<compile_context>
chip_gen: v7x
topology: tpu7x:2x2x1
jax: 0.10.0
libtpu: 0.0.40
codegen_flags: <defaults>
</compile_context>

<pallas_src>
import math

import jax
import jax.numpy as jnp
from jax import lax
from jax.experimental import pallas as pl
from jax.experimental.pallas import tpu as pltpu


# --------------------------------------------------------------------------
# Fused Conv1d + bias + BatchNorm1d(eval) + ReLU (+ MaxPool1d(2,2)) (+ proj)
# --------------------------------------------------------------------------

def _make_conv_kernel(K, stride, Lp, Cin, Cout, pool, proj):
    Lout = (Lp - K) // stride + 1           # conv output length (pre-pool)
    Lfin = Lout // 2 if pool else Lout      # post-pool length
    ps = stride * (2 if pool else 1)        # per-phase input stride

    def conv_phase(x_ref, w_ref, off):
        """Conv pre-activations at output positions off, off+ps, ... (Lfin rows)."""
        acc = jnp.zeros((Lfin, Cout), jnp.float32)
        # K is tiny (3/5/7) and static -> unrolled taps; tap dots pipeline on the
        # MXU.  (Kept instead of an im2col lane-concat to avoid unaligned
        # minor-dim concatenation in Mosaic.)
        for k in range(K):
            sl = pl.ds(off + k, Lfin, ps) if ps > 1 else pl.ds(off + k, Lfin)
            xk = x_ref[sl, :]                              # (Lfin, Cin) strided tap
            if Cin == 1:
                acc = acc + xk * w_ref[k]                  # outer-product tap
            else:
                acc = acc + jnp.dot(xk, w_ref[k],
                                    preferred_element_type=jnp.float32)
        return acc

    def kernel(x_ref, w_ref, b_ref, scale_ref, shift_ref, *rest):
        o_ref = rest[-1]

        def finish(a):                       # conv bias + BN(eval) + ReLU
            a = (a + b_ref[...]) * scale_ref[...] + shift_ref[...]
            return jnp.maximum(a, 0.0)

        y = finish(conv_phase(x_ref, w_ref, 0))
        if pool:
            # MaxPool(2,2) in-register: second phase (odd conv positions) + max.
            y = jnp.maximum(y, finish(conv_phase(x_ref, w_ref, stride)))
        if proj:
            wp_ref, bp_ref = rest[0], rest[1]              # fused input_proj
            y = (jnp.dot(y, wp_ref[...], preferred_element_type=jnp.float32)
                 + bp_ref[...])
        o_ref[...] = y

    return kernel, Lout, Lfin


def conv_block(x_pad, w, b, scale, shift, *, K, stride, pool,
               proj_w=None, proj_b=None):
    """x_pad: (B, Lp, Cin) already zero-padded along length.  w: (K, Cin, Cout)."""
    B, Lp, Cin = x_pad.shape
    Cout = w.shape[-1]
    proj = proj_w is not None
    kernel, Lout, Lfin = _make_conv_kernel(K, stride, Lp, Cin, Cout, pool, proj)
    Dout = proj_w.shape[-1] if proj else Cout

    in_specs = [
        pl.BlockSpec((None, Lp, Cin), lambda bi: (bi, 0, 0)),
        pl.BlockSpec((K, Cin, Cout), lambda bi: (0, 0, 0)),
        pl.BlockSpec((1, Cout), lambda bi: (0, 0)),
        pl.BlockSpec((1, Cout), lambda bi: (0, 0)),
        pl.BlockSpec((1, Cout), lambda bi: (0, 0)),
    ]
    args = [x_pad, w, b, scale, shift]
    if proj:
        in_specs += [pl.BlockSpec(proj_w.shape, lambda bi: (0, 0)),
                     pl.BlockSpec((1, Dout), lambda bi: (0, 0))]
        args += [proj_w, proj_b]

    flops = 2 * B * Lout * K * Cin * Cout
    if proj:
        flops += 2 * B * Lfin * Cout * Dout
    bytes_acc = 4 * (x_pad.size + w.size + 3 * Cout + B * Lfin * Dout
                     + (proj_w.size + Dout if proj else 0))

    return pl.pallas_call(
        kernel,
        out_shape=jax.ShapeDtypeStruct((B, Lfin, Dout), jnp.float32),
        grid=(B,),
        in_specs=in_specs,
        out_specs=pl.BlockSpec((None, Lfin, Dout), lambda bi: (bi, 0, 0)),
        compiler_params=pltpu.CompilerParams(dimension_semantics=("parallel",)),
        cost_estimate=pl.CostEstimate(flops=int(flops), transcendentals=0,
                                      bytes_accessed=int(bytes_acc)),
    )(*args)


# --------------------------------------------------------------------------
# Bidirectional LSTM layer: both directions in one kernel (grid over direction)
# --------------------------------------------------------------------------

def _sigmoid(z):
    # exp + approx reciprocal -> both on the EUP slot, off the serial VPU path.
    return pl.reciprocal(1.0 + jnp.exp(-z), approx=True)


def _make_bilstm_kernel(T, Bp, Din, H):
    def kernel(x_ref, wih_ref, whh_ref, b_ref, hseq_ref, hlast_ref, xproj_ref):
        d = pl.program_id(0)                 # 0 = forward, 1 = backward direction

        # Hoisted input projection for ALL timesteps: one big MXU matmul
        # (T*Bp, Din) x (Din, 4H) instead of T tiny ones on the serial path.
        xproj_ref[...] = (
            jnp.dot(x_ref[...], wih_ref[...], preferred_element_type=jnp.float32)
            + b_ref[...])

        def step(s, carry):
            h, c = carry
            t = jnp.where(d == 0, s, T - 1 - s)          # in-kernel time reversal
            row = pl.multiple_of(t * Bp, Bp)
            # Fused gates: single (Bp,H)x(H,4H) matmul; gate order (i, f, g, o).
            gates = xproj_ref[pl.ds(row, Bp), :] + jnp.dot(
                h, whh_ref[...], preferred_element_type=jnp.float32)
            i_g = _sigmoid(gates[:, 0:H])
            f_g = _sigmoid(gates[:, H:2 * H])
            g_g = jnp.tanh(gates[:, 2 * H:3 * H])
            o_g = _sigmoid(gates[:, 3 * H:4 * H])
            c = f_g * c + i_g * g_g
            h = o_g * jnp.tanh(c)
            hseq_ref[t] = h
            return (h, c)

        carry = (jnp.zeros((Bp, H), jnp.float32), jnp.zeros((Bp, H), jnp.float32))
        if T <= 32:
            for s in range(T):               # fully unrolled short recurrence
                carry = step(s, carry)
        else:
            carry = lax.fori_loop(0, T, step, carry, unroll=4)
        hlast_ref[...] = carry[0]

    return kernel


def bilstm_layer(x_flat, wih, whh, b, *, T, Bp):
    """x_flat: (T*Bp, Din) time-major rows (row = t*Bp + b).
    wih: (2, Din, 4H)   whh: (2, H, 4H)   b: (2, 1, 4H)  (b_ih + b_hh)
    Returns hseq (T, Bp, 2H) and hlast (Bp, 2H) with [fwd | bwd] on the last axis.
    """
    TB, Din = x_flat.shape
    H = whh.shape[-2]
    G = 4 * H
    kernel = _make_bilstm_kernel(T, Bp, Din, H)

    flops = 2 * 2 * TB * G * (Din + H)
    trans = 2 * 5 * TB * H
    bytes_acc = 4 * (x_flat.size + wih.size + whh.size + b.size
                     + T * Bp * 2 * H + Bp * 2 * H)

    return pl.pallas_call(
        kernel,
        out_shape=(jax.ShapeDtypeStruct((T, Bp, 2 * H), jnp.float32),
                   jax.ShapeDtypeStruct((Bp, 2 * H), jnp.float32)),
        grid=(2,),                            # direction axis; parallel -> 2 TCs on v7x
        in_specs=[
            pl.BlockSpec((TB, Din), lambda d: (0, 0)),
            pl.BlockSpec((None, Din, G), lambda d: (d, 0, 0)),
            pl.BlockSpec((None, H, G), lambda d: (d, 0, 0)),
            pl.BlockSpec((None, 1, G), lambda d: (d, 0, 0)),
        ],
        out_specs=(pl.BlockSpec((T, Bp, H), lambda d: (0, 0, d)),
                   pl.BlockSpec((Bp, H), lambda d: (0, d))),
        scratch_shapes=[pltpu.VMEM((TB, G), jnp.float32)],
        compiler_params=pltpu.CompilerParams(dimension_semantics=("parallel",)),
        cost_estimate=pl.CostEstimate(flops=int(flops), transcendentals=int(trans),
                                      bytes_accessed=int(bytes_acc)),
    )(x_flat, wih, whh, b)


# --------------------------------------------------------------------------
# Final fc Linear
# --------------------------------------------------------------------------

def linear_kernel(x_ref, w_ref, b_ref, o_ref):
    o_ref[...] = (jnp.dot(x_ref[...], w_ref[...],
                          preferred_element_type=jnp.float32) + b_ref[...])


def linear(x, w, b):
    M, Din = x.shape
    Dout = w.shape[-1]
    return pl.pallas_call(
        linear_kernel,
        out_shape=jax.ShapeDtypeStruct((M, Dout), jnp.float32),
        grid=(1,),
        in_specs=[
            pl.BlockSpec((M, Din), lambda i: (0, 0)),
            pl.BlockSpec((Din, Dout), lambda i: (0, 0)),
            pl.BlockSpec((1, Dout), lambda i: (0, 0)),
        ],
        out_specs=pl.BlockSpec((M, Dout), lambda i: (0, 0)),
    )(x, w, b)


# --------------------------------------------------------------------------
# Parameters (deterministic synthetic init; shapes follow the nn.Module)
# --------------------------------------------------------------------------

def init_params(key, d_model=128, num_classes=5):
    keys = iter(jax.random.split(key, 64))

    def u(shape, fan_in):
        bound = 1.0 / math.sqrt(fan_in)
        return jax.random.uniform(next(keys), shape, jnp.float32, -bound, bound)

    def n(shape, scale):
        return scale * jax.random.normal(next(keys), shape, jnp.float32)

    H = d_model
    p = {
        # conv weights stored (K, Cin, Cout)  == torch (Cout, Cin, K) transposed
        "w1": u((7, 1, 32), 1 * 7),      "cb1": u((1, 32), 1 * 7),
        "g1": 1.0 + n((1, 32), 0.1),     "be1": n((1, 32), 0.1),
        "rm1": n((1, 32), 0.05),         "rv1": 1.0 + jnp.abs(n((1, 32), 0.05)),
        "w2": u((5, 32, 64), 32 * 5),    "cb2": u((1, 64), 32 * 5),
        "g2": 1.0 + n((1, 64), 0.1),     "be2": n((1, 64), 0.1),
        "rm2": n((1, 64), 0.05),         "rv2": 1.0 + jnp.abs(n((1, 64), 0.05)),
        "w3": u((3, 64, 128), 64 * 3),   "cb3": u((1, 128), 64 * 3),
        "g3": 1.0 + n((1, 128), 0.1),    "be3": n((1, 128), 0.1),
        "rm3": n((1, 128), 0.05),        "rv3": 1.0 + jnp.abs(n((1, 128), 0.05)),
        # input_proj: Linear(128, d_model), stored (in, out)
        "wp": u((128, d_model), 128),    "bp": u((1, d_model), 128),
        # fc: Linear(2*d_model, num_classes)
        "wf": u((2 * d_model, num_classes), 2 * d_model),
        "bf": u((1, num_classes), 2 * d_model),
    }
    # LSTM: 2 layers x 2 directions, gates fused along the last axis in PyTorch
    # order (i, f, g, o): W_ih (Din, 4H), W_hh (H, 4H), bias = b_ih + b_hh.
    for layer, din in ((0, d_model), (1, 2 * H)):
        wih, whh, bb = [], [], []
        for _ in range(2):                          # forward, backward
            wih.append(u((din, 4 * H), H))
            whh.append(u((H, 4 * H), H))
            bb.append(u((1, 4 * H), H) + u((1, 4 * H), H))
        p[f"wih{layer}"] = jnp.stack(wih)
        p[f"whh{layer}"] = jnp.stack(whh)
        p[f"b{layer}"] = jnp.stack(bb)
    return p


# --------------------------------------------------------------------------
# Forward pass (matches CNNSleepLSTMModel.forward, inference/eval mode)
# --------------------------------------------------------------------------

@jax.jit
def forward(x, p):
    B = x.shape[0]
    eps = 1e-5

    def bn_fold(gamma, beta, mean, var):      # general eval-mode BN fold
        s = gamma / jnp.sqrt(var + eps)
        return s, beta - mean * s

    s1, t1 = bn_fold(p["g1"], p["be1"], p["rm1"], p["rv1"])
    s2, t2 = bn_fold(p["g2"], p["be2"], p["rm2"], p["rv2"])
    s3, t3 = bn_fold(p["g3"], p["be3"], p["rm3"], p["rv3"])

    # ---- CNN stack (channels-last), fused conv+bn+relu(+in-register pool) ----
    h = conv_block(jnp.pad(x, ((0, 0), (3, 3), (0, 0))), p["w1"], p["cb1"], s1, t1,
                   K=7, stride=2, pool=True)                      # (B, L/4, 32)
    h = conv_block(jnp.pad(h, ((0, 0), (2, 2), (0, 0))), p["w2"], p["cb2"], s2, t2,
                   K=5, stride=2, pool=True)                      # (B, L/16, 64)
    # third conv with the input_proj Linear fused in
    h = conv_block(jnp.pad(h, ((0, 0), (1, 1), (0, 0))), p["w3"], p["cb3"], s3, t3,
                   K=3, stride=1, pool=False,
                   proj_w=p["wp"], proj_b=p["bp"])                # (B, T, d_model)

    _, T, d_model = h.shape
    H = d_model
    Bp = ((B + 7) // 8) * 8          # pad batch rows to a sublane multiple

    # (B,T,D) -> time-major flat (T*Bp, D); padded rows are dead and dropped later.
    seq = jnp.transpose(h, (1, 0, 2))
    seq = jnp.pad(seq, ((0, 0), (0, Bp - B), (0, 0)))
    x0 = seq.reshape(T * Bp, d_model)

    # ---- bidirectional 2-layer LSTM (one fused pallas_call per layer) ----
    hs0, _ = bilstm_layer(x0, p["wih0"], p["whh0"], p["b0"], T=T, Bp=Bp)  # (T,Bp,2H)
    # TODO(synk): nn.LSTM inter-layer dropout is train-only; inference path omits it.
    _, h_last = bilstm_layer(hs0.reshape(T * Bp, 2 * H),
                             p["wih1"], p["whh1"], p["b1"], T=T, Bp=Bp)   # (Bp, 2H)

    # fc on cat(h_n[-2], h_n[-1])
    return linear(h_last, p["wf"], p["bf"])[:B]                   # (B, num_classes)


# --------------------------------------------------------------------------

if __name__ == "__main__":
    key = jax.random.PRNGKey(0)
    k_x, k_p = jax.random.split(key)

    B, L = 2, 128              # L=128 -> T=8 after the CNN stack
    d_model, num_classes = 128, 5

    x = jax.random.normal(k_x, (B, L, 1), dtype=jnp.float32)
    params = init_params(k_p, d_model=d_model, num_classes=num_classes)

    logits = forward(x, params)
    jax.block_until_ready(logits)

    assert logits.shape == (B, num_classes), logits.shape
    assert bool(jnp.all(jnp.isfinite(logits)))
    print("KERNEL_OK")
</pallas_src>

<mosaic_0001>
module attributes {stable_mosaic.version = 11 : i64} {
  func.func @kernel(%arg0: i32, %arg1: memref<1x134x1xf32, #tpu.memory_space<vmem>>, %arg2: memref<7x1x32xf32, #tpu.memory_space<vmem>>, %arg3: memref<1x32xf32, #tpu.memory_space<vmem>>, %arg4: memref<1x32xf32, #tpu.memory_space<vmem>>, %arg5: memref<1x32xf32, #tpu.memory_space<vmem>>, %arg6: memref<1x32x32xf32, #tpu.memory_space<vmem>>) attributes {dimension_semantics = [#tpu.dimension_semantics<parallel>], iteration_bounds = array<i64: 2>, scalar_prefetch = 0 : i64, scratch_operands = 0 : i64, tpu.core_type = #tpu.core_type<tc>, window_params = [{transform_indices = @transform_0, window_bounds = array<i64: 1, 134, 1>}, {pipeline_mode = #tpu.pipeline_mode<synchronous>, transform_indices = @transform_1, window_bounds = array<i64: 7, 1, 32>}, {pipeline_mode = #tpu.pipeline_mode<synchronous>, transform_indices = @transform_2, window_bounds = array<i64: 1, 32>}, {pipeline_mode = #tpu.pipeline_mode<synchronous>, transform_indices = @transform_3, window_bounds = array<i64: 1, 32>}, {pipeline_mode = #tpu.pipeline_mode<synchronous>, transform_indices = @transform_4, window_bounds = array<i64: 1, 32>}, {transform_indices = @transform_5, window_bounds = array<i64: 1, 32, 32>}]} {
    %cst = arith.constant 0.000000e+00 : f32
    %0 = vector.broadcast %cst : f32 to vector<32x32xf32>
    %c0 = arith.constant 0 : index
    %c0_0 = arith.constant 0 : index
    %c0_1 = arith.constant 0 : index
    %1 = tpu.strided_load %arg1[%c0, %c0_0, %c0_1] {strides = array<i32: 1, 4, 1>} : memref<1x134x1xf32, #tpu.memory_space<vmem>>, vector<1x32x1xf32>
    %2 = vector.shape_cast %1 : vector<1x32x1xf32> to vector<32x1xf32>
    %c0_2 = arith.constant 0 : index
    %c0_3 = arith.constant 0 : index
    %c0_4 = arith.constant 0 : index
    %3 = vector.load %arg2[%c0_2, %c0_3, %c0_4] : memref<7x1x32xf32, #tpu.memory_space<vmem>>, vector<1x1x32xf32>
    %4 = vector.shape_cast %3 : vector<1x1x32xf32> to vector<1x32xf32>
    %5 = vector.broadcast %2 : vector<32x1xf32> to vector<32x32xf32>
    %6 = vector.broadcast %4 : vector<1x32xf32> to vector<32x32xf32>
    %7 = arith.mulf %5, %6 : vector<32x32xf32>
    %8 = arith.addf %0, %7 : vector<32x32xf32>
    %c0_5 = arith.constant 0 : index
    %c1 = arith.constant 1 : index
    %c0_6 = arith.constant 0 : index
    %9 = tpu.strided_load %arg1[%c0_5, %c1, %c0_6] {strides = array<i32: 1, 4, 1>} : memref<1x134x1xf32, #tpu.memory_space<vmem>>, vector<1x32x1xf32>
    %10 = vector.shape_cast %9 : vector<1x32x1xf32> to vector<32x1xf32>
    %c1_7 = arith.constant 1 : index
    %c0_8 = arith.constant 0 : index
    %c0_9 = arith.constant 0 : index
    %11 = vector.load %arg2[%c1_7, %c0_8, %c0_9] : memref<7x1x32xf32, #tpu.memory_space<vmem>>, vector<1x1x32xf32>
    %12 = vector.shape_cast %11 : vector<1x1x32xf32> to vector<1x32xf32>
    %13 = vector.broadcast %10 : vector<32x1xf32> to vector<32x32xf32>
    %14 = vector.broadcast %12 : vector<1x32xf32> to vector<32x32xf32>
    %15 = arith.mulf %13, %14 : vector<32x32xf32>
    %16 = arith.addf %8, %15 : vector<32x32xf32>
    %c0_10 = arith.constant 0 : index
    %c2 = arith.constant 2 : index
    %c0_11 = arith.constant 0 : index
    %17 = tpu.strided_load %arg1[%c0_10, %c2, %c0_11] {strides = array<i32: 1, 4, 1>} : memref<1x134x1xf32, #tpu.memory_space<vmem>>, vector<1x32x1xf32>
    %18 = vector.shape_cast %17 : vector<1x32x1xf32> to vector<32x1xf32>
    %c2_12 = arith.constant 2 : index
    %c0_13 = arith.constant 0 : index
    %c0_14 = arith.constant 0 : index
    %19 = vector.load %arg2[%c2_12, %c0_13, %c0_14] : memref<7x1x32xf32, #tpu.memory_space<vmem>>, vector<1x1x32xf32>
    %20 = vector.shape_cast %19 : vector<1x1x32xf32> to vector<1x32xf32>
    %21 = vector.broadcast %18 : vector<32x1xf32> to vector<32x32xf32>
    %22 = vector.broadcast %20 : vector<1x32xf32> to vector<32x32xf32>
    %23 = arith.mulf %21, %22 : vector<32x32xf32>
    %24 = arith.addf %16, %23 : vector<32x32xf32>
    %c0_15 = arith.constant 0 : index
    %c3 = arith.constant 3 : index
    %c0_16 = arith.constant 0 : index
    %25 = tpu.strided_load %arg1[%c0_15, %c3, %c0_16] {strides = array<i32: 1, 4, 1>} : memref<1x134x1xf32, #tpu.memory_space<vmem>>, vector<1x32x1xf32>
    %26 = vector.shape_cast %25 : vector<1x32x1xf32> to vector<32x1xf32>
    %c3_17 = arith.constant 3 : index
    %c0_18 = arith.constant 0 : index
    %c0_19 = arith.constant 0 : index
    %27 = vector.load %arg2[%c3_17, %c0_18, %c0_19] : memref<7x1x32xf32, #tpu.memory_space<vmem>>, vector<1x1x32xf32>
    %28 = vector.shape_cast %27 : vector<1x1x32xf32> to vector<1x32xf32>
    %29 = vector.broadcast %26 : vector<32x1xf32> to vector<32x32xf32>
    %30 = vector.broadcast %28 : vector<1x32xf32> to vector<32x32xf32>
    %31 = arith.mulf %29, %30 : vector<32x32xf32>
    %32 = arith.addf %24, %31 : vector<32x32xf32>
    %c0_20 = arith.constant 0 : index
    %c4 = arith.constant 4 : index
    %c0_21 = arith.constant 0 : index
    %33 = tpu.strided_load %arg1[%c0_20, %c4, %c0_21] {strides = array<i32: 1, 4, 1>} : memref<1x134x1xf32, #tpu.memory_space<vmem>>, vector<1x32x1xf32>
    %34 = vector.shape_cast %33 : vector<1x32x1xf32> to vector<32x1xf32>
    %c4_22 = arith.constant 4 : index
    %c0_23 = arith.constant 0 : index
    %c0_24 = arith.constant 0 : index
    %35 = vector.load %arg2[%c4_22, %c0_23, %c0_24] : memref<7x1x32xf32, #tpu.memory_space<vmem>>, vector<1x1x32xf32>
    %36 = vector.shape_cast %35 : vector<1x1x32xf32> to vector<1x32xf32>
    %37 = vector.broadcast %34 : vector<32x1xf32> to vector<32x32xf32>
    %38 = vector.broadcast %36 : vector<1x32xf32> to vector<32x32xf32>
    %39 = arith.mulf %37, %38 : vector<32x32xf32>
    %40 = arith.addf %32, %39 : vector<32x32xf32>
    %c0_25 = arith.constant 0 : index
    %c5 = arith.constant 5 : index
    %c0_26 = arith.constant 0 : index
    %41 = tpu.strided_load %arg1[%c0_25, %c5, %c0_26] {strides = array<i32: 1, 4, 1>} : memref<1x134x1xf32, #tpu.memory_space<vmem>>, vector<1x32x1xf32>
    %42 = vector.shape_cast %41 : vector<1x32x1xf32> to vector<32x1xf32>
    %c5_27 = arith.constant 5 : index
    %c0_28 = arith.constant 0 : index
    %c0_29 = arith.constant 0 : index
    %43 = vector.load %arg2[%c5_27, %c0_28, %c0_29] : memref<7x1x32xf32, #tpu.memory_space<vmem>>, vector<1x1x32xf32>
    %44 = vector.shape_cast %43 : vector<1x1x32xf32> to vector<1x32xf32>
    %45 = vector.broadcast %42 : vector<32x1xf32> to vector<32x32xf32>
    %46 = vector.broadcast %44 : vector<1x32xf32> to vector<32x32xf32>
    %47 = arith.mulf %45, %46 : vector<32x32xf32>
    %48 = arith.addf %40, %47 : vector<32x32xf32>
    %c0_30 = arith.constant 0 : index
    %c6 = arith.constant 6 : index
    %c0_31 = arith.constant 0 : index
    %49 = tpu.strided_load %arg1[%c0_30, %c6, %c0_31] {strides = array<i32: 1, 4, 1>} : memref<1x134x1xf32, #tpu.memory_space<vmem>>, vector<1x32x1xf32>
    %50 = vector.shape_cast %49 : vector<1x32x1xf32> to vector<32x1xf32>
    %c6_32 = arith.constant 6 : index
    %c0_33 = arith.constant 0 : index
    %c0_34 = arith.constant 0 : index
    %51 = vector.load %arg2[%c6_32, %c0_33, %c0_34] : memref<7x1x32xf32, #tpu.memory_space<vmem>>, vector<1x1x32xf32>
    %52 = vector.shape_cast %51 : vector<1x1x32xf32> to vector<1x32xf32>
    %53 = vector.broadcast %50 : vector<32x1xf32> to vector<32x32xf32>
    %54 = vector.broadcast %52 : vector<1x32xf32> to vector<32x32xf32>
    %55 = arith.mulf %53, %54 : vector<32x32xf32>
    %56 = arith.addf %48, %55 : vector<32x32xf32>
    %c0_35 = arith.constant 0 : index
    %c0_36 = arith.constant 0 : index
    %57 = vector.load %arg3[%c0_35, %c0_36] : memref<1x32xf32, #tpu.memory_space<vmem>>, vector<1x32xf32>
    %58 = vector.broadcast %57 : vector<1x32xf32> to vector<32x32xf32>
    %59 = arith.addf %56, %58 : vector<32x32xf32>
    %c0_37 = arith.constant 0 : index
    %c0_38 = arith.constant 0 : index
    %60 = vector.load %arg4[%c0_37, %c0_38] : memref<1x32xf32, #tpu.memory_space<vmem>>, vector<1x32xf32>
    %61 = vector.broadcast %60 : vector<1x32xf32> to vector<32x32xf32>
    %62 = arith.mulf %59, %61 : vector<32x32xf32>
    %c0_39 = arith.constant 0 : index
    %c0_40 = arith.constant 0 : index
    %63 = vector.load %arg5[%c0_39, %c0_40] : memref<1x32xf32, #tpu.memory_space<vmem>>, vector<1x32xf32>
    %64 = vector.broadcast %63 : vector<1x32xf32> to vector<32x32xf32>
    %65 = arith.addf %62, %64 : vector<32x32xf32>
    %cst_41 = arith.constant 0.000000e+00 : f32
    %66 = vector.broadcast %cst_41 : f32 to vector<32x32xf32>
    %67 = arith.maximumf %65, %66 : vector<32x32xf32>
    %cst_42 = arith.constant 0.000000e+00 : f32
    %68 = vector.broadcast %cst_42 : f32 to vector<32x32xf32>
    %c0_43 = arith.constant 0 : index
    %c2_44 = arith.constant 2 : index
    %c0_45 = arith.constant 0 : index
    %69 = tpu.strided_load %arg1[%c0_43, %c2_44, %c0_45] {strides = array<i32: 1, 4, 1>} : memref<1x134x1xf32, #tpu.memory_space<vmem>>, vector<1x32x1xf32>
    %70 = vector.shape_cast %69 : vector<1x32x1xf32> to vector<32x1xf32>
    %c0_46 = arith.constant 0 : index
    %c0_47 = arith.constant 0 : index
    %c0_48 = arith.constant 0 : index
    %71 = vector.load %arg2[%c0_46, %c0_47, %c0_48] : memref<7x1x32xf32, #tpu.memory_space<vmem>>, vector<1x1x32xf32>
    %72 = vector.shape_cast %71 : vector<1x1x32xf32> to vector<1x32xf32>
    %73 = vector.broadcast %70 : vector<32x1xf32> to vector<32x32xf32>
    %74 = vector.broadcast %72 : vector<1x32xf32> to vector<32x32xf32>
    %75 = arith.mulf %73, %74 : vector<32x32xf32>
    %76 = arith.addf %68, %75 : vector<32x32xf32>
    %c0_49 = arith.constant 0 : index
    %c3_50 = arith.constant 3 : index
    %c0_51 = arith.constant 0 : index
    %77 = tpu.strided_load %arg1[%c0_49, %c3_50, %c0_51] {strides = array<i32: 1, 4, 1>} : memref<1x134x1xf32, #tpu.memory_space<vmem>>, vector<1x32x1xf32>
    %78 = vector.shape_cast %77 : vector<1x32x1xf32> to vector<32x1xf32>
    %c1_52 = arith.constant 1 : index
    %c0_53 = arith.constant 0 : index
    %c0_54 = arith.constant 0 : index
    %79 = vector.load %arg2[%c1_52, %c0_53, %c0_54] : memref<7x1x32xf32, #tpu.memory_space<vmem>>, vector<1x1x32xf32>
    %80 = vector.shape_cast %79 : vector<1x1x32xf32> to vector<1x32xf32>
    %81 = vector.broadcast %78 : vector<32x1xf32> to vector<32x32xf32>
    %82 = vector.broadcast %80 : vector<1x32xf32> to vector<32x32xf32>
    %83 = arith.mulf %81, %82 : vector<32x32xf32>
    %84 = arith.addf %76, %83 : vector<32x32xf32>
    %c0_55 = arith.constant 0 : index
    %c4_56 = arith.constant 4 : index
    %c0_57 = arith.constant 0 : index
    %85 = tpu.strided_load %arg1[%c0_55, %c4_56, %c0_57] {strides = array<i32: 1, 4, 1>} : memref<1x134x1xf32, #tpu.memory_space<vmem>>, vector<1x32x1xf32>
    %86 = vector.shape_cast %85 : vector<1x32x1xf32> to vector<32x1xf32>
    %c2_58 = arith.constant 2 : index
    %c0_59 = arith.constant 0 : index
    %c0_60 = arith.constant 0 : index
    %87 = vector.load %arg2[%c2_58, %c0_59, %c0_60] : memref<7x1x32xf32, #tpu.memory_space<vmem>>, vector<1x1x32xf32>
    %88 = vector.shape_cast %87 : vector<1x1x32xf32> to vector<1x32xf32>
    %89 = vector.broadcast %86 : vector<32x1xf32> to vector<32x32xf32>
    %90 = vector.broadcast %88 : vector<1x32xf32> to vector<32x32xf32>
    %91 = arith.mulf %89, %90 : vector<32x32xf32>
    %92 = arith.addf %84, %91 : vector<32x32xf32>
    %c0_61 = arith.constant 0 : index
    %c5_62 = arith.constant 5 : index
    %c0_63 = arith.constant 0 : index
    %93 = tpu.strided_load %arg1[%c0_61, %c5_62, %c0_63] {strides = array<i32: 1, 4, 1>} : memref<1x134x1xf32, #tpu.memory_space<vmem>>, vector<1x32x1xf32>
    %94 = vector.shape_cast %93 : vector<1x32x1xf32> to vector<32x1xf32>
    %c3_64 = arith.constant 3 : index
    %c0_65 = arith.constant 0 : index
    %c0_66 = arith.constant 0 : index
    %95 = vector.load %arg2[%c3_64, %c0_65, %c0_66] : memref<7x1x32xf32, #tpu.memory_space<vmem>>, vector<1x1x32xf32>
    %96 = vector.shape_cast %95 : vector<1x1x32xf32> to vector<1x32xf32>
    %97 = vector.broadcast %94 : vector<32x1xf32> to vector<32x32xf32>
    %98 = vector.broadcast %96 : vector<1x32xf32> to vector<32x32xf32>
    %99 = arith.mulf %97, %98 : vector<32x32xf32>
    %100 = arith.addf %92, %99 : vector<32x32xf32>
    %c0_67 = arith.constant 0 : index
    %c6_68 = arith.constant 6 : index
    %c0_69 = arith.constant 0 : index
    %101 = tpu.strided_load %arg1[%c0_67, %c6_68, %c0_69] {strides = array<i32: 1, 4, 1>} : memref<1x134x1xf32, #tpu.memory_space<vmem>>, vector<1x32x1xf32>
    %102 = vector.shape_cast %101 : vector<1x32x1xf32> to vector<32x1xf32>
    %c4_70 = arith.constant 4 : index
    %c0_71 = arith.constant 0 : index
    %c0_72 = arith.constant 0 : index
    %103 = vector.load %arg2[%c4_70, %c0_71, %c0_72] : memref<7x1x32xf32, #tpu.memory_space<vmem>>, vector<1x1x32xf32>
    %104 = vector.shape_cast %103 : vector<1x1x32xf32> to vector<1x32xf32>
    %105 = vector.broadcast %102 : vector<32x1xf32> to vector<32x32xf32>
    %106 = vector.broadcast %104 : vector<1x32xf32> to vector<32x32xf32>
    %107 = arith.mulf %105, %106 : vector<32x32xf32>
    %108 = arith.addf %100, %107 : vector<32x32xf32>
    %c0_73 = arith.constant 0 : index
    %c7 = arith.constant 7 : index
    %c0_74 = arith.constant 0 : index
    %109 = tpu.strided_load %arg1[%c0_73, %c7, %c0_74] {strides = array<i32: 1, 4, 1>} : memref<1x134x1xf32, #tpu.memory_space<vmem>>, vector<1x32x1xf32>
    %110 = vector.shape_cast %109 : vector<1x32x1xf32> to vector<32x1xf32>
    %c5_75 = arith.constant 5 : index
    %c0_76 = arith.constant 0 : index
    %c0_77 = arith.constant 0 : index
    %111 = vector.load %arg2[%c5_75, %c0_76, %c0_77] : memref<7x1x32xf32, #tpu.memory_space<vmem>>, vector<1x1x32xf32>
    %112 = vector.shape_cast %111 : vector<1x1x32xf32> to vector<1x32xf32>
    %113 = vector.broadcast %110 : vector<32x1xf32> to vector<32x32xf32>
    %114 = vector.broadcast %112 : vector<1x32xf32> to vector<32x32xf32>
    %115 = arith.mulf %113, %114 : vector<32x32xf32>
    %116 = arith.addf %108, %115 : vector<32x32xf32>
    %c0_78 = arith.constant 0 : index
    %c8 = arith.constant 8 : index
    %c0_79 = arith.constant 0 : index
    %117 = tpu.strided_load %arg1[%c0_78, %c8, %c0_79] {strides = array<i32: 1, 4, 1>} : memref<1x134x1xf32, #tpu.memory_space<vmem>>, vector<1x32x1xf32>
    %118 = vector.shape_cast %117 : vector<1x32x1xf32> to vector<32x1xf32>
    %c6_80 = arith.constant 6 : index
    %c0_81 = arith.constant 0 : index
    %c0_82 = arith.constant 0 : index
    %119 = vector.load %arg2[%c6_80, %c0_81, %c0_82] : memref<7x1x32xf32, #tpu.memory_space<vmem>>, vector<1x1x32xf32>
    %120 = vector.shape_cast %119 : vector<1x1x32xf32> to vector<1x32xf32>
    %121 = vector.broadcast %118 : vector<32x1xf32> to vector<32x32xf32>
    %122 = vector.broadcast %120 : vector<1x32xf32> to vector<32x32xf32>
    %123 = arith.mulf %121, %122 : vector<32x32xf32>
    %124 = arith.addf %116, %123 : vector<32x32xf32>
    %c0_83 = arith.constant 0 : index
    %c0_84 = arith.constant 0 : index
    %125 = vector.load %arg3[%c0_83, %c0_84] : memref<1x32xf32, #tpu.memory_space<vmem>>, vector<1x32xf32>
    %126 = vector.broadcast %125 : vector<1x32xf32> to vector<32x32xf32>
    %127 = arith.addf %124, %126 : vector<32x32xf32>
    %c0_85 = arith.constant 0 : index
    %c0_86 = arith.constant 0 : index
    %128 = vector.load %arg4[%c0_85, %c0_86] : memref<1x32xf32, #tpu.memory_space<vmem>>, vector<1x32xf32>
    %129 = vector.broadcast %128 : vector<1x32xf32> to vector<32x32xf32>
    %130 = arith.mulf %127, %129 : vector<32x32xf32>
    %c0_87 = arith.constant 0 : index
    %c0_88 = arith.constant 0 : index
    %131 = vector.load %arg5[%c0_87, %c0_88] : memref<1x32xf32, #tpu.memory_space<vmem>>, vector<1x32xf32>
    %132 = vector.broadcast %131 : vector<1x32xf32> to vector<32x32xf32>
    %133 = arith.addf %130, %132 : vector<32x32xf32>
    %cst_89 = arith.constant 0.000000e+00 : f32
    %134 = vector.broadcast %cst_89 : f32 to vector<32x32xf32>
    %135 = arith.maximumf %133, %134 : vector<32x32xf32>
    %136 = arith.maximumf %67, %135 : vector<32x32xf32>
    %c0_90 = arith.constant 0 : index
    %c0_91 = arith.constant 0 : index
    %c0_92 = arith.constant 0 : index
    %137 = vector.load %arg6[%c0_90, %c0_91, %c0_92] : memref<1x32x32xf32, #tpu.memory_space<vmem>>, vector<1x32x32xf32>
    %138 = vector.shape_cast %137 : vector<1x32x32xf32> to vector<32x32xf32>
    %139 = vector.shape_cast %136 : vector<32x32xf32> to vector<1x32x32xf32>
    tpu.vector_store %arg6[%c0_90, %c0_91, %c0_92], %139 {strides = array<i32>} : memref<1x32x32xf32, #tpu.memory_space<vmem>>, vector<1x32x32xf32>,
    return
  }
  func.func @transform_0(%arg0: i32) -> (i32, i32, i32) {
    %c0_i32 = arith.constant 0 : i32
    %c0_i32_0 = arith.constant 0 : i32
    %c0_i32_1 = arith.constant 0 : i32
    return %arg0, %c0_i32, %c0_i32_0 : i32, i32, i32
  }
  func.func @transform_1(%arg0: i32) -> (i32, i32, i32) {
    %c0_i32 = arith.constant 0 : i32
    %c0_i32_0 = arith.constant 0 : i32
    %c0_i32_1 = arith.constant 0 : i32
    %c0_i32_2 = arith.constant 0 : i32
    return %c0_i32, %c0_i32_0, %c0_i32_1 : i32, i32, i32
  }
  func.func @transform_2(%arg0: i32) -> (i32, i32) {
    %c0_i32 = arith.constant 0 : i32
    %c0_i32_0 = arith.constant 0 : i32
    %c0_i32_1 = arith.constant 0 : i32
    return %c0_i32, %c0_i32_0 : i32, i32
  }
  func.func @transform_3(%arg0: i32) -> (i32, i32) {
    %c0_i32 = arith.constant 0 : i32
    %c0_i32_0 = arith.constant 0 : i32
    %c0_i32_1 = arith.constant 0 : i32
    return %c0_i32, %c0_i32_0 : i32, i32
  }
  func.func @transform_4(%arg0: i32) -> (i32, i32) {
    %c0_i32 = arith.constant 0 : i32
    %c0_i32_0 = arith.constant 0 : i32
    %c0_i32_1 = arith.constant 0 : i32
    return %c0_i32, %c0_i32_0 : i32, i32
  }
  func.func @transform_5(%arg0: i32) -> (i32, i32, i32) {
    %c0_i32 = arith.constant 0 : i32
    %c0_i32_0 = arith.constant 0 : i32
    %c0_i32_1 = arith.constant 0 : i32
    return %arg0, %c0_i32, %c0_i32_0 : i32, i32, i32
  }
}

module attributes {stable_mosaic.version = 11 : i64} {
  func.func @kernel(%arg0: i32, %arg1: memref<1x10x64xf32, #tpu.memory_space<vmem>>, %arg2: memref<3x64x128xf32, #tpu.memory_space<vmem>>, %arg3: memref<1x128xf32, #tpu.memory_space<vmem>>, %arg4: memref<1x128xf32, #tpu.memory_space<vmem>>, %arg5: memref<1x128xf32, #tpu.memory_space<vmem>>, %arg6: memref<128x128xf32, #tpu.memory_space<vmem>>, %arg7: memref<1x128xf32, #tpu.memory_space<vmem>>, %arg8: memref<1x8x128xf32, #tpu.memory_space<vmem>>) attributes {dimension_semantics = [#tpu.dimension_semantics<parallel>], iteration_bounds = array<i64: 2>, scalar_prefetch = 0 : i64, scratch_operands = 0 : i64, tpu.core_type = #tpu.core_type<tc>, window_params = [{transform_indices = @transform_0, window_bounds = array<i64: 1, 10, 64>}, {pipeline_mode = #tpu.pipeline_mode<synchronous>, transform_indices = @transform_1, window_bounds = array<i64: 3, 64, 128>}, {pipeline_mode = #tpu.pipeline_mode<synchronous>, transform_indices = @transform_2, window_bounds = array<i64: 1, 128>}, {pipeline_mode = #tpu.pipeline_mode<synchronous>, transform_indices = @transform_3, window_bounds = array<i64: 1, 128>}, {pipeline_mode = #tpu.pipeline_mode<synchronous>, transform_indices = @transform_4, window_bounds = array<i64: 1, 128>}, {pipeline_mode = #tpu.pipeline_mode<synchronous>, transform_indices = @transform_5, window_bounds = array<i64: 128, 128>}, {pipeline_mode = #tpu.pipeline_mode<synchronous>, transform_indices = @transform_6, window_bounds = array<i64: 1, 128>}, {transform_indices = @transform_7, window_bounds = array<i64: 1, 8, 128>}]} {
    %cst = arith.constant 0.000000e+00 : f32
    %0 = vector.broadcast %cst : f32 to vector<8x128xf32>
    %c0 = arith.constant 0 : index
    %c0_0 = arith.constant 0 : index
    %c0_1 = arith.constant 0 : index
    %1 = vector.load %arg1[%c0, %c0_0, %c0_1] : memref<1x10x64xf32, #tpu.memory_space<vmem>>, vector<1x8x64xf32>
    %2 = vector.shape_cast %1 : vector<1x8x64xf32> to vector<8x64xf32>
    %c0_2 = arith.constant 0 : index
    %c0_3 = arith.constant 0 : index
    %c0_4 = arith.constant 0 : index
    %3 = vector.load %arg2[%c0_2, %c0_3, %c0_4] : memref<3x64x128xf32, #tpu.memory_space<vmem>>, vector<1x64x128xf32>
    %4 = vector.shape_cast %3 : vector<1x64x128xf32> to vector<64x128xf32>
    %cst_5 = arith.constant dense<0.000000e+00> : vector<8x128xf32>
    %5 = tpu.matmul %2, %4, %cst_5 {dimension_numbers = #tpu.dot_dimension_numbers<[1], [0], [0], [1], [0, 0, 1, 1], [], []>} : vector<8x64xf32>, vector<64x128xf32>, vector<8x128xf32> -> vector<8x128xf32>
    %6 = arith.addf %0, %5 : vector<8x128xf32>
    %c0_6 = arith.constant 0 : index
    %c1 = arith.constant 1 : index
    %c0_7 = arith.constant 0 : index
    %7 = vector.load %arg1[%c0_6, %c1, %c0_7] : memref<1x10x64xf32, #tpu.memory_space<vmem>>, vector<1x8x64xf32>
    %8 = vector.shape_cast %7 : vector<1x8x64xf32> to vector<8x64xf32>
    %c1_8 = arith.constant 1 : index
    %c0_9 = arith.constant 0 : index
    %c0_10 = arith.constant 0 : index
    %9 = vector.load %arg2[%c1_8, %c0_9, %c0_10] : memref<3x64x128xf32, #tpu.memory_space<vmem>>, vector<1x64x128xf32>
    %10 = vector.shape_cast %9 : vector<1x64x128xf32> to vector<64x128xf32>
    %cst_11 = arith.constant dense<0.000000e+00> : vector<8x128xf32>
    %11 = tpu.matmul %8, %10, %cst_11 {dimension_numbers = #tpu.dot_dimension_numbers<[1], [0], [0], [1], [0, 0, 1, 1], [], []>} : vector<8x64xf32>, vector<64x128xf32>, vector<8x128xf32> -> vector<8x128xf32>
    %12 = arith.addf %6, %11 : vector<8x128xf32>
    %c0_12 = arith.constant 0 : index
    %c2 = arith.constant 2 : index
    %c0_13 = arith.constant 0 : index
    %13 = vector.load %arg1[%c0_12, %c2, %c0_13] : memref<1x10x64xf32, #tpu.memory_space<vmem>>, vector<1x8x64xf32>
    %14 = vector.shape_cast %13 : vector<1x8x64xf32> to vector<8x64xf32>
    %c2_14 = arith.constant 2 : index
    %c0_15 = arith.constant 0 : index
    %c0_16 = arith.constant 0 : index
    %15 = vector.load %arg2[%c2_14, %c0_15, %c0_16] : memref<3x64x128xf32, #tpu.memory_space<vmem>>, vector<1x64x128xf32>
    %16 = vector.shape_cast %15 : vector<1x64x128xf32> to vector<64x128xf32>
    %cst_17 = arith.constant dense<0.000000e+00> : vector<8x128xf32>
    %17 = tpu.matmul %14, %16, %cst_17 {dimension_numbers = #tpu.dot_dimension_numbers<[1], [0], [0], [1], [0, 0, 1, 1], [], []>} : vector<8x64xf32>, vector<64x128xf32>, vector<8x128xf32> -> vector<8x128xf32>
    %18 = arith.addf %12, %17 : vector<8x128xf32>
    %c0_18 = arith.constant 0 : index
    %c0_19 = arith.constant 0 : index
    %19 = vector.load %arg3[%c0_18, %c0_19] : memref<1x128xf32, #tpu.memory_space<vmem>>, vector<1x128xf32>
    %20 = vector.broadcast %19 : vector<1x128xf32> to vector<8x128xf32>
    %21 = arith.addf %18, %20 : vector<8x128xf32>
    %c0_20 = arith.constant 0 : index
    %c0_21 = arith.constant 0 : index
    %22 = vector.load %arg4[%c0_20, %c0_21] : memref<1x128xf32, #tpu.memory_space<vmem>>, vector<1x128xf32>
    %23 = vector.broadcast %22 : vector<1x128xf32> to vector<8x128xf32>
    %24 = arith.mulf %21, %23 : vector<8x128xf32>
    %c0_22 = arith.constant 0 : index
    %c0_23 = arith.constant 0 : index
    %25 = vector.load %arg5[%c0_22, %c0_23] : memref<1x128xf32, #tpu.memory_space<vmem>>, vector<1x128xf32>
    %26 = vector.broadcast %25 : vector<1x128xf32> to vector<8x128xf32>
    %27 = arith.addf %24, %26 : vector<8x128xf32>
    %cst_24 = arith.constant 0.000000e+00 : f32
    %28 = vector.broadcast %cst_24 : f32 to vector<8x128xf32>
    %29 = arith.maximumf %27, %28 : vector<8x128xf32>
    %c0_25 = arith.constant 0 : index
    %c0_26 = arith.constant 0 : index
    %30 = vector.load %arg6[%c0_25, %c0_26] : memref<128x128xf32, #tpu.memory_space<vmem>>, vector<128x128xf32>
    %cst_27 = arith.constant dense<0.000000e+00> : vector<8x128xf32>
    %31 = tpu.matmul %29, %30, %cst_27 {dimension_numbers = #tpu.dot_dimension_numbers<[1], [0], [0], [1], [0, 0, 1, 1], [], []>} : vector<8x128xf32>, vector<128x128xf32>, vector<8x128xf32> -> vector<8x128xf32>
    %c0_28 = arith.constant 0 : index
    %c0_29 = arith.constant 0 : index
    %32 = vector.load %arg7[%c0_28, %c0_29] : memref<1x128xf32, #tpu.memory_space<vmem>>, vector<1x128xf32>
    %33 = vector.broadcast %32 : vector<1x128xf32> to vector<8x128xf32>
    %34 = arith.addf %31, %33 : vector<8x128xf32>
    %c0_30 = arith.constant 0 : index
    %c0_31 = arith.constant 0 : index
    %c0_32 = arith.constant 0 : index
    %35 = vector.load %arg8[%c0_30, %c0_31, %c0_32] : memref<1x8x128xf32, #tpu.memory_space<vmem>>, vector<1x8x128xf32>
    %36 = vector.shape_cast %35 : vector<1x8x128xf32> to vector<8x128xf32>
    %37 = vector.shape_cast %34 : vector<8x128xf32> to vector<1x8x128xf32>
    tpu.vector_store %arg8[%c0_30, %c0_31, %c0_32], %37 {strides = array<i32>} : memref<1x8x128xf32, #tpu.memory_space<vmem>>, vector<1x8x128xf32>,
    return
  }
  func.func @transform_0(%arg0: i32) -> (i32, i32, i32) {
    %c0_i32 = arith.constant 0 : i32
    %c0_i32_0 = arith.constant 0 : i32
    %c0_i32_1 = arith.constant 0 : i32
    return %arg0, %c0_i32, %c0_i32_0 : i32, i32, i32
  }
  func.func @transform_1(%arg0: i32) -> (i32, i32, i32) {
    %c0_i32 = arith.constant 0 : i32
    %c0_i32_0 = arith.constant 0 : i32
    %c0_i32_1 = arith.constant 0 : i32
    %c0_i32_2 = arith.constant 0 : i32
    return %c0_i32, %c0_i32_0, %c0_i32_1 : i32, i32, i32
  }
  func.func @transform_2(%arg0: i32) -> (i32, i32) {
    %c0_i32 = arith.constant 0 : i32
    %c0_i32_0 = arith.constant 0 : i32
    %c0_i32_1 = arith.constant 0 : i32
    return %c0_i32, %c0_i32_0 : i32, i32
  }
  func.func @transform_3(%arg0: i32) -> (i32, i32) {
    %c0_i32 = arith.constant 0 : i32
    %c0_i32_0 = arith.constant 0 : i32
    %c0_i32_1 = arith.constant 0 : i32
    return %c0_i32, %c0_i32_0 : i32, i32
  }
  func.func @transform_4(%arg0: i32) -> (i32, i32) {
    %c0_i32 = arith.constant 0 : i32
    %c0_i32_0 = arith.constant 0 : i32
    %c0_i32_1 = arith.constant 0 : i32
    return %c0_i32, %c0_i32_0 : i32, i32
  }
  func.func @transform_5(%arg0: i32) -> (i32, i32) {
    %c0_i32 = arith.constant 0 : i32
    %c0_i32_0 = arith.constant 0 : i32
    %c0_i32_1 = arith.constant 0 : i32
    return %c0_i32, %c0_i32_0 : i32, i32
  }
  func.func @transform_6(%arg0: i32) -> (i32, i32) {
    %c0_i32 = arith.constant 0 : i32
    %c0_i32_0 = arith.constant 0 : i32
    %c0_i32_1 = arith.constant 0 : i32
    return %c0_i32, %c0_i32_0 : i32, i32
  }
  func.func @transform_7(%arg0: i32) -> (i32, i32, i32) {
    %c0_i32 = arith.constant 0 : i32
    %c0_i32_0 = arith.constant 0 : i32
    %c0_i32_1 = arith.constant 0 : i32
    return %arg0, %c0_i32, %c0_i32_0 : i32, i32, i32
  }
}

module attributes {stable_mosaic.version = 11 : i64} {
  func.func @kernel(%arg0: i32, %arg1: memref<1x36x32xf32, #tpu.memory_space<vmem>>, %arg2: memref<5x32x64xf32, #tpu.memory_space<vmem>>, %arg3: memref<1x64xf32, #tpu.memory_space<vmem>>, %arg4: memref<1x64xf32, #tpu.memory_space<vmem>>, %arg5: memref<1x64xf32, #tpu.memory_space<vmem>>, %arg6: memref<1x8x64xf32, #tpu.memory_space<vmem>>) attributes {dimension_semantics = [#tpu.dimension_semantics<parallel>], iteration_bounds = array<i64: 2>, scalar_prefetch = 0 : i64, scratch_operands = 0 : i64, tpu.core_type = #tpu.core_type<tc>, window_params = [{transform_indices = @transform_0, window_bounds = array<i64: 1, 36, 32>}, {pipeline_mode = #tpu.pipeline_mode<synchronous>, transform_indices = @transform_1, window_bounds = array<i64: 5, 32, 64>}, {pipeline_mode = #tpu.pipeline_mode<synchronous>, transform_indices = @transform_2, window_bounds = array<i64: 1, 64>}, {pipeline_mode = #tpu.pipeline_mode<synchronous>, transform_indices = @transform_3, window_bounds = array<i64: 1, 64>}, {pipeline_mode = #tpu.pipeline_mode<synchronous>, transform_indices = @transform_4, window_bounds = array<i64: 1, 64>}, {transform_indices = @transform_5, window_bounds = array<i64: 1, 8, 64>}]} {
    %cst = arith.constant 0.000000e+00 : f32
    %0 = vector.broadcast %cst : f32 to vector<8x64xf32>
    %c0 = arith.constant 0 : index
    %c0_0 = arith.constant 0 : index
    %c0_1 = arith.constant 0 : index
    %1 = tpu.strided_load %arg1[%c0, %c0_0, %c0_1] {strides = array<i32: 1, 4, 1>} : memref<1x36x32xf32, #tpu.memory_space<vmem>>, vector<1x8x32xf32>
    %2 = vector.shape_cast %1 : vector<1x8x32xf32> to vector<8x32xf32>
    %c0_2 = arith.constant 0 : index
    %c0_3 = arith.constant 0 : index
    %c0_4 = arith.constant 0 : index
    %3 = vector.load %arg2[%c0_2, %c0_3, %c0_4] : memref<5x32x64xf32, #tpu.memory_space<vmem>>, vector<1x32x64xf32>
    %4 = vector.shape_cast %3 : vector<1x32x64xf32> to vector<32x64xf32>
    %cst_5 = arith.constant dense<0.000000e+00> : vector<8x64xf32>
    %5 = tpu.matmul %2, %4, %cst_5 {dimension_numbers = #tpu.dot_dimension_numbers<[1], [0], [0], [1], [0, 0, 1, 1], [], []>} : vector<8x32xf32>, vector<32x64xf32>, vector<8x64xf32> -> vector<8x64xf32>
    %6 = arith.addf %0, %5 : vector<8x64xf32>
    %c0_6 = arith.constant 0 : index
    %c1 = arith.constant 1 : index
    %c0_7 = arith.constant 0 : index
    %7 = tpu.strided_load %arg1[%c0_6, %c1, %c0_7] {strides = array<i32: 1, 4, 1>} : memref<1x36x32xf32, #tpu.memory_space<vmem>>, vector<1x8x32xf32>
    %8 = vector.shape_cast %7 : vector<1x8x32xf32> to vector<8x32xf32>
    %c1_8 = arith.constant 1 : index
    %c0_9 = arith.constant 0 : index
    %c0_10 = arith.constant 0 : index
    %9 = vector.load %arg2[%c1_8, %c0_9, %c0_10] : memref<5x32x64xf32, #tpu.memory_space<vmem>>, vector<1x32x64xf32>
    %10 = vector.shape_cast %9 : vector<1x32x64xf32> to vector<32x64xf32>
    %cst_11 = arith.constant dense<0.000000e+00> : vector<8x64xf32>
    %11 = tpu.matmul %8, %10, %cst_11 {dimension_numbers = #tpu.dot_dimension_numbers<[1], [0], [0], [1], [0, 0, 1, 1], [], []>} : vector<8x32xf32>, vector<32x64xf32>, vector<8x64xf32> -> vector<8x64xf32>
    %12 = arith.addf %6, %11 : vector<8x64xf32>
    %c0_12 = arith.constant 0 : index
    %c2 = arith.constant 2 : index
    %c0_13 = arith.constant 0 : index
    %13 = tpu.strided_load %arg1[%c0_12, %c2, %c0_13] {strides = array<i32: 1, 4, 1>} : memref<1x36x32xf32, #tpu.memory_space<vmem>>, vector<1x8x32xf32>
    %14 = vector.shape_cast %13 : vector<1x8x32xf32> to vector<8x32xf32>
    %c2_14 = arith.constant 2 : index
    %c0_15 = arith.constant 0 : index
    %c0_16 = arith.constant 0 : index
    %15 = vector.load %arg2[%c2_14, %c0_15, %c0_16] : memref<5x32x64xf32, #tpu.memory_space<vmem>>, vector<1x32x64xf32>
    %16 = vector.shape_cast %15 : vector<1x32x64xf32> to vector<32x64xf32>
    %cst_17 = arith.constant dense<0.000000e+00> : vector<8x64xf32>
    %17 = tpu.matmul %14, %16, %cst_17 {dimension_numbers = #tpu.dot_dimension_numbers<[1], [0], [0], [1], [0, 0, 1, 1], [], []>} : vector<8x32xf32>, vector<32x64xf32>, vector<8x64xf32> -> vector<8x64xf32>
    %18 = arith.addf %12, %17 : vector<8x64xf32>
    %c0_18 = arith.constant 0 : index
    %c3 = arith.constant 3 : index
    %c0_19 = arith.constant 0 : index
    %19 = tpu.strided_load %arg1[%c0_18, %c3, %c0_19] {strides = array<i32: 1, 4, 1>} : memref<1x36x32xf32, #tpu.memory_space<vmem>>, vector<1x8x32xf32>
    %20 = vector.shape_cast %19 : vector<1x8x32xf32> to vector<8x32xf32>
    %c3_20 = arith.constant 3 : index
    %c0_21 = arith.constant 0 : index
    %c0_22 = arith.constant 0 : index
    %21 = vector.load %arg2[%c3_20, %c0_21, %c0_22] : memref<5x32x64xf32, #tpu.memory_space<vmem>>, vector<1x32x64xf32>
    %22 = vector.shape_cast %21 : vector<1x32x64xf32> to vector<32x64xf32>
    %cst_23 = arith.constant dense<0.000000e+00> : vector<8x64xf32>
    %23 = tpu.matmul %20, %22, %cst_23 {dimension_numbers = #tpu.dot_dimension_numbers<[1], [0], [0], [1], [0, 0, 1, 1], [], []>} : vector<8x32xf32>, vector<32x64xf32>, vector<8x64xf32> -> vector<8x64xf32>
    %24 = arith.addf %18, %23 : vector<8x64xf32>
    %c0_24 = arith.constant 0 : index
    %c4 = arith.constant 4 : index
    %c0_25 = arith.constant 0 : index
    %25 = tpu.strided_load %arg1[%c0_24, %c4, %c0_25] {strides = array<i32: 1, 4, 1>} : memref<1x36x32xf32, #tpu.memory_space<vmem>>, vector<1x8x32xf32>
    %26 = vector.shape_cast %25 : vector<1x8x32xf32> to vector<8x32xf32>
    %c4_26 = arith.constant 4 : index
    %c0_27 = arith.constant 0 : index
    %c0_28 = arith.constant 0 : index
    %27 = vector.load %arg2[%c4_26, %c0_27, %c0_28] : memref<5x32x64xf32, #tpu.memory_space<vmem>>, vector<1x32x64xf32>
    %28 = vector.shape_cast %27 : vector<1x32x64xf32> to vector<32x64xf32>
    %cst_29 = arith.constant dense<0.000000e+00> : vector<8x64xf32>
    %29 = tpu.matmul %26, %28, %cst_29 {dimension_numbers = #tpu.dot_dimension_numbers<[1], [0], [0], [1], [0, 0, 1, 1], [], []>} : vector<8x32xf32>, vector<32x64xf32>, vector<8x64xf32> -> vector<8x64xf32>
    %30 = arith.addf %24, %29 : vector<8x64xf32>
    %c0_30 = arith.constant 0 : index
    %c0_31 = arith.constant 0 : index
    %31 = vector.load %arg3[%c0_30, %c0_31] : memref<1x64xf32, #tpu.memory_space<vmem>>, vector<1x64xf32>
    %32 = vector.broadcast %31 : vector<1x64xf32> to vector<8x64xf32>
    %33 = arith.addf %30, %32 : vector<8x64xf32>
    %c0_32 = arith.constant 0 : index
    %c0_33 = arith.constant 0 : index
    %34 = vector.load %arg4[%c0_32, %c0_33] : memref<1x64xf32, #tpu.memory_space<vmem>>, vector<1x64xf32>
    %35 = vector.broadcast %34 : vector<1x64xf32> to vector<8x64xf32>
    %36 = arith.mulf %33, %35 : vector<8x64xf32>
    %c0_34 = arith.constant 0 : index
    %c0_35 = arith.constant 0 : index
    %37 = vector.load %arg5[%c0_34, %c0_35] : memref<1x64xf32, #tpu.memory_space<vmem>>, vector<1x64xf32>
    %38 = vector.broadcast %37 : vector<1x64xf32> to vector<8x64xf32>
    %39 = arith.addf %36, %38 : vector<8x64xf32>
    %cst_36 = arith.constant 0.000000e+00 : f32
    %40 = vector.broadcast %cst_36 : f32 to vector<8x64xf32>
    %41 = arith.maximumf %39, %40 : vector<8x64xf32>
    %cst_37 = arith.constant 0.000000e+00 : f32
    %42 = vector.broadcast %cst_37 : f32 to vector<8x64xf32>
    %c0_38 = arith.constant 0 : index
    %c2_39 = arith.constant 2 : index
    %c0_40 = arith.constant 0 : index
    %43 = tpu.strided_load %arg1[%c0_38, %c2_39, %c0_40] {strides = array<i32: 1, 4, 1>} : memref<1x36x32xf32, #tpu.memory_space<vmem>>, vector<1x8x32xf32>
    %44 = vector.shape_cast %43 : vector<1x8x32xf32> to vector<8x32xf32>
    %c0_41 = arith.constant 0 : index
    %c0_42 = arith.constant 0 : index
    %c0_43 = arith.constant 0 : index
    %45 = vector.load %arg2[%c0_41, %c0_42, %c0_43] : memref<5x32x64xf32, #tpu.memory_space<vmem>>, vector<1x32x64xf32>
    %46 = vector.shape_cast %45 : vector<1x32x64xf32> to vector<32x64xf32>
    %cst_44 = arith.constant dense<0.000000e+00> : vector<8x64xf32>
    %47 = tpu.matmul %44, %46, %cst_44 {dimension_numbers = #tpu.dot_dimension_numbers<[1], [0], [0], [1], [0, 0, 1, 1], [], []>} : vector<8x32xf32>, vector<32x64xf32>, vector<8x64xf32> -> vector<8x64xf32>
    %48 = arith.addf %42, %47 : vector<8x64xf32>
    %c0_45 = arith.constant 0 : index
    %c3_46 = arith.constant 3 : index
    %c0_47 = arith.constant 0 : index
    %49 = tpu.strided_load %arg1[%c0_45, %c3_46, %c0_47] {strides = array<i32: 1, 4, 1>} : memref<1x36x32xf32, #tpu.memory_space<vmem>>, vector<1x8x32xf32>
    %50 = vector.shape_cast %49 : vector<1x8x32xf32> to vector<8x32xf32>
    %c1_48 = arith.constant 1 : index
    %c0_49 = arith.constant 0 : index
    %c0_50 = arith.constant 0 : index
    %51 = vector.load %arg2[%c1_48, %c0_49, %c0_50] : memref<5x32x64xf32, #tpu.memory_space<vmem>>, vector<1x32x64xf32>
    %52 = vector.shape_cast %51 : vector<1x32x64xf32> to vector<32x64xf32>
    %cst_51 = arith.constant dense<0.000000e+00> : vector<8x64xf32>
    %53 = tpu.matmul %50, %52, %cst_51 {dimension_numbers = #tpu.dot_dimension_numbers<[1], [0], [0], [1], [0, 0, 1, 1], [], []>} : vector<8x32xf32>, vector<32x64xf32>, vector<8x64xf32> -> vector<8x64xf32>
    %54 = arith.addf %48, %53 : vector<8x64xf32>
    %c0_52 = arith.constant 0 : index
    %c4_53 = arith.constant 4 : index
    %c0_54 = arith.constant 0 : index
    %55 = tpu.strided_load %arg1[%c0_52, %c4_53, %c0_54] {strides = array<i32: 1, 4, 1>} : memref<1x36x32xf32, #tpu.memory_space<vmem>>, vector<1x8x32xf32>
    %56 = vector.shape_cast %55 : vector<1x8x32xf32> to vector<8x32xf32>
    %c2_55 = arith.constant 2 : index
    %c0_56 = arith.constant 0 : index
    %c0_57 = arith.constant 0 : index
    %57 = vector.load %arg2[%c2_55, %c0_56, %c0_57] : memref<5x32x64xf32, #tpu.memory_space<vmem>>, vector<1x32x64xf32>
    %58 = vector.shape_cast %57 : vector<1x32x64xf32> to vector<32x64xf32>
    %cst_58 = arith.constant dense<0.000000e+00> : vector<8x64xf32>
    %59 = tpu.matmul %56, %58, %cst_58 {dimension_numbers = #tpu.dot_dimension_numbers<[1], [0], [0], [1], [0, 0, 1, 1], [], []>} : vector<8x32xf32>, vector<32x64xf32>, vector<8x64xf32> -> vector<8x64xf32>
    %60 = arith.addf %54, %59 : vector<8x64xf32>
    %c0_59 = arith.constant 0 : index
    %c5 = arith.constant 5 : index
    %c0_60 = arith.constant 0 : index
    %61 = tpu.strided_load %arg1[%c0_59, %c5, %c0_60] {strides = array<i32: 1, 4, 1>} : memref<1x36x32xf32, #tpu.memory_space<vmem>>, vector<1x8x32xf32>
    %62 = vector.shape_cast %61 : vector<1x8x32xf32> to vector<8x32xf32>
    %c3_61 = arith.constant 3 : index
    %c0_62 = arith.constant 0 : index
    %c0_63 = arith.constant 0 : index
    %63 = vector.load %arg2[%c3_61, %c0_62, %c0_63] : memref<5x32x64xf32, #tpu.memory_space<vmem>>, vector<1x32x64xf32>
    %64 = vector.shape_cast %63 : vector<1x32x64xf32> to vector<32x64xf32>
    %cst_64 = arith.constant dense<0.000000e+00> : vector<8x64xf32>
    %65 = tpu.matmul %62, %64, %cst_64 {dimension_numbers = #tpu.dot_dimension_numbers<[1], [0], [0], [1], [0, 0, 1, 1], [], []>} : vector<8x32xf32>, vector<32x64xf32>, vector<8x64xf32> -> vector<8x64xf32>
    %66 = arith.addf %60, %65 : vector<8x64xf32>
    %c0_65 = arith.constant 0 : index
    %c6 = arith.constant 6 : index
    %c0_66 = arith.constant 0 : index
    %67 = tpu.strided_load %arg1[%c0_65, %c6, %c0_66] {strides = array<i32: 1, 4, 1>} : memref<1x36x32xf32, #tpu.memory_space<vmem>>, vector<1x8x32xf32>
    %68 = vector.shape_cast %67 : vector<1x8x32xf32> to vector<8x32xf32>
    %c4_67 = arith.constant 4 : index
    %c0_68 = arith.constant 0 : index
    %c0_69 = arith.constant 0 : index
    %69 = vector.load %arg2[%c4_67, %c0_68, %c0_69] : memref<5x32x64xf32, #tpu.memory_space<vmem>>, vector<1x32x64xf32>
    %70 = vector.shape_cast %69 : vector<1x32x64xf32> to vector<32x64xf32>
    %cst_70 = arith.constant dense<0.000000e+00> : vector<8x64xf32>
    %71 = tpu.matmul %68, %70, %cst_70 {dimension_numbers = #tpu.dot_dimension_numbers<[1], [0], [0], [1], [0, 0, 1, 1], [], []>} : vector<8x32xf32>, vector<32x64xf32>, vector<8x64xf32> -> vector<8x64xf32>
    %72 = arith.addf %66, %71 : vector<8x64xf32>
    %c0_71 = arith.constant 0 : index
    %c0_72 = arith.constant 0 : index
    %73 = vector.load %arg3[%c0_71, %c0_72] : memref<1x64xf32, #tpu.memory_space<vmem>>, vector<1x64xf32>
    %74 = vector.broadcast %73 : vector<1x64xf32> to vector<8x64xf32>
    %75 = arith.addf %72, %74 : vector<8x64xf32>
    %c0_73 = arith.constant 0 : index
    %c0_74 = arith.constant 0 : index
    %76 = vector.load %arg4[%c0_73, %c0_74] : memref<1x64xf32, #tpu.memory_space<vmem>>, vector<1x64xf32>
    %77 = vector.broadcast %76 : vector<1x64xf32> to vector<8x64xf32>
    %78 = arith.mulf %75, %77 : vector<8x64xf32>
    %c0_75 = arith.constant 0 : index
    %c0_76 = arith.constant 0 : index
    %79 = vector.load %arg5[%c0_75, %c0_76] : memref<1x64xf32, #tpu.memory_space<vmem>>, vector<1x64xf32>
    %80 = vector.broadcast %79 : vector<1x64xf32> to vector<8x64xf32>
    %81 = arith.addf %78, %80 : vector<8x64xf32>
    %cst_77 = arith.constant 0.000000e+00 : f32
    %82 = vector.broadcast %cst_77 : f32 to vector<8x64xf32>
    %83 = arith.maximumf %81, %82 : vector<8x64xf32>
    %84 = arith.maximumf %41, %83 : vector<8x64xf32>
    %c0_78 = arith.constant 0 : index
    %c0_79 = arith.constant 0 : index
    %c0_80 = arith.constant 0 : index
    %85 = vector.load %arg6[%c0_78, %c0_79, %c0_80] : memref<1x8x64xf32, #tpu.memory_space<vmem>>, vector<1x8x64xf32>
    %86 = vector.shape_cast %85 : vector<1x8x64xf32> to vector<8x64xf32>
    %87 = vector.shape_cast %84 : vector<8x64xf32> to vector<1x8x64xf32>
    tpu.vector_store %arg6[%c0_78, %c0_79, %c0_80], %87 {strides = array<i32>} : memref<1x8x64xf32, #tpu.memory_space<vmem>>, vector<1x8x64xf32>,
    return
  }
  func.func @transform_0(%arg0: i32) -> (i32, i32, i32) {
    %c0_i32 = arith.constant 0 : i32
    %c0_i32_0 = arith.constant 0 : i32
    %c0_i32_1 = arith.constant 0 : i32
    return %arg0, %c0_i32, %c0_i32_0 : i32, i32, i32
  }
  func.func @transform_1(%arg0: i32) -> (i32, i32, i32) {
    %c0_i32 = arith.constant 0 : i32
    %c0_i32_0 = arith.constant 0 : i32
    %c0_i32_1 = arith.constant 0 : i32
    %c0_i32_2 = arith.constant 0 : i32
    return %c0_i32, %c0_i32_0, %c0_i32_1 : i32, i32, i32
  }
  func.func @transform_2(%arg0: i32) -> (i32, i32) {
    %c0_i32 = arith.constant 0 : i32
    %c0_i32_0 = arith.constant 0 : i32
    %c0_i32_1 = arith.constant 0 : i32
    return %c0_i32, %c0_i32_0 : i32, i32
  }
  func.func @transform_3(%arg0: i32) -> (i32, i32) {
    %c0_i32 = arith.constant 0 : i32
    %c0_i32_0 = arith.constant 0 : i32
    %c0_i32_1 = arith.constant 0 : i32
    return %c0_i32, %c0_i32_0 : i32, i32
  }
  func.func @transform_4(%arg0: i32) -> (i32, i32) {
    %c0_i32 = arith.constant 0 : i32
    %c0_i32_0 = arith.constant 0 : i32
    %c0_i32_1 = arith.constant 0 : i32
    return %c0_i32, %c0_i32_0 : i32, i32
  }
  func.func @transform_5(%arg0: i32) -> (i32, i32, i32) {
    %c0_i32 = arith.constant 0 : i32
    %c0_i32_0 = arith.constant 0 : i32
    %c0_i32_1 = arith.constant 0 : i32
    return %arg0, %c0_i32, %c0_i32_0 : i32, i32, i32
  }
}

module attributes {stable_mosaic.version = 11 : i64} {
  func.func @kernel(%arg0: i32, %arg1: memref<64x128xf32, #tpu.memory_space<vmem>>, %arg2: memref<1x128x512xf32, #tpu.memory_space<vmem>>, %arg3: memref<1x128x512xf32, #tpu.memory_space<vmem>>, %arg4: memref<1x1x512xf32, #tpu.memory_space<vmem>>, %arg5: memref<8x8x128xf32, #tpu.memory_space<vmem>>, %arg6: memref<8x128xf32, #tpu.memory_space<vmem>>, %arg7: memref<64x512xf32, #tpu.memory_space<vmem>>) attributes {dimension_semantics = [#tpu.dimension_semantics<parallel>], iteration_bounds = array<i64: 2>, scalar_prefetch = 0 : i64, scratch_operands = 1 : i64, tpu.core_type = #tpu.core_type<tc>, window_params = [{pipeline_mode = #tpu.pipeline_mode<synchronous>, transform_indices = @transform_0, window_bounds = array<i64: 64, 128>}, {transform_indices = @transform_1, window_bounds = array<i64: 1, 128, 512>}, {transform_indices = @transform_2, window_bounds = array<i64: 1, 128, 512>}, {transform_indices = @transform_3, window_bounds = array<i64: 1, 1, 512>}, {transform_indices = @transform_4, window_bounds = array<i64: 8, 8, 128>}, {transform_indices = @transform_5, window_bounds = array<i64: 8, 128>}]} {
    %c0 = arith.constant 0 : index
    %c0_0 = arith.constant 0 : index
    %0 = vector.load %arg1[%c0, %c0_0] : memref<64x128xf32, #tpu.memory_space<vmem>>, vector<64x128xf32>
    %c0_1 = arith.constant 0 : index
    %c0_2 = arith.constant 0 : index
    %c0_3 = arith.constant 0 : index
    %1 = vector.load %arg2[%c0_1, %c0_2, %c0_3] : memref<1x128x512xf32, #tpu.memory_space<vmem>>, vector<1x128x512xf32>
    %2 = vector.shape_cast %1 : vector<1x128x512xf32> to vector<128x512xf32>
    %cst = arith.constant dense<0.000000e+00> : vector<64x512xf32>
    %3 = tpu.matmul %0, %2, %cst {dimension_numbers = #tpu.dot_dimension_numbers<[1], [0], [0], [1], [0, 0, 1, 1], [], []>} : vector<64x128xf32>, vector<128x512xf32>, vector<64x512xf32> -> vector<64x512xf32>
    %c0_4 = arith.constant 0 : index
    %c0_5 = arith.constant 0 : index
    %c0_6 = arith.constant 0 : index
    %4 = vector.load %arg4[%c0_4, %c0_5, %c0_6] : memref<1x1x512xf32, #tpu.memory_space<vmem>>, vector<1x1x512xf32>
    %5 = vector.shape_cast %4 : vector<1x1x512xf32> to vector<1x512xf32>
    %6 = vector.broadcast %5 : vector<1x512xf32> to vector<64x512xf32>
    %7 = arith.addf %3, %6 : vector<64x512xf32>
    %c0_7 = arith.constant 0 : index
    %c0_8 = arith.constant 0 : index
    %8 = vector.load %arg7[%c0_7, %c0_8] : memref<64x512xf32, #tpu.memory_space<vmem>>, vector<64x512xf32>
    tpu.vector_store %arg7[%c0_7, %c0_8], %7 {strides = array<i32>} : memref<64x512xf32, #tpu.memory_space<vmem>>, vector<64x512xf32>,
    %cst_9 = arith.constant 0.000000e+00 : f32
    %9 = vector.broadcast %cst_9 : f32 to vector<8x128xf32>
    %cst_10 = arith.constant 0.000000e+00 : f32
    %10 = vector.broadcast %cst_10 : f32 to vector<8x128xf32>
    %c0_i32 = arith.constant 0 : i32
    %11 = arith.cmpi eq, %arg0, %c0_i32 : i32
    %c0_i32_11 = arith.constant 0 : i32
    %c7_i32 = arith.constant 7 : i32
    %12 = arith.select %11, %c0_i32_11, %c7_i32 : i32
    %c8_i32 = arith.constant 8 : i32
    %13 = arith.muli %12, %c8_i32 : i32
    %14 = tpu.assume_multiple %13, 8 : i32
    %15 = arith.index_cast %14 : i32 to index
    %c0_12 = arith.constant 0 : index
    %16 = vector.load %arg7[%15, %c0_12] : memref<64x512xf32, #tpu.memory_space<vmem>>, vector<8x512xf32>
    %c0_13 = arith.constant 0 : index
    %c0_14 = arith.constant 0 : index
    %c0_15 = arith.constant 0 : index
    %17 = vector.load %arg3[%c0_13, %c0_14, %c0_15] : memref<1x128x512xf32, #tpu.memory_space<vmem>>, vector<1x128x512xf32>
    %18 = vector.shape_cast %17 : vector<1x128x512xf32> to vector<128x512xf32>
    %cst_16 = arith.constant dense<0.000000e+00> : vector<8x512xf32>
    %19 = tpu.matmul %9, %18, %cst_16 {dimension_numbers = #tpu.dot_dimension_numbers<[1], [0], [0], [1], [0, 0, 1, 1], [], []>} : vector<8x128xf32>, vector<128x512xf32>, vector<8x512xf32> -> vector<8x512xf32>
    %20 = arith.addf %16, %19 : vector<8x512xf32>
    %21 = vector.extract_strided_slice %20 {offsets = [0, 0], sizes = [8, 128], strides = [1, 1]} : vector<8x512xf32> to vector<8x128xf32>
    %cst_17 = arith.constant 0.000000e+00 : f32
    %22 = vector.broadcast %cst_17 : f32 to vector<8x128xf32>
    %23 = arith.subf %22, %21 : vector<8x128xf32>
    %24 = math.exp %23 : vector<8x128xf32>
    %cst_18 = arith.constant 1.000000e+00 : f32
    %25 = vector.broadcast %cst_18 : f32 to vector<8x128xf32>
    %26 = arith.addf %25, %24 : vector<8x128xf32>
    %27 = tpu.reciprocal %26 {approx = true} : vector<8x128xf32> -> vector<8x128xf32>
    %28 = vector.extract_strided_slice %20 {offsets = [0, 128], sizes = [8, 128], strides = [1, 1]} : vector<8x512xf32> to vector<8x128xf32>
    %cst_19 = arith.constant 0.000000e+00 : f32
    %29 = vector.broadcast %cst_19 : f32 to vector<8x128xf32>
    %30 = arith.subf %29, %28 : vector<8x128xf32>
    %31 = math.exp %30 : vector<8x128xf32>
    %cst_20 = arith.constant 1.000000e+00 : f32
    %32 = vector.broadcast %cst_20 : f32 to vector<8x128xf32>
    %33 = arith.addf %32, %31 : vector<8x128xf32>
    %34 = tpu.reciprocal %33 {approx = true} : vector<8x128xf32> -> vector<8x128xf32>
    %35 = vector.extract_strided_slice %20 {offsets = [0, 256], sizes = [8, 128], strides = [1, 1]} : vector<8x512xf32> to vector<8x128xf32>
    %36 = math.tanh %35 : vector<8x128xf32>
    %37 = vector.extract_strided_slice %20 {offsets = [0, 384], sizes = [8, 128], strides = [1, 1]} : vector<8x512xf32> to vector<8x128xf32>
    %cst_21 = arith.constant 0.000000e+00 : f32
    %38 = vector.broadcast %cst_21 : f32 to vector<8x128xf32>
    %39 = arith.subf %38, %37 : vector<8x128xf32>
    %40 = math.exp %39 : vector<8x128xf32>
    %cst_22 = arith.constant 1.000000e+00 : f32
    %41 = vector.broadcast %cst_22 : f32 to vector<8x128xf32>
    %42 = arith.addf %41, %40 : vector<8x128xf32>
    %43 = tpu.reciprocal %42 {approx = true} : vector<8x128xf32> -> vector<8x128xf32>
    %44 = arith.mulf %34, %10 : vector<8x128xf32>
    %45 = arith.mulf %27, %36 : vector<8x128xf32>
    %46 = arith.addf %44, %45 : vector<8x128xf32>
    %47 = math.tanh %46 : vector<8x128xf32>
    %48 = arith.mulf %43, %47 : vector<8x128xf32>
    %49 = arith.index_cast %12 : i32 to index
    %c0_23 = arith.constant 0 : index
    %c0_24 = arith.constant 0 : index
    %50 = vector.load %arg5[%49, %c0_23, %c0_24] : memref<8x8x128xf32, #tpu.memory_space<vmem>>, vector<1x8x128xf32>
    %51 = vector.shape_cast %50 : vector<1x8x128xf32> to vector<8x128xf32>
    %52 = vector.shape_cast %48 : vector<8x128xf32> to vector<1x8x128xf32>
    tpu.vector_store %arg5[%49, %c0_23, %c0_24], %52 {strides = array<i32>} : memref<8x8x128xf32, #tpu.memory_space<vmem>>, vector<1x8x128xf32>,
    %c0_i32_25 = arith.constant 0 : i32
    %53 = arith.cmpi eq, %arg0, %c0_i32_25 : i32
    %c1_i32 = arith.constant 1 : i32
    %c6_i32 = arith.constant 6 : i32
    %54 = arith.select %53, %c1_i32, %c6_i32 : i32
    %c8_i32_26 = arith.constant 8 : i32
    %55 = arith.muli %54, %c8_i32_26 : i32
    %56 = tpu.assume_multiple %55, 8 : i32
    %57 = arith.index_cast %56 : i32 to index
    %c0_27 = arith.constant 0 : index
    %58 = vector.load %arg7[%57, %c0_27] : memref<64x512xf32, #tpu.memory_space<vmem>>, vector<8x512xf32>
    %c0_28 = arith.constant 0 : index
    %c0_29 = arith.constant 0 : index
    %c0_30 = arith.constant 0 : index
    %59 = vector.load %arg3[%c0_28, %c0_29, %c0_30] : memref<1x128x512xf32, #tpu.memory_space<vmem>>, vector<1x128x512xf32>
    %60 = vector.shape_cast %59 : vector<1x128x512xf32> to vector<128x512xf32>
    %cst_31 = arith.constant dense<0.000000e+00> : vector<8x512xf32>
    %61 = tpu.matmul %48, %60, %cst_31 {dimension_numbers = #tpu.dot_dimension_numbers<[1], [0], [0], [1], [0, 0, 1, 1], [], []>} : vector<8x128xf32>, vector<128x512xf32>, vector<8x512xf32> -> vector<8x512xf32>
    %62 = arith.addf %58, %61 : vector<8x512xf32>
    %63 = vector.extract_strided_slice %62 {offsets = [0, 0], sizes = [8, 128], strides = [1, 1]} : vector<8x512xf32> to vector<8x128xf32>
    %cst_32 = arith.constant 0.000000e+00 : f32
    %64 = vector.broadcast %cst_32 : f32 to vector<8x128xf32>
    %65 = arith.subf %64, %63 : vector<8x128xf32>
    %66 = math.exp %65 : vector<8x128xf32>
    %cst_33 = arith.constant 1.000000e+00 : f32
    %67 = vector.broadcast %cst_33 : f32 to vector<8x128xf32>
    %68 = arith.addf %67, %66 : vector<8x128xf32>
    %69 = tpu.reciprocal %68 {approx = true} : vector<8x128xf32> -> vector<8x128xf32>
    %70 = vector.extract_strided_slice %62 {offsets = [0, 128], sizes = [8, 128], strides = [1, 1]} : vector<8x512xf32> to vector<8x128xf32>
    %cst_34 = arith.constant 0.000000e+00 : f32
    %71 = vector.broadcast %cst_34 : f32 to vector<8x128xf32>
    %72 = arith.subf %71, %70 : vector<8x128xf32>
    %73 = math.exp %72 : vector<8x128xf32>
    %cst_35 = arith.constant 1.000000e+00 : f32
    %74 = vector.broadcast %cst_35 : f32 to vector<8x128xf32>
    %75 = arith.addf %74, %73 : vector<8x128xf32>
    %76 = tpu.reciprocal %75 {approx = true} : vector<8x128xf32> -> vector<8x128xf32>
    %77 = vector.extract_strided_slice %62 {offsets = [0, 256], sizes = [8, 128], strides = [1, 1]} : vector<8x512xf32> to vector<8x128xf32>
    %78 = math.tanh %77 : vector<8x128xf32>
    %79 = vector.extract_strided_slice %62 {offsets = [0, 384], sizes = [8, 128], strides = [1, 1]} : vector<8x512xf32> to vector<8x128xf32>
    %cst_36 = arith.constant 0.000000e+00 : f32
    %80 = vector.broadcast %cst_36 : f32 to vector<8x128xf32>
    %81 = arith.subf %80, %79 : vector<8x128xf32>
    %82 = math.exp %81 : vector<8x128xf32>
    %cst_37 = arith.constant 1.000000e+00 : f32
    %83 = vector.broadcast %cst_37 : f32 to vector<8x128xf32>
    %84 = arith.addf %83, %82 : vector<8x128xf32>
    %85 = tpu.reciprocal %84 {approx = true} : vector<8x128xf32> -> vector<8x128xf32>
    %86 = arith.mulf %76, %46 : vector<8x128xf32>
    %87 = arith.mulf %69, %78 : vector<8x128xf32>
    %88 = arith.addf %86, %87 : vector<8x128xf32>
    %89 = math.tanh %88 : vector<8x128xf32>
    %90 = arith.mulf %85, %89 : vector<8x128xf32>
    %91 = arith.index_cast %54 : i32 to index
    %c0_38 = arith.constant 0 : index
    %c0_39 = arith.constant 0 : index
    %92 = vector.load %arg5[%91, %c0_38, %c0_39] : memref<8x8x128xf32, #tpu.memory_space<vmem>>, vector<1x8x128xf32>
    %93 = vector.shape_cast %92 : vector<1x8x128xf32> to vector<8x128xf32>
    %94 = vector.shape_cast %90 : vector<8x128xf32> to vector<1x8x128xf32>
    tpu.vector_store %arg5[%91, %c0_38, %c0_39], %94 {strides = array<i32>} : memref<8x8x128xf32, #tpu.memory_space<vmem>>, vector<1x8x128xf32>,
    %c0_i32_40 = arith.constant 0 : i32
    %95 = arith.cmpi eq, %arg0, %c0_i32_40 : i32
    %c2_i32 = arith.constant 2 : i32
    %c5_i32 = arith.constant 5 : i32
    %96 = arith.select %95, %c2_i32, %c5_i32 : i32
    %c8_i32_41 = arith.constant 8 : i32
    %97 = arith.muli %96, %c8_i32_41 : i32
    %98 = tpu.assume_multiple %97, 8 : i32
    %99 = arith.index_cast %98 : i32 to index
    %c0_42 = arith.constant 0 : index
    %100 = vector.load %arg7[%99, %c0_42] : memref<64x512xf32, #tpu.memory_space<vmem>>, vector<8x512xf32>
    %c0_43 = arith.constant 0 : index
    %c0_44 = arith.constant 0 : index
    %c0_45 = arith.constant 0 : index
    %101 = vector.load %arg3[%c0_43, %c0_44, %c0_45] : memref<1x128x512xf32, #tpu.memory_space<vmem>>, vector<1x128x512xf32>
    %102 = vector.shape_cast %101 : vector<1x128x512xf32> to vector<128x512xf32>
    %cst_46 = arith.constant dense<0.000000e+00> : vector<8x512xf32>
    %103 = tpu.matmul %90, %102, %cst_46 {dimension_numbers = #tpu.dot_dimension_numbers<[1], [0], [0], [1], [0, 0, 1, 1], [], []>} : vector<8x128xf32>, vector<128x512xf32>, vector<8x512xf32> -> vector<8x512xf32>
    %104 = arith.addf %100, %103 : vector<8x512xf32>
    %105 = vector.extract_strided_slice %104 {offsets = [0, 0], sizes = [8, 128], strides = [1, 1]} : vector<8x512xf32> to vector<8x128xf32>
    %cst_47 = arith.constant 0.000000e+00 : f32
    %106 = vector.broadcast %cst_47 : f32 to vector<8x128xf32>
    %107 = arith.subf %106, %105 : vector<8x128xf32>
    %108 = math.exp %107 : vector<8x128xf32>
    %cst_48 = arith.constant 1.000000e+00 : f32
    %109 = vector.broadcast %cst_48 : f32 to vector<8x128xf32>
    %110 = arith.addf %109, %108 : vector<8x128xf32>
    %111 = tpu.reciprocal %110 {approx = true} : vector<8x128xf32> -> vector<8x128xf32>
    %112 = vector.extract_strided_slice %104 {offsets = [0, 128], sizes = [8, 128], strides = [1, 1]} : vector<8x512xf32> to vector<8x128xf32>
    %cst_49 = arith.constant 0.000000e+00 : f32
    %113 = vector.broadcast %cst_49 : f32 to vector<8x128xf32>
    %114 = arith.subf %113, %112 : vector<8x128xf32>
    %115 = math.exp %114 : vector<8x128xf32>
    %cst_50 = arith.constant 1.000000e+00 : f32
    %116 = vector.broadcast %cst_50 : f32 to vector<8x128xf32>
    %117 = arith.addf %116, %115 : vector<8x128xf32>
    %118 = tpu.reciprocal %117 {approx = true} : vector<8x128xf32> -> vector<8x128xf32>
    %119 = vector.extract_strided_slice %104 {offsets = [0, 256], sizes = [8, 128], strides = [1, 1]} : vector<8x512xf32> to vector<8x128xf32>
    %120 = math.tanh %119 : vector<8x128xf32>
    %121 = vector.extract_strided_slice %104 {offsets = [0, 384], sizes = [8, 128], strides = [1, 1]} : vector<8x512xf32> to vector<8x128xf32>
    %cst_51 = arith.constant 0.000000e+00 : f32
    %122 = vector.broadcast %cst_51 : f32 to vector<8x128xf32>
    %123 = arith.subf %122, %121 : vector<8x128xf32>
    %124 = math.exp %123 : vector<8x128xf32>
    %cst_52 = arith.constant 1.000000e+00 : f32
    %125 = vector.broadcast %cst_52 : f32 to vector<8x128xf32>
    %126 = arith.addf %125, %124 : vector<8x128xf32>
    %127 = tpu.reciprocal %126 {approx = true} : vector<8x128xf32> -> vector<8x128xf32>
    %128 = arith.mulf %118, %88 : vector<8x128xf32>
    %129 = arith.mulf %111, %120 : vector<8x128xf32>
    %130 = arith.addf %128, %129 : vector<8x128xf32>
    %131 = math.tanh %130 : vector<8x128xf32>
    %132 = arith.mulf %127, %131 : vector<8x128xf32>
    %133 = arith.index_cast %96 : i32 to index
    %c0_53 = arith.constant 0 : index
    %c0_54 = arith.constant 0 : index
    %134 = vector.load %arg5[%133, %c0_53, %c0_54] : memref<8x8x128xf32, #tpu.memory_space<vmem>>, vector<1x8x128xf32>
    %135 = vector.shape_cast %134 : vector<1x8x128xf32> to vector<8x128xf32>
    %136 = vector.shape_cast %132 : vector<8x128xf32> to vector<1x8x128xf32>
    tpu.vector_store %arg5[%133, %c0_53, %c0_54], %136 {strides = array<i32>} : memref<8x8x128xf32, #tpu.memory_space<vmem>>, vector<1x8x128xf32>,
    %c0_i32_55 = arith.constant 0 : i32
    %137 = arith.cmpi eq, %arg0, %c0_i32_55 : i32
    %c3_i32 = arith.constant 3 : i32
    %c4_i32 = arith.constant 4 : i32
    %138 = arith.select %137, %c3_i32, %c4_i32 : i32
    %c8_i32_56 = arith.constant 8 : i32
    %139 = arith.muli %138, %c8_i32_56 : i32
    %140 = tpu.assume_multiple %139, 8 : i32
    %141 = arith.index_cast %140 : i32 to index
    %c0_57 = arith.constant 0 : index
    %142 = vector.load %arg7[%141, %c0_57] : memref<64x512xf32, #tpu.memory_space<vmem>>, vector<8x512xf32>
    %c0_58 = arith.constant 0 : index
    %c0_59 = arith.constant 0 : index
    %c0_60 = arith.constant 0 : index
    %143 = vector.load %arg3[%c0_58, %c0_59, %c0_60] : memref<1x128x512xf32, #tpu.memory_space<vmem>>, vector<1x128x512xf32>
    %144 = vector.shape_cast %143 : vector<1x128x512xf32> to vector<128x512xf32>
    %cst_61 = arith.constant dense<0.000000e+00> : vector<8x512xf32>
    %145 = tpu.matmul %132, %144, %cst_61 {dimension_numbers = #tpu.dot_dimension_numbers<[1], [0], [0], [1], [0, 0, 1, 1], [], []>} : vector<8x128xf32>, vector<128x512xf32>, vector<8x512xf32> -> vector<8x512xf32>
    %146 = arith.addf %142, %145 : vector<8x512xf32>
    %147 = vector.extract_strided_slice %146 {offsets = [0, 0], sizes = [8, 128], strides = [1, 1]} : vector<8x512xf32> to vector<8x128xf32>
    %cst_62 = arith.constant 0.000000e+00 : f32
    %148 = vector.broadcast %cst_62 : f32 to vector<8x128xf32>
    %149 = arith.subf %148, %147 : vector<8x128xf32>
    %150 = math.exp %149 : vector<8x128xf32>
    %cst_63 = arith.constant 1.000000e+00 : f32
    %151 = vector.broadcast %cst_63 : f32 to vector<8x128xf32>
    %152 = arith.addf %151, %150 : vector<8x128xf32>
    %153 = tpu.reciprocal %152 {approx = true} : vector<8x128xf32> -> vector<8x128xf32>
    %154 = vector.extract_strided_slice %146 {offsets = [0, 128], sizes = [8, 128], strides = [1, 1]} : vector<8x512xf32> to vector<8x128xf32>
    %cst_64 = arith.constant 0.000000e+00 : f32
    %155 = vector.broadcast %cst_64 : f32 to vector<8x128xf32>
    %156 = arith.subf %155, %154 : vector<8x128xf32>
    %157 = math.exp %156 : vector<8x128xf32>
    %cst_65 = arith.constant 1.000000e+00 : f32
    %158 = vector.broadcast %cst_65 : f32 to vector<8x128xf32>
    %159 = arith.addf %158, %157 : vector<8x128xf32>
    %160 = tpu.reciprocal %159 {approx = true} : vector<8x128xf32> -> vector<8x128xf32>
    %161 = vector.extract_strided_slice %146 {offsets = [0, 256], sizes = [8, 128], strides = [1, 1]} : vector<8x512xf32> to vector<8x128xf32>
    %162 = math.tanh %161 : vector<8x128xf32>
    %163 = vector.extract_strided_slice %146 {offsets = [0, 384], sizes = [8, 128], strides = [1, 1]} : vector<8x512xf32> to vector<8x128xf32>
    %cst_66 = arith.constant 0.000000e+00 : f32
    %164 = vector.broadcast %cst_66 : f32 to vector<8x128xf32>
    %165 = arith.subf %164, %163 : vector<8x128xf32>
    %166 = math.exp %165 : vector<8x128xf32>
    %cst_67 = arith.constant 1.000000e+00 : f32
    %167 = vector.broadcast %cst_67 : f32 to vector<8x128xf32>
    %168 = arith.addf %167, %166 : vector<8x128xf32>
    %169 = tpu.reciprocal %168 {approx = true} : vector<8x128xf32> -> vector<8x128xf32>
    %170 = arith.mulf %160, %130 : vector<8x128xf32>
    %171 = arith.mulf %153, %162 : vector<8x128xf32>
    %172 = arith.addf %170, %171 : vector<8x128xf32>
    %173 = math.tanh %172 : vector<8x128xf32>
    %174 = arith.mulf %169, %173 : vector<8x128xf32>
    %175 = arith.index_cast %138 : i32 to index
    %c0_68 = arith.constant 0 : index
    %c0_69 = arith.constant 0 : index
    %176 = vector.load %arg5[%175, %c0_68, %c0_69] : memref<8x8x128xf32, #tpu.memory_space<vmem>>, vector<1x8x128xf32>
    %177 = vector.shape_cast %176 : vector<1x8x128xf32> to vector<8x128xf32>
    %178 = vector.shape_cast %174 : vector<8x128xf32> to vector<1x8x128xf32>
    tpu.vector_store %arg5[%175, %c0_68, %c0_69], %178 {strides = array<i32>} : memref<8x8x128xf32, #tpu.memory_space<vmem>>, vector<1x8x128xf32>,
    %c0_i32_70 = arith.constant 0 : i32
    %179 = arith.cmpi eq, %arg0, %c0_i32_70 : i32
    %c4_i32_71 = arith.constant 4 : i32
    %c3_i32_72 = arith.constant 3 : i32
    %180 = arith.select %179, %c4_i32_71, %c3_i32_72 : i32
    %c8_i32_73 = arith.constant 8 : i32
    %181 = arith.muli %180, %c8_i32_73 : i32
    %182 = tpu.assume_multiple %181, 8 : i32
    %183 = arith.index_cast %182 : i32 to index
    %c0_74 = arith.constant 0 : index
    %184 = vector.load %arg7[%183, %c0_74] : memref<64x512xf32, #tpu.memory_space<vmem>>, vector<8x512xf32>
    %c0_75 = arith.constant 0 : index
    %c0_76 = arith.constant 0 : index
    %c0_77 = arith.constant 0 : index
    %185 = vector.load %arg3[%c0_75, %c0_76, %c0_77] : memref<1x128x512xf32, #tpu.memory_space<vmem>>, vector<1x128x512xf32>
    %186 = vector.shape_cast %185 : vector<1x128x512xf32> to vector<128x512xf32>
    %cst_78 = arith.constant dense<0.000000e+00> : vector<8x512xf32>
    %187 = tpu.matmul %174, %186, %cst_78 {dimension_numbers = #tpu.dot_dimension_numbers<[1], [0], [0], [1], [0, 0, 1, 1], [], []>} : vector<8x128xf32>, vector<128x512xf32>, vector<8x512xf32> -> vector<8x512xf32>
    %188 = arith.addf %184, %187 : vector<8x512xf32>
    %189 = vector.extract_strided_slice %188 {offsets = [0, 0], sizes = [8, 128], strides = [1, 1]} : vector<8x512xf32> to vector<8x128xf32>
    %cst_79 = arith.constant 0.000000e+00 : f32
    %190 = vector.broadcast %cst_79 : f32 to vector<8x128xf32>
    %191 = arith.subf %190, %189 : vector<8x128xf32>
    %192 = math.exp %191 : vector<8x128xf32>
    %cst_80 = arith.constant 1.000000e+00 : f32
    %193 = vector.broadcast %cst_80 : f32 to vector<8x128xf32>
    %194 = arith.addf %193, %192 : vector<8x128xf32>
    %195 = tpu.reciprocal %194 {approx = true} : vector<8x128xf32> -> vector<8x128xf32>
    %196 = vector.extract_strided_slice %188 {offsets = [0, 128], sizes = [8, 128], strides = [1, 1]} : vector<8x512xf32> to vector<8x128xf32>
    %cst_81 = arith.constant 0.000000e+00 : f32
    %197 = vector.broadcast %cst_81 : f32 to vector<8x128xf32>
    %198 = arith.subf %197, %196 : vector<8x128xf32>
    %199 = math.exp %198 : vector<8x128xf32>
    %cst_82 = arith.constant 1.000000e+00 : f32
    %200 = vector.broadcast %cst_82 : f32 to vector<8x128xf32>
    %201 = arith.addf %200, %199 : vector<8x128xf32>
    %202 = tpu.reciprocal %201 {approx = true} : vector<8x128xf32> -> vector<8x128xf32>
    %203 = vector.extract_strided_slice %188 {offsets = [0, 256], sizes = [8, 128], strides = [1, 1]} : vector<8x512xf32> to vector<8x128xf32>
    %204 = math.tanh %203 : vector<8x128xf32>
    %205 = vector.extract_strided_slice %188 {offsets = [0, 384], sizes = [8, 128], strides = [1, 1]} : vector<8x512xf32> to vector<8x128xf32>
    %cst_83 = arith.constant 0.000000e+00 : f32
    %206 = vector.broadcast %cst_83 : f32 to vector<8x128xf32>
    %207 = arith.subf %206, %205 : vector<8x128xf32>
    %208 = math.exp %207 : vector<8x128xf32>
    %cst_84 = arith.constant 1.000000e+00 : f32
    %209 = vector.broadcast %cst_84 : f32 to vector<8x128xf32>
    %210 = arith.addf %209, %208 : vector<8x128xf32>
    %211 = tpu.reciprocal %210 {approx = true} : vector<8x128xf32> -> vector<8x128xf32>
    %212 = arith.mulf %202, %172 : vector<8x128xf32>
    %213 = arith.mulf %195, %204 : vector<8x128xf32>
    %214 = arith.addf %212, %213 : vector<8x128xf32>
    %215 = math.tanh %214 : vector<8x128xf32>
    %216 = arith.mulf %211, %215 : vector<8x128xf32>
    %217 = arith.index_cast %180 : i32 to index
    %c0_85 = arith.constant 0 : index
    %c0_86 = arith.constant 0 : index
    %218 = vector.load %arg5[%217, %c0_85, %c0_86] : memref<8x8x128xf32, #tpu.memory_space<vmem>>, vector<1x8x128xf32>
    %219 = vector.shape_cast %218 : vector<1x8x128xf32> to vector<8x128xf32>
    %220 = vector.shape_cast %216 : vector<8x128xf32> to vector<1x8x128xf32>
    tpu.vector_store %arg5[%217, %c0_85, %c0_86], %220 {strides = array<i32>} : memref<8x8x128xf32, #tpu.memory_space<vmem>>, vector<1x8x128xf32>,
    %c0_i32_87 = arith.constant 0 : i32
    %221 = arith.cmpi eq, %arg0, %c0_i32_87 : i32
    %c5_i32_88 = arith.constant 5 : i32
    %c2_i32_89 = arith.constant 2 : i32
    %222 = arith.select %221, %c5_i32_88, %c2_i32_89 : i32
    %c8_i32_90 = arith.constant 8 : i32
    %223 = arith.muli %222, %c8_i32_90 : i32
    %224 = tpu.assume_multiple %223, 8 : i32
    %225 = arith.index_cast %224 : i32 to index
    %c0_91 = arith.constant 0 : index
    %226 = vector.load %arg7[%225, %c0_91] : memref<64x512xf32, #tpu.memory_space<vmem>>, vector<8x512xf32>
    %c0_92 = arith.constant 0 : index
    %c0_93 = arith.constant 0 : index
    %c0_94 = arith.constant 0 : index
    %227 = vector.load %arg3[%c0_92, %c0_93, %c0_94] : memref<1x128x512xf32, #tpu.memory_space<vmem>>, vector<1x128x512xf32>
    %228 = vector.shape_cast %227 : vector<1x128x512xf32> to vector<128x512xf32>
    %cst_95 = arith.constant dense<0.000000e+00> : vector<8x512xf32>
    %229 = tpu.matmul %216, %228, %cst_95 {dimension_numbers = #tpu.dot_dimension_numbers<[1], [0], [0], [1], [0, 0, 1, 1], [], []>} : vector<8x128xf32>, vector<128x512xf32>, vector<8x512xf32> -> vector<8x512xf32>
    %230 = arith.addf %226, %229 : vector<8x512xf32>
    %231 = vector.extract_strided_slice %230 {offsets = [0, 0], sizes = [8, 128], strides = [1, 1]} : vector<8x512xf32> to vector<8x128xf32>
    %cst_96 = arith.constant 0.000000e+00 : f32
    %232 = vector.broadcast %cst_96 : f32 to vector<8x128xf32>
    %233 = arith.subf %232, %231 : vector<8x128xf32>
    %234 = math.exp %233 : vector<8x128xf32>
    %cst_97 = arith.constant 1.000000e+00 : f32
    %235 = vector.broadcast %cst_97 : f32 to vector<8x128xf32>
    %236 = arith.addf %235, %234 : vector<8x128xf32>
    %237 = tpu.reciprocal %236 {approx = true} : vector<8x128xf32> -> vector<8x128xf32>
    %238 = vector.extract_strided_slice %230 {offsets = [0, 128], sizes = [8, 128], strides = [1, 1]} : vector<8x512xf32> to vector<8x128xf32>
    %cst_98 = arith.constant 0.000000e+00 : f32
    %239 = vector.broadcast %cst_98 : f32 to vector<8x128xf32>
    %240 = arith.subf %239, %238 : vector<8x128xf32>
    %241 = math.exp %240 : vector<8x128xf32>
    %cst_99 = arith.constant 1.000000e+00 : f32
    %242 = vector.broadcast %cst_99 : f32 to vector<8x128xf32>
    %243 = arith.addf %242, %241 : vector<8x128xf32>
    %244 = tpu.reciprocal %243 {approx = true} : vector<8x128xf32> -> vector<8x128xf32>
    %245 = vector.extract_strided_slice %230 {offsets = [0, 256], sizes = [8, 128], strides = [1, 1]} : vector<8x512xf32> to vector<8x128xf32>
    %246 = math.tanh %245 : vector<8x128xf32>
    %247 = vector.extract_strided_slice %230 {offsets = [0, 384], sizes = [8, 128], strides = [1, 1]} : vector<8x512xf32> to vector<8x128xf32>
    %cst_100 = arith.constant 0.000000e+00 : f32
    %248 = vector.broadcast %cst_100 : f32 to vector<8x128xf32>
    %249 = arith.subf %248, %247 : vector<8x128xf32>
    %250 = math.exp %249 : vector<8x128xf32>
    %cst_101 = arith.constant 1.000000e+00 : f32
    %251 = vector.broadcast %cst_101 : f32 to vector<8x128xf32>
    %252 = arith.addf %251, %250 : vector<8x128xf32>
    %253 = tpu.reciprocal %252 {approx = true} : vector<8x128xf32> -> vector<8x128xf32>
    %254 = arith.mulf %244, %214 : vector<8x128xf32>
    %255 = arith.mulf %237, %246 : vector<8x128xf32>
    %256 = arith.addf %254, %255 : vector<8x128xf32>
    %257 = math.tanh %256 : vector<8x128xf32>
    %258 = arith.mulf %253, %257 : vector<8x128xf32>
    %259 = arith.index_cast %222 : i32 to index
    %c0_102 = arith.constant 0 : index
    %c0_103 = arith.constant 0 : index
    %260 = vector.load %arg5[%259, %c0_102, %c0_103] : memref<8x8x128xf32, #tpu.memory_space<vmem>>, vector<1x8x128xf32>
    %261 = vector.shape_cast %260 : vector<1x8x128xf32> to vector<8x128xf32>
    %262 = vector.shape_cast %258 : vector<8x128xf32> to vector<1x8x128xf32>
    tpu.vector_store %arg5[%259, %c0_102, %c0_103], %262 {strides = array<i32>} : memref<8x8x128xf32, #tpu.memory_space<vmem>>, vector<1x8x128xf32>,
    %c0_i32_104 = arith.constant 0 : i32
    %263 = arith.cmpi eq, %arg0, %c0_i32_104 : i32
    %c6_i32_105 = arith.constant 6 : i32
    %c1_i32_106 = arith.constant 1 : i32
    %264 = arith.select %263, %c6_i32_105, %c1_i32_106 : i32
    %c8_i32_107 = arith.constant 8 : i32
    %265 = arith.muli %264, %c8_i32_107 : i32
    %266 = tpu.assume_multiple %265, 8 : i32
    %267 = arith.index_cast %266 : i32 to index
    %c0_108 = arith.constant 0 : index
    %268 = vector.load %arg7[%267, %c0_108] : memref<64x512xf32, #tpu.memory_space<vmem>>, vector<8x512xf32>
    %c0_109 = arith.constant 0 : index
    %c0_110 = arith.constant 0 : index
    %c0_111 = arith.constant 0 : index
    %269 = vector.load %arg3[%c0_109, %c0_110, %c0_111] : memref<1x128x512xf32, #tpu.memory_space<vmem>>, vector<1x128x512xf32>
    %270 = vector.shape_cast %269 : vector<1x128x512xf32> to vector<128x512xf32>
    %cst_112 = arith.constant dense<0.000000e+00> : vector<8x512xf32>
    %271 = tpu.matmul %258, %270, %cst_112 {dimension_numbers = #tpu.dot_dimension_numbers<[1], [0], [0], [1], [0, 0, 1, 1], [], []>} : vector<8x128xf32>, vector<128x512xf32>, vector<8x512xf32> -> vector<8x512xf32>
    %272 = arith.addf %268, %271 : vector<8x512xf32>
    %273 = vector.extract_strided_slice %272 {offsets = [0, 0], sizes = [8, 128], strides = [1, 1]} : vector<8x512xf32> to vector<8x128xf32>
    %cst_113 = arith.constant 0.000000e+00 : f32
    %274 = vector.broadcast %cst_113 : f32 to vector<8x128xf32>
    %275 = arith.subf %274, %273 : vector<8x128xf32>
    %276 = math.exp %275 : vector<8x128xf32>
    %cst_114 = arith.constant 1.000000e+00 : f32
    %277 = vector.broadcast %cst_114 : f32 to vector<8x128xf32>
    %278 = arith.addf %277, %276 : vector<8x128xf32>
    %279 = tpu.reciprocal %278 {approx = true} : vector<8x128xf32> -> vector<8x128xf32>
    %280 = vector.extract_strided_slice %272 {offsets = [0, 128], sizes = [8, 128], strides = [1, 1]} : vector<8x512xf32> to vector<8x128xf32>
    %cst_115 = arith.constant 0.000000e+00 : f32
    %281 = vector.broadcast %cst_115 : f32 to vector<8x128xf32>
    %282 = arith.subf %281, %280 : vector<8x128xf32>
    %283 = math.exp %282 : vector<8x128xf32>
    %cst_116 = arith.constant 1.000000e+00 : f32
    %284 = vector.broadcast %cst_116 : f32 to vector<8x128xf32>
    %285 = arith.addf %284, %283 : vector<8x128xf32>
    %286 = tpu.reciprocal %285 {approx = true} : vector<8x128xf32> -> vector<8x128xf32>
    %287 = vector.extract_strided_slice %272 {offsets = [0, 256], sizes = [8, 128], strides = [1, 1]} : vector<8x512xf32> to vector<8x128xf32>
    %288 = math.tanh %287 : vector<8x128xf32>
    %289 = vector.extract_strided_slice %272 {offsets = [0, 384], sizes = [8, 128], strides = [1, 1]} : vector<8x512xf32> to vector<8x128xf32>
    %cst_117 = arith.constant 0.000000e+00 : f32
    %290 = vector.broadcast %cst_117 : f32 to vector<8x128xf32>
    %291 = arith.subf %290, %289 : vector<8x128xf32>
    %292 = math.exp %291 : vector<8x128xf32>
    %cst_118 = arith.constant 1.000000e+00 : f32
    %293 = vector.broadcast %cst_118 : f32 to vector<8x128xf32>
    %294 = arith.addf %293, %292 : vector<8x128xf32>
    %295 = tpu.reciprocal %294 {approx = true} : vector<8x128xf32> -> vector<8x128xf32>
    %296 = arith.mulf %286, %256 : vector<8x128xf32>
    %297 = arith.mulf %279, %288 : vector<8x128xf32>
    %298 = arith.addf %296, %297 : vector<8x128xf32>
    %299 = math.tanh %298 : vector<8x128xf32>
    %300 = arith.mulf %295, %299 : vector<8x128xf32>
    %301 = arith.index_cast %264 : i32 to index
    %c0_119 = arith.constant 0 : index
    %c0_120 = arith.constant 0 : index
    %302 = vector.load %arg5[%301, %c0_119, %c0_120] : memref<8x8x128xf32, #tpu.memory_space<vmem>>, vector<1x8x128xf32>
    %303 = vector.shape_cast %302 : vector<1x8x128xf32> to vector<8x128xf32>
    %304 = vector.shape_cast %300 : vector<8x128xf32> to vector<1x8x128xf32>
    tpu.vector_store %arg5[%301, %c0_119, %c0_120], %304 {strides = array<i32>} : memref<8x8x128xf32, #tpu.memory_space<vmem>>, vector<1x8x128xf32>,
    %c0_i32_121 = arith.constant 0 : i32
    %305 = arith.cmpi eq, %arg0, %c0_i32_121 : i32
    %c7_i32_122 = arith.constant 7 : i32
    %c0_i32_123 = arith.constant 0 : i32
    %306 = arith.select %305, %c7_i32_122, %c0_i32_123 : i32
    %c8_i32_124 = arith.constant 8 : i32
    %307 = arith.muli %306, %c8_i32_124 : i32
    %308 = tpu.assume_multiple %307, 8 : i32
    %309 = arith.index_cast %308 : i32 to index
    %c0_125 = arith.constant 0 : index
    %310 = vector.load %arg7[%309, %c0_125] : memref<64x512xf32, #tpu.memory_space<vmem>>, vector<8x512xf32>
    %c0_126 = arith.constant 0 : index
    %c0_127 = arith.constant 0 : index
    %c0_128 = arith.constant 0 : index
    %311 = vector.load %arg3[%c0_126, %c0_127, %c0_128] : memref<1x128x512xf32, #tpu.memory_space<vmem>>, vector<1x128x512xf32>
    %312 = vector.shape_cast %311 : vector<1x128x512xf32> to vector<128x512xf32>
    %cst_129 = arith.constant dense<0.000000e+00> : vector<8x512xf32>
    %313 = tpu.matmul %300, %312, %cst_129 {dimension_numbers = #tpu.dot_dimension_numbers<[1], [0], [0], [1], [0, 0, 1, 1], [], []>} : vector<8x128xf32>, vector<128x512xf32>, vector<8x512xf32> -> vector<8x512xf32>
    %314 = arith.addf %310, %313 : vector<8x512xf32>
    %315 = vector.extract_strided_slice %314 {offsets = [0, 0], sizes = [8, 128], strides = [1, 1]} : vector<8x512xf32> to vector<8x128xf32>
    %cst_130 = arith.constant 0.000000e+00 : f32
    %316 = vector.broadcast %cst_130 : f32 to vector<8x128xf32>
    %317 = arith.subf %316, %315 : vector<8x128xf32>
    %318 = math.exp %317 : vector<8x128xf32>
    %cst_131 = arith.constant 1.000000e+00 : f32
    %319 = vector.broadcast %cst_131 : f32 to vector<8x128xf32>
    %320 = arith.addf %319, %318 : vector<8x128xf32>
    %321 = tpu.reciprocal %320 {approx = true} : vector<8x128xf32> -> vector<8x128xf32>
    %322 = vector.extract_strided_slice %314 {offsets = [0, 128], sizes = [8, 128], strides = [1, 1]} : vector<8x512xf32> to vector<8x128xf32>
    %cst_132 = arith.constant 0.000000e+00 : f32
    %323 = vector.broadcast %cst_132 : f32 to vector<8x128xf32>
    %324 = arith.subf %323, %322 : vector<8x128xf32>
    %325 = math.exp %324 : vector<8x128xf32>
    %cst_133 = arith.constant 1.000000e+00 : f32
    %326 = vector.broadcast %cst_133 : f32 to vector<8x128xf32>
    %327 = arith.addf %326, %325 : vector<8x128xf32>
    %328 = tpu.reciprocal %327 {approx = true} : vector<8x128xf32> -> vector<8x128xf32>
    %329 = vector.extract_strided_slice %314 {offsets = [0, 256], sizes = [8, 128], strides = [1, 1]} : vector<8x512xf32> to vector<8x128xf32>
    %330 = math.tanh %329 : vector<8x128xf32>
    %331 = vector.extract_strided_slice %314 {offsets = [0, 384], sizes = [8, 128], strides = [1, 1]} : vector<8x512xf32> to vector<8x128xf32>
    %cst_134 = arith.constant 0.000000e+00 : f32
    %332 = vector.broadcast %cst_134 : f32 to vector<8x128xf32>
    %333 = arith.subf %332, %331 : vector<8x128xf32>
    %334 = math.exp %333 : vector<8x128xf32>
    %cst_135 = arith.constant 1.000000e+00 : f32
    %335 = vector.broadcast %cst_135 : f32 to vector<8x128xf32>
    %336 = arith.addf %335, %334 : vector<8x128xf32>
    %337 = tpu.reciprocal %336 {approx = true} : vector<8x128xf32> -> vector<8x128xf32>
    %338 = arith.mulf %328, %298 : vector<8x128xf32>
    %339 = arith.mulf %321, %330 : vector<8x128xf32>
    %340 = arith.addf %338, %339 : vector<8x128xf32>
    %341 = math.tanh %340 : vector<8x128xf32>
    %342 = arith.mulf %337, %341 : vector<8x128xf32>
    %343 = arith.index_cast %306 : i32 to index
    %c0_136 = arith.constant 0 : index
    %c0_137 = arith.constant 0 : index
    %344 = vector.load %arg5[%343, %c0_136, %c0_137] : memref<8x8x128xf32, #tpu.memory_space<vmem>>, vector<1x8x128xf32>
    %345 = vector.shape_cast %344 : vector<1x8x128xf32> to vector<8x128xf32>
    %346 = vector.shape_cast %342 : vector<8x128xf32> to vector<1x8x128xf32>
    tpu.vector_store %arg5[%343, %c0_136, %c0_137], %346 {strides = array<i32>} : memref<8x8x128xf32, #tpu.memory_space<vmem>>, vector<1x8x128xf32>,
    %c0_138 = arith.constant 0 : index
    %c0_139 = arith.constant 0 : index
    %347 = vector.load %arg6[%c0_138, %c0_139] : memref<8x128xf32, #tpu.memory_space<vmem>>, vector<8x128xf32>
    tpu.vector_store %arg6[%c0_138, %c0_139], %342 {strides = array<i32>} : memref<8x128xf32, #tpu.memory_space<vmem>>, vector<8x128xf32>,
    return
  }
  func.func @transform_0(%arg0: i32) -> (i32, i32) {
    %c0_i32 = arith.constant 0 : i32
    %c0_i32_0 = arith.constant 0 : i32
    %c0_i32_1 = arith.constant 0 : i32
    return %c0_i32, %c0_i32_0 : i32, i32
  }
  func.func @transform_1(%arg0: i32) -> (i32, i32, i32) {
    %c0_i32 = arith.constant 0 : i32
    %c0_i32_0 = arith.constant 0 : i32
    %c0_i32_1 = arith.constant 0 : i32
    return %arg0, %c0_i32, %c0_i32_0 : i32, i32, i32
  }
  func.func @transform_2(%arg0: i32) -> (i32, i32, i32) {
    %c0_i32 = arith.constant 0 : i32
    %c0_i32_0 = arith.constant 0 : i32
    %c0_i32_1 = arith.constant 0 : i32
    return %arg0, %c0_i32, %c0_i32_0 : i32, i32, i32
  }
  func.func @transform_3(%arg0: i32) -> (i32, i32, i32) {
    %c0_i32 = arith.constant 0 : i32
    %c0_i32_0 = arith.constant 0 : i32
    %c0_i32_1 = arith.constant 0 : i32
    return %arg0, %c0_i32, %c0_i32_0 : i32, i32, i32
  }
  func.func @transform_4(%arg0: i32) -> (i32, i32, i32) {
    %c0_i32 = arith.constant 0 : i32
    %c0_i32_0 = arith.constant 0 : i32
    %c0_i32_1 = arith.constant 0 : i32
    return %c0_i32, %c0_i32_0, %arg0 : i32, i32, i32
  }
  func.func @transform_5(%arg0: i32) -> (i32, i32) {
    %c0_i32 = arith.constant 0 : i32
    %c0_i32_0 = arith.constant 0 : i32
    return %c0_i32, %arg0 : i32, i32
  }
}

module attributes {stable_mosaic.version = 11 : i64} {
  func.func @linear_kernel(%arg0: i32, %arg1: memref<8x256xf32, #tpu.memory_space<vmem>>, %arg2: memref<256x5xf32, #tpu.memory_space<vmem>>, %arg3: memref<1x5xf32, #tpu.memory_space<vmem>>, %arg4: memref<8x5xf32, #tpu.memory_space<vmem>>) attributes {dimension_semantics = [#tpu.dimension_semantics<arbitrary>], iteration_bounds = array<i64: 1>, scalar_prefetch = 0 : i64, scratch_operands = 0 : i64, tpu.core_type = #tpu.core_type<tc>, window_params = [{pipeline_mode = #tpu.pipeline_mode<synchronous>, transform_indices = @transform_0, window_bounds = array<i64: 8, 256>}, {pipeline_mode = #tpu.pipeline_mode<synchronous>, transform_indices = @transform_1, window_bounds = array<i64: 256, 5>}, {pipeline_mode = #tpu.pipeline_mode<synchronous>, transform_indices = @transform_2, window_bounds = array<i64: 1, 5>}, {pipeline_mode = #tpu.pipeline_mode<synchronous>, transform_indices = @transform_3, window_bounds = array<i64: 8, 5>}]} {
    %c0 = arith.constant 0 : index
    %c0_0 = arith.constant 0 : index
    %0 = vector.load %arg1[%c0, %c0_0] : memref<8x256xf32, #tpu.memory_space<vmem>>, vector<8x256xf32>
    %c0_1 = arith.constant 0 : index
    %c0_2 = arith.constant 0 : index
    %1 = vector.load %arg2[%c0_1, %c0_2] : memref<256x5xf32, #tpu.memory_space<vmem>>, vector<256x5xf32>
    %cst = arith.constant dense<0.000000e+00> : vector<8x5xf32>
    %2 = tpu.matmul %0, %1, %cst {dimension_numbers = #tpu.dot_dimension_numbers<[1], [0], [0], [1], [0, 0, 1, 1], [], []>} : vector<8x256xf32>, vector<256x5xf32>, vector<8x5xf32> -> vector<8x5xf32>
    %c0_3 = arith.constant 0 : index
    %c0_4 = arith.constant 0 : index
    %3 = vector.load %arg3[%c0_3, %c0_4] : memref<1x5xf32, #tpu.memory_space<vmem>>, vector<1x5xf32>
    %4 = vector.broadcast %3 : vector<1x5xf32> to vector<8x5xf32>
    %5 = arith.addf %2, %4 : vector<8x5xf32>
    %c0_5 = arith.constant 0 : index
    %c0_6 = arith.constant 0 : index
    %6 = vector.load %arg4[%c0_5, %c0_6] : memref<8x5xf32, #tpu.memory_space<vmem>>, vector<8x5xf32>
    tpu.vector_store %arg4[%c0_5, %c0_6], %5 {strides = array<i32>} : memref<8x5xf32, #tpu.memory_space<vmem>>, vector<8x5xf32>,
    return
  }
  func.func @transform_0(%arg0: i32) -> (i32, i32) {
    %c0_i32 = arith.constant 0 : i32
    %c0_i32_0 = arith.constant 0 : i32
    %c0_i32_1 = arith.constant 0 : i32
    return %c0_i32, %c0_i32_0 : i32, i32
  }
  func.func @transform_1(%arg0: i32) -> (i32, i32) {
    %c0_i32 = arith.constant 0 : i32
    %c0_i32_0 = arith.constant 0 : i32
    %c0_i32_1 = arith.constant 0 : i32
    return %c0_i32, %c0_i32_0 : i32, i32
  }
  func.func @transform_2(%arg0: i32) -> (i32, i32) {
    %c0_i32 = arith.constant 0 : i32
    %c0_i32_0 = arith.constant 0 : i32
    %c0_i32_1 = arith.constant 0 : i32
    return %c0_i32, %c0_i32_0 : i32, i32
  }
  func.func @transform_3(%arg0: i32) -> (i32, i32) {
    %c0_i32 = arith.constant 0 : i32
    %c0_i32_0 = arith.constant 0 : i32
    %c0_i32_1 = arith.constant 0 : i32
    return %c0_i32, %c0_i32_0 : i32, i32
  }
}

module attributes {stable_mosaic.version = 11 : i64} {
  func.func @kernel(%arg0: i32, %arg1: memref<64x256xf32, #tpu.memory_space<vmem>>, %arg2: memref<1x256x512xf32, #tpu.memory_space<vmem>>, %arg3: memref<1x128x512xf32, #tpu.memory_space<vmem>>, %arg4: memref<1x1x512xf32, #tpu.memory_space<vmem>>, %arg5: memref<8x8x128xf32, #tpu.memory_space<vmem>>, %arg6: memref<8x128xf32, #tpu.memory_space<vmem>>, %arg7: memref<64x512xf32, #tpu.memory_space<vmem>>) attributes {dimension_semantics = [#tpu.dimension_semantics<parallel>], iteration_bounds = array<i64: 2>, scalar_prefetch = 0 : i64, scratch_operands = 1 : i64, tpu.core_type = #tpu.core_type<tc>, window_params = [{pipeline_mode = #tpu.pipeline_mode<synchronous>, transform_indices = @transform_0, window_bounds = array<i64: 64, 256>}, {transform_indices = @transform_1, window_bounds = array<i64: 1, 256, 512>}, {transform_indices = @transform_2, window_bounds = array<i64: 1, 128, 512>}, {transform_indices = @transform_3, window_bounds = array<i64: 1, 1, 512>}, {transform_indices = @transform_4, window_bounds = array<i64: 8, 8, 128>}, {transform_indices = @transform_5, window_bounds = array<i64: 8, 128>}]} {
    %c0 = arith.constant 0 : index
    %c0_0 = arith.constant 0 : index
    %0 = vector.load %arg1[%c0, %c0_0] : memref<64x256xf32, #tpu.memory_space<vmem>>, vector<64x256xf32>
    %c0_1 = arith.constant 0 : index
    %c0_2 = arith.constant 0 : index
    %c0_3 = arith.constant 0 : index
    %1 = vector.load %arg2[%c0_1, %c0_2, %c0_3] : memref<1x256x512xf32, #tpu.memory_space<vmem>>, vector<1x256x512xf32>
    %2 = vector.shape_cast %1 : vector<1x256x512xf32> to vector<256x512xf32>
    %cst = arith.constant dense<0.000000e+00> : vector<64x512xf32>
    %3 = tpu.matmul %0, %2, %cst {dimension_numbers = #tpu.dot_dimension_numbers<[1], [0], [0], [1], [0, 0, 1, 1], [], []>} : vector<64x256xf32>, vector<256x512xf32>, vector<64x512xf32> -> vector<64x512xf32>
    %c0_4 = arith.constant 0 : index
    %c0_5 = arith.constant 0 : index
    %c0_6 = arith.constant 0 : index
    %4 = vector.load %arg4[%c0_4, %c0_5, %c0_6] : memref<1x1x512xf32, #tpu.memory_space<vmem>>, vector<1x1x512xf32>
    %5 = vector.shape_cast %4 : vector<1x1x512xf32> to vector<1x512xf32>
    %6 = vector.broadcast %5 : vector<1x512xf32> to vector<64x512xf32>
    %7 = arith.addf %3, %6 : vector<64x512xf32>
    %c0_7 = arith.constant 0 : index
    %c0_8 = arith.constant 0 : index
    %8 = vector.load %arg7[%c0_7, %c0_8] : memref<64x512xf32, #tpu.memory_space<vmem>>, vector<64x512xf32>
    tpu.vector_store %arg7[%c0_7, %c0_8], %7 {strides = array<i32>} : memref<64x512xf32, #tpu.memory_space<vmem>>, vector<64x512xf32>,
    %cst_9 = arith.constant 0.000000e+00 : f32
    %9 = vector.broadcast %cst_9 : f32 to vector<8x128xf32>
    %cst_10 = arith.constant 0.000000e+00 : f32
    %10 = vector.broadcast %cst_10 : f32 to vector<8x128xf32>
    %c0_i32 = arith.constant 0 : i32
    %11 = arith.cmpi eq, %arg0, %c0_i32 : i32
    %c0_i32_11 = arith.constant 0 : i32
    %c7_i32 = arith.constant 7 : i32
    %12 = arith.select %11, %c0_i32_11, %c7_i32 : i32
    %c8_i32 = arith.constant 8 : i32
    %13 = arith.muli %12, %c8_i32 : i32
    %14 = tpu.assume_multiple %13, 8 : i32
    %15 = arith.index_cast %14 : i32 to index
    %c0_12 = arith.constant 0 : index
    %16 = vector.load %arg7[%15, %c0_12] : memref<64x512xf32, #tpu.memory_space<vmem>>, vector<8x512xf32>
    %c0_13 = arith.constant 0 : index
    %c0_14 = arith.constant 0 : index
    %c0_15 = arith.constant 0 : index
    %17 = vector.load %arg3[%c0_13, %c0_14, %c0_15] : memref<1x128x512xf32, #tpu.memory_space<vmem>>, vector<1x128x512xf32>
    %18 = vector.shape_cast %17 : vector<1x128x512xf32> to vector<128x512xf32>
    %cst_16 = arith.constant dense<0.000000e+00> : vector<8x512xf32>
    %19 = tpu.matmul %9, %18, %cst_16 {dimension_numbers = #tpu.dot_dimension_numbers<[1], [0], [0], [1], [0, 0, 1, 1], [], []>} : vector<8x128xf32>, vector<128x512xf32>, vector<8x512xf32> -> vector<8x512xf32>
    %20 = arith.addf %16, %19 : vector<8x512xf32>
    %21 = vector.extract_strided_slice %20 {offsets = [0, 0], sizes = [8, 128], strides = [1, 1]} : vector<8x512xf32> to vector<8x128xf32>
    %cst_17 = arith.constant 0.000000e+00 : f32
    %22 = vector.broadcast %cst_17 : f32 to vector<8x128xf32>
    %23 = arith.subf %22, %21 : vector<8x128xf32>
    %24 = math.exp %23 : vector<8x128xf32>
    %cst_18 = arith.constant 1.000000e+00 : f32
    %25 = vector.broadcast %cst_18 : f32 to vector<8x128xf32>
    %26 = arith.addf %25, %24 : vector<8x128xf32>
    %27 = tpu.reciprocal %26 {approx = true} : vector<8x128xf32> -> vector<8x128xf32>
    %28 = vector.extract_strided_slice %20 {offsets = [0, 128], sizes = [8, 128], strides = [1, 1]} : vector<8x512xf32> to vector<8x128xf32>
    %cst_19 = arith.constant 0.000000e+00 : f32
    %29 = vector.broadcast %cst_19 : f32 to vector<8x128xf32>
    %30 = arith.subf %29, %28 : vector<8x128xf32>
    %31 = math.exp %30 : vector<8x128xf32>
    %cst_20 = arith.constant 1.000000e+00 : f32
    %32 = vector.broadcast %cst_20 : f32 to vector<8x128xf32>
    %33 = arith.addf %32, %31 : vector<8x128xf32>
    %34 = tpu.reciprocal %33 {approx = true} : vector<8x128xf32> -> vector<8x128xf32>
    %35 = vector.extract_strided_slice %20 {offsets = [0, 256], sizes = [8, 128], strides = [1, 1]} : vector<8x512xf32> to vector<8x128xf32>
    %36 = math.tanh %35 : vector<8x128xf32>
    %37 = vector.extract_strided_slice %20 {offsets = [0, 384], sizes = [8, 128], strides = [1, 1]} : vector<8x512xf32> to vector<8x128xf32>
    %cst_21 = arith.constant 0.000000e+00 : f32
    %38 = vector.broadcast %cst_21 : f32 to vector<8x128xf32>
    %39 = arith.subf %38, %37 : vector<8x128xf32>
    %40 = math.exp %39 : vector<8x128xf32>
    %cst_22 = arith.constant 1.000000e+00 : f32
    %41 = vector.broadcast %cst_22 : f32 to vector<8x128xf32>
    %42 = arith.addf %41, %40 : vector<8x128xf32>
    %43 = tpu.reciprocal %42 {approx = true} : vector<8x128xf32> -> vector<8x128xf32>
    %44 = arith.mulf %34, %10 : vector<8x128xf32>
    %45 = arith.mulf %27, %36 : vector<8x128xf32>
    %46 = arith.addf %44, %45 : vector<8x128xf32>
    %47 = math.tanh %46 : vector<8x128xf32>
    %48 = arith.mulf %43, %47 : vector<8x128xf32>
    %49 = arith.index_cast %12 : i32 to index
    %c0_23 = arith.constant 0 : index
    %c0_24 = arith.constant 0 : index
    %50 = vector.load %arg5[%49, %c0_23, %c0_24] : memref<8x8x128xf32, #tpu.memory_space<vmem>>, vector<1x8x128xf32>
    %51 = vector.shape_cast %50 : vector<1x8x128xf32> to vector<8x128xf32>
    %52 = vector.shape_cast %48 : vector<8x128xf32> to vector<1x8x128xf32>
    tpu.vector_store %arg5[%49, %c0_23, %c0_24], %52 {strides = array<i32>} : memref<8x8x128xf32, #tpu.memory_space<vmem>>, vector<1x8x128xf32>,
    %c0_i32_25 = arith.constant 0 : i32
    %53 = arith.cmpi eq, %arg0, %c0_i32_25 : i32
    %c1_i32 = arith.constant 1 : i32
    %c6_i32 = arith.constant 6 : i32
    %54 = arith.select %53, %c1_i32, %c6_i32 : i32
    %c8_i32_26 = arith.constant 8 : i32
    %55 = arith.muli %54, %c8_i32_26 : i32
    %56 = tpu.assume_multiple %55, 8 : i32
    %57 = arith.index_cast %56 : i32 to index
    %c0_27 = arith.constant 0 : index
    %58 = vector.load %arg7[%57, %c0_27] : memref<64x512xf32, #tpu.memory_space<vmem>>, vector<8x512xf32>
    %c0_28 = arith.constant 0 : index
    %c0_29 = arith.constant 0 : index
    %c0_30 = arith.constant 0 : index
    %59 = vector.load %arg3[%c0_28, %c0_29, %c0_30] : memref<1x128x512xf32, #tpu.memory_space<vmem>>, vector<1x128x512xf32>
    %60 = vector.shape_cast %59 : vector<1x128x512xf32> to vector<128x512xf32>
    %cst_31 = arith.constant dense<0.000000e+00> : vector<8x512xf32>
    %61 = tpu.matmul %48, %60, %cst_31 {dimension_numbers = #tpu.dot_dimension_numbers<[1], [0], [0], [1], [0, 0, 1, 1], [], []>} : vector<8x128xf32>, vector<128x512xf32>, vector<8x512xf32> -> vector<8x512xf32>
    %62 = arith.addf %58, %61 : vector<8x512xf32>
    %63 = vector.extract_strided_slice %62 {offsets = [0, 0], sizes = [8, 128], strides = [1, 1]} : vector<8x512xf32> to vector<8x128xf32>
    %cst_32 = arith.constant 0.000000e+00 : f32
    %64 = vector.broadcast %cst_32 : f32 to vector<8x128xf32>
    %65 = arith.subf %64, %63 : vector<8x128xf32>
    %66 = math.exp %65 : vector<8x128xf32>
    %cst_33 = arith.constant 1.000000e+00 : f32
    %67 = vector.broadcast %cst_33 : f32 to vector<8x128xf32>
    %68 = arith.addf %67, %66 : vector<8x128xf32>
    %69 = tpu.reciprocal %68 {approx = true} : vector<8x128xf32> -> vector<8x128xf32>
    %70 = vector.extract_strided_slice %62 {offsets = [0, 128], sizes = [8, 128], strides = [1, 1]} : vector<8x512xf32> to vector<8x128xf32>
    %cst_34 = arith.constant 0.000000e+00 : f32
    %71 = vector.broadcast %cst_34 : f32 to vector<8x128xf32>
    %72 = arith.subf %71, %70 : vector<8x128xf32>
    %73 = math.exp %72 : vector<8x128xf32>
    %cst_35 = arith.constant 1.000000e+00 : f32
    %74 = vector.broadcast %cst_35 : f32 to vector<8x128xf32>
    %75 = arith.addf %74, %73 : vector<8x128xf32>
    %76 = tpu.reciprocal %75 {approx = true} : vector<8x128xf32> -> vector<8x128xf32>
    %77 = vector.extract_strided_slice %62 {offsets = [0, 256], sizes = [8, 128], strides = [1, 1]} : vector<8x512xf32> to vector<8x128xf32>
    %78 = math.tanh %77 : vector<8x128xf32>
    %79 = vector.extract_strided_slice %62 {offsets = [0, 384], sizes = [8, 128], strides = [1, 1]} : vector<8x512xf32> to vector<8x128xf32>
    %cst_36 = arith.constant 0.000000e+00 : f32
    %80 = vector.broadcast %cst_36 : f32 to vector<8x128xf32>
    %81 = arith.subf %80, %79 : vector<8x128xf32>
    %82 = math.exp %81 : vector<8x128xf32>
    %cst_37 = arith.constant 1.000000e+00 : f32
    %83 = vector.broadcast %cst_37 : f32 to vector<8x128xf32>
    %84 = arith.addf %83, %82 : vector<8x128xf32>
    %85 = tpu.reciprocal %84 {approx = true} : vector<8x128xf32> -> vector<8x128xf32>
    %86 = arith.mulf %76, %46 : vector<8x128xf32>
    %87 = arith.mulf %69, %78 : vector<8x128xf32>
    %88 = arith.addf %86, %87 : vector<8x128xf32>
    %89 = math.tanh %88 : vector<8x128xf32>
    %90 = arith.mulf %85, %89 : vector<8x128xf32>
    %91 = arith.index_cast %54 : i32 to index
    %c0_38 = arith.constant 0 : index
    %c0_39 = arith.constant 0 : index
    %92 = vector.load %arg5[%91, %c0_38, %c0_39] : memref<8x8x128xf32, #tpu.memory_space<vmem>>, vector<1x8x128xf32>
    %93 = vector.shape_cast %92 : vector<1x8x128xf32> to vector<8x128xf32>
    %94 = vector.shape_cast %90 : vector<8x128xf32> to vector<1x8x128xf32>
    tpu.vector_store %arg5[%91, %c0_38, %c0_39], %94 {strides = array<i32>} : memref<8x8x128xf32, #tpu.memory_space<vmem>>, vector<1x8x128xf32>,
    %c0_i32_40 = arith.constant 0 : i32
    %95 = arith.cmpi eq, %arg0, %c0_i32_40 : i32
    %c2_i32 = arith.constant 2 : i32
    %c5_i32 = arith.constant 5 : i32
    %96 = arith.select %95, %c2_i32, %c5_i32 : i32
    %c8_i32_41 = arith.constant 8 : i32
    %97 = arith.muli %96, %c8_i32_41 : i32
    %98 = tpu.assume_multiple %97, 8 : i32
    %99 = arith.index_cast %98 : i32 to index
    %c0_42 = arith.constant 0 : index
    %100 = vector.load %arg7[%99, %c0_42] : memref<64x512xf32, #tpu.memory_space<vmem>>, vector<8x512xf32>
    %c0_43 = arith.constant 0 : index
    %c0_44 = arith.constant 0 : index
    %c0_45 = arith.constant 0 : index
    %101 = vector.load %arg3[%c0_43, %c0_44, %c0_45] : memref<1x128x512xf32, #tpu.memory_space<vmem>>, vector<1x128x512xf32>
    %102 = vector.shape_cast %101 : vector<1x128x512xf32> to vector<128x512xf32>
    %cst_46 = arith.constant dense<0.000000e+00> : vector<8x512xf32>
    %103 = tpu.matmul %90, %102, %cst_46 {dimension_numbers = #tpu.dot_dimension_numbers<[1], [0], [0], [1], [0, 0, 1, 1], [], []>} : vector<8x128xf32>, vector<128x512xf32>, vector<8x512xf32> -> vector<8x512xf32>
    %104 = arith.addf %100, %103 : vector<8x512xf32>
    %105 = vector.extract_strided_slice %104 {offsets = [0, 0], sizes = [8, 128], strides = [1, 1]} : vector<8x512xf32> to vector<8x128xf32>
    %cst_47 = arith.constant 0.000000e+00 : f32
    %106 = vector.broadcast %cst_47 : f32 to vector<8x128xf32>
    %107 = arith.subf %106, %105 : vector<8x128xf32>
    %108 = math.exp %107 : vector<8x128xf32>
    %cst_48 = arith.constant 1.000000e+00 : f32
    %109 = vector.broadcast %cst_48 : f32 to vector<8x128xf32>
    %110 = arith.addf %109, %108 : vector<8x128xf32>
    %111 = tpu.reciprocal %110 {approx = true} : vector<8x128xf32> -> vector<8x128xf32>
    %112 = vector.extract_strided_slice %104 {offsets = [0, 128], sizes = [8, 128], strides = [1, 1]} : vector<8x512xf32> to vector<8x128xf32>
    %cst_49 = arith.constant 0.000000e+00 : f32
    %113 = vector.broadcast %cst_49 : f32 to vector<8x128xf32>
    %114 = arith.subf %113, %112 : vector<8x128xf32>
    %115 = math.exp %114 : vector<8x128xf32>
    %cst_50 = arith.constant 1.000000e+00 : f32
    %116 = vector.broadcast %cst_50 : f32 to vector<8x128xf32>
    %117 = arith.addf %116, %115 : vector<8x128xf32>
    %118 = tpu.reciprocal %117 {approx = true} : vector<8x128xf32> -> vector<8x128xf32>
    %119 = vector.extract_strided_slice %104 {offsets = [0, 256], sizes = [8, 128], strides = [1, 1]} : vector<8x512xf32> to vector<8x128xf32>
    %120 = math.tanh %119 : vector<8x128xf32>
    %121 = vector.extract_strided_slice %104 {offsets = [0, 384], sizes = [8, 128], strides = [1, 1]} : vector<8x512xf32> to vector<8x128xf32>
    %cst_51 = arith.constant 0.000000e+00 : f32
    %122 = vector.broadcast %cst_51 : f32 to vector<8x128xf32>
    %123 = arith.subf %122, %121 : vector<8x128xf32>
    %124 = math.exp %123 : vector<8x128xf32>
    %cst_52 = arith.constant 1.000000e+00 : f32
    %125 = vector.broadcast %cst_52 : f32 to vector<8x128xf32>
    %126 = arith.addf %125, %124 : vector<8x128xf32>
    %127 = tpu.reciprocal %126 {approx = true} : vector<8x128xf32> -> vector<8x128xf32>
    %128 = arith.mulf %118, %88 : vector<8x128xf32>
    %129 = arith.mulf %111, %120 : vector<8x128xf32>
    %130 = arith.addf %128, %129 : vector<8x128xf32>
    %131 = math.tanh %130 : vector<8x128xf32>
    %132 = arith.mulf %127, %131 : vector<8x128xf32>
    %133 = arith.index_cast %96 : i32 to index
    %c0_53 = arith.constant 0 : index
    %c0_54 = arith.constant 0 : index
    %134 = vector.load %arg5[%133, %c0_53, %c0_54] : memref<8x8x128xf32, #tpu.memory_space<vmem>>, vector<1x8x128xf32>
    %135 = vector.shape_cast %134 : vector<1x8x128xf32> to vector<8x128xf32>
    %136 = vector.shape_cast %132 : vector<8x128xf32> to vector<1x8x128xf32>
    tpu.vector_store %arg5[%133, %c0_53, %c0_54], %136 {strides = array<i32>} : memref<8x8x128xf32, #tpu.memory_space<vmem>>, vector<1x8x128xf32>,
    %c0_i32_55 = arith.constant 0 : i32
    %137 = arith.cmpi eq, %arg0, %c0_i32_55 : i32
    %c3_i32 = arith.constant 3 : i32
    %c4_i32 = arith.constant 4 : i32
    %138 = arith.select %137, %c3_i32, %c4_i32 : i32
    %c8_i32_56 = arith.constant 8 : i32
    %139 = arith.muli %138, %c8_i32_56 : i32
    %140 = tpu.assume_multiple %139, 8 : i32
    %141 = arith.index_cast %140 : i32 to index
    %c0_57 = arith.constant 0 : index
    %142 = vector.load %arg7[%141, %c0_57] : memref<64x512xf32, #tpu.memory_space<vmem>>, vector<8x512xf32>
    %c0_58 = arith.constant 0 : index
    %c0_59 = arith.constant 0 : index
    %c0_60 = arith.constant 0 : index
    %143 = vector.load %arg3[%c0_58, %c0_59, %c0_60] : memref<1x128x512xf32, #tpu.memory_space<vmem>>, vector<1x128x512xf32>
    %144 = vector.shape_cast %143 : vector<1x128x512xf32> to vector<128x512xf32>
    %cst_61 = arith.constant dense<0.000000e+00> : vector<8x512xf32>
    %145 = tpu.matmul %132, %144, %cst_61 {dimension_numbers = #tpu.dot_dimension_numbers<[1], [0], [0], [1], [0, 0, 1, 1], [], []>} : vector<8x128xf32>, vector<128x512xf32>, vector<8x512xf32> -> vector<8x512xf32>
    %146 = arith.addf %142, %145 : vector<8x512xf32>
    %147 = vector.extract_strided_slice %146 {offsets = [0, 0], sizes = [8, 128], strides = [1, 1]} : vector<8x512xf32> to vector<8x128xf32>
    %cst_62 = arith.constant 0.000000e+00 : f32
    %148 = vector.broadcast %cst_62 : f32 to vector<8x128xf32>
    %149 = arith.subf %148, %147 : vector<8x128xf32>
    %150 = math.exp %149 : vector<8x128xf32>
    %cst_63 = arith.constant 1.000000e+00 : f32
    %151 = vector.broadcast %cst_63 : f32 to vector<8x128xf32>
    %152 = arith.addf %151, %150 : vector<8x128xf32>
    %153 = tpu.reciprocal %152 {approx = true} : vector<8x128xf32> -> vector<8x128xf32>
    %154 = vector.extract_strided_slice %146 {offsets = [0, 128], sizes = [8, 128], strides = [1, 1]} : vector<8x512xf32> to vector<8x128xf32>
    %cst_64 = arith.constant 0.000000e+00 : f32
    %155 = vector.broadcast %cst_64 : f32 to vector<8x128xf32>
    %156 = arith.subf %155, %154 : vector<8x128xf32>
    %157 = math.exp %156 : vector<8x128xf32>
    %cst_65 = arith.constant 1.000000e+00 : f32
    %158 = vector.broadcast %cst_65 : f32 to vector<8x128xf32>
    %159 = arith.addf %158, %157 : vector<8x128xf32>
    %160 = tpu.reciprocal %159 {approx = true} : vector<8x128xf32> -> vector<8x128xf32>
    %161 = vector.extract_strided_slice %146 {offsets = [0, 256], sizes = [8, 128], strides = [1, 1]} : vector<8x512xf32> to vector<8x128xf32>
    %162 = math.tanh %161 : vector<8x128xf32>
    %163 = vector.extract_strided_slice %146 {offsets = [0, 384], sizes = [8, 128], strides = [1, 1]} : vector<8x512xf32> to vector<8x128xf32>
    %cst_66 = arith.constant 0.000000e+00 : f32
    %164 = vector.broadcast %cst_66 : f32 to vector<8x128xf32>
    %165 = arith.subf %164, %163 : vector<8x128xf32>
    %166 = math.exp %165 : vector<8x128xf32>
    %cst_67 = arith.constant 1.000000e+00 : f32
    %167 = vector.broadcast %cst_67 : f32 to vector<8x128xf32>
    %168 = arith.addf %167, %166 : vector<8x128xf32>
    %169 = tpu.reciprocal %168 {approx = true} : vector<8x128xf32> -> vector<8x128xf32>
    %170 = arith.mulf %160, %130 : vector<8x128xf32>
    %171 = arith.mulf %153, %162 : vector<8x128xf32>
    %172 = arith.addf %170, %171 : vector<8x128xf32>
    %173 = math.tanh %172 : vector<8x128xf32>
    %174 = arith.mulf %169, %173 : vector<8x128xf32>
    %175 = arith.index_cast %138 : i32 to index
    %c0_68 = arith.constant 0 : index
    %c0_69 = arith.constant 0 : index
    %176 = vector.load %arg5[%175, %c0_68, %c0_69] : memref<8x8x128xf32, #tpu.memory_space<vmem>>, vector<1x8x128xf32>
    %177 = vector.shape_cast %176 : vector<1x8x128xf32> to vector<8x128xf32>
    %178 = vector.shape_cast %174 : vector<8x128xf32> to vector<1x8x128xf32>
    tpu.vector_store %arg5[%175, %c0_68, %c0_69], %178 {strides = array<i32>} : memref<8x8x128xf32, #tpu.memory_space<vmem>>, vector<1x8x128xf32>,
    %c0_i32_70 = arith.constant 0 : i32
    %179 = arith.cmpi eq, %arg0, %c0_i32_70 : i32
    %c4_i32_71 = arith.constant 4 : i32
    %c3_i32_72 = arith.constant 3 : i32
    %180 = arith.select %179, %c4_i32_71, %c3_i32_72 : i32
    %c8_i32_73 = arith.constant 8 : i32
    %181 = arith.muli %180, %c8_i32_73 : i32
    %182 = tpu.assume_multiple %181, 8 : i32
    %183 = arith.index_cast %182 : i32 to index
    %c0_74 = arith.constant 0 : index
    %184 = vector.load %arg7[%183, %c0_74] : memref<64x512xf32, #tpu.memory_space<vmem>>, vector<8x512xf32>
    %c0_75 = arith.constant 0 : index
    %c0_76 = arith.constant 0 : index
    %c0_77 = arith.constant 0 : index
    %185 = vector.load %arg3[%c0_75, %c0_76, %c0_77] : memref<1x128x512xf32, #tpu.memory_space<vmem>>, vector<1x128x512xf32>
    %186 = vector.shape_cast %185 : vector<1x128x512xf32> to vector<128x512xf32>
    %cst_78 = arith.constant dense<0.000000e+00> : vector<8x512xf32>
    %187 = tpu.matmul %174, %186, %cst_78 {dimension_numbers = #tpu.dot_dimension_numbers<[1], [0], [0], [1], [0, 0, 1, 1], [], []>} : vector<8x128xf32>, vector<128x512xf32>, vector<8x512xf32> -> vector<8x512xf32>
    %188 = arith.addf %184, %187 : vector<8x512xf32>
    %189 = vector.extract_strided_slice %188 {offsets = [0, 0], sizes = [8, 128], strides = [1, 1]} : vector<8x512xf32> to vector<8x128xf32>
    %cst_79 = arith.constant 0.000000e+00 : f32
    %190 = vector.broadcast %cst_79 : f32 to vector<8x128xf32>
    %191 = arith.subf %190, %189 : vector<8x128xf32>
    %192 = math.exp %191 : vector<8x128xf32>
    %cst_80 = arith.constant 1.000000e+00 : f32
    %193 = vector.broadcast %cst_80 : f32 to vector<8x128xf32>
    %194 = arith.addf %193, %192 : vector<8x128xf32>
    %195 = tpu.reciprocal %194 {approx = true} : vector<8x128xf32> -> vector<8x128xf32>
    %196 = vector.extract_strided_slice %188 {offsets = [0, 128], sizes = [8, 128], strides = [1, 1]} : vector<8x512xf32> to vector<8x128xf32>
    %cst_81 = arith.constant 0.000000e+00 : f32
    %197 = vector.broadcast %cst_81 : f32 to vector<8x128xf32>
    %198 = arith.subf %197, %196 : vector<8x128xf32>
    %199 = math.exp %198 : vector<8x128xf32>
    %cst_82 = arith.constant 1.000000e+00 : f32
    %200 = vector.broadcast %cst_82 : f32 to vector<8x128xf32>
    %201 = arith.addf %200, %199 : vector<8x128xf32>
    %202 = tpu.reciprocal %201 {approx = true} : vector<8x128xf32> -> vector<8x128xf32>
    %203 = vector.extract_strided_slice %188 {offsets = [0, 256], sizes = [8, 128], strides = [1, 1]} : vector<8x512xf32> to vector<8x128xf32>
    %204 = math.tanh %203 : vector<8x128xf32>
    %205 = vector.extract_strided_slice %188 {offsets = [0, 384], sizes = [8, 128], strides = [1, 1]} : vector<8x512xf32> to vector<8x128xf32>
    %cst_83 = arith.constant 0.000000e+00 : f32
    %206 = vector.broadcast %cst_83 : f32 to vector<8x128xf32>
    %207 = arith.subf %206, %205 : vector<8x128xf32>
    %208 = math.exp %207 : vector<8x128xf32>
    %cst_84 = arith.constant 1.000000e+00 : f32
    %209 = vector.broadcast %cst_84 : f32 to vector<8x128xf32>
    %210 = arith.addf %209, %208 : vector<8x128xf32>
    %211 = tpu.reciprocal %210 {approx = true} : vector<8x128xf32> -> vector<8x128xf32>
    %212 = arith.mulf %202, %172 : vector<8x128xf32>
    %213 = arith.mulf %195, %204 : vector<8x128xf32>
    %214 = arith.addf %212, %213 : vector<8x128xf32>
    %215 = math.tanh %214 : vector<8x128xf32>
    %216 = arith.mulf %211, %215 : vector<8x128xf32>
    %217 = arith.index_cast %180 : i32 to index
    %c0_85 = arith.constant 0 : index
    %c0_86 = arith.constant 0 : index
    %218 = vector.load %arg5[%217, %c0_85, %c0_86] : memref<8x8x128xf32, #tpu.memory_space<vmem>>, vector<1x8x128xf32>
    %219 = vector.shape_cast %218 : vector<1x8x128xf32> to vector<8x128xf32>
    %220 = vector.shape_cast %216 : vector<8x128xf32> to vector<1x8x128xf32>
    tpu.vector_store %arg5[%217, %c0_85, %c0_86], %220 {strides = array<i32>} : memref<8x8x128xf32, #tpu.memory_space<vmem>>, vector<1x8x128xf32>,
    %c0_i32_87 = arith.constant 0 : i32
    %221 = arith.cmpi eq, %arg0, %c0_i32_87 : i32
    %c5_i32_88 = arith.constant 5 : i32
    %c2_i32_89 = arith.constant 2 : i32
    %222 = arith.select %221, %c5_i32_88, %c2_i32_89 : i32
    %c8_i32_90 = arith.constant 8 : i32
    %223 = arith.muli %222, %c8_i32_90 : i32
    %224 = tpu.assume_multiple %223, 8 : i32
    %225 = arith.index_cast %224 : i32 to index
    %c0_91 = arith.constant 0 : index
    %226 = vector.load %arg7[%225, %c0_91] : memref<64x512xf32, #tpu.memory_space<vmem>>, vector<8x512xf32>
    %c0_92 = arith.constant 0 : index
    %c0_93 = arith.constant 0 : index
    %c0_94 = arith.constant 0 : index
    %227 = vector.load %arg3[%c0_92, %c0_93, %c0_94] : memref<1x128x512xf32, #tpu.memory_space<vmem>>, vector<1x128x512xf32>
    %228 = vector.shape_cast %227 : vector<1x128x512xf32> to vector<128x512xf32>
    %cst_95 = arith.constant dense<0.000000e+00> : vector<8x512xf32>
    %229 = tpu.matmul %216, %228, %cst_95 {dimension_numbers = #tpu.dot_dimension_numbers<[1], [0], [0], [1], [0, 0, 1, 1], [], []>} : vector<8x128xf32>, vector<128x512xf32>, vector<8x512xf32> -> vector<8x512xf32>
    %230 = arith.addf %226, %229 : vector<8x512xf32>
    %231 = vector.extract_strided_slice %230 {offsets = [0, 0], sizes = [8, 128], strides = [1, 1]} : vector<8x512xf32> to vector<8x128xf32>
    %cst_96 = arith.constant 0.000000e+00 : f32
    %232 = vector.broadcast %cst_96 : f32 to vector<8x128xf32>
    %233 = arith.subf %232, %231 : vector<8x128xf32>
    %234 = math.exp %233 : vector<8x128xf32>
    %cst_97 = arith.constant 1.000000e+00 : f32
    %235 = vector.broadcast %cst_97 : f32 to vector<8x128xf32>
    %236 = arith.addf %235, %234 : vector<8x128xf32>
    %237 = tpu.reciprocal %236 {approx = true} : vector<8x128xf32> -> vector<8x128xf32>
    %238 = vector.extract_strided_slice %230 {offsets = [0, 128], sizes = [8, 128], strides = [1, 1]} : vector<8x512xf32> to vector<8x128xf32>
    %cst_98 = arith.constant 0.000000e+00 : f32
    %239 = vector.broadcast %cst_98 : f32 to vector<8x128xf32>
    %240 = arith.subf %239, %238 : vector<8x128xf32>
    %241 = math.exp %240 : vector<8x128xf32>
    %cst_99 = arith.constant 1.000000e+00 : f32
    %242 = vector.broadcast %cst_99 : f32 to vector<8x128xf32>
    %243 = arith.addf %242, %241 : vector<8x128xf32>
    %244 = tpu.reciprocal %243 {approx = true} : vector<8x128xf32> -> vector<8x128xf32>
    %245 = vector.extract_strided_slice %230 {offsets = [0, 256], sizes = [8, 128], strides = [1, 1]} : vector<8x512xf32> to vector<8x128xf32>
    %246 = math.tanh %245 : vector<8x128xf32>
    %247 = vector.extract_strided_slice %230 {offsets = [0, 384], sizes = [8, 128], strides = [1, 1]} : vector<8x512xf32> to vector<8x128xf32>
    %cst_100 = arith.constant 0.000000e+00 : f32
    %248 = vector.broadcast %cst_100 : f32 to vector<8x128xf32>
    %249 = arith.subf %248, %247 : vector<8x128xf32>
    %250 = math.exp %249 : vector<8x128xf32>
    %cst_101 = arith.constant 1.000000e+00 : f32
    %251 = vector.broadcast %cst_101 : f32 to vector<8x128xf32>
    %252 = arith.addf %251, %250 : vector<8x128xf32>
    %253 = tpu.reciprocal %252 {approx = true} : vector<8x128xf32> -> vector<8x128xf32>
    %254 = arith.mulf %244, %214 : vector<8x128xf32>
    %255 = arith.mulf %237, %246 : vector<8x128xf32>
    %256 = arith.addf %254, %255 : vector<8x128xf32>
    %257 = math.tanh %256 : vector<8x128xf32>
    %258 = arith.mulf %253, %257 : vector<8x128xf32>
    %259 = arith.index_cast %222 : i32 to index
    %c0_102 = arith.constant 0 : index
    %c0_103 = arith.constant 0 : index
    %260 = vector.load %arg5[%259, %c0_102, %c0_103] : memref<8x8x128xf32, #tpu.memory_space<vmem>>, vector<1x8x128xf32>
    %261 = vector.shape_cast %260 : vector<1x8x128xf32> to vector<8x128xf32>
    %262 = vector.shape_cast %258 : vector<8x128xf32> to vector<1x8x128xf32>
    tpu.vector_store %arg5[%259, %c0_102, %c0_103], %262 {strides = array<i32>} : memref<8x8x128xf32, #tpu.memory_space<vmem>>, vector<1x8x128xf32>,
    %c0_i32_104 = arith.constant 0 : i32
    %263 = arith.cmpi eq, %arg0, %c0_i32_104 : i32
    %c6_i32_105 = arith.constant 6 : i32
    %c1_i32_106 = arith.constant 1 : i32
    %264 = arith.select %263, %c6_i32_105, %c1_i32_106 : i32
    %c8_i32_107 = arith.constant 8 : i32
    %265 = arith.muli %264, %c8_i32_107 : i32
    %266 = tpu.assume_multiple %265, 8 : i32
    %267 = arith.index_cast %266 : i32 to index
    %c0_108 = arith.constant 0 : index
    %268 = vector.load %arg7[%267, %c0_108] : memref<64x512xf32, #tpu.memory_space<vmem>>, vector<8x512xf32>
    %c0_109 = arith.constant 0 : index
    %c0_110 = arith.constant 0 : index
    %c0_111 = arith.constant 0 : index
    %269 = vector.load %arg3[%c0_109, %c0_110, %c0_111] : memref<1x128x512xf32, #tpu.memory_space<vmem>>, vector<1x128x512xf32>
    %270 = vector.shape_cast %269 : vector<1x128x512xf32> to vector<128x512xf32>
    %cst_112 = arith.constant dense<0.000000e+00> : vector<8x512xf32>
    %271 = tpu.matmul %258, %270, %cst_112 {dimension_numbers = #tpu.dot_dimension_numbers<[1], [0], [0], [1], [0, 0, 1, 1], [], []>} : vector<8x128xf32>, vector<128x512xf32>, vector<8x512xf32> -> vector<8x512xf32>
    %272 = arith.addf %268, %271 : vector<8x512xf32>
    %273 = vector.extract_strided_slice %272 {offsets = [0, 0], sizes = [8, 128], strides = [1, 1]} : vector<8x512xf32> to vector<8x128xf32>
    %cst_113 = arith.constant 0.000000e+00 : f32
    %274 = vector.broadcast %cst_113 : f32 to vector<8x128xf32>
    %275 = arith.subf %274, %273 : vector<8x128xf32>
    %276 = math.exp %275 : vector<8x128xf32>
    %cst_114 = arith.constant 1.000000e+00 : f32
    %277 = vector.broadcast %cst_114 : f32 to vector<8x128xf32>
    %278 = arith.addf %277, %276 : vector<8x128xf32>
    %279 = tpu.reciprocal %278 {approx = true} : vector<8x128xf32> -> vector<8x128xf32>
    %280 = vector.extract_strided_slice %272 {offsets = [0, 128], sizes = [8, 128], strides = [1, 1]} : vector<8x512xf32> to vector<8x128xf32>
    %cst_115 = arith.constant 0.000000e+00 : f32
    %281 = vector.broadcast %cst_115 : f32 to vector<8x128xf32>
    %282 = arith.subf %281, %280 : vector<8x128xf32>
    %283 = math.exp %282 : vector<8x128xf32>
    %cst_116 = arith.constant 1.000000e+00 : f32
    %284 = vector.broadcast %cst_116 : f32 to vector<8x128xf32>
    %285 = arith.addf %284, %283 : vector<8x128xf32>
    %286 = tpu.reciprocal %285 {approx = true} : vector<8x128xf32> -> vector<8x128xf32>
    %287 = vector.extract_strided_slice %272 {offsets = [0, 256], sizes = [8, 128], strides = [1, 1]} : vector<8x512xf32> to vector<8x128xf32>
    %288 = math.tanh %287 : vector<8x128xf32>
    %289 = vector.extract_strided_slice %272 {offsets = [0, 384], sizes = [8, 128], strides = [1, 1]} : vector<8x512xf32> to vector<8x128xf32>
    %cst_117 = arith.constant 0.000000e+00 : f32
    %290 = vector.broadcast %cst_117 : f32 to vector<8x128xf32>
    %291 = arith.subf %290, %289 : vector<8x128xf32>
    %292 = math.exp %291 : vector<8x128xf32>
    %cst_118 = arith.constant 1.000000e+00 : f32
    %293 = vector.broadcast %cst_118 : f32 to vector<8x128xf32>
    %294 = arith.addf %293, %292 : vector<8x128xf32>
    %295 = tpu.reciprocal %294 {approx = true} : vector<8x128xf32> -> vector<8x128xf32>
    %296 = arith.mulf %286, %256 : vector<8x128xf32>
    %297 = arith.mulf %279, %288 : vector<8x128xf32>
    %298 = arith.addf %296, %297 : vector<8x128xf32>
    %299 = math.tanh %298 : vector<8x128xf32>
    %300 = arith.mulf %295, %299 : vector<8x128xf32>
    %301 = arith.index_cast %264 : i32 to index
    %c0_119 = arith.constant 0 : index
    %c0_120 = arith.constant 0 : index
    %302 = vector.load %arg5[%301, %c0_119, %c0_120] : memref<8x8x128xf32, #tpu.memory_space<vmem>>, vector<1x8x128xf32>
    %303 = vector.shape_cast %302 : vector<1x8x128xf32> to vector<8x128xf32>
    %304 = vector.shape_cast %300 : vector<8x128xf32> to vector<1x8x128xf32>
    tpu.vector_store %arg5[%301, %c0_119, %c0_120], %304 {strides = array<i32>} : memref<8x8x128xf32, #tpu.memory_space<vmem>>, vector<1x8x128xf32>,
    %c0_i32_121 = arith.constant 0 : i32
    %305 = arith.cmpi eq, %arg0, %c0_i32_121 : i32
    %c7_i32_122 = arith.constant 7 : i32
    %c0_i32_123 = arith.constant 0 : i32
    %306 = arith.select %305, %c7_i32_122, %c0_i32_123 : i32
    %c8_i32_124 = arith.constant 8 : i32
    %307 = arith.muli %306, %c8_i32_124 : i32
    %308 = tpu.assume_multiple %307, 8 : i32
    %309 = arith.index_cast %308 : i32 to index
    %c0_125 = arith.constant 0 : index
    %310 = vector.load %arg7[%309, %c0_125] : memref<64x512xf32, #tpu.memory_space<vmem>>, vector<8x512xf32>
    %c0_126 = arith.constant 0 : index
    %c0_127 = arith.constant 0 : index
    %c0_128 = arith.constant 0 : index
    %311 = vector.load %arg3[%c0_126, %c0_127, %c0_128] : memref<1x128x512xf32, #tpu.memory_space<vmem>>, vector<1x128x512xf32>
    %312 = vector.shape_cast %311 : vector<1x128x512xf32> to vector<128x512xf32>
    %cst_129 = arith.constant dense<0.000000e+00> : vector<8x512xf32>
    %313 = tpu.matmul %300, %312, %cst_129 {dimension_numbers = #tpu.dot_dimension_numbers<[1], [0], [0], [1], [0, 0, 1, 1], [], []>} : vector<8x128xf32>, vector<128x512xf32>, vector<8x512xf32> -> vector<8x512xf32>
    %314 = arith.addf %310, %313 : vector<8x512xf32>
    %315 = vector.extract_strided_slice %314 {offsets = [0, 0], sizes = [8, 128], strides = [1, 1]} : vector<8x512xf32> to vector<8x128xf32>
    %cst_130 = arith.constant 0.000000e+00 : f32
    %316 = vector.broadcast %cst_130 : f32 to vector<8x128xf32>
    %317 = arith.subf %316, %315 : vector<8x128xf32>
    %318 = math.exp %317 : vector<8x128xf32>
    %cst_131 = arith.constant 1.000000e+00 : f32
    %319 = vector.broadcast %cst_131 : f32 to vector<8x128xf32>
    %320 = arith.addf %319, %318 : vector<8x128xf32>
    %321 = tpu.reciprocal %320 {approx = true} : vector<8x128xf32> -> vector<8x128xf32>
    %322 = vector.extract_strided_slice %314 {offsets = [0, 128], sizes = [8, 128], strides = [1, 1]} : vector<8x512xf32> to vector<8x128xf32>
    %cst_132 = arith.constant 0.000000e+00 : f32
    %323 = vector.broadcast %cst_132 : f32 to vector<8x128xf32>
    %324 = arith.subf %323, %322 : vector<8x128xf32>
    %325 = math.exp %324 : vector<8x128xf32>
    %cst_133 = arith.constant 1.000000e+00 : f32
    %326 = vector.broadcast %cst_133 : f32 to vector<8x128xf32>
    %327 = arith.addf %326, %325 : vector<8x128xf32>
    %328 = tpu.reciprocal %327 {approx = true} : vector<8x128xf32> -> vector<8x128xf32>
    %329 = vector.extract_strided_slice %314 {offsets = [0, 256], sizes = [8, 128], strides = [1, 1]} : vector<8x512xf32> to vector<8x128xf32>
    %330 = math.tanh %329 : vector<8x128xf32>
    %331 = vector.extract_strided_slice %314 {offsets = [0, 384], sizes = [8, 128], strides = [1, 1]} : vector<8x512xf32> to vector<8x128xf32>
    %cst_134 = arith.constant 0.000000e+00 : f32
    %332 = vector.broadcast %cst_134 : f32 to vector<8x128xf32>
    %333 = arith.subf %332, %331 : vector<8x128xf32>
    %334 = math.exp %333 : vector<8x128xf32>
    %cst_135 = arith.constant 1.000000e+00 : f32
    %335 = vector.broadcast %cst_135 : f32 to vector<8x128xf32>
    %336 = arith.addf %335, %334 : vector<8x128xf32>
    %337 = tpu.reciprocal %336 {approx = true} : vector<8x128xf32> -> vector<8x128xf32>
    %338 = arith.mulf %328, %298 : vector<8x128xf32>
    %339 = arith.mulf %321, %330 : vector<8x128xf32>
    %340 = arith.addf %338, %339 : vector<8x128xf32>
    %341 = math.tanh %340 : vector<8x128xf32>
    %342 = arith.mulf %337, %341 : vector<8x128xf32>
    %343 = arith.index_cast %306 : i32 to index
    %c0_136 = arith.constant 0 : index
    %c0_137 = arith.constant 0 : index
    %344 = vector.load %arg5[%343, %c0_136, %c0_137] : memref<8x8x128xf32, #tpu.memory_space<vmem>>, vector<1x8x128xf32>
    %345 = vector.shape_cast %344 : vector<1x8x128xf32> to vector<8x128xf32>
    %346 = vector.shape_cast %342 : vector<8x128xf32> to vector<1x8x128xf32>
    tpu.vector_store %arg5[%343, %c0_136, %c0_137], %346 {strides = array<i32>} : memref<8x8x128xf32, #tpu.memory_space<vmem>>, vector<1x8x128xf32>,
    %c0_138 = arith.constant 0 : index
    %c0_139 = arith.constant 0 : index
    %347 = vector.load %arg6[%c0_138, %c0_139] : memref<8x128xf32, #tpu.memory_space<vmem>>, vector<8x128xf32>
    tpu.vector_store %arg6[%c0_138, %c0_139], %342 {strides = array<i32>} : memref<8x128xf32, #tpu.memory_space<vmem>>, vector<8x128xf32>,
    return
  }
  func.func @transform_0(%arg0: i32) -> (i32, i32) {
    %c0_i32 = arith.constant 0 : i32
    %c0_i32_0 = arith.constant 0 : i32
    %c0_i32_1 = arith.constant 0 : i32
    return %c0_i32, %c0_i32_0 : i32, i32
  }
  func.func @transform_1(%arg0: i32) -> (i32, i32, i32) {
    %c0_i32 = arith.constant 0 : i32
    %c0_i32_0 = arith.constant 0 : i32
    %c0_i32_1 = arith.constant 0 : i32
    return %arg0, %c0_i32, %c0_i32_0 : i32, i32, i32
  }
  func.func @transform_2(%arg0: i32) -> (i32, i32, i32) {
    %c0_i32 = arith.constant 0 : i32
    %c0_i32_0 = arith.constant 0 : i32
    %c0_i32_1 = arith.constant 0 : i32
    return %arg0, %c0_i32, %c0_i32_0 : i32, i32, i32
  }
  func.func @transform_3(%arg0: i32) -> (i32, i32, i32) {
    %c0_i32 = arith.constant 0 : i32
    %c0_i32_0 = arith.constant 0 : i32
    %c0_i32_1 = arith.constant 0 : i32
    return %arg0, %c0_i32, %c0_i32_0 : i32, i32, i32
  }
  func.func @transform_4(%arg0: i32) -> (i32, i32, i32) {
    %c0_i32 = arith.constant 0 : i32
    %c0_i32_0 = arith.constant 0 : i32
    %c0_i32_1 = arith.constant 0 : i32
    return %c0_i32, %c0_i32_0, %arg0 : i32, i32, i32
  }
  func.func @transform_5(%arg0: i32) -> (i32, i32) {
    %c0_i32 = arith.constant 0 : i32
    %c0_i32_0 = arith.constant 0 : i32
    return %c0_i32, %arg0 : i32, i32
  }
}

</mosaic_0001>

<bundles_post_ra>
// kernel: forward.6
= control target key start
LH: loop header
LB: loop body
LE: loop exit
PB: predicated region body
PF: predicated region fallthrough
CT: control target
= control target key end

     0   :  { %s873_s18 = smov 0   ;;  %s1036_s0 = inlined_call_operand.vmem [shape: f32[2,134,1], index: 0, kind: input, shape index: {}]   ;;  %s1037_s1 = inlined_call_operand.vmem [shape: f32[7,1,32], index: 1, kind: input, shape index: {}]   ;;  %s1038_s2 = inlined_call_operand.vmem [shape: f32[1,32], index: 2, kind: input, shape index: {}]   ;;  %s1039_s3 = inlined_call_operand.vmem [shape: f32[1,32], index: 3, kind: input, shape index: {}]   ;;  %s1040_s4 = inlined_call_operand.vmem [shape: f32[1,32], index: 4, kind: input, shape index: {}]   ;;  %s1041_s5 = inlined_call_operand.vmem [shape: f32[2,32,32], index: 5, kind: output, shape index: {}]  }
   0x1 LB: > { %s760_s19 = sadd.s32 4294967295, %s840_s18   ;;  %p764_p0 = scmp.ge.s32.totalorder %s840_s18, 1  ;;  %s840_s18 = sphi %s873_s18, %s15_s18  }
   0x2   : > { %p187_p1 = scmp.lt.s32.totalorder %s840_s18, 3 }
   0x4   : > { %p188_p2 = pnand %p764_p0, %p187_p1 }
   0x5   : > { %p215_p3 = scmp.lt.s32.totalorder (!%p188_p2), %s760_s19, 1  ;;  %v842_v0 = vmov (!%p188_p2), 0   ;;  %v777_v57 = vld [vmem:[%s1037_s1 + $0x1] ss:$0 sm:$0xff] (!%p188_p2)  ;;  %v771_v58 = vld [vmem:[%s1037_s1] ss:$0 sm:$0xff] (!%p188_p2) }
   0x6   : > { %191 = sbr.rel (%p188_p2) target bundleno = 230 (0xe6), region = 40  ;;  %833 = vset.pattern.permute.xlu1 (!%p188_p2), %v842_v0  ;;  %832 = vset.pattern.permute.xlu0 (!%p188_p2), %v842_v0  ;;  %v783_v61 = vld [vmem:[%s1037_s1 + $0x2] ss:$0 sm:$0xff] (!%p188_p2)  ;;  %vm700_vm0 = vcmask (!%p188_p2), 261120  }
   0xd   : > { %s1043_s19 = smov (!%p215_p3, %s760_s19), 1 }
   0xe   : > { %s822_s20 = smul.u32 136, %s1043_s19  ;;  %s821_s21 = sshll.u32 %s1043_s19, 5 }
   0xf   : > { %s224_s24 = scalar_lea.vmem %s1041_s5, %s821_s21 }
  0x10   : > { %s887_s23 = scalar_lea.vmem %s1036_s0, %s822_s20 }
  0x11   : > { %v769_v1 = vld [vmem:[%s887_s23 + $0x40] ss:$4 sm:$0xff]  ;;  %v773_v5 = vld [vmem:[%s887_s23 + $0x21] ss:$4 sm:$0xff]  ;;  %v779_v9 = vld [vmem:[%s887_s23 + $0x22] ss:$4 sm:$0xff] }
  0x12   : > { %v225_v2 = vld [vmem:[%s887_s23] ss:$4 sm:$0xff]  ;;  %245 = vperm.xlu1 %833, %v769_v1   ;;  %v772_v6 = vld [vmem:[%s887_s23 + $0x1] ss:$4 sm:$0xff]  ;;  %v778_v10 = vld [vmem:[%s887_s23 + $0x2] ss:$4 sm:$0xff] }
  0x13   : > { %235 = vperm.xlu0 %832, %v225_v2   ;;  %v770_v3 = vld [vmem:[%s887_s23 + $0x60] ss:$4 sm:$0xff]  ;;  %v775_v7 = vld [vmem:[%s887_s23 + $0x61] ss:$4 sm:$0xff]  ;;  %v781_v11 = vld [vmem:[%s887_s23 + $0x62] ss:$4 sm:$0xff] }
  0x14   : > { %v768_v4 = vld [vmem:[%s887_s23 + $0x20] ss:$4 sm:$0xff]  ;;  %v774_v8 = vld [vmem:[%s887_s23 + $0x41] ss:$4 sm:$0xff]  ;;  %v780_v12 = vld [vmem:[%s887_s23 + $0x42] ss:$4 sm:$0xff] }
  0x15   : > { %v785_v13 = vld [vmem:[%s887_s23 + $0x23] ss:$4 sm:$0xff]  ;;  %v791_v17 = vld [vmem:[%s887_s23 + $0x24] ss:$4 sm:$0xff]  ;;  %v797_v21 = vld [vmem:[%s887_s23 + $0x25] ss:$4 sm:$0xff] }
  0x16   : > { %250 = vperm.xlu1 %833, %v770_v3   ;;  %v784_v14 = vld [vmem:[%s887_s23 + $0x3] ss:$4 sm:$0xff]  ;;  %v790_v18 = vld [vmem:[%s887_s23 + $0x4] ss:$4 sm:$0xff]  ;;  %v796_v22 = vld [vmem:[%s887_s23 + $0x5] ss:$4 sm:$0xff] }
  0x17   : > { %240 = vperm.xlu0 %832, %v768_v4   ;;  %v787_v15 = vld [vmem:[%s887_s23 + $0x63] ss:$4 sm:$0xff]  ;;  %v793_v19 = vld [vmem:[%s887_s23 + $0x64] ss:$4 sm:$0xff]  ;;  %v799_v23 = vld [vmem:[%s887_s23 + $0x65] ss:$4 sm:$0xff] }
  0x18   : > { %v786_v16 = vld [vmem:[%s887_s23 + $0x43] ss:$4 sm:$0xff]  ;;  %v792_v20 = vld [vmem:[%s887_s23 + $0x44] ss:$4 sm:$0xff]  ;;  %v798_v24 = vld [vmem:[%s887_s23 + $0x45] ss:$4 sm:$0xff] }
  0x19   : > { %v803_v25 = vld [vmem:[%s887_s23 + $0x26] ss:$4 sm:$0xff]  ;;  %v812_v29 = vld [vmem:[%s887_s23 + $0x27] ss:$4 sm:$0xff]  ;;  %v816_v33 = vld [vmem:[%s887_s23 + $0x28] ss:$4 sm:$0xff] }
  0x1a   : > { %284 = vperm.xlu1 %833, %v773_v5   ;;  %v802_v26 = vld [vmem:[%s887_s23 + $0x6] ss:$4 sm:$0xff]  ;;  %v811_v30 = vld [vmem:[%s887_s23 + $0x7] ss:$4 sm:$0xff]  ;;  %v815_v34 = vld [vmem:[%s887_s23 + $0x8] ss:$4 sm:$0xff] }
  0x1b   : > { %279 = vperm.xlu0 %832, %v772_v6   ;;  %v805_v27 = vld [vmem:[%s887_s23 + $0x66] ss:$4 sm:$0xff]  ;;  %v814_v31 = vld [vmem:[%s887_s23 + $0x67] ss:$4 sm:$0xff]  ;;  %v818_v35 = vld [vmem:[%s887_s23 + $0x68] ss:$4 sm:$0xff] }
  0x1c   : > { %v804_v28 = vld [vmem:[%s887_s23 + $0x46] ss:$4 sm:$0xff]  ;;  %v813_v32 = vld [vmem:[%s887_s23 + $0x47] ss:$4 sm:$0xff]  ;;  %v817_v36 = vld [vmem:[%s887_s23 + $0x48] ss:$4 sm:$0xff] }
  0x1d   : > { %v945_v4 = vld [vmem:[%s1037_s1 + $0x3] ss:$0 sm:$0xff] }
  0x1e   : > { %294 = vperm.xlu1 %833, %v775_v7  }
  0x1f   : > { %289 = vperm.xlu0 %832, %v774_v8  }
  0x22   : > { %328 = vperm.xlu1 %833, %v779_v9  }
  0x23   : > { %323 = vperm.xlu0 %832, %v778_v10  }
  0x26   : > { %338 = vperm.xlu1 %833, %v781_v11  }
  0x27   : > { %333 = vperm.xlu0 %832, %v780_v12  }
  0x2a   : > { %372 = vperm.xlu1 %833, %v785_v13  }
  0x2b   : > { %367 = vperm.xlu0 %832, %v784_v14  }
  0x2e   : > { %382 = vperm.xlu1 %833, %v787_v15  }
  0x2f   : > { %377 = vperm.xlu0 %832, %v786_v16  }
  0x32   : > { %416 = vperm.xlu1 %833, %v791_v17  }
  0x33   : > { %411 = vperm.xlu0 %832, %v790_v18  }
  0x36   : > { %426 = vperm.xlu1 %833, %v793_v19   ;;  %v955_v19 = vld [vmem:[%s1037_s1 + $0x4] ss:$0 sm:$0xff] }
  0x37   : > { %421 = vperm.xlu0 %832, %v792_v20  }
  0x3a   : > { %460 = vperm.xlu1 %833, %v797_v21  }
  0x3b   : > { %455 = vperm.xlu0 %832, %v796_v22  }
  0x3e   : > { %470 = vperm.xlu1 %833, %v799_v23  }
  0x3f   : > { %465 = vperm.xlu0 %832, %v798_v24  }
  0x42   : > { %504 = vperm.xlu1 %833, %v803_v25  }
  0x43   : > { %499 = vperm.xlu0 %832, %v802_v26  }
  0x46   : > { %514 = vperm.xlu1 %833, %v805_v27  }
  0x47   : > { %509 = vperm.xlu0 %832, %v804_v28   ;;  %v961_v28 = vld [vmem:[%s1037_s1 + $0x5] ss:$0 sm:$0xff] }
  0x4a   : > { %623 = vperm.xlu1 %833, %v812_v29  }
  0x4b   : > { %618 = vperm.xlu0 %832, %v811_v30  }
  0x4e   : > { %633 = vperm.xlu1 %833, %v814_v31  }
  0x4f   : > { %628 = vperm.xlu0 %832, %v813_v32  }
  0x52   : > { %659 = vperm.xlu1 %833, %v816_v33  }
  0x53   : > { %654 = vperm.xlu0 %832, %v815_v34  }
  0x56   : > { %669 = vperm.xlu1 %833, %v818_v35  }
  0x57   : > { %664 = vperm.xlu0 %832, %v817_v36  }
  0x91   : > { %v246_v37 = vpop.permute.xlu1 %245 }
  0x92   : > { %v236_v38 = vpop.permute.xlu0 %235  ;;  %v261_v5 = vmul.f32 %v771_v58, %v246_v37 }
  0x93   : > { %v259_v2 = vmul.f32 %v771_v58, %v236_v38 }
  0x95   : > { %v251_v39 = vpop.permute.xlu1 %250 }
  0x96   : > { %v241_v40 = vpop.permute.xlu0 %240  ;;  %v262_v6 = vmul.f32 %v771_v58, %v251_v39  ;;  %v969_v39 = vld [vmem:[%s1037_s1 + $0x6] ss:$0 sm:$0xff] }
  0x97   : > { %v260_v3 = vmul.f32 %v771_v58, %v241_v40 }
  0x99   : > { %v285_v41 = vpop.permute.xlu1 %284 }
  0x9a   : > { %v280_v42 = vpop.permute.xlu0 %279  ;;  %v304_v59 = vmul.f32 %v777_v57, %v285_v41 }
  0x9b   : > { %v303_v60 = vmul.f32 %v777_v57, %v280_v42 }
  0x9c   : > { %v308_v9 = vadd.f32 %v304_v59, %v260_v3 }
  0x9d   : > { %v295_v43 = vpop.permute.xlu1 %294  ;;  %v307_v10 = vadd.f32 %v303_v60, %v259_v2 }
  0x9e   : > { %v290_v44 = vpop.permute.xlu0 %289  ;;  %v306_v0 = vmul.f32 %v777_v57, %v295_v43 }
  0x9f   : > { %v305_v1 = vmul.f32 %v777_v57, %v290_v44 }
  0xa0   : > { %v310_v15 = vadd.f32 %v306_v0, %v262_v6 }
  0xa1   : > { %v329_v45 = vpop.permute.xlu1 %328  ;;  %v309_v16 = vadd.f32 %v305_v1, %v261_v5 }
  0xa2   : > { %v324_v46 = vpop.permute.xlu0 %323  ;;  %v348_v7 = vmul.f32 %v783_v61, %v329_v45  ;;  %v569_v20 = vmul.f32 %v771_v58, %v329_v45 }
  0xa3   : > { %v347_v8 = vmul.f32 %v783_v61, %v324_v46  ;;  %v568_v21 = vmul.f32 %v771_v58, %v324_v46 }
  0xa4   : > { %v352_v24 = vadd.f32 %v348_v7, %v308_v9 }
  0xa5   : > { %v339_v47 = vpop.permute.xlu1 %338  ;;  %v351_v25 = vadd.f32 %v347_v8, %v307_v10 }
  0xa6   : > { %v334_v48 = vpop.permute.xlu0 %333  ;;  %v350_v11 = vmul.f32 %v783_v61, %v339_v47  ;;  %v571_v26 = vmul.f32 %v771_v58, %v339_v47 }
  0xa7   : > { %v349_v12 = vmul.f32 %v783_v61, %v334_v48  ;;  %v570_v27 = vmul.f32 %v771_v58, %v334_v48 }
  0xa8   : > { %v354_v29 = vadd.f32 %v350_v11, %v310_v15 }
  0xa9   : > { %v373_v49 = vpop.permute.xlu1 %372  ;;  %v353_v30 = vadd.f32 %v349_v12, %v309_v16 }
  0xaa   : > { %v368_v50 = vpop.permute.xlu0 %367  ;;  %v392_v17 = vmul.f32 %v945_v4, %v373_v49  ;;  %v577_v18 = vmul.f32 %v777_v57, %v373_v49 }
  0xab   : > { %v391_v22 = vmul.f32 %v945_v4, %v368_v50  ;;  %v576_v23 = vmul.f32 %v777_v57, %v368_v50 }
  0xac   : > { %v396_v35 = vadd.f32 %v392_v17, %v352_v24  ;;  %v581_v36 = vadd.f32 %v577_v18, %v569_v20  ;;  %v995_v17 = vld [vmem:[%s1038_s2] ss:$0 sm:$0xff] }
  0xad   : > { %v383_v51 = vpop.permute.xlu1 %382  ;;  %v395_v40 = vadd.f32 %v391_v22, %v351_v25  ;;  %v580_v41 = vadd.f32 %v576_v23, %v568_v21 }
  0xae   : > { %v378_v52 = vpop.permute.xlu0 %377  ;;  %v394_v37 = vmul.f32 %v945_v4, %v383_v51  ;;  %v579_v38 = vmul.f32 %v777_v57, %v383_v51 }
  0xaf   : > { %v393_v44 = vmul.f32 %v945_v4, %v378_v52  ;;  %v578_v45 = vmul.f32 %v777_v57, %v378_v52 }
  0xb0   : > { %v398_v60 = vadd.f32 %v394_v37, %v354_v29  ;;  %v583_v0 = vadd.f32 %v579_v38, %v571_v26 }
  0xb1   : > { %v417_v53 = vpop.permute.xlu1 %416  ;;  %v397_v3 = vadd.f32 %v393_v44, %v353_v30  ;;  %v582_v5 = vadd.f32 %v578_v45, %v570_v27 }
  0xb2   : > { %v412_v54 = vpop.permute.xlu0 %411  ;;  %v436_v31 = vmul.f32 %v955_v19, %v417_v53  ;;  %v585_v46 = vmul.f32 %v783_v61, %v417_v53 }
  0xb3   : > { %v435_v32 = vmul.f32 %v955_v19, %v412_v54  ;;  %v584_v47 = vmul.f32 %v783_v61, %v412_v54 }
  0xb4   : > { %v440_v48 = vadd.f32 %v436_v31, %v396_v35  ;;  %v589_v6 = vadd.f32 %v585_v46, %v581_v36 }
  0xb5   : > { %v925_v55 = vpop.permute.xlu1 %426  ;;  %v439_v49 = vadd.f32 %v435_v32, %v395_v40  ;;  %v588_v7 = vadd.f32 %v584_v47, %v580_v41 }
  0xb6   : > { %v927_v56 = vpop.permute.xlu0 %421  ;;  %v438_v1 = vmul.f32 %v955_v19, %v925_v55  ;;  %v587_v2 = vmul.f32 %v783_v61, %v925_v55 }
  0xb7   : > { %v437_v52 = vmul.f32 %v955_v19, %v927_v56  ;;  %v586_v53 = vmul.f32 %v783_v61, %v927_v56 }
  0xb8   : > { %v442_v15 = vadd.f32 %v438_v1, %v398_v60  ;;  %v591_v16 = vadd.f32 %v587_v2, %v583_v0  ;;  %v810_v1 = vld [vmem:[%s1040_s4] ss:$0 sm:$0xff] }
  0xb9   : > { %v938_v62 = vpop.permute.xlu1 %460  ;;  %v441_v18 = vadd.f32 %v437_v52, %v397_v3  ;;  %v590_v20 = vadd.f32 %v586_v53, %v582_v5 }
  0xba   : > { %v940_v63 = vpop.permute.xlu0 %455  ;;  %v480_v42 = vmul.f32 %v961_v28, %v938_v62  ;;  %v593_v56 = vmul.f32 %v945_v4, %v938_v62 }
  0xbb   : > { %v479_v43 = vmul.f32 %v961_v28, %v940_v63  ;;  %v592_v61 = vmul.f32 %v945_v4, %v940_v63 }
  0xbc   : > { %v484_v54 = vadd.f32 %v480_v42, %v440_v48  ;;  %v597_v32 = vadd.f32 %v593_v56, %v589_v6 }
  0xbd   : > { %v947_v13 = vpop.permute.xlu1 %470  ;;  %v483_v57 = vadd.f32 %v479_v43, %v439_v49  ;;  %v596_v35 = vadd.f32 %v592_v61, %v588_v7 }
  0xbe   : > { %v949_v14 = vpop.permute.xlu0 %465  ;;  %v482_v8 = vmul.f32 %v961_v28, %v947_v13  ;;  %v595_v23 = vmul.f32 %v945_v4, %v947_v13  ;;  %v809_v13 = vld [vmem:[%s1039_s3] ss:$0 sm:$0xff] }
  0xbf   : > { %v481_v9 = vmul.f32 %v961_v28, %v949_v14  ;;  %v594_v62 = vmul.f32 %v945_v4, %v949_v14 }
  0xc0   : > { %v486_v25 = vadd.f32 %v482_v8, %v442_v15  ;;  %v599_v38 = vadd.f32 %v595_v23, %v591_v16 }
  0xc1   : > { %v505_v33 = vpop.permute.xlu1 %504  ;;  %v485_v26 = vadd.f32 %v481_v9, %v441_v18  ;;  %v598_v40 = vadd.f32 %v594_v62, %v590_v20 }
  0xc2   : > { %v500_v34 = vpop.permute.xlu0 %499  ;;  %v524_v50 = vmul.f32 %v969_v39, %v505_v33  ;;  %v601_v24 = vmul.f32 %v955_v19, %v505_v33 }
  0xc3   : > { %v523_v51 = vmul.f32 %v969_v39, %v500_v34  ;;  %v600_v63 = vmul.f32 %v955_v19, %v500_v34 }
  0xc4   : > { %v528_v10 = vadd.f32 %v524_v50, %v484_v54  ;;  %v605_v41 = vadd.f32 %v601_v24, %v597_v32 }
  0xc5   : > { %v515_v58 = vpop.permute.xlu1 %514  ;;  %v527_v11 = vadd.f32 %v523_v51, %v483_v57  ;;  %v604_v42 = vadd.f32 %v600_v63, %v596_v35 }
  0xc6   : > { %v510_v59 = vpop.permute.xlu0 %509  ;;  %v526_v21 = vmul.f32 %v969_v39, %v515_v58  ;;  %v539_v27 = vadd.f32 %v995_v17, %v528_v10  ;;  %v603_v34 = vmul.f32 %v955_v19, %v515_v58 }
  0xc7   : > { %v525_v22 = vmul.f32 %v969_v39, %v510_v59  ;;  %v538_v29 = vadd.f32 %v995_v17, %v527_v11  ;;  %v602_v37 = vmul.f32 %v955_v19, %v510_v59 }
  0xc8   : > { %v530_v33 = vadd.f32 %v526_v21, %v486_v25  ;;  %v550_v43 = vmul.f32 %v809_v13, %v539_v27  ;;  %v607_v59 = vadd.f32 %v603_v34, %v599_v38 }
  0xc9   : > { %v624_v55 = vpop.permute.xlu1 %623  ;;  %v529_v36 = vadd.f32 %v525_v22, %v485_v26  ;;  %v549_v44 = vmul.f32 %v809_v13, %v538_v29  ;;  %v606_v0 = vadd.f32 %v602_v37, %v598_v40 }
  0xca   : > { %v619_v12 = vpop.permute.xlu0 %618  ;;  %v637_v4 = vmul.f32 %v961_v28, %v624_v55  ;;  %v541_v19 = vadd.f32 %v995_v17, %v530_v33  ;;  %v561_v8 = vadd.f32 %v810_v1, %v550_v43 }
  0xcb   : > { %v636_v14 = vmul.f32 %v961_v28, %v619_v12  ;;  %v540_v60 = vadd.f32 %v995_v17, %v529_v36  ;;  %v560_v9 = vadd.f32 %v810_v1, %v549_v44 }
  0xcc   : > { %v641_v49 = vadd.f32 %v637_v4, %v605_v41  ;;  %v552_v10 = vmul.f32 %v809_v13, %v541_v19  ;;  %v565_v21 = vmax.f32 %v561_v8, 0.0 }
  0xcd   : > { %v634_v30 = vpop.permute.xlu1 %633  ;;  %v640_v50 = vadd.f32 %v636_v14, %v604_v42  ;;  %v551_v11 = vmul.f32 %v809_v13, %v540_v60  ;;  %v564_v22 = vmax.f32 %v560_v9, 0.0 }
  0xce   : > { %v629_v31 = vpop.permute.xlu0 %628  ;;  %v639_v45 = vmul.f32 %v961_v28, %v634_v30  ;;  %v563_v23 = vadd.f32 %v810_v1, %v552_v10 }
  0xcf   : > { %v638_v46 = vmul.f32 %v961_v28, %v629_v31  ;;  %v562_v62 = vadd.f32 %v810_v1, %v551_v11 }
  0xd0   : > { %v643_v52 = vadd.f32 %v639_v45, %v607_v59  ;;  %v567_v31 = vmax.f32 %v563_v23, 0.0 }
  0xd1   : > { %v660_v47 = vpop.permute.xlu1 %659  ;;  %v642_v53 = vadd.f32 %v638_v46, %v606_v0  ;;  %v566_v32 = vmax.f32 %v562_v62, 0.0 }
  0xd2   : > { %v655_v48 = vpop.permute.xlu0 %654  ;;  %v673_v51 = vmul.f32 %v969_v39, %v660_v47 }
  0xd3   : > { %v672_v58 = vmul.f32 %v969_v39, %v655_v48 }
  0xd4   : > { %v677_v2 = vadd.f32 %v673_v51, %v641_v49 }
  0xd5   : > { %v676_v28 = vadd.f32 %v672_v58, %v640_v50  ;;  %v670_v54 = vpop.permute.xlu1 %669 }
  0xd6   : > { %v665_v57 = vpop.permute.xlu0 %664  ;;  %v681_v3 = vadd.f32 %v995_v17, %v677_v2  ;;  %v675_v6 = vmul.f32 %v969_v39, %v670_v54 }
  0xd7   : > { %v680_v5 = vadd.f32 %v995_v17, %v676_v28  ;;  %v674_v7 = vmul.f32 %v969_v39, %v665_v57 }
  0xd8   : > { %v685_v55 = vmul.f32 %v809_v13, %v681_v3  ;;  %v679_v15 = vadd.f32 %v675_v6, %v643_v52 }
  0xd9   : > { %v684_v12 = vmul.f32 %v809_v13, %v680_v5  ;;  %v678_v16 = vadd.f32 %v674_v7, %v642_v53 }
  0xda   : > { %v689_v56 = vadd.f32 %v810_v1, %v685_v55  ;;  %v683_v18 = vadd.f32 %v995_v17, %v679_v15 }
  0xdb   : > { %v688_v61 = vadd.f32 %v810_v1, %v684_v12  ;;  %v682_v20 = vadd.f32 %v995_v17, %v678_v16 }
  0xdc   : > { %v693_v39 = vmax.f32 %v689_v56, 0.0  ;;  %v687_v63 = vmul.f32 %v809_v13, %v683_v18 }
  0xdd   : > { %v692_v24 = vmax.f32 %v688_v61, 0.0  ;;  %v686_v25 = vmul.f32 %v809_v13, %v682_v20 }
  0xde   : > { %v697_v26 = vmax.f32 %v565_v21, %v693_v39  ;;  %v691_v29 = vadd.f32 %v810_v1, %v687_v63 }
  0xdf   : > { %v696_v27 = vmax.f32 %v564_v22, %v692_v24  ;;  %v690_v30 = vadd.f32 %v810_v1, %v686_v25 }
  0xe0   : > { %702 = vst.msk [vmem:[%s224_s24 + $0x8] sm:$0xff] %vm700_vm0, %v697_v26  ;;  %v695_v17 = vmax.f32 %v691_v29, 0.0 }
  0xe1   : > { %701 = vst.msk [vmem:[%s224_s24] sm:$0xff] %vm700_vm0, %v696_v27  ;;  %v694_v35 = vmax.f32 %v690_v30, 0.0 }
  0xe2   : > { %v699_v4 = vmax.f32 %v567_v31, %v695_v17 }
  0xe3   : > { %v698_v14 = vmax.f32 %v566_v32, %v694_v35 }
  0xe4   : > { %704 = vst.msk [vmem:[%s224_s24 + $0x18] sm:$0xff] %vm700_vm0, %v699_v4 }
  0xe5   : > { %703 = vst.msk [vmem:[%s224_s24 + $0x10] sm:$0xff] %vm700_vm0, %v698_v14 }
  0xe6 PF: > { %s15_s18 = sadd.s32 1, %s840_s18  }
  0xe7   : > { %p12_p4 = scmp.ge.s32.totalorder %s15_s18, 4  }
  0xe9   :  { %14 = sbr.rel (!%p12_p4) target bundleno = 1 (0x1), region = 111 }

// kernel: forward.8
= control target key start
LH: loop header
LB: loop body
LE: loop exit
PB: predicated region body
PF: predicated region fallthrough
CT: control target
= control target key end

     0   :  { %12 = vsyncpa [#allocation3], 0  ;;  %s1445_s0 = inlined_call_operand.vmem [shape: f32[2,10,64], index: 0, kind: input, shape index: {}]   ;;  %s1446_s1 = inlined_call_operand.vmem [shape: f32[3,64,128], index: 1, kind: input, shape index: {}]   ;;  %s1447_s2 = inlined_call_operand.hbm [shape: f32[1,128], index: 2, kind: input, shape index: {}]   ;;  %s1448_s3 = inlined_call_operand.vmem [shape: f32[1,128], index: 3, kind: input, shape index: {}]   ;;  %s1449_s4 = inlined_call_operand.vmem [shape: f32[1,128], index: 4, kind: input, shape index: {}]   ;;  %s1450_s5 = inlined_call_operand.hbm [shape: f32[128,128], index: 5, kind: input, shape index: {}]   ;;  %s1451_s6 = inlined_call_operand.hbm [shape: f32[1,128], index: 6, kind: input, shape index: {}]   ;;  %s1452_s7 = inlined_call_operand.vmem [shape: f32[2,8,128], index: 7, kind: output, shape index: {}]  }
   0x1   :  { %13 = vsyncpa [#allocation5], 0  ;;  %s1198_s24 = smov 0  }
   0x2 LB: > { %s1150_s25 = smov [#allocation4]   ;;  %s1204_s27 = sadd.s32 4294967295, %s1148_s24   ;;  %s1148_s24 = sphi %s1198_s24, %s19_s24  }
   0x3   : > { %s234_s26 = sshll.u32 %s1150_s25, 4  ;;  %p772_p0 = scmp.ge.s32.totalorder %s1148_s24, 1  ;;  %s1213_s26 = int_to_ptr.vmem [resolvable:$true] %s234_s26 }
   0x4   : > { %p202_p1 = scmp.lt.s32.totalorder %s1148_s24, 3  ;;  %p1028_p2 = scmp.eq.s32.totalorder %s1204_s27, 0 }
   0x5   : > { %s1151_s29 = smov [#allocation2]   ;;  %s1152_s9 = smov [#allocation6]  }
   0x6   : > { %p1209_p3 = pnand %p772_p0, %p202_p1  ;;  %s218_s30 = sshll.u32 %s1151_s29, 4  ;;  %s1223_s30 = int_to_ptr.vmem [resolvable:$true] %s218_s30 }
   0x7   : > { %s248_s10 = sshll.u32 %s1152_s9, 4  ;;  %s1050_s13 = scalar_lea.hbm %s1450_s5, 2048  ;;  %s1225_s10 = int_to_ptr.vmem [resolvable:$true] %s248_s10 }
   0x8   : > { %p1018_p4 = pneg %p1209_p3  ;;  %p1051_p6 = scmp.ne.s32.totalorder %s1450_s5, %s1050_s13 }
   0x9   : > { %p1057_p10 = scmp.lt.u32.totalorder %s1050_s13, %s1450_s5 }
   0xa   : > { %p1219_p5 = pnand %p1028_p2, %p1018_p4 }
   0xc   : > { %p1235_p7 = pneg %p1219_p5 }
   0xe   : > { %p1053_p8 = pnand %p1235_p7, %p1051_p6 }
  0x10   : > { %p1054_p9 = pneg %p1053_p8 }
  0x12   : > { %p1059_p11 = pnand %p1057_p10, %p1054_p9 }
  0x14   : > { %1062 = shalt.err (!%p1059_p11)
}
  0x15   : > { %s1063_s19 = scalar_lea.vmem %s1213_s26, 2048  ;;  %p1071_p1 = scmp.lt.s32.totalorder %s1213_s26, %s1213_s26 }
  0x16   : > { %p1064_p12 = scmp.ne.s32.totalorder %s1213_s26, %s1063_s19  ;;  %p1072_p4 = scmp.lt.s32.totalorder %s1063_s19, %s1063_s19 }
  0x18   : > { %p1066_p13 = pnand %p1064_p12, %p1235_p7  ;;  %p1073_p6 = por %p1072_p4, %p1071_p1 }
  0x1a   : > { %p1067_p0 = pneg %p1066_p13 }
  0x1c   : > { %p1074_p8 = pnand %p1073_p6, %p1067_p0 }
  0x1e   : > { %1077 = shalt.err (!%p1074_p8)
}
  0x1f   : > { %s1153_s20 = smov 128   ;;  %s1154_s21 = smov 8  }
  0x20   : > { %1024 = dma.hbm_to_vmem [thread:$0]  (!%p1219_p5), %s1450_s5, 2048, %s1213_s26, [#allocation5], %s1153_s20, %s1153_s20, %s1154_s21  }
  0x21   : > { %s1078_s9 = scalar_lea.hbm %s1447_s2, 16 }
  0x22   : > { %p1079_p9 = scmp.ne.s32.totalorder %s1447_s2, %s1078_s9  ;;  %p1085_p12 = scmp.lt.u32.totalorder %s1078_s9, %s1447_s2 }
  0x24   : > { %p1081_p10 = pnand %p1079_p9, %p1235_p7 }
  0x26   : > { %p1082_p11 = pneg %p1081_p10 }
  0x28   : > { %p1087_p13 = pnand %p1085_p12, %p1082_p11 }
  0x2a   : > { %1090 = shalt.err (!%p1087_p13)
}
  0x2b   : > { %s1091_s26 = scalar_lea.vmem %s1223_s30, 16  ;;  %s1098_s15 = scalar_lea.vmem %s1223_s30, 32 }
  0x2c   : > { %p1092_p0 = scmp.ne.s32.totalorder %s1223_s30, %s1091_s26  ;;  %p1099_p6 = scmp.lt.s32.totalorder %s1223_s30, %s1223_s30 }
  0x2d   : > { %p1100_p8 = scmp.lt.s32.totalorder %s1098_s15, %s1091_s26 }
  0x2e   : > { %p1094_p1 = pnand %p1092_p0, %p1235_p7 }
  0x2f   : > { %p1101_p9 = por %p1100_p8, %p1099_p6 }
  0x30   : > { %p1095_p4 = pneg %p1094_p1 }
  0x32   : > { %p1102_p10 = pnand %p1101_p9, %p1095_p4 }
  0x34   : > { %1105 = shalt.err (!%p1102_p10)
}
  0x35   : > { %1021 = dma.hbm_to_vmem [thread:$0]  (!%p1219_p5), %s1447_s2, 16, %s1223_s30, [#allocation3]  }
  0x36   : > { %s1106_s21 = scalar_lea.hbm %s1451_s6, 16 }
  0x37   : > { %p1107_p11 = scmp.ne.s32.totalorder %s1451_s6, %s1106_s21  ;;  %p1113_p0 = scmp.lt.u32.totalorder %s1106_s21, %s1451_s6 }
  0x39   : > { %p1109_p12 = pnand %p1107_p11, %p1235_p7 }
  0x3b   : > { %p1110_p13 = pneg %p1109_p12 }
  0x3d   : > { %p1115_p1 = pnand %p1113_p0, %p1110_p13 }
  0x3f   : > { %1118 = shalt.err (!%p1115_p1)
}
  0x40   : > { %s1119_s30 = scalar_lea.vmem %s1225_s10, 16  ;;  %s1126_s9 = scalar_lea.vmem %s1225_s10, 32 }
  0x41   : > { %p1120_p4 = scmp.ne.s32.totalorder %s1225_s10, %s1119_s30  ;;  %p1127_p9 = scmp.lt.s32.totalorder %s1225_s10, %s1225_s10 }
  0x42   : > { %p1128_p10 = scmp.lt.s32.totalorder %s1126_s9, %s1119_s30 }
  0x43   : > { %p1122_p6 = pnand %p1120_p4, %p1235_p7 }
  0x44   : > { %p1129_p11 = por %p1128_p10, %p1127_p9 }
  0x45   : > { %p1123_p8 = pneg %p1122_p6 }
  0x47   : > { %p1130_p12 = pnand %p1129_p11, %p1123_p8 }
  0x49   : > { %1133 = shalt.err (!%p1130_p12)
}
  0x4a   : > { %1027 = dma.hbm_to_vmem [thread:$0]  (!%p1219_p5), %s1451_s6, 16, %s1225_s10, [#allocation5]  }
  0x4b   : > { %269 = sbr.rel (%p1209_p3) target bundleno = 557 (0x22d), region = 48 }
  0x52   : > { %1139 = dma.done.wait (%p1028_p2), [#allocation3], 16  }
  0x53   : > { %1141 = vsyncadd (%p1028_p2), [#allocation3], 4294967280 }
  0x54   : > { %1143 = dma.done.wait (%p1028_p2), [#allocation5], 2064  }
  0x55   : > { %1145 = vsyncadd (%p1028_p2), [#allocation5], 4294965232  ;;  %v1155_v0 = vmov 0.0|0.0   ;;  %vm1156_vm0 = vmmov 0   ;;  %v1157_v1 = vmov 0.0   ;;  %v784_v2 = vld [vmem:[%s1446_s1 + $0x40] sm:$0xff] }
  0x56   : > { %946 = vmatprep.subr.bf16.mxu0 %v1155_v0  ;;  %958 = vmatprep.subr.bf16.mxu1 %v1155_v0  ;;  %v785_v3 = vld [vmem:[%s1446_s1 + $0x48] sm:$0xff]  ;;  %v318_v4 = vld [vmem:[%s1446_s1] sm:$0xff]  ;;  %v786_v7 = vld [vmem:[%s1446_s1 + $0x50] sm:$0xff]  ;;  %p308_p2 = scmp.lt.s32.totalorder %s1204_s27, 1  ;;  %vm336_vm1 = vcmask 523264  }
  0x57   : > { %870 = vmatprep.mubr.msk.f32.mxu0 %vm1156_vm0, %v1157_v1  ;;  %889 = vmatprep.mubr.msk.f32.mxu1 %vm1156_vm0, %v1157_v1  ;;  %v947_v5 = vpack.c.bf16 %v785_v3, %v784_v2  ;;  %v319_v6 = vld [vmem:[%s1446_s1 + $0x8] sm:$0xff]  ;;  %v787_v8 = vld [vmem:[%s1446_s1 + $0x58] sm:$0xff]  ;;  %v320_v10 = vld [vmem:[%s1446_s1 + $0x10] sm:$0xff] }
  0x58   : > { %v959_v9 = vpack.c.bf16 %v319_v6, %v318_v4  ;;  %v321_v11 = vld [vmem:[%s1446_s1 + $0x18] sm:$0xff]  ;;  %v950_v12 = vpack.c.bf16 %v787_v8, %v786_v7  ;;  %v788_v14 = vld [vmem:[%s1446_s1 + $0x60] sm:$0xff]  ;;  %v789_v15 = vld [vmem:[%s1446_s1 + $0x68] sm:$0xff]  ;;  %s1457_s27 = smov (!%p308_p2, %s1204_s27), 1 }
  0x59   : > { %948 = vmatpush3.bf16.msra.mxu0 %v947_v5  ;;  %v962_v13 = vpack.c.bf16 %v321_v11, %v320_v10  ;;  %v322_v16 = vld [vmem:[%s1446_s1 + $0x20] sm:$0xff]  ;;  %v323_v17 = vld [vmem:[%s1446_s1 + $0x28] sm:$0xff]  ;;  %v953_v18 = vpack.c.bf16 %v789_v15, %v788_v14  ;;  %v790_v20 = vld [vmem:[%s1446_s1 + $0x70] sm:$0xff]  ;;  %s809_s20 = sshll.u32 %s1457_s27, 4 }
  0x5a   : > { %960 = vmatpush3.bf16.msra.mxu1 %v959_v9  ;;  %949 = vmatprep.subr.bf16.mxu0 %v1155_v0  ;;  %v965_v19 = vpack.c.bf16 %v323_v17, %v322_v16  ;;  %v791_v21 = vld [vmem:[%s1446_s1 + $0x78] sm:$0xff]  ;;  %v324_v22 = vld [vmem:[%s1446_s1 + $0x30] sm:$0xff]  ;;  %s1383_s23 = scalar_lea.vmem %s1445_s0, %s809_s20  ;;  %v794_v26 = vld [vmem:[%s1446_s1 + $0x80] sm:$0xff] }
  0x5b   : > { %961 = vmatprep.subr.bf16.mxu1 %v1155_v0  ;;  %v325_v23 = vld [vmem:[%s1446_s1 + $0x38] sm:$0xff]  ;;  %v956_v24 = vpack.c.bf16 %v791_v21, %v790_v20  ;;  %v795_v27 = vld [vmem:[%s1446_s1 + $0x88] sm:$0xff]  ;;  %v317_v32 = vld [vmem:[%s1383_s23] sm:$0xff] }
  0x5c   : > { %v968_v25 = vpack.c.bf16 %v325_v23, %v324_v22  ;;  %v592_v28 = vld [vmem:[#allocation4] sm:$0xff]  ;;  %v593_v29 = vld [vmem:[#allocation4 + $0x8] sm:$0xff]  ;;  %v971_v31 = vpack.c.bf16 %v795_v27, %v794_v26  ;;  %v797_v34 = vld [vmem:[%s1446_s1 + $0x98] sm:$0xff] }
  0x5d   : > { %951 = vmatpush3.bf16.msra.mxu0 %v950_v12  ;;  %v326_v30 = vld [vmem:[%s1383_s23 + $0x1] sm:$0xff]  ;;  %v796_v33 = vld [vmem:[%s1446_s1 + $0x90] sm:$0xff]  ;;  %v983_v35 = vpack.c.bf16 %v593_v29, %v592_v28  ;;  %v801_v41 = vld [vmem:[%s1446_s1 + $0xb8] sm:$0xff] }
  0x5e   : > { %963 = vmatpush3.bf16.msra.mxu1 %v962_v13  ;;  %952 = vmatprep.subr.bf16.mxu0 %v1155_v0  ;;  %v974_v36 = vpack.c.bf16 %v797_v34, %v796_v33  ;;  %v798_v37 = vld [vmem:[%s1446_s1 + $0xa0] sm:$0xff]  ;;  %v799_v38 = vld [vmem:[%s1446_s1 + $0xa8] sm:$0xff]  ;;  %v800_v40 = vld [vmem:[%s1446_s1 + $0xb0] sm:$0xff] }
  0x5f   : > { %964 = vmatprep.subr.bf16.mxu1 %v1155_v0  ;;  %v977_v39 = vpack.c.bf16 %v799_v38, %v798_v37  ;;  %v980_v42 = vpack.c.bf16 %v801_v41, %v800_v40  ;;  %v483_v43 = vld [vmem:[%s1383_s23 + $0x2] sm:$0xff]  ;;  %v594_v44 = vld [vmem:[#allocation4 + $0x10] sm:$0xff]  ;;  %v595_v45 = vld [vmem:[#allocation4 + $0x18] sm:$0xff]  ;;  %s783_s23 = sshll.u32 %s1457_s27, 3 }
  0x60   : > { %v986_v46 = vpack.c.bf16 %v595_v45, %v594_v44  ;;  %v596_v47 = vld [vmem:[#allocation4 + $0x20] sm:$0xff]  ;;  %v597_v48 = vld [vmem:[#allocation4 + $0x28] sm:$0xff]  ;;  %v598_v50 = vld [vmem:[#allocation4 + $0x30] sm:$0xff]  ;;  %s316_s30 = scalar_lea.vmem %s1452_s7, %s783_s23 }
  0x61   : > { %954 = vmatpush3.bf16.msra.mxu0 %v953_v18  ;;  %v989_v49 = vpack.c.bf16 %v597_v48, %v596_v47  ;;  %v599_v51 = vld [vmem:[#allocation4 + $0x38] sm:$0xff]  ;;  %v600_v53 = vld [vmem:[#allocation4 + $0x40] sm:$0xff]  ;;  %v601_v54 = vld [vmem:[#allocation4 + $0x48] sm:$0xff] }
  0x62   : > { %966 = vmatpush3.bf16.msra.mxu1 %v965_v19  ;;  %955 = vmatprep.subr.bf16.mxu0 %v1155_v0  ;;  %v992_v52 = vpack.c.bf16 %v599_v51, %v598_v50  ;;  %v995_v55 = vpack.c.bf16 %v601_v54, %v600_v53  ;;  %v602_v56 = vld [vmem:[#allocation4 + $0x50] sm:$0xff]  ;;  %v603_v57 = vld [vmem:[#allocation4 + $0x58] sm:$0xff]  ;;  %v604_v59 = vld [vmem:[#allocation4 + $0x60] sm:$0xff] }
  0x63   : > { %967 = vmatprep.subr.bf16.mxu1 %v1155_v0  ;;  %v998_v58 = vpack.c.bf16 %v603_v57, %v602_v56  ;;  %v605_v60 = vld [vmem:[#allocation4 + $0x68] sm:$0xff]  ;;  %v606_v62 = vld [vmem:[#allocation4 + $0x70] sm:$0xff]  ;;  %v607_v63 = vld [vmem:[#allocation4 + $0x78] sm:$0xff] }
  0x64   : > { %v1001_v61 = vpack.c.bf16 %v605_v60, %v604_v59  ;;  %v803_v8 = vld [vmem:[#allocation2] ss:$0 sm:$0xff]  ;;  %v806_v16 = vld [vmem:[#allocation6] ss:$0 sm:$0xff] }
  0x65   : > { %957 = vmatpush3.bf16.msra.mxu0 %v956_v24  ;;  %v804_v11 = vld [vmem:[%s1448_s3] ss:$0 sm:$0xff] }
  0x66   : > { %969 = vmatpush3.bf16.msra.mxu1 %v968_v25  ;;  %970 = vmatprep.subr.bf16.mxu0 %v1155_v0 }
  0x67   : > { %982 = vmatprep.subr.bf16.mxu1 %v1155_v0 }
  0x68   : > { %871 = vmatmul.mubr.msk.f32.vlgmr.msra.gmra.mrb[0].mxu0 %vm336_vm1, %v326_v30 }
  0x69   : > { %890 = vmatmul.mubr.msk.f32.vlgmr.msra.gmra.mrb[0].mxu1 %vm336_vm1, %v317_v32  ;;  %972 = vmatpush3.bf16.msra.mxu0 %v971_v31 }
  0x6a   : > { %973 = vmatprep.subr.bf16.mxu0 %v1155_v0  ;;  %908 = vmatprep.mubr.msk.f32.mxu0 %vm1156_vm0, %v1157_v1 }
  0x6b   : > { %984 = vmatpush3.bf16.msra.mxu1 %v983_v35  ;;  %943 = vmatprep.mubr.msk.f32.mxu1 %vm1156_vm0, %v1157_v1  ;;  %v1004_v1 = vpack.c.bf16 %v607_v63, %v606_v62 }
  0x6c   : > { %985 = vmatprep.subr.bf16.mxu1 %v1155_v0 }
  0x6d   : > { %975 = vmatpush3.bf16.msra.mxu0 %v974_v36 }
  0x6e   : > { %976 = vmatprep.subr.bf16.mxu0 %v1155_v0 }
  0x6f   : > { %987 = vmatpush3.bf16.msra.mxu1 %v986_v46 }
  0x70   : > { %988 = vmatprep.subr.bf16.mxu1 %v1155_v0 }
  0x71   : > { %978 = vmatpush3.bf16.msra.mxu0 %v977_v39 }
  0x72   : > { %979 = vmatprep.subr.bf16.mxu0 %v1155_v0 }
  0x73   : > { %990 = vmatpush3.bf16.msra.mxu1 %v989_v49 }
  0x74   : > { %991 = vmatprep.subr.bf16.mxu1 %v1155_v0 }
  0x75   : > { %981 = vmatpush3.bf16.msra.mxu0 %v980_v42 }
  0x77   : > { %993 = vmatpush3.bf16.msra.mxu1 %v992_v52 }
  0x78   : > { %909 = vmatmul.mubr.msk.f32.vlgmr.msra.gmra.mrb[2].mxu0 %vm336_vm1, %v483_v43  ;;  %994 = vmatprep.subr.bf16.mxu1 %v1155_v0 }
  0x7b   : > { %996 = vmatpush3.bf16.msra.mxu1 %v995_v55 }
  0x7c   : > { %997 = vmatprep.subr.bf16.mxu1 %v1155_v0 }
  0x7f   : > { %999 = vmatpush3.bf16.msra.mxu1 %v998_v58 }
  0x80   : > { %1000 = vmatprep.subr.bf16.mxu1 %v1155_v0 }
  0x83   : > { %1002 = vmatpush3.bf16.msra.mxu1 %v1001_v61 }
  0x84   : > { %1003 = vmatprep.subr.bf16.mxu1 %v1155_v0  ;;  %v805_v0 = vld [vmem:[%s1449_s4] ss:$0 sm:$0xff] }
  0x87   : > { %1005 = vmatpush3.bf16.msra.mxu1 %v1004_v1 }
 0x13b   : > { %v406_v2 = vpop.f32.mrb[0].mxu0 }
 0x13c   : > { %v872_v3 = vpop.f32.mrb[1].mxu0  ;;  %v479_v4 = vpop.f32.mrb[0].mxu1 }
 0x13d   : > { %v480_v5 = vadd.f32 %v479_v4, %v406_v2  ;;  %v891_v6 = vpop.f32.mrb[1].mxu1 }
 0x14b   : > { %v562_v7 = vpop.f32.mrb[2].mxu0 }
 0x14c   : > { %v566_v9 = vadd.f32 %v562_v7, %v480_v5  ;;  %v910_v10 = vpop.f32.mrb[3].mxu0 }
 0x14e   : > { %v574_v12 = vadd.f32 %v803_v8, %v566_v9 }
 0x150   : > { %v582_v13 = vmul.f32 %v804_v11, %v574_v12 }
 0x152   : > { %v590_v14 = vadd.f32 %v805_v0, %v582_v13 }
 0x154   : > { %v591_v15 = vmax.f32 %v590_v14, 0.0 }
 0x156   : > { %944 = vmatmul.mubr.f32.vlgmr.msra.gmra.mrb[2].mxu1 %v591_v15 }
 0x229   : > { %v681_v17 = vpop.f32.mrb[2].mxu1 }
 0x22a   : > { %v682_v18 = vadd.f32 %v806_v16, %v681_v17  ;;  %v945_v19 = vpop.f32.mrb[3].mxu1 }
 0x22c   : > { %685 = vst [vmem:[%s316_s30] sm:$0xff] %v682_v18 }
 0x22d PF: > { %s19_s24 = sadd.s32 1, %s1148_s24  }
 0x22e   : > { %p16_p3 = scmp.ge.s32.totalorder %s19_s24, 4  }
 0x230   :  { %18 = sbr.rel (!%p16_p3) target bundleno = 2 (0x2), region = 93 }
 0x237   :  { %705 = vsyncpa [#allocation3], 1 }
 0x238   :  { %707 = vsyncpa [#allocation3 + $0x1], 1 }
 0x239   :  { %708 = vsyncpa [#allocation5], 1 }

// kernel: forward.7
= control target key start
LH: loop header
LB: loop body
LE: loop exit
PB: predicated region body
PF: predicated region fallthrough
CT: control target
= control target key end

     0   :  { %10 = vsyncpa [#allocation3], 0  ;;  %s1451_s18 = smov 0   ;;  %s1587_s0 = inlined_call_operand.vmem [shape: f32[2,36,32], index: 0, kind: input, shape index: {}]   ;;  %s1588_s1 = inlined_call_operand.hbm [shape: f32[5,32,64], index: 1, kind: input, shape index: {}]   ;;  %s1589_s2 = inlined_call_operand.vmem [shape: f32[1,64], index: 2, kind: input, shape index: {}]   ;;  %s1590_s3 = inlined_call_operand.vmem [shape: f32[1,64], index: 3, kind: input, shape index: {}]   ;;  %s1591_s4 = inlined_call_operand.vmem [shape: f32[1,64], index: 4, kind: input, shape index: {}]   ;;  %s1592_s5 = inlined_call_operand.vmem [shape: f32[2,8,64], index: 5, kind: output, shape index: {}]  }
   0x1 LB: > { %s1457_s19 = sadd.s32 4294967295, %s1413_s18   ;;  %p1102_p0 = scmp.ge.s32.totalorder %s1413_s18, 1  ;;  %s1413_s18 = sphi %s1451_s18, %s16_s18  }
   0x2   : > { %p157_p1 = scmp.lt.s32.totalorder %s1413_s18, 3  ;;  %s1415_s20 = smov [#allocation2]  }
   0x3   : > { %s169_s21 = sshll.u32 %s1415_s20, 4  ;;  %p1593_p3 = scmp.eq.s32.totalorder %s1457_s19, 0  ;;  %s170_s21 = int_to_ptr.vmem [resolvable:$true] %s169_s21 }
   0x4   : > { %p1461_p2 = pnand %p1102_p0, %p157_p1  ;;  %s1375_s26 = scalar_lea.hbm %s1588_s1, 2560 }
   0x5   : > { %p1376_p6 = scmp.ne.s32.totalorder %s1588_s1, %s1375_s26  ;;  %p1382_p10 = scmp.lt.u32.totalorder %s1375_s26, %s1588_s1 }
   0x6   : > { %s1595_s22 = scalar_select %p1461_p2, 1, 0 }
   0x7   : > { %p1355_p4 = pneg %p1461_p2 }
   0x9   : > { %p1470_p5 = pnand %p1593_p3, %p1355_p4 }
   0xb   : > { %p1377_p7 = pneg %p1470_p5 }
   0xd   : > { %p1378_p8 = pnand %p1377_p7, %p1376_p6 }
   0xf   : > { %p1379_p9 = pneg %p1378_p8 }
  0x11   : > { %p1384_p11 = pnand %p1382_p10, %p1379_p9 }
  0x13   : > { %1387 = shalt.err (!%p1384_p11)
}
  0x14   : > { %s1388_s6 = scalar_lea.vmem %s170_s21, 2560  ;;  %p1396_p1 = scmp.lt.s32.totalorder %s170_s21, %s170_s21 }
  0x15   : > { %p1389_p12 = scmp.ne.s32.totalorder %s170_s21, %s1388_s6  ;;  %p1397_p4 = scmp.lt.s32.totalorder %s1388_s6, %s1388_s6 }
  0x17   : > { %p1391_p13 = pnand %p1389_p12, %p1377_p7  ;;  %p1398_p3 = por %p1397_p4, %p1396_p1 }
  0x19   : > { %p1392_p0 = pneg %p1391_p13 }
  0x1b   : > { %p1399_p2 = pnand %p1398_p3, %p1392_p0 }
  0x1d   : > { %1402 = shalt.err (!%p1399_p2)
}
  0x1e   : > { %s1416_s7 = smov 128   ;;  %s1417_s8 = smov 8  }
  0x1f   : > { %1358 = dma.hbm_to_vmem [thread:$0]  (!%p1470_p5), %s1588_s1, 2560, %s170_s21, [#allocation3], %s1416_s7, %s1416_s7, %s1417_s8  }
  0x20   : > { %p1597_p6 = scmp.ne.s32.totalorder %s1595_s22, 0 }
  0x21   : > { %p1598_p8 = scmp.eq.s32.totalorder (!%p1597_p6), %s1457_s19, 0 }
  0x22   : > { %202 = sbr.rel (%p1597_p6) target bundleno = 311 (0x137), region = 40 }
  0x29   : > { %1408 = dma.done.wait (%p1598_p8), [#allocation3], 2560   ;;  %p1599_p7 = pmov %p1598_p8 }
  0x2a   : > { %p229_p2 = scmp.lt.s32.totalorder %s1457_s19, 1  ;;  %v1418_v0 = vmov 0.0|0.0   ;;  %vm1419_vm0 = vmmov 0   ;;  %v1420_v1 = vmov 0.0   ;;  %v246_v2 = vld [vmem:[#allocation2 + $0x20] sm:$0xff]  ;;  %v247_v3 = vld [vmem:[#allocation2 + $0x28] sm:$0xff] }
  0x2b   : > { %1410 = vsyncadd (%p1599_p7), [#allocation3], 4294964736  ;;  %1290 = vmatprep.subr.bf16.mxu0 %v1418_v0  ;;  %1296 = vmatprep.subr.bf16.mxu1 %v1418_v0  ;;  %v239_v4 = vld [vmem:[#allocation2] sm:$0xff]  ;;  %v1291_v5 = vpack.c.bf16 %v247_v3, %v246_v2  ;;  %v240_v6 = vld [vmem:[#allocation2 + $0x8] sm:$0xff]  ;;  %vm250_vm1 = vcmask 261120   ;;  %vm1033_vm2 = vcmask 523264  }
  0x2c   : > { %1188 = vmatprep.mubr.msk.f32.mxu0 %vm1419_vm0, %v1420_v1  ;;  %1199 = vmatprep.mubr.msk.f32.mxu1 %vm1419_vm0, %v1420_v1  ;;  %s1601_s19 = smov (!%p229_p2, %s1457_s19), 1  ;;  %v248_v7 = vld [vmem:[#allocation2 + $0x30] sm:$0xff]  ;;  %v249_v8 = vld [vmem:[#allocation2 + $0x38] sm:$0xff]  ;;  %v1507_v9 = vpack.c.bf16 %v240_v6, %v239_v4  ;;  %v400_v14 = vld [vmem:[#allocation2 + $0x40] sm:$0xff] }
  0x2d   : > { %s1350_s11 = smul.u32 40, %s1601_s19  ;;  %v241_v10 = vld [vmem:[#allocation2 + $0x10] sm:$0xff]  ;;  %v242_v11 = vld [vmem:[#allocation2 + $0x18] sm:$0xff]  ;;  %1292 = vmatpush3.bf16.msra.mxu0 %v1291_v5  ;;  %v1294_v12 = vpack.c.bf16 %v249_v8, %v248_v7  ;;  %v401_v15 = vld [vmem:[#allocation2 + $0x48] sm:$0xff]  ;;  %s1108_s23 = sshll.u32 %s1601_s19, 3 }
  0x2e   : > { %1298 = vmatpush3.bf16.msra.mxu1 %v1507_v9  ;;  %1293 = vmatprep.subr.bf16.mxu0 %v1418_v0  ;;  %v1511_v13 = vpack.c.bf16 %v242_v11, %v241_v10  ;;  %v481_v16 = vld [vmem:[#allocation2 + $0x60] sm:$0xff]  ;;  %v482_v17 = vld [vmem:[#allocation2 + $0x68] sm:$0xff]  ;;  %v1303_v19 = vpack.c.bf16 %v401_v15, %v400_v14  ;;  %v402_v22 = vld [vmem:[#allocation2 + $0x50] sm:$0xff]  ;;  %s237_s26 = scalar_lea.vmem %s1592_s5, %s1108_s23 }
  0x2f   : > { %s1516_s14 = scalar_lea.vmem %s1587_s0, %s1350_s11  ;;  %1299 = vmatprep.subr.bf16.mxu1 %v1418_v0  ;;  %v1309_v21 = vpack.c.bf16 %v482_v17, %v481_v16  ;;  %v403_v23 = vld [vmem:[#allocation2 + $0x58] sm:$0xff]  ;;  %v483_v24 = vld [vmem:[#allocation2 + $0x70] sm:$0xff]  ;;  %v562_v28 = vld [vmem:[#allocation2 + $0x80] sm:$0xff] }
  0x30   : > { %v1109_v18 = vld [vmem:[%s1516_s14 + $0x1] ss:$4 sm:$0xff]  ;;  %v238_v20 = vld [vmem:[%s1516_s14] ss:$4 sm:$0xff]  ;;  %v1306_v26 = vpack.c.bf16 %v403_v23, %v402_v22  ;;  %v1112_v30 = vld [vmem:[%s1516_s14 + $0x2] ss:$4 sm:$0xff] }
  0x31   : > { %1295 = vmatpush3.bf16.msra.mxu0 %v1294_v12  ;;  %v484_v25 = vld [vmem:[#allocation2 + $0x78] sm:$0xff]  ;;  %v563_v29 = vld [vmem:[#allocation2 + $0x88] sm:$0xff]  ;;  %v564_v33 = vld [vmem:[#allocation2 + $0x90] sm:$0xff] }
  0x32   : > { %1301 = vmatpush3.bf16.msra.mxu1 %v1511_v13  ;;  %1302 = vmatprep.subr.bf16.mxu0 %v1418_v0  ;;  %v1312_v27 = vpack.c.bf16 %v484_v25, %v483_v24  ;;  %v1315_v31 = vpack.c.bf16 %v563_v29, %v562_v28  ;;  %v1114_v32 = vld [vmem:[%s1516_s14 + $0x3] ss:$4 sm:$0xff]  ;;  %v1116_v36 = vld [vmem:[%s1516_s14 + $0x4] ss:$4 sm:$0xff]  ;;  %v1124_v37 = vld [vmem:[%s1516_s14 + $0x5] ss:$4 sm:$0xff] }
  0x33   : > { %1308 = vmatprep.subr.bf16.mxu1 %v1418_v0  ;;  %v565_v34 = vld [vmem:[#allocation2 + $0x98] sm:$0xff]  ;;  %v1118_v61 = vld [vmem:[%s1589_s2] ss:$0 sm:$0xff] }
  0x34   : > { %1189 = vmatmul.mubr.msk.f32.vlgmr.msra.gmra.mrb[0].mxu0 %vm250_vm1, %v1109_v18  ;;  %v1318_v35 = vpack.c.bf16 %v565_v34, %v564_v33  ;;  %v1126_v38 = vld [vmem:[%s1516_s14 + $0x6] ss:$4 sm:$0xff]  ;;  %v1119_v63 = vld [vmem:[%s1590_s3] ss:$0 sm:$0xff] }
  0x35   : > { %1200 = vmatmul.mubr.msk.f32.vlgmr.msra.gmra.mrb[0].mxu1 %vm250_vm1, %v238_v20  ;;  %1304 = vmatpush3.bf16.msra.mxu0 %v1303_v19  ;;  %v1120_v7 = vld [vmem:[%s1591_s4] ss:$0 sm:$0xff] }
  0x36   : > { %1310 = vmatpush3.bf16.msra.mxu1 %v1309_v21  ;;  %1305 = vmatprep.subr.bf16.mxu0 %v1418_v0 }
  0x37   : > { %1311 = vmatprep.subr.bf16.mxu1 %v1418_v0  ;;  %1210 = vmatprep.mubr.msk.f32.mxu0 %vm1419_vm0, %v1420_v1 }
  0x38   : > { %1221 = vmatprep.mubr.msk.f32.mxu1 %vm1419_vm0, %v1420_v1 }
  0x39   : > { %1307 = vmatpush3.bf16.msra.mxu0 %v1306_v26 }
  0x3a   : > { %1313 = vmatpush3.bf16.msra.mxu1 %v1312_v27  ;;  %1314 = vmatprep.subr.bf16.mxu0 %v1418_v0 }
  0x3b   : > { %1320 = vmatprep.subr.bf16.mxu1 %v1418_v0 }
  0x3c   : > { %1211 = vmatmul.mubr.msk.f32.vlgmr.msra.gmra.mrb[2].mxu0 %vm250_vm1, %v1112_v30 }
  0x3d   : > { %1316 = vmatpush3.bf16.msra.mxu0 %v1315_v31  ;;  %1222 = vmatmul.mubr.msk.f32.vlgmr.msra.gmra.mrb[2].mxu1 %vm250_vm1, %v1114_v32 }
  0x3e   : > { %1322 = vmatpush3.bf16.msra.mxu1 %v1291_v5  ;;  %1317 = vmatprep.subr.bf16.mxu0 %v1418_v0 }
  0x3f   : > { %1323 = vmatprep.subr.bf16.mxu1 %v1418_v0  ;;  %1232 = vmatprep.mubr.msk.f32.mxu0 %vm1419_vm0, %v1420_v1 }
  0x40   : > { %1243 = vmatprep.mubr.msk.f32.mxu1 %vm1419_vm0, %v1420_v1 }
  0x41   : > { %1319 = vmatpush3.bf16.msra.mxu0 %v1318_v35 }
  0x42   : > { %1325 = vmatpush3.bf16.msra.mxu1 %v1294_v12  ;;  %1326 = vmatprep.subr.bf16.mxu0 %v1418_v0 }
  0x43   : > { %1332 = vmatprep.subr.bf16.mxu1 %v1418_v0 }
  0x44   : > { %1233 = vmatmul.mubr.msk.f32.vlgmr.msra.gmra.mrb[4].mxu0 %vm250_vm1, %v1116_v36 }
  0x45   : > { %1328 = vmatpush3.bf16.msra.mxu0 %v1507_v9  ;;  %1244 = vmatmul.mubr.msk.f32.vlgmr.msra.gmra.mrb[4].mxu1 %vm250_vm1, %v1114_v32 }
  0x46   : > { %1334 = vmatpush3.bf16.msra.mxu1 %v1303_v19  ;;  %1329 = vmatprep.subr.bf16.mxu0 %v1418_v0 }
  0x47   : > { %1335 = vmatprep.subr.bf16.mxu1 %v1418_v0  ;;  %1254 = vmatprep.mubr.msk.f32.mxu0 %vm1419_vm0, %v1420_v1 }
  0x48   : > { %1265 = vmatprep.mubr.msk.f32.mxu1 %vm1419_vm0, %v1420_v1 }
  0x49   : > { %1331 = vmatpush3.bf16.msra.mxu0 %v1511_v13 }
  0x4a   : > { %1337 = vmatpush3.bf16.msra.mxu1 %v1306_v26  ;;  %1338 = vmatprep.subr.bf16.mxu0 %v1418_v0 }
  0x4b   : > { %1344 = vmatprep.subr.bf16.mxu1 %v1418_v0 }
  0x4c   : > { %1255 = vmatmul.mubr.msk.f32.vlgmr.msra.gmra.mrb[6].mxu0 %vm250_vm1, %v1112_v30 }
  0x4d   : > { %1340 = vmatpush3.bf16.msra.mxu0 %v1309_v21  ;;  %1266 = vmatmul.mubr.msk.f32.vlgmr.msra.gmra.mrb[6].mxu1 %vm250_vm1, %v1116_v36 }
  0x4e   : > { %1346 = vmatpush3.bf16.msra.mxu1 %v1315_v31  ;;  %1341 = vmatprep.subr.bf16.mxu0 %v1418_v0 }
  0x4f   : > { %1347 = vmatprep.subr.bf16.mxu1 %v1418_v0  ;;  %1276 = vmatprep.mubr.msk.f32.mxu0 %vm1419_vm0, %v1420_v1 }
  0x50   : > { %1287 = vmatprep.mubr.msk.f32.mxu1 %vm1419_vm0, %v1420_v1 }
  0x51   : > { %1343 = vmatpush3.bf16.msra.mxu0 %v1312_v27 }
  0x52   : > { %1349 = vmatpush3.bf16.msra.mxu1 %v1318_v35 }
  0x54   : > { %1277 = vmatmul.mubr.msk.f32.vlgmr.msra.gmra.mrb[8].mxu0 %vm250_vm1, %v1124_v37 }
  0x55   : > { %1288 = vmatmul.mubr.msk.f32.vlgmr.msra.gmra.mrb[8].mxu1 %vm250_vm1, %v1126_v38 }
 0x107   : > { %v320_v39 = vpop.f32.mrb[0].mxu0 }
 0x108   : > { %v1190_v40 = vpop.f32.mrb[1].mxu0  ;;  %v393_v41 = vpop.f32.mrb[0].mxu1 }
 0x109   : > { %v394_v42 = vadd.f32 %v393_v41, %v320_v39  ;;  %v1201_v43 = vpop.f32.mrb[1].mxu1 }
 0x10f   : > { %v473_v44 = vpop.f32.mrb[2].mxu0 }
 0x110   : > { %v477_v45 = vadd.f32 %v473_v44, %v394_v42  ;;  %v1212_v46 = vpop.f32.mrb[3].mxu0  ;;  %v554_v47 = vpop.f32.mrb[2].mxu1 }
 0x111   : > { %v1223_v48 = vpop.f32.mrb[3].mxu1 }
 0x112   : > { %v558_v49 = vadd.f32 %v554_v47, %v477_v45 }
 0x117   : > { %v635_v50 = vpop.f32.mrb[4].mxu0 }
 0x118   : > { %v639_v51 = vadd.f32 %v635_v50, %v558_v49  ;;  %v1234_v52 = vpop.f32.mrb[5].mxu0  ;;  %v731_v53 = vpop.f32.mrb[4].mxu1 }
 0x119   : > { %v1245_v54 = vpop.f32.mrb[5].mxu1 }
 0x11a   : > { %v647_v62 = vadd.f32 %v1118_v61, %v639_v51 }
 0x11c   : > { %v655_v5 = vmul.f32 %v1119_v63, %v647_v62 }
 0x11e   : > { %v663_v9 = vadd.f32 %v1120_v7, %v655_v5 }
 0x11f   : > { %v801_v55 = vpop.f32.mrb[6].mxu0 }
 0x120   : > { %v802_v56 = vadd.f32 %v801_v55, %v731_v53  ;;  %v1256_v57 = vpop.f32.mrb[7].mxu0  ;;  %v871_v58 = vpop.f32.mrb[6].mxu1  ;;  %v664_v12 = vmax.f32 %v663_v9, 0.0 }
 0x121   : > { %v1267_v59 = vpop.f32.mrb[7].mxu1 }
 0x122   : > { %v875_v60 = vadd.f32 %v871_v58, %v802_v56 }
 0x127   : > { %v947_v0 = vpop.f32.mrb[8].mxu0 }
 0x128   : > { %v951_v1 = vadd.f32 %v947_v0, %v875_v60  ;;  %v1278_v2 = vpop.f32.mrb[9].mxu0  ;;  %v1023_v3 = vpop.f32.mrb[8].mxu1 }
 0x129   : > { %v1289_v4 = vpop.f32.mrb[9].mxu1 }
 0x12a   : > { %v1027_v6 = vadd.f32 %v1023_v3, %v951_v1 }
 0x12c   : > { %v1028_v8 = vadd.f32 %v1118_v61, %v1027_v6 }
 0x12e   : > { %v1029_v10 = vmul.f32 %v1119_v63, %v1028_v8 }
 0x130   : > { %v1030_v11 = vadd.f32 %v1120_v7, %v1029_v10 }
 0x132   : > { %v1031_v13 = vmax.f32 %v1030_v11, 0.0 }
 0x134   : > { %v1032_v14 = vmax.f32 %v664_v12, %v1031_v13 }
 0x136   : > { %1034 = vst.msk [vmem:[%s237_s26] sm:$0xff] %vm1033_vm2, %v1032_v14 }
 0x137 PF: > { %s16_s18 = sadd.s32 1, %s1413_s18  }
 0x138   : > { %p13_p3 = scmp.ge.s32.totalorder %s16_s18, 4  }
 0x13a   :  { %15 = sbr.rel (!%p13_p3) target bundleno = 1 (0x1), region = 85 }
 0x141   :  { %1054 = vsyncpa [#allocation3], 1 }
 0x142   :  { %1056 = vsyncpa [#allocation3 + $0x1], 1 }

// kernel: forward.11
= control target key start
LH: loop header
LB: loop body
LE: loop exit
PB: predicated region body
PF: predicated region fallthrough
CT: control target
= control target key end

     0   :  { %vm125_vm0 = vcmask 39936   ;;  %s327_s1 = inlined_call_operand.vmem [shape: f32[256,5], index: 1, kind: input, shape index: {}]   ;;  %s328_s0 = inlined_call_operand.vmem [shape: f32[8,256], index: 0, kind: input, shape index: {}]   ;;  %s329_s2 = inlined_call_operand.vmem [shape: f32[1,5], index: 2, kind: input, shape index: {}]   ;;  %s330_s3 = inlined_call_operand.vmem [shape: f32[8,5], index: 3, kind: output, shape index: {}]  }
   0x1   :  { %v32_v0 = vld [vmem:[%s327_s1 + $0x80] sm:$0xff]  ;;  %v33_v1 = vld [vmem:[%s327_s1 + $0x88] sm:$0xff]  ;;  %v34_v5 = vld [vmem:[%s327_s1 + $0x90] sm:$0xff] }
   0x2   :  { %v16_v2 = vld [vmem:[%s327_s1] sm:$0xff]  ;;  %v167_v3 = vpack.c.bf16 %v33_v1, %v32_v0  ;;  %v17_v4 = vld [vmem:[%s327_s1 + $0x8] sm:$0xff]  ;;  %v35_v6 = vld [vmem:[%s327_s1 + $0x98] sm:$0xff] }
   0x3   :  { %v169_v7 = vpack.c.bf16 %v17_v4, %v16_v2  ;;  %v171_v8 = vpack.c.bf16 %v35_v6, %v34_v5  ;;  %v18_v9 = vld [vmem:[%s327_s1 + $0x10] sm:$0xff]  ;;  %v19_v10 = vld [vmem:[%s327_s1 + $0x18] sm:$0xff]  ;;  %v36_v11 = vld [vmem:[%s327_s1 + $0xa0] sm:$0xff] }
   0x4   :  { %168 = vmatprep.subr.bf16.mxu0 %v167_v3  ;;  %v37_v12 = vld [vmem:[%s327_s1 + $0xa8] sm:$0xff]  ;;  %v173_v13 = vpack.c.bf16 %v19_v10, %v18_v9  ;;  %v20_v15 = vld [vmem:[%s327_s1 + $0x20] sm:$0xff]  ;;  %v38_v17 = vld [vmem:[%s327_s1 + $0xb0] sm:$0xff] }
   0x5   :  { %170 = vmatpush3.bf16.msra.mxu0 %v169_v7  ;;  %v175_v14 = vpack.c.bf16 %v37_v12, %v36_v11  ;;  %v21_v16 = vld [vmem:[%s327_s1 + $0x28] sm:$0xff]  ;;  %v39_v18 = vld [vmem:[%s327_s1 + $0xb8] sm:$0xff]  ;;  %v22_v21 = vld [vmem:[%s327_s1 + $0x30] sm:$0xff] }
   0x6   :  { %172 = vmatprep.subr.bf16.mxu0 %v171_v8  ;;  %v177_v19 = vpack.c.bf16 %v21_v16, %v20_v15  ;;  %v179_v20 = vpack.c.bf16 %v39_v18, %v38_v17  ;;  %v23_v22 = vld [vmem:[%s327_s1 + $0x38] sm:$0xff]  ;;  %v40_v23 = vld [vmem:[%s327_s1 + $0xc0] sm:$0xff]  ;;  %v41_v24 = vld [vmem:[%s327_s1 + $0xc8] sm:$0xff] }
   0x7   :  { %v15_v25 = vld [vmem:[%s328_s0 + $0x8] sm:$0xff]  ;;  %v181_v26 = vpack.c.bf16 %v23_v22, %v22_v21  ;;  %v183_v27 = vpack.c.bf16 %v41_v24, %v40_v23  ;;  %v24_v28 = vld [vmem:[%s327_s1 + $0x40] sm:$0xff]  ;;  %v42_v30 = vld [vmem:[%s327_s1 + $0xd0] sm:$0xff] }
   0x8   :  { %119 = vmatprep.mubr.f32.mxu0 %v15_v25  ;;  %v25_v29 = vld [vmem:[%s327_s1 + $0x48] sm:$0xff]  ;;  %v43_v31 = vld [vmem:[%s327_s1 + $0xd8] sm:$0xff]  ;;  %v26_v34 = vld [vmem:[%s327_s1 + $0x50] sm:$0xff] }
   0x9   :  { %174 = vmatpush3.bf16.msra.mxu0 %v173_v13  ;;  %v185_v32 = vpack.c.bf16 %v25_v29, %v24_v28  ;;  %v187_v33 = vpack.c.bf16 %v43_v31, %v42_v30  ;;  %v27_v35 = vld [vmem:[%s327_s1 + $0x58] sm:$0xff]  ;;  %v44_v36 = vld [vmem:[%s327_s1 + $0xe0] sm:$0xff]  ;;  %v45_v37 = vld [vmem:[%s327_s1 + $0xe8] sm:$0xff] }
   0xa   :  { %176 = vmatprep.subr.bf16.mxu0 %v175_v14  ;;  %v189_v38 = vpack.c.bf16 %v27_v35, %v26_v34  ;;  %v191_v39 = vpack.c.bf16 %v45_v37, %v44_v36  ;;  %v28_v40 = vld [vmem:[%s327_s1 + $0x60] sm:$0xff]  ;;  %v29_v41 = vld [vmem:[%s327_s1 + $0x68] sm:$0xff]  ;;  %v46_v42 = vld [vmem:[%s327_s1 + $0xf0] sm:$0xff] }
   0xb   :  { %v47_v43 = vld [vmem:[%s327_s1 + $0xf8] sm:$0xff]  ;;  %v193_v44 = vpack.c.bf16 %v29_v41, %v28_v40  ;;  %v30_v46 = vld [vmem:[%s327_s1 + $0x70] sm:$0xff]  ;;  %v14_v49 = vld [vmem:[%s328_s0] sm:$0xff] }
   0xc   :  { %v195_v45 = vpack.c.bf16 %v47_v43, %v46_v42  ;;  %v31_v47 = vld [vmem:[%s327_s1 + $0x78] sm:$0xff]  ;;  %v131_v51 = vld [vmem:[%s329_s2] ss:$0 sm:$0xff] }
   0xd   :  { %178 = vmatpush3.bf16.msra.mxu0 %v177_v19  ;;  %v197_v48 = vpack.c.bf16 %v31_v47, %v30_v46 }
   0xe   :  { %180 = vmatprep.subr.bf16.mxu0 %v179_v20 }
  0x11   :  { %182 = vmatpush3.bf16.msra.mxu0 %v181_v26 }
  0x12   :  { %184 = vmatprep.subr.bf16.mxu0 %v183_v27 }
  0x15   :  { %186 = vmatpush3.bf16.msra.mxu0 %v185_v32 }
  0x16   :  { %188 = vmatprep.subr.bf16.mxu0 %v187_v33 }
  0x19   :  { %190 = vmatpush3.bf16.msra.mxu0 %v189_v38 }
  0x1a   :  { %192 = vmatprep.subr.bf16.mxu0 %v191_v39 }
  0x1d   :  { %194 = vmatpush3.bf16.msra.mxu0 %v193_v44 }
  0x1e   :  { %196 = vmatprep.subr.bf16.mxu0 %v195_v45 }
  0x21   :  { %198 = vmatpush3.bf16.msra.mxu0 %v197_v48 }
  0x24   :  { %120 = vmatmul.mubr.f32.vlgmr.msra.gmra.mrb[0].mxu0 %v14_v49 }
  0xf7   :  { %v164_v50 = vpop.f32.mrb[0].mxu0 }
  0xf8   :  { %v165_v52 = vpop.f32.mrb[1].mxu0 }
  0xf9   :  { %v166_v53 = vadd.f32 %v165_v52, %v164_v50 }
  0xfb   :  { %v122_v54 = vadd.f32 %v166_v53, %v131_v51 }
  0xfd   :  { %126 = vst.msk [vmem:[%s330_s3] sm:$0xff] %vm125_vm0, %v122_v54 }

// kernel: forward.9
= control target key start
LH: loop header
LB: loop body
LE: loop exit
PB: predicated region body
PF: predicated region fallthrough
CT: control target
= control target key end

     0   :  { %11 = vsyncpa [#allocation4], 0  ;;  %s4860_s0 = inlined_call_operand.vmem [shape: f32[64,128], index: 0, kind: input, shape index: {}]   ;;  %s4861_s1 = inlined_call_operand.vmem [shape: f32[2,128,512], index: 1, kind: input, shape index: {}]   ;;  %s4862_s2 = inlined_call_operand.hbm [shape: f32[2,128,512], index: 2, kind: input, shape index: {}]   ;;  %s4863_s3 = inlined_call_operand.vmem [shape: f32[2,1,512], index: 3, kind: input, shape index: {}]   ;;  %s4864_s4 = inlined_call_operand.vmem [shape: f32[8,8,256], index: 4, kind: output, shape index: {0}]   ;;  %s4865_s5 = inlined_call_operand.hbm [shape: f32[8,256], index: 5, kind: output, shape index: {1}]  }
   0x1   :  { %13 = vsyncpa [#allocation4 + $0x1], 0 }
   0x2   :  { %14 = vsyncpa [#allocation5], 0 }
   0x3   :  { %16 = vsyncpa [#allocation5 + $0x1], 0  ;;  %s3769_s18 = smov 0   ;;  %s3771_s19 = smov 0  }
   0x4   :  { %s3773_s20 = smov 0   ;;  %s3775_s21 = smov 0  }
   0x5 LB: > { %s3790_s22 = sadd.s32 4294967295, %s3732_s21   ;;  %s2830_s23 = sadd.s32 4294967294, %s3732_s21   ;;  %s3732_s21 = sphi %s3775_s21, %s4888_s21   ;;  %s3728_s20 = sphi %s3773_s20, %s4887_s20   ;;  %s3724_s19 = sphi %s3771_s19, %s4886_s19   ;;  %s3720_s18 = sphi %s3769_s18, %s4885_s18  }
   0x6   : > { %s3794_s24 = sadd.s32 1, %s3732_s21   ;;  %s76_s25 = sadd.s32 1, %s3728_s20 }
   0x7   : > { %s73_s26 = ssub.s32 %s3732_s21, %s3794_s24  ;;  %p83_p0 = scmp.ne.s32.totalorder %s3728_s20, %s3724_s19 }
   0x8   : > { %p74_p1 = scmp.eq.s32.totalorder %s73_s26, 0  ;;  %p84_p2 = scmp.eq.s32.totalorder %s3732_s21, 0 }
   0x9   : > { %p89_p3 = scmp.ne.s32.totalorder %s3724_s19, %s3720_s18  ;;  %p4866_p4 = scmp.eq.s32.totalorder %s3790_s22, 0 }
   0xa   : > { %s3806_s27 = scalar_select %p74_p1, %s3728_s20, %s76_s25  }
   0xb   : > { %p3808_p5 = por %p84_p2, %p83_p0  ;;  %p3814_p6 = por %p4866_p4, %p89_p3 }
   0xc   : > { %p139_p7 = scmp.eq.s32.totalorder %s3790_s22, 1  ;;  %p171_p8 = scmp.eq.s32.totalorder %s2830_s23, 1 }
   0xd   : > { %p3471_p10 = scmp.lt.s32.totalorder %s3732_s21, 2  ;;  %s202_s7 = sand.u32 1, %s3728_s20  }
   0xe   : > { %p3821_p11 = por %p139_p7, %p83_p0  ;;  %p3825_p12 = por %p171_p8, %p89_p3 }
   0xf   : > { %s2873_s8 = sshll.u32 %s3732_s21, 13  ;;  %s2833_s9 = sshll.u32 %s202_s7, 9 }
  0x10   : > { %s4870_s30 = scalar_select %p3821_p11, 1, 0 }
  0x11   : > { %s4871_s6 = scalar_select %p3825_p12, 1, 0 }
  0x12   : > { %s3834_s12 = scalar_lea.hbm %s4862_s2, %s2873_s8  ;;  %s206_s13 = scalar_lea.vmem [#allocation3], %s2833_s9 }
  0x13   : > { %s213_s14 = sshll.u32 %s206_s13, 4  ;;  %p3838_p13 = pnand %p3471_p10, %p3808_p5  ;;  %s3842_s14 = int_to_ptr.vmem [resolvable:$true] %s213_s14 }
  0x14   : > { %s3844_s16 = scalar_lea.sflag [#allocation4], %s202_s7  ;;  %s3636_s17 = scalar_lea.hbm %s3834_s12, 8192 }
  0x15   : > { %p3637_p0 = scmp.ne.s32.totalorder %s3834_s12, %s3636_s17  ;;  %p3638_p1 = pneg %p3838_p13 }
  0x16   : > { %s3641_s26 = scalar_lea.hbm %s4862_s2, 16384  ;;  %p3642_p5 = scmp.lt.u32.totalorder %s3834_s12, %s4862_s2 }
  0x17   : > { %p3639_p2 = pnand %p3638_p1, %p3637_p0  ;;  %p3643_p7 = scmp.lt.u32.totalorder %s3641_s26, %s3636_s17 }
  0x18   : > { %p3645_p10 = scmp.lt.u32.totalorder %s3636_s17, %s3834_s12 }
  0x19   : > { %p3640_p3 = pneg %p3639_p2  ;;  %p3644_p8 = por %p3643_p7, %p3642_p5 }
  0x1b   : > { %p3646_p9 = por %p3645_p10, %p3644_p8 }
  0x1d   : > { %p3647_p4 = pnand %p3646_p9, %p3640_p3 }
  0x1f   : > { %3650 = shalt.err (!%p3647_p4)
}
  0x20   : > { %s3651_s7 = scalar_lea.vmem %s3842_s14, 8192  ;;  %s3734_s9 = smov [#allocation3]  }
  0x21   : > { %p3652_p0 = scmp.ne.s32.totalorder %s3842_s14, %s3651_s7  ;;  %s3656_s10 = sshll.u32 %s3734_s9, 4  ;;  %s3657_s10 = int_to_ptr.vmem [resolvable:$false] %s3656_s10 }
  0x22   : > { %s3658_s11 = scalar_lea.vmem %s3657_s10, 16384  ;;  %p3659_p11 = scmp.lt.s32.totalorder %s3842_s14, %s3657_s10 }
  0x23   : > { %p3654_p2 = pnand %p3652_p0, %p3638_p1  ;;  %p3660_p5 = scmp.lt.s32.totalorder %s3658_s11, %s3651_s7 }
  0x25   : > { %p3655_p12 = pneg %p3654_p2  ;;  %p3661_p7 = por %p3660_p5, %p3659_p11 }
  0x27   : > { %p3662_p8 = pnand %p3661_p7, %p3655_p12 }
  0x29   : > { %3665 = shalt.err (!%p3662_p8)
}
  0x2a   : > { %s3735_s13 = smov 512   ;;  %s3736_s17 = smov 32  }
  0x2b   : > { %3466 = dma.hbm_to_vmem [thread:$0]  (!%p3838_p13), %s3834_s12, 8192, %s3842_s14, %s3844_s16, %s3735_s13, %s3735_s13, %s3736_s17  }
  0x2c   : > { %p2836_p4 = scmp.ge.s32.totalorder %s3732_s21, 1  ;;  %p228_p9 = scmp.lt.s32.totalorder %s3732_s21, 3 }
  0x2e   : > { %p229_p1 = pnand %p2836_p4, %p228_p9 }
  0x2f   : > { %s3875_s23 = sand.u32 (!%p229_p1), 1, %s3724_s19  }
  0x30   : > { %232 = sbr.rel (%p229_p1) target bundleno = 2256 (0x8d0), region = 36  ;;  %s2837_s25 = sshll.u32 (!%p229_p1), %s3875_s23, 9 }
  0x31   : > { %s235_s26 = scalar_lea.sflag (!%p229_p1), [#allocation4], %s3875_s23  ;;  %s3879_s28 = scalar_lea.vmem (!%p229_p1), [#allocation3], %s2837_s25 }
  0x37   : > { %3711 = dma.done.wait (%p3814_p6), %s235_s26, 8192  }
  0x38   : > { %3713 = vsyncadd (%p3814_p6), %s235_s26, 4294959104  ;;  %p278_p11 = scmp.lt.s32.totalorder %s3790_s22, 1  ;;  %v3737_v0 = vmov 0.0   ;;  %p4873_p6 = scmp.eq.s32.totalorder %s3790_s22, 0 }
  0x39   : > { %445 = vmatprep.mubr.f32.mxu0 %v3737_v0  ;;  %558 = vmatprep.mubr.f32.mxu1 %v3737_v0  ;;  %s2838_s16 = sshll.u32 %s3875_s23, 6  ;;  %p4881_p7 = scmp.ne.s32.totalorder %s4870_s30, 0 }
  0x3a   : > { %s3889_s12 = scalar_select %p278_p11, %s3790_s22, 1 }
  0x3b   : > { %p4874_p12 = pmov %p4873_p6  ;;  %p4875_p13 = pmov %p4873_p6 }
  0x3c   : > { %s2874_s14 = sshll.u32 %s3889_s12, 9  ;;  %s2842_s10 = sshll.u32 %s3889_s12, 2 }
  0x3d   : > { %s3895_s8 = scalar_lea.vmem %s4861_s1, %s2874_s14  ;;  %s286_s17 = scalar_lea.vmem %s4863_s3, %s2842_s10 }
  0x3e   : > { %v296_v1 = vld [vmem:[%s3895_s8 + $0x8] sm:$0xff]  ;;  %v298_v3 = vld [vmem:[%s3895_s8 + $0x18] sm:$0xff]  ;;  %v295_v6 = vld [vmem:[%s3895_s8] sm:$0xff]  ;;  %s4236_s12 = scalar_select %p4873_p6, 0, 7 }
  0x3f   : > { %v300_v2 = vld [vmem:[%s3895_s8 + $0x28] sm:$0xff]  ;;  %v302_v5 = vld [vmem:[%s3895_s8 + $0x38] sm:$0xff]  ;;  %v299_v7 = vld [vmem:[%s3895_s8 + $0x20] sm:$0xff]  ;;  %s4293_s7 = scalar_select %p4874_p12, 1, 6 }
  0x40   : > { %v2883_v4 = vpack.c.bf16 %v300_v2, %v296_v1  ;;  %v2915_v8 = vpack.c.bf16 %v302_v5, %v298_v3  ;;  %v2885_v9 = vpack.c.bf16 %v299_v7, %v295_v6  ;;  %v297_v10 = vld [vmem:[%s3895_s8 + $0x10] sm:$0xff]  ;;  %v304_v12 = vld [vmem:[%s3895_s8 + $0x48] sm:$0xff]  ;;  %v306_v15 = vld [vmem:[%s3895_s8 + $0x58] sm:$0xff]  ;;  %s2843_s25 = sshll.u32 %s4236_s12, 3  ;;  %p4876_p3 = pmov %p4873_p6 }
  0x41   : > { %v301_v11 = vld [vmem:[%s3895_s8 + $0x30] sm:$0xff]  ;;  %v308_v14 = vld [vmem:[%s3895_s8 + $0x68] sm:$0xff]  ;;  %v310_v16 = vld [vmem:[%s3895_s8 + $0x78] sm:$0xff]  ;;  %s642_s26 = sshra.s32 %s2843_s25, 3  ;;  %s2846_s9 = sshll.u32 %s4293_s7, 3 }
  0x42   : > { %2884 = vmatprep.subr.bf16.mxu0 %v2883_v4  ;;  %v2917_v13 = vpack.c.bf16 %v301_v11, %v297_v10  ;;  %2916 = vmatprep.subr.bf16.mxu1 %v2915_v8  ;;  %v2887_v17 = vpack.c.bf16 %v308_v14, %v304_v12  ;;  %v2919_v18 = vpack.c.bf16 %v310_v16, %v306_v15  ;;  %v303_v19 = vld [vmem:[%s3895_s8 + $0x40] sm:$0xff]  ;;  %v305_v21 = vld [vmem:[%s3895_s8 + $0x50] sm:$0xff]  ;;  %v312_v24 = vld [vmem:[%s3895_s8 + $0x88] sm:$0xff]  ;;  %s2875_s14 = sshll.u32 %s642_s26, 5  ;;  %s886_s10 = sshra.s32 %s2846_s9, 3 }
  0x43   : > { %2886 = vmatpush1.bf16.msra.mxu0 %v2885_v9  ;;  %v307_v20 = vld [vmem:[%s3895_s8 + $0x60] sm:$0xff]  ;;  %v309_v23 = vld [vmem:[%s3895_s8 + $0x70] sm:$0xff]  ;;  %v316_v25 = vld [vmem:[%s3895_s8 + $0xa8] sm:$0xff]  ;;  %s646_s15 = scalar_lea.vmem [#allocation2], %s2875_s14  ;;  %s2876_s11 = sshll.u32 %s886_s10, 5 }
  0x44   : > { %2918 = vmatpush1.bf16.msra.mxu1 %v2917_v13  ;;  %v2889_v22 = vpack.c.bf16 %v307_v20, %v303_v19  ;;  %2888 = vmatprep.subr.bf16.mxu0 %v2887_v17  ;;  %v2921_v26 = vpack.c.bf16 %v309_v23, %v305_v21  ;;  %v2891_v27 = vpack.c.bf16 %v316_v25, %v312_v24  ;;  %v314_v28 = vld [vmem:[%s3895_s8 + $0x98] sm:$0xff]  ;;  %v311_v30 = vld [vmem:[%s3895_s8 + $0x80] sm:$0xff]  ;;  %v313_v33 = vld [vmem:[%s3895_s8 + $0x90] sm:$0xff]  ;;  %s890_s13 = scalar_lea.vmem [#allocation2], %s2876_s11  ;;  %p4877_p10 = pmov %p4876_p3 }
  0x45   : > { %2920 = vmatprep.subr.bf16.mxu1 %v2919_v18  ;;  %v318_v29 = vld [vmem:[%s3895_s8 + $0xb8] sm:$0xff]  ;;  %v315_v32 = vld [vmem:[%s3895_s8 + $0xa0] sm:$0xff]  ;;  %v317_v34 = vld [vmem:[%s3895_s8 + $0xb0] sm:$0xff]  ;;  %s4471_s12 = scalar_select %p4875_p13, 2, 5 }
  0x46   : > { %v2923_v31 = vpack.c.bf16 %v318_v29, %v314_v28  ;;  %v2893_v35 = vpack.c.bf16 %v315_v32, %v311_v30  ;;  %v320_v36 = vld [vmem:[%s3895_s8 + $0xc8] sm:$0xff]  ;;  %v322_v38 = vld [vmem:[%s3895_s8 + $0xd8] sm:$0xff]  ;;  %v2925_v39 = vpack.c.bf16 %v317_v34, %v313_v33  ;;  %v319_v42 = vld [vmem:[%s3895_s8 + $0xc0] sm:$0xff]  ;;  %p4878_p0 = pmov %p4876_p3 }
  0x47   : > { %2890 = vmatpush1.bf16.msra.mxu0 %v2889_v22  ;;  %v324_v37 = vld [vmem:[%s3895_s8 + $0xe8] sm:$0xff]  ;;  %v326_v41 = vld [vmem:[%s3895_s8 + $0xf8] sm:$0xff]  ;;  %v323_v43 = vld [vmem:[%s3895_s8 + $0xe0] sm:$0xff] }
  0x48   : > { %2922 = vmatpush1.bf16.msra.mxu1 %v2921_v26  ;;  %2892 = vmatprep.subr.bf16.mxu0 %v2891_v27  ;;  %v2895_v40 = vpack.c.bf16 %v324_v37, %v320_v36  ;;  %v2927_v44 = vpack.c.bf16 %v326_v41, %v322_v38  ;;  %v321_v45 = vld [vmem:[%s3895_s8 + $0xd0] sm:$0xff]  ;;  %v328_v47 = vld [vmem:[%s3895_s8 + $0x108] sm:$0xff]  ;;  %v330_v49 = vld [vmem:[%s3895_s8 + $0x118] sm:$0xff]  ;;  %v2897_v51 = vpack.c.bf16 %v323_v43, %v319_v42  ;;  %p4879_p2 = pmov %p4878_p0  ;;  %p4880_p5 = pmov %p4878_p0 }
  0x49   : > { %2924 = vmatprep.subr.bf16.mxu1 %v2923_v31  ;;  %v325_v46 = vld [vmem:[%s3895_s8 + $0xf0] sm:$0xff]  ;;  %v332_v48 = vld [vmem:[%s3895_s8 + $0x128] sm:$0xff]  ;;  %v334_v50 = vld [vmem:[%s3895_s8 + $0x138] sm:$0xff] }
  0x4a   : > { %v2929_v52 = vpack.c.bf16 %v325_v46, %v321_v45  ;;  %v2899_v53 = vpack.c.bf16 %v332_v48, %v328_v47  ;;  %v327_v54 = vld [vmem:[%s3895_s8 + $0x100] sm:$0xff]  ;;  %v329_v56 = vld [vmem:[%s3895_s8 + $0x110] sm:$0xff]  ;;  %v2931_v57 = vpack.c.bf16 %v334_v50, %v330_v49  ;;  %v336_v59 = vld [vmem:[%s3895_s8 + $0x148] sm:$0xff] }
  0x4b   : > { %2894 = vmatpush1.bf16.msra.mxu0 %v2893_v35  ;;  %v331_v55 = vld [vmem:[%s3895_s8 + $0x120] sm:$0xff]  ;;  %v333_v58 = vld [vmem:[%s3895_s8 + $0x130] sm:$0xff]  ;;  %v340_v60 = vld [vmem:[%s3895_s8 + $0x168] sm:$0xff] }
  0x4c   : > { %2926 = vmatpush1.bf16.msra.mxu1 %v2925_v39  ;;  %2896 = vmatprep.subr.bf16.mxu0 %v2895_v40  ;;  %v338_v61 = vld [vmem:[%s3895_s8 + $0x158] sm:$0xff]  ;;  %v2901_v63 = vpack.c.bf16 %v331_v55, %v327_v54  ;;  %v2933_v1 = vpack.c.bf16 %v333_v58, %v329_v56  ;;  %v2903_v2 = vpack.c.bf16 %v340_v60, %v336_v59  ;;  %v335_v3 = vld [vmem:[%s3895_s8 + $0x140] sm:$0xff]  ;;  %v337_v5 = vld [vmem:[%s3895_s8 + $0x150] sm:$0xff] }
  0x4d   : > { %2928 = vmatprep.subr.bf16.mxu1 %v2927_v44  ;;  %v342_v62 = vld [vmem:[%s3895_s8 + $0x178] sm:$0xff]  ;;  %v339_v4 = vld [vmem:[%s3895_s8 + $0x160] sm:$0xff]  ;;  %v341_v7 = vld [vmem:[%s3895_s8 + $0x170] sm:$0xff] }
  0x4e   : > { %v2935_v6 = vpack.c.bf16 %v342_v62, %v338_v61  ;;  %v344_v8 = vld [vmem:[%s3895_s8 + $0x188] sm:$0xff]  ;;  %v346_v10 = vld [vmem:[%s3895_s8 + $0x198] sm:$0xff]  ;;  %v2905_v12 = vpack.c.bf16 %v339_v4, %v335_v3  ;;  %v2937_v13 = vpack.c.bf16 %v341_v7, %v337_v5  ;;  %v343_v15 = vld [vmem:[%s3895_s8 + $0x180] sm:$0xff] }
  0x4f   : > { %2898 = vmatpush1.bf16.msra.mxu0 %v2897_v51  ;;  %v348_v9 = vld [vmem:[%s3895_s8 + $0x1a8] sm:$0xff]  ;;  %v350_v11 = vld [vmem:[%s3895_s8 + $0x1b8] sm:$0xff]  ;;  %v347_v16 = vld [vmem:[%s3895_s8 + $0x1a0] sm:$0xff] }
  0x50   : > { %2930 = vmatpush1.bf16.msra.mxu1 %v2929_v52  ;;  %2900 = vmatprep.subr.bf16.mxu0 %v2899_v53  ;;  %v2907_v14 = vpack.c.bf16 %v348_v9, %v344_v8  ;;  %v345_v17 = vld [vmem:[%s3895_s8 + $0x190] sm:$0xff]  ;;  %v2939_v18 = vpack.c.bf16 %v350_v11, %v346_v10  ;;  %v352_v20 = vld [vmem:[%s3895_s8 + $0x1c8] sm:$0xff]  ;;  %v354_v22 = vld [vmem:[%s3895_s8 + $0x1d8] sm:$0xff]  ;;  %v2909_v24 = vpack.c.bf16 %v347_v16, %v343_v15 }
  0x51   : > { %2932 = vmatprep.subr.bf16.mxu1 %v2931_v57  ;;  %v349_v19 = vld [vmem:[%s3895_s8 + $0x1b0] sm:$0xff]  ;;  %v356_v21 = vld [vmem:[%s3895_s8 + $0x1e8] sm:$0xff]  ;;  %v358_v23 = vld [vmem:[%s3895_s8 + $0x1f8] sm:$0xff] }
  0x52   : > { %v2941_v25 = vpack.c.bf16 %v349_v19, %v345_v17  ;;  %v2911_v26 = vpack.c.bf16 %v356_v21, %v352_v20  ;;  %v351_v27 = vld [vmem:[%s3895_s8 + $0x1c0] sm:$0xff]  ;;  %v353_v29 = vld [vmem:[%s3895_s8 + $0x1d0] sm:$0xff]  ;;  %v2943_v30 = vpack.c.bf16 %v358_v23, %v354_v22  ;;  %v652_v32 = vld [vmem:[%s3879_s28 + $0x8] sm:$0xff] }
  0x53   : > { %2902 = vmatpush1.bf16.msra.mxu0 %v2901_v63  ;;  %v355_v28 = vld [vmem:[%s3895_s8 + $0x1e0] sm:$0xff]  ;;  %v357_v31 = vld [vmem:[%s3895_s8 + $0x1f0] sm:$0xff]  ;;  %v656_v33 = vld [vmem:[%s3879_s28 + $0x28] sm:$0xff]  ;;  %s4254_s8 = scalar_lea.vmem [#allocation6], %s2838_s16 }
  0x54   : > { %2934 = vmatpush1.bf16.msra.mxu1 %v2933_v1  ;;  %2904 = vmatprep.subr.bf16.mxu0 %v2903_v2  ;;  %v654_v34 = vld [vmem:[%s3879_s28 + $0x18] sm:$0xff]  ;;  %v2913_v36 = vpack.c.bf16 %v355_v28, %v351_v27  ;;  %v2945_v37 = vpack.c.bf16 %v357_v31, %v353_v29  ;;  %v3965_v38 = vpack.c.bf16 %v656_v33, %v652_v32  ;;  %v651_v39 = vld [vmem:[%s3879_s28] sm:$0xff]  ;;  %v653_v42 = vld [vmem:[%s3879_s28 + $0x10] sm:$0xff]  ;;  %s882_s29 = scalar_lea.vmem %s4254_s8, %s2843_s25 [#allocation6]  ;;  %s2849_s25 = sshll.u32 %s4471_s12, 3 }
  0x55   : > { %2936 = vmatprep.subr.bf16.mxu1 %v2935_v6  ;;  %v658_v35 = vld [vmem:[%s3879_s28 + $0x38] sm:$0xff]  ;;  %v655_v40 = vld [vmem:[%s3879_s28 + $0x20] sm:$0xff]  ;;  %v657_v43 = vld [vmem:[%s3879_s28 + $0x30] sm:$0xff]  ;;  %s1130_s26 = sshra.s32 %s2849_s25, 3  ;;  %s1370_s16 = scalar_lea.vmem %s4254_s8, %s2849_s25 [#allocation6] }
  0x56   : > { %v3969_v41 = vpack.c.bf16 %v658_v35, %v654_v34  ;;  %v660_v44 = vld [vmem:[%s3879_s28 + $0x48] sm:$0xff]  ;;  %v287_v46 = vld [vmem:[%s4860_s0] sm:$0xff]  ;;  %v662_v47 = vld [vmem:[%s3879_s28 + $0x58] sm:$0xff]  ;;  %v3981_v49 = vpack.c.bf16 %v655_v40, %v651_v39  ;;  %v3984_v50 = vpack.c.bf16 %v657_v43, %v653_v42  ;;  %s2877_s14 = sshll.u32 %s1130_s26, 5 }
  0x57   : > { %2906 = vmatpush1.bf16.msra.mxu0 %v2905_v12  ;;  %v664_v45 = vld [vmem:[%s3879_s28 + $0x68] sm:$0xff]  ;;  %v666_v48 = vld [vmem:[%s3879_s28 + $0x78] sm:$0xff]  ;;  %v659_v52 = vld [vmem:[%s3879_s28 + $0x40] sm:$0xff] }
  0x58   : > { %2938 = vmatpush1.bf16.msra.mxu1 %v2937_v13  ;;  %2908 = vmatprep.subr.bf16.mxu0 %v2907_v14  ;;  %v3986_v51 = vpack.c.bf16 %v664_v45, %v660_v44  ;;  %v663_v53 = vld [vmem:[%s3879_s28 + $0x60] sm:$0xff]  ;;  %v661_v54 = vld [vmem:[%s3879_s28 + $0x50] sm:$0xff]  ;;  %v3991_v55 = vpack.c.bf16 %v666_v48, %v662_v47  ;;  %v668_v57 = vld [vmem:[%s3879_s28 + $0x88] sm:$0xff] }
  0x59   : > { %2940 = vmatprep.subr.bf16.mxu1 %v2939_v18  ;;  %v665_v56 = vld [vmem:[%s3879_s28 + $0x70] sm:$0xff]  ;;  %v672_v58 = vld [vmem:[%s3879_s28 + $0xa8] sm:$0xff]  ;;  %v670_v60 = vld [vmem:[%s3879_s28 + $0x98] sm:$0xff]  ;;  %v4004_v62 = vpack.c.bf16 %v663_v53, %v659_v52 }
  0x5a   : > { %v288_v59 = vld [vmem:[%s4860_s0 + $0x8] sm:$0xff]  ;;  %v674_v61 = vld [vmem:[%s3879_s28 + $0xb8] sm:$0xff]  ;;  %v4008_v63 = vpack.c.bf16 %v665_v56, %v661_v54  ;;  %v4010_v1 = vpack.c.bf16 %v672_v58, %v668_v57  ;;  %v667_v2 = vld [vmem:[%s3879_s28 + $0x80] sm:$0xff] }
  0x5b   : > { %2910 = vmatpush1.bf16.msra.mxu0 %v2909_v24  ;;  %v671_v3 = vld [vmem:[%s3879_s28 + $0xa0] sm:$0xff]  ;;  %v669_v4 = vld [vmem:[%s3879_s28 + $0x90] sm:$0xff]  ;;  %v4016_v5 = vpack.c.bf16 %v674_v61, %v670_v60  ;;  %v676_v7 = vld [vmem:[%s3879_s28 + $0xc8] sm:$0xff] }
  0x5c   : > { %2942 = vmatpush1.bf16.msra.mxu1 %v2941_v25  ;;  %2912 = vmatprep.subr.bf16.mxu0 %v2911_v26  ;;  %v673_v6 = vld [vmem:[%s3879_s28 + $0xb0] sm:$0xff]  ;;  %v680_v8 = vld [vmem:[%s3879_s28 + $0xe8] sm:$0xff]  ;;  %v678_v10 = vld [vmem:[%s3879_s28 + $0xd8] sm:$0xff]  ;;  %v4029_v12 = vpack.c.bf16 %v671_v3, %v667_v2 }
  0x5d   : > { %2944 = vmatprep.subr.bf16.mxu1 %v2943_v30  ;;  %v289_v9 = vld [vmem:[%s4860_s0 + $0x10] sm:$0xff]  ;;  %v682_v11 = vld [vmem:[%s3879_s28 + $0xf8] sm:$0xff]  ;;  %v4033_v13 = vpack.c.bf16 %v673_v6, %v669_v4  ;;  %v4035_v14 = vpack.c.bf16 %v680_v8, %v676_v7  ;;  %v675_v15 = vld [vmem:[%s3879_s28 + $0xc0] sm:$0xff] }
  0x5e   : > { %v679_v16 = vld [vmem:[%s3879_s28 + $0xe0] sm:$0xff]  ;;  %v677_v17 = vld [vmem:[%s3879_s28 + $0xd0] sm:$0xff]  ;;  %v4041_v18 = vpack.c.bf16 %v682_v11, %v678_v10  ;;  %v684_v20 = vld [vmem:[%s3879_s28 + $0x108] sm:$0xff] }
  0x5f   : > { %2914 = vmatpush1.bf16.msra.mxu0 %v2913_v36  ;;  %v681_v19 = vld [vmem:[%s3879_s28 + $0xf0] sm:$0xff]  ;;  %v688_v21 = vld [vmem:[%s3879_s28 + $0x128] sm:$0xff]  ;;  %v290_v22 = vld [vmem:[%s4860_s0 + $0x18] sm:$0xff]  ;;  %v4054_v25 = vpack.c.bf16 %v679_v16, %v675_v15 }
  0x60   : > { %2946 = vmatpush1.bf16.msra.mxu1 %v2945_v37  ;;  %2948 = vmatprep.subr.bf16.mxu0 %v3965_v38  ;;  %v686_v23 = vld [vmem:[%s3879_s28 + $0x118] sm:$0xff]  ;;  %v4058_v26 = vpack.c.bf16 %v681_v19, %v677_v17  ;;  %v4060_v27 = vpack.c.bf16 %v688_v21, %v684_v20  ;;  %v683_v28 = vld [vmem:[%s3879_s28 + $0x100] sm:$0xff]  ;;  %v685_v30 = vld [vmem:[%s3879_s28 + $0x110] sm:$0xff] }
  0x61   : > { %2980 = vmatprep.subr.bf16.mxu1 %v3969_v41  ;;  %v690_v24 = vld [vmem:[%s3879_s28 + $0x138] sm:$0xff]  ;;  %v687_v29 = vld [vmem:[%s3879_s28 + $0x120] sm:$0xff]  ;;  %v689_v32 = vld [vmem:[%s3879_s28 + $0x130] sm:$0xff] }
  0x62   : > { %446 = vmatmul.mubr.f32.vlgmr.msra.gmra.mrb[0].mxu0 %v287_v46  ;;  %v4066_v31 = vpack.c.bf16 %v690_v24, %v686_v23  ;;  %v692_v33 = vld [vmem:[%s3879_s28 + $0x148] sm:$0xff]  ;;  %v291_v35 = vld [vmem:[%s4860_s0 + $0x20] sm:$0xff]  ;;  %v694_v36 = vld [vmem:[%s3879_s28 + $0x158] sm:$0xff]  ;;  %v4079_v39 = vpack.c.bf16 %v687_v29, %v683_v28  ;;  %v4083_v40 = vpack.c.bf16 %v689_v32, %v685_v30  ;;  %v361_v29 = vlaneseq }
  0x63   : > { %559 = vmatmul.mubr.f32.vlgmr.msra.gmra.mrb[0].mxu1 %v287_v46  ;;  %451 = vmatprep.mubr.f32.mxu0 %v3737_v0  ;;  %v696_v34 = vld [vmem:[%s3879_s28 + $0x168] sm:$0xff]  ;;  %v698_v37 = vld [vmem:[%s3879_s28 + $0x178] sm:$0xff]  ;;  %v691_v43 = vld [vmem:[%s3879_s28 + $0x140] sm:$0xff] }
  0x64   : > { %564 = vmatprep.mubr.f32.mxu1 %v3737_v0  ;;  %2950 = vmatpush1.bf16.msra.mxu0 %v3981_v49  ;;  %v4085_v42 = vpack.c.bf16 %v696_v34, %v692_v33  ;;  %v695_v44 = vld [vmem:[%s3879_s28 + $0x160] sm:$0xff]  ;;  %v693_v45 = vld [vmem:[%s3879_s28 + $0x150] sm:$0xff]  ;;  %v4091_v46 = vpack.c.bf16 %v698_v37, %v694_v36  ;;  %v700_v48 = vld [vmem:[%s3879_s28 + $0x188] sm:$0xff]  ;;  %v362_v30 = vshrl.u32 %v361_v29, 7 }
  0x65   : > { %2982 = vmatpush1.bf16.msra.mxu1 %v3984_v50  ;;  %2952 = vmatprep.subr.bf16.mxu0 %v3986_v51  ;;  %v697_v47 = vld [vmem:[%s3879_s28 + $0x170] sm:$0xff]  ;;  %v704_v52 = vld [vmem:[%s3879_s28 + $0x1a8] sm:$0xff]  ;;  %v702_v54 = vld [vmem:[%s3879_s28 + $0x198] sm:$0xff]  ;;  %v4104_v57 = vpack.c.bf16 %v695_v44, %v691_v43 }
  0x66   : > { %452 = vmatmul.mubr.f32.gmra.mrb[2].mxu0 %v288_v59  ;;  %2984 = vmatprep.subr.bf16.mxu1 %v3991_v55  ;;  %v292_v53 = vld [vmem:[%s4860_s0 + $0x28] sm:$0xff]  ;;  %v706_v56 = vld [vmem:[%s3879_s28 + $0x1b8] sm:$0xff]  ;;  %v4108_v58 = vpack.c.bf16 %v697_v47, %v693_v45  ;;  %v699_v60 = vld [vmem:[%s3879_s28 + $0x180] sm:$0xff]  ;;  %v363_v32 = vsub.s32 0, %v362_v30  ;;  %v367_v34 = vsub.s32 1, %v362_v30  ;;  %v375_v36 = vsub.s32 3, %v362_v30 }
  0x67   : > { %565 = vmatmul.mubr.f32.gmra.mrb[2].mxu1 %v288_v59  ;;  %457 = vmatprep.mubr.f32.mxu0 %v3737_v0  ;;  %v4110_v59 = vpack.c.bf16 %v704_v52, %v700_v48  ;;  %v703_v61 = vld [vmem:[%s3879_s28 + $0x1a0] sm:$0xff]  ;;  %v701_v2 = vld [vmem:[%s3879_s28 + $0x190] sm:$0xff]  ;;  %v4116_v3 = vpack.c.bf16 %v706_v56, %v702_v54  ;;  %v708_v6 = vld [vmem:[%s3879_s28 + $0x1c8] sm:$0xff] }
  0x68   : > { %570 = vmatprep.mubr.f32.mxu1 %v3737_v0  ;;  %2954 = vmatpush1.bf16.msra.mxu0 %v4004_v62  ;;  %v705_v4 = vld [vmem:[%s3879_s28 + $0x1b0] sm:$0xff]  ;;  %v712_v7 = vld [vmem:[%s3879_s28 + $0x1e8] sm:$0xff]  ;;  %v714_v10 = vld [vmem:[%s3879_s28 + $0x1f8] sm:$0xff]  ;;  %v4129_v11 = vpack.c.bf16 %v703_v61, %v699_v60 }
  0x69   : > { %2986 = vmatpush1.bf16.msra.mxu1 %v4008_v63  ;;  %2956 = vmatprep.subr.bf16.mxu0 %v4010_v1  ;;  %v293_v8 = vld [vmem:[%s4860_s0 + $0x30] sm:$0xff]  ;;  %v4133_v15 = vpack.c.bf16 %v705_v4, %v701_v2  ;;  %v4135_v16 = vpack.c.bf16 %v712_v7, %v708_v6  ;;  %v707_v17 = vld [vmem:[%s3879_s28 + $0x1c0] sm:$0xff]  ;;  %v294_v23 = vld [vmem:[%s4860_s0 + $0x38] sm:$0xff] }
  0x6a   : > { %458 = vmatmul.mubr.f32.gmra.mrb[4].mxu0 %v289_v9  ;;  %2988 = vmatprep.subr.bf16.mxu1 %v4016_v5  ;;  %v711_v19 = vld [vmem:[%s3879_s28 + $0x1e0] sm:$0xff]  ;;  %v709_v21 = vld [vmem:[%s3879_s28 + $0x1d0] sm:$0xff] }
  0x6b   : > { %571 = vmatmul.mubr.f32.gmra.mrb[4].mxu1 %v289_v9  ;;  %463 = vmatprep.mubr.f32.mxu0 %v3737_v0  ;;  %v710_v9 = vld [vmem:[%s3879_s28 + $0x1d8] sm:$0xff]  ;;  %v4150_v24 = vpack.c.bf16 %v711_v19, %v707_v17  ;;  %v359_v33 = vld [vmem:[%s286_s17] sm:$0xf]  ;;  %s1126_s17 = scalar_lea.vmem %s4254_s8, %s2846_s9 [#allocation6] }
  0x6c   : > { %576 = vmatprep.mubr.f32.mxu1 %v3737_v0  ;;  %2958 = vmatpush1.bf16.msra.mxu0 %v4029_v12  ;;  %v4140_v20 = vpack.c.bf16 %v714_v10, %v710_v9  ;;  %v4203_v37 = vrot.slane %v359_v33, %v363_v32  ;;  %v4205_v43 = vrot.slane %v359_v33, %v367_v34 }
  0x6d   : > { %2990 = vmatpush1.bf16.msra.mxu1 %v4033_v13  ;;  %2960 = vmatprep.subr.bf16.mxu0 %v4035_v14 }
  0x6e   : > { %464 = vmatmul.mubr.f32.gmra.mrb[6].mxu0 %v290_v22  ;;  %2992 = vmatprep.subr.bf16.mxu1 %v4041_v18 }
  0x6f   : > { %577 = vmatmul.mubr.f32.gmra.mrb[6].mxu1 %v290_v22  ;;  %469 = vmatprep.mubr.f32.mxu0 %v3737_v0  ;;  %v713_v22 = vld [vmem:[%s3879_s28 + $0x1f0] sm:$0xff] }
  0x70   : > { %582 = vmatprep.mubr.f32.mxu1 %v3737_v0  ;;  %2962 = vmatpush1.bf16.msra.mxu0 %v4054_v25  ;;  %v4154_v28 = vpack.c.bf16 %v713_v22, %v709_v21 }
  0x71   : > { %2994 = vmatpush1.bf16.msra.mxu1 %v4058_v26  ;;  %2964 = vmatprep.subr.bf16.mxu0 %v4060_v27 }
  0x72   : > { %470 = vmatmul.mubr.f32.gmra.mrb[8].mxu0 %v291_v35  ;;  %2996 = vmatprep.subr.bf16.mxu1 %v4066_v31 }
  0x73   : > { %583 = vmatmul.mubr.f32.gmra.mrb[8].mxu1 %v291_v35  ;;  %475 = vmatprep.mubr.f32.mxu0 %v3737_v0  ;;  %v371_v35 = vsub.s32 2, %v362_v30 }
  0x74   : > { %588 = vmatprep.mubr.f32.mxu1 %v3737_v0  ;;  %2966 = vmatpush1.bf16.msra.mxu0 %v4079_v39 }
  0x75   : > { %2998 = vmatpush1.bf16.msra.mxu1 %v4083_v40  ;;  %2968 = vmatprep.subr.bf16.mxu0 %v4085_v42  ;;  %v4207_v44 = vrot.slane %v359_v33, %v371_v35 }
  0x76   : > { %476 = vmatmul.mubr.f32.gmra.mrb[10].mxu0 %v292_v53  ;;  %3000 = vmatprep.subr.bf16.mxu1 %v4091_v46 }
  0x77   : > { %589 = vmatmul.mubr.f32.gmra.mrb[10].mxu1 %v292_v53  ;;  %481 = vmatprep.mubr.f32.mxu0 %v3737_v0 }
  0x78   : > { %594 = vmatprep.mubr.f32.mxu1 %v3737_v0  ;;  %2970 = vmatpush1.bf16.msra.mxu0 %v4104_v57 }
  0x79   : > { %3002 = vmatpush1.bf16.msra.mxu1 %v4108_v58  ;;  %2972 = vmatprep.subr.bf16.mxu0 %v4110_v59 }
  0x7a   : > { %482 = vmatmul.mubr.f32.gmra.mrb[12].mxu0 %v293_v8  ;;  %3004 = vmatprep.subr.bf16.mxu1 %v4116_v3 }
  0x7b   : > { %595 = vmatmul.mubr.f32.gmra.mrb[12].mxu1 %v293_v8  ;;  %487 = vmatprep.mubr.f32.mxu0 %v3737_v0 }
  0x7c   : > { %600 = vmatprep.mubr.f32.mxu1 %v3737_v0  ;;  %2974 = vmatpush1.bf16.msra.mxu0 %v4129_v11 }
  0x7d   : > { %3006 = vmatpush1.bf16.msra.mxu1 %v4133_v15  ;;  %2976 = vmatprep.subr.bf16.mxu0 %v4135_v16 }
  0x7e   : > { %488 = vmatmul.mubr.f32.gmra.mrb[14].mxu0 %v294_v23  ;;  %3008 = vmatprep.subr.bf16.mxu1 %v4140_v20 }
  0x7f   : > { %601 = vmatmul.mubr.f32.gmra.mrb[14].mxu1 %v294_v23  ;;  %779 = vmatprep.mubr.f32.mxu0 %v3737_v0 }
  0x80   : > { %2978 = vmatpush1.bf16.msra.mxu0 %v4150_v24  ;;  %850 = vmatprep.mubr.f32.mxu1 %v3737_v0 }
  0x81   : > { %3010 = vmatpush1.bf16.msra.mxu1 %v4154_v28  ;;  %3012 = vmatprep.subr.bf16.mxu0 %v3965_v38 }
  0x82   : > { %3044 = vmatprep.subr.bf16.mxu1 %v3969_v41 }
  0x83   : > { %780 = vmatmul.mubr.f32.vlgmr.msra.gmra.mrb[16].mxu0 %v3737_v0 }
  0x84   : > { %851 = vmatmul.mubr.f32.vlgmr.msra.gmra.mrb[16].mxu1 %v3737_v0  ;;  %3014 = vmatpush1.bf16.msra.mxu0 %v3981_v49 }
  0x85   : > { %3046 = vmatpush1.bf16.msra.mxu1 %v3984_v50  ;;  %3016 = vmatprep.subr.bf16.mxu0 %v3986_v51 }
  0x86   : > { %3048 = vmatprep.subr.bf16.mxu1 %v3991_v55  ;;  %1023 = vmatprep.mubr.f32.mxu0 %v3737_v0 }
  0x87   : > { %1094 = vmatprep.mubr.f32.mxu1 %v3737_v0 }
  0x88   : > { %3018 = vmatpush1.bf16.msra.mxu0 %v4004_v62 }
  0x89   : > { %3050 = vmatpush1.bf16.msra.mxu1 %v4008_v63  ;;  %3020 = vmatprep.subr.bf16.mxu0 %v4010_v1 }
  0x8a   : > { %3052 = vmatprep.subr.bf16.mxu1 %v4016_v5 }
  0x8c   : > { %3022 = vmatpush1.bf16.msra.mxu0 %v4029_v12 }
  0x8d   : > { %3054 = vmatpush1.bf16.msra.mxu1 %v4033_v13  ;;  %3024 = vmatprep.subr.bf16.mxu0 %v4035_v14 }
  0x8e   : > { %3056 = vmatprep.subr.bf16.mxu1 %v4041_v18 }
  0x90   : > { %3026 = vmatpush1.bf16.msra.mxu0 %v4054_v25 }
  0x91   : > { %3058 = vmatpush1.bf16.msra.mxu1 %v4058_v26  ;;  %3028 = vmatprep.subr.bf16.mxu0 %v4060_v27 }
  0x92   : > { %3060 = vmatprep.subr.bf16.mxu1 %v4066_v31 }
  0x94   : > { %3030 = vmatpush1.bf16.msra.mxu0 %v4079_v39 }
  0x95   : > { %3062 = vmatpush1.bf16.msra.mxu1 %v4083_v40  ;;  %3032 = vmatprep.subr.bf16.mxu0 %v4085_v42 }
  0x96   : > { %3064 = vmatprep.subr.bf16.mxu1 %v4091_v46 }
  0x98   : > { %3034 = vmatpush1.bf16.msra.mxu0 %v4104_v57 }
  0x99   : > { %3066 = vmatpush1.bf16.msra.mxu1 %v4108_v58  ;;  %3036 = vmatprep.subr.bf16.mxu0 %v4110_v59 }
  0x9a   : > { %3068 = vmatprep.subr.bf16.mxu1 %v4116_v3 }
  0x9c   : > { %3038 = vmatpush1.bf16.msra.mxu0 %v4129_v11 }
  0x9d   : > { %3070 = vmatpush1.bf16.msra.mxu1 %v4133_v15  ;;  %3040 = vmatprep.subr.bf16.mxu0 %v4135_v16 }
  0x9e   : > { %3072 = vmatprep.subr.bf16.mxu1 %v4140_v20 }
  0xa0   : > { %3042 = vmatpush1.bf16.msra.mxu0 %v4150_v24 }
  0xa1   : > { %3074 = vmatpush1.bf16.msra.mxu1 %v4154_v28  ;;  %3076 = vmatprep.subr.bf16.mxu0 %v3965_v38  ;;  %v4209_v38 = vrot.slane %v359_v33, %v375_v36 }
  0xa2   : > { %3108 = vmatprep.subr.bf16.mxu1 %v3969_v41 }
 0x135   : > { %v447_v41 = vpop.f32.mrb[0].mxu0 }
 0x136   : > { %v448_v45 = vadd.f32 %v447_v41, %v4203_v37  ;;  %v449_v47 = vpop.f32.mrb[1].mxu0  ;;  %v560_v48 = vpop.f32.mrb[0].mxu1 }
 0x137   : > { %v450_v52 = vadd.f32 %v449_v47, %v4205_v43  ;;  %v561_v53 = vadd.f32 %v560_v48, %v4207_v44  ;;  %v562_v54 = vpop.f32.mrb[1].mxu1 }
 0x138   : > { %607 = vst [vmem:[#allocation2] sm:$0xff] %v448_v45  ;;  %v563_v56 = vadd.f32 %v562_v54, %v4209_v38 }
 0x139   : > { %608 = vst [vmem:[#allocation2 + $0x8] sm:$0xff] %v450_v52  ;;  %v453_v60 = vpop.f32.mrb[2].mxu0  ;;  %609 = vst [vmem:[#allocation2 + $0x10] sm:$0xff] %v561_v53 }
 0x13a   : > { %v454_v61 = vadd.f32 %v453_v60, %v4203_v37  ;;  %v455_v2 = vpop.f32.mrb[3].mxu0  ;;  %610 = vst [vmem:[#allocation2 + $0x18] sm:$0xff] %v563_v56  ;;  %v566_v4 = vpop.f32.mrb[2].mxu1 }
 0x13b   : > { %v456_v6 = vadd.f32 %v455_v2, %v4205_v43  ;;  %v567_v7 = vadd.f32 %v566_v4, %v4207_v44  ;;  %v568_v8 = vpop.f32.mrb[3].mxu1 }
 0x13c   : > { %611 = vst [vmem:[#allocation2 + $0x20] sm:$0xff] %v454_v61  ;;  %v569_v9 = vadd.f32 %v568_v8, %v4209_v38 }
 0x13d   : > { %612 = vst [vmem:[#allocation2 + $0x28] sm:$0xff] %v456_v6  ;;  %v459_v10 = vpop.f32.mrb[4].mxu0  ;;  %613 = vst [vmem:[#allocation2 + $0x30] sm:$0xff] %v567_v7 }
 0x13e   : > { %v460_v17 = vadd.f32 %v459_v10, %v4203_v37  ;;  %v461_v19 = vpop.f32.mrb[5].mxu0  ;;  %614 = vst [vmem:[#allocation2 + $0x38] sm:$0xff] %v569_v9  ;;  %v572_v21 = vpop.f32.mrb[4].mxu1 }
 0x13f   : > { %v462_v22 = vadd.f32 %v461_v19, %v4205_v43  ;;  %v573_v23 = vadd.f32 %v572_v21, %v4207_v44  ;;  %v574_v29 = vpop.f32.mrb[5].mxu1 }
 0x140   : > { %615 = vst [vmem:[#allocation2 + $0x40] sm:$0xff] %v460_v17  ;;  %v575_v30 = vadd.f32 %v574_v29, %v4209_v38 }
 0x141   : > { %616 = vst [vmem:[#allocation2 + $0x48] sm:$0xff] %v462_v22  ;;  %v465_v32 = vpop.f32.mrb[6].mxu0  ;;  %617 = vst [vmem:[#allocation2 + $0x50] sm:$0xff] %v573_v23 }
 0x142   : > { %v466_v33 = vadd.f32 %v465_v32, %v4203_v37  ;;  %v467_v34 = vpop.f32.mrb[7].mxu0  ;;  %618 = vst [vmem:[#allocation2 + $0x58] sm:$0xff] %v575_v30  ;;  %v578_v35 = vpop.f32.mrb[6].mxu1 }
 0x143   : > { %v468_v36 = vadd.f32 %v467_v34, %v4205_v43  ;;  %v579_v41 = vadd.f32 %v578_v35, %v4207_v44  ;;  %v580_v45 = vpop.f32.mrb[7].mxu1 }
 0x144   : > { %619 = vst [vmem:[#allocation2 + $0x60] sm:$0xff] %v466_v33  ;;  %v581_v47 = vadd.f32 %v580_v45, %v4209_v38 }
 0x145   : > { %620 = vst [vmem:[#allocation2 + $0x68] sm:$0xff] %v468_v36  ;;  %v471_v48 = vpop.f32.mrb[8].mxu0  ;;  %621 = vst [vmem:[#allocation2 + $0x70] sm:$0xff] %v579_v41 }
 0x146   : > { %v472_v52 = vadd.f32 %v471_v48, %v4203_v37  ;;  %v473_v53 = vpop.f32.mrb[9].mxu0  ;;  %622 = vst [vmem:[#allocation2 + $0x78] sm:$0xff] %v581_v47  ;;  %v584_v54 = vpop.f32.mrb[8].mxu1 }
 0x147   : > { %v474_v56 = vadd.f32 %v473_v53, %v4205_v43  ;;  %v585_v60 = vadd.f32 %v584_v54, %v4207_v44  ;;  %v586_v61 = vpop.f32.mrb[9].mxu1 }
 0x148   : > { %623 = vst [vmem:[#allocation2 + $0x80] sm:$0xff] %v472_v52  ;;  %v587_v2 = vadd.f32 %v586_v61, %v4209_v38 }
 0x149   : > { %624 = vst [vmem:[#allocation2 + $0x88] sm:$0xff] %v474_v56  ;;  %v477_v4 = vpop.f32.mrb[10].mxu0  ;;  %625 = vst [vmem:[#allocation2 + $0x90] sm:$0xff] %v585_v60 }
 0x14a   : > { %v478_v6 = vadd.f32 %v477_v4, %v4203_v37  ;;  %v479_v7 = vpop.f32.mrb[11].mxu0  ;;  %626 = vst [vmem:[#allocation2 + $0x98] sm:$0xff] %v587_v2  ;;  %v590_v8 = vpop.f32.mrb[10].mxu1 }
 0x14b   : > { %v480_v9 = vadd.f32 %v479_v7, %v4205_v43  ;;  %v591_v10 = vadd.f32 %v590_v8, %v4207_v44  ;;  %v592_v17 = vpop.f32.mrb[11].mxu1 }
 0x14c   : > { %627 = vst [vmem:[#allocation2 + $0xa0] sm:$0xff] %v478_v6  ;;  %v593_v19 = vadd.f32 %v592_v17, %v4209_v38 }
 0x14d   : > { %628 = vst [vmem:[#allocation2 + $0xa8] sm:$0xff] %v480_v9  ;;  %629 = vst [vmem:[#allocation2 + $0xb0] sm:$0xff] %v591_v10  ;;  %v483_v21 = vpop.f32.mrb[12].mxu0 }
 0x14e   : > { %630 = vst [vmem:[#allocation2 + $0xb8] sm:$0xff] %v593_v19  ;;  %v484_v22 = vadd.f32 %v483_v21, %v4203_v37  ;;  %v596_v23 = vpop.f32.mrb[12].mxu1  ;;  %v485_v29 = vpop.f32.mrb[13].mxu0 }
 0x14f   : > { %v597_v30 = vadd.f32 %v596_v23, %v4207_v44  ;;  %v486_v32 = vadd.f32 %v485_v29, %v4205_v43  ;;  %v598_v33 = vpop.f32.mrb[13].mxu1 }
 0x150   : > { %631 = vst [vmem:[#allocation2 + $0xc0] sm:$0xff] %v484_v22  ;;  %v599_v34 = vadd.f32 %v598_v33, %v4209_v38 }
 0x151   : > { %633 = vst [vmem:[#allocation2 + $0xd0] sm:$0xff] %v597_v30  ;;  %632 = vst [vmem:[#allocation2 + $0xc8] sm:$0xff] %v486_v32  ;;  %v489_v35 = vpop.f32.mrb[14].mxu0 }
 0x152   : > { %634 = vst [vmem:[#allocation2 + $0xd8] sm:$0xff] %v599_v34  ;;  %v490_v36 = vadd.f32 %v489_v35, %v4203_v37  ;;  %v602_v41 = vpop.f32.mrb[14].mxu1  ;;  %v491_v45 = vpop.f32.mrb[15].mxu0 }
 0x153   : > { %v603_v47 = vadd.f32 %v602_v41, %v4207_v44  ;;  %v492_v48 = vadd.f32 %v491_v45, %v4205_v43  ;;  %v604_v52 = vpop.f32.mrb[15].mxu1 }
 0x154   : > { %635 = vst [vmem:[#allocation2 + $0xe0] sm:$0xff] %v490_v36  ;;  %v605_v53 = vadd.f32 %v604_v52, %v4209_v38 }
 0x155   : > { %637 = vst [vmem:[#allocation2 + $0xf0] sm:$0xff] %v603_v47  ;;  %636 = vst [vmem:[#allocation2 + $0xe8] sm:$0xff] %v492_v48 }
 0x156   : > { %638 = vst [vmem:[#allocation2 + $0xf8] sm:$0xff] %v605_v53  ;;  %v781_v54 = vpop.f32.mrb[16].mxu0 }
 0x157   : > { %v783_v56 = vpop.f32.mrb[17].mxu0  ;;  %v852_v60 = vpop.f32.mrb[16].mxu1 }
 0x158   : > { %v854_v37 = vpop.f32.mrb[17].mxu1 }
 0x15d   : > { %v647_v61 = vld [vmem:[%s646_s15] sm:$0xff]  ;;  %v648_v4 = vld [vmem:[%s646_s15 + $0x8] sm:$0xff]  ;;  %v650_v7 = vld [vmem:[%s646_s15 + $0x18] sm:$0xff] }
 0x15e   : > { %v857_v2 = vadd.f32 %v781_v54, %v647_v61  ;;  %v858_v6 = vadd.f32 %v783_v56, %v648_v4  ;;  %v860_v10 = vadd.f32 %v854_v37, %v650_v7  ;;  %v649_v17 = vld [vmem:[%s646_s15 + $0x10] sm:$0xff]  ;;  %v1384_v37 = vld [vmem:[%s3879_s28 + $0x8] sm:$0xff]  ;;  %v1387_v7 = vld [vmem:[%s3879_s28 + $0x20] sm:$0xff]  ;;  %s1134_s15 = scalar_lea.vmem [#allocation2], %s2877_s14 }
 0x15f   : > { %v859_v21 = vadd.f32 %v852_v60, %v649_v17  ;;  %v1388_v61 = vld [vmem:[%s3879_s28 + $0x28] sm:$0xff] }
 0x160   : > { %v861_v44 = vsub.f32 0.0, %v857_v2  ;;  %v866_v43 = vsub.f32 0.0, %v858_v6  ;;  %v872_v38 = vsub.f32 0.0, %v860_v10  ;;  %v1386_v2 = vld [vmem:[%s3879_s28 + $0x18] sm:$0xff]  ;;  %v4310_v4 = vpack.c.bf16 %v1388_v61, %v1384_v37  ;;  %v1389_v10 = vld [vmem:[%s3879_s28 + $0x30] sm:$0xff]  ;;  %v1392_v17 = vld [vmem:[%s3879_s28 + $0x48] sm:$0xff] }
 0x161   : > { %v1390_v6 = vld [vmem:[%s3879_s28 + $0x38] sm:$0xff] }
 0x162   : > { %v862_v8 = vmul.f32 1.442695, %v861_v44  ;;  %v867_v9 = vmul.f32 1.442695, %v866_v43  ;;  %v873_v19 = vmul.f32 1.442695, %v872_v38  ;;  %v4315_v43 = vpack.c.bf16 %v1390_v6, %v1386_v2 }
 0x163   : > { %v1383_v44 = vld [vmem:[%s3879_s28] sm:$0xff]  ;;  %v1426_v37 = vld [vmem:[%s3879_s28 + $0x158] sm:$0xff] }
 0x164   : > { %3508 = vpow2.f32 %v862_v8  ;;  %v4317_v8 = vpack.c.bf16 %v1387_v7, %v1383_v44  ;;  %v1430_v2 = vld [vmem:[%s3879_s28 + $0x178] sm:$0xff]  ;;  %v1423_v6 = vld [vmem:[%s3879_s28 + $0x140] sm:$0xff] }
 0x165   : > { %3510 = vpow2.f32 %v867_v9  ;;  %v1385_v9 = vld [vmem:[%s3879_s28 + $0x10] sm:$0xff]  ;;  %v1427_v44 = vld [vmem:[%s3879_s28 + $0x160] sm:$0xff]  ;;  %v4415_v7 = vpack.c.bf16 %v1430_v2, %v1426_v37 }
 0x166   : > { %3512 = vpow2.f32 %v873_v19  ;;  %v4322_v38 = vpack.c.bf16 %v1389_v10, %v1385_v9  ;;  %v1396_v19 = vld [vmem:[%s3879_s28 + $0x68] sm:$0xff]  ;;  %v4417_v9 = vpack.c.bf16 %v1427_v44, %v1423_v6  ;;  %v1425_v10 = vld [vmem:[%s3879_s28 + $0x150] sm:$0xff]  ;;  %v1138_v44 = vld [vmem:[%s1134_s15 + $0x18] sm:$0xff] }
 0x167   : > { %3514 = vtanh.f32 %v859_v21  ;;  %v1394_v21 = vld [vmem:[%s3879_s28 + $0x58] sm:$0xff] }
 0x16e   : > { %v3509_v22 = vpop.eup %3508 }
 0x16f   : > { %v3511_v23 = vpop.eup %3510  ;;  %v864_v29 = vadd.f32 1.0, %v3509_v22  ;;  %v4330_v22 = vpack.c.bf16 %v1396_v19, %v1392_v17  ;;  %v1429_v17 = vld [vmem:[%s3879_s28 + $0x170] sm:$0xff]  ;;  %v1432_v19 = vld [vmem:[%s3879_s28 + $0x188] sm:$0xff] }
 0x170   : > { %v869_v30 = vadd.f32 1.0, %v3511_v23  ;;  %v3513_v32 = vpop.eup %3512  ;;  %v1398_v23 = vld [vmem:[%s3879_s28 + $0x78] sm:$0xff] }
 0x171   : > { %3516 = vrcp.f32 %v864_v29  ;;  %v3515_v33 = vpop.eup %3514  ;;  %v875_v41 = vadd.f32 1.0, %v3513_v32  ;;  %v1391_v29 = vld [vmem:[%s3879_s28 + $0x40] sm:$0xff]  ;;  %v4335_v32 = vpack.c.bf16 %v1398_v23, %v1394_v21  ;;  %v4423_v21 = vpack.c.bf16 %v1429_v17, %v1425_v10  ;;  %v1436_v23 = vld [vmem:[%s3879_s28 + $0x1a8] sm:$0xff] }
 0x172   : > { %3518 = vrcp.f32 %v869_v30  ;;  %v1395_v30 = vld [vmem:[%s3879_s28 + $0x60] sm:$0xff] }
 0x173   : > { %3520 = vrcp.f32 %v875_v41  ;;  %v1400_v41 = vld [vmem:[%s3879_s28 + $0x88] sm:$0xff] }
 0x17b   : > { %v3517_v34 = vpop.eup %3516 }
 0x17c   : > { %v3519_v35 = vpop.eup %3518  ;;  %v878_v36 = vmul.f32 %v3517_v34, %v3515_v33  ;;  %v4337_v33 = vpack.c.bf16 %v1395_v30, %v1391_v29  ;;  %v1393_v34 = vld [vmem:[%s3879_s28 + $0x50] sm:$0xff]  ;;  %v1434_v29 = vld [vmem:[%s3879_s28 + $0x198] sm:$0xff] }
 0x17d   : > { %v877_v45 = vmul.f32 0.0, %v3519_v35  ;;  %v3521_v48 = vpop.eup %3520  ;;  %v1397_v35 = vld [vmem:[%s3879_s28 + $0x70] sm:$0xff]  ;;  %v1438_v30 = vld [vmem:[%s3879_s28 + $0x1b8] sm:$0xff] }
 0x17f   : > { %v4250_v47 = vadd.f32 %v878_v36, %v877_v45  ;;  %v4342_v36 = vpack.c.bf16 %v1397_v35, %v1393_v34  ;;  %v1404_v45 = vld [vmem:[%s3879_s28 + $0xa8] sm:$0xff]  ;;  %v4429_v34 = vpack.c.bf16 %v1436_v23, %v1432_v19  ;;  %v4431_v35 = vpack.c.bf16 %v1438_v30, %v1434_v29  ;;  %v1137_v23 = vld [vmem:[%s1134_s15 + $0x10] sm:$0xff] }
 0x181   : > { %3522 = vtanh.f32 %v4250_v47 }
 0x18b   : > { %v3523_v52 = vpop.eup %3522 }
 0x18c   : > { %v881_v53 = vmul.f32 %v3523_v52, %v3521_v48  ;;  %v4350_v48 = vpack.c.bf16 %v1404_v45, %v1400_v41  ;;  %v1406_v52 = vld [vmem:[%s3879_s28 + $0xb8] sm:$0xff]  ;;  %v1431_v41 = vld [vmem:[%s3879_s28 + $0x180] sm:$0xff] }
 0x18d   : > { %v1435_v45 = vld [vmem:[%s3879_s28 + $0x1a0] sm:$0xff] }
 0x18e   : > { %883 = vst [vmem:[%s882_s29] sm:$0xff] %v881_v53  ;;  %1024 = vmatmul.mubr.f32.vlgmr.msra.gmra.mrb[18].mxu0 %v881_v53  ;;  %1095 = vmatmul.mubr.f32.vlgmr.msra.gmra.mrb[18].mxu1 %v881_v53  ;;  %v1399_v53 = vld [vmem:[%s3879_s28 + $0x80] sm:$0xff]  ;;  %s4519_s29 = scalar_select %p4876_p3, 3, 4 }
 0x18f   : > { %3078 = vmatpush1.bf16.msra.mxu0 %v3981_v49  ;;  %3110 = vmatpush1.bf16.msra.mxu1 %v3984_v50  ;;  %v891_v49 = vld [vmem:[%s890_s13] sm:$0xff] }
 0x190   : > { %3080 = vmatprep.subr.bf16.mxu0 %v3986_v51  ;;  %3112 = vmatprep.subr.bf16.mxu1 %v3991_v55  ;;  %s2852_s7 = sshll.u32 %s4519_s29, 3 }
 0x191   : > { %1267 = vmatprep.mubr.f32.mxu0 %v3737_v0  ;;  %1338 = vmatprep.mubr.f32.mxu1 %v3737_v0  ;;  %s1374_s9 = sshra.s32 %s2852_s7, 3 }
 0x192   : > { %s2878_s10 = sshll.u32 %s1374_s9, 5 }
 0x193   : > { %3082 = vmatpush1.bf16.msra.mxu0 %v4004_v62  ;;  %3114 = vmatpush1.bf16.msra.mxu1 %v4008_v63  ;;  %v892_v62 = vld [vmem:[%s890_s13 + $0x8] sm:$0xff]  ;;  %s1378_s11 = scalar_lea.vmem [#allocation2], %s2878_s10 }
 0x194   : > { %3084 = vmatprep.subr.bf16.mxu0 %v4010_v1  ;;  %3116 = vmatprep.subr.bf16.mxu1 %v4016_v5 }
 0x197   : > { %3086 = vmatpush1.bf16.msra.mxu0 %v4029_v12  ;;  %3118 = vmatpush1.bf16.msra.mxu1 %v4033_v13 }
 0x198   : > { %3088 = vmatprep.subr.bf16.mxu0 %v4035_v14  ;;  %3120 = vmatprep.subr.bf16.mxu1 %v4041_v18  ;;  %v894_v18 = vld [vmem:[%s890_s13 + $0x18] sm:$0xff] }
 0x19b   : > { %3090 = vmatpush1.bf16.msra.mxu0 %v4054_v25  ;;  %3122 = vmatpush1.bf16.msra.mxu1 %v4058_v26 }
 0x19c   : > { %3092 = vmatprep.subr.bf16.mxu0 %v4060_v27  ;;  %3124 = vmatprep.subr.bf16.mxu1 %v4066_v31  ;;  %v893_v31 = vld [vmem:[%s890_s13 + $0x10] sm:$0xff]  ;;  %s1614_s13 = scalar_lea.vmem %s4254_s8, %s2852_s7 [#allocation6] }
 0x19f   : > { %3094 = vmatpush1.bf16.msra.mxu0 %v4079_v39  ;;  %3126 = vmatpush1.bf16.msra.mxu1 %v4083_v40 }
 0x1a0   : > { %3096 = vmatprep.subr.bf16.mxu0 %v4085_v42  ;;  %3128 = vmatprep.subr.bf16.mxu1 %v4091_v46 }
 0x1a3   : > { %3098 = vmatpush1.bf16.msra.mxu0 %v4104_v57  ;;  %3130 = vmatpush1.bf16.msra.mxu1 %v4108_v58 }
 0x1a4   : > { %3100 = vmatprep.subr.bf16.mxu0 %v4110_v59  ;;  %3132 = vmatprep.subr.bf16.mxu1 %v4116_v3 }
 0x1a7   : > { %3102 = vmatpush1.bf16.msra.mxu0 %v4129_v11  ;;  %3134 = vmatpush1.bf16.msra.mxu1 %v4133_v15 }
 0x1a8   : > { %3104 = vmatprep.subr.bf16.mxu0 %v4135_v16  ;;  %3136 = vmatprep.subr.bf16.mxu1 %v4140_v20 }
 0x1ab   : > { %3106 = vmatpush1.bf16.msra.mxu0 %v4150_v24  ;;  %3138 = vmatpush1.bf16.msra.mxu1 %v4154_v28 }
 0x1ac   : > { %3140 = vmatprep.subr.bf16.mxu0 %v4310_v4  ;;  %3172 = vmatprep.subr.bf16.mxu1 %v4315_v43 }
 0x261   : > { %v1025_v50 = vpop.f32.mrb[18].mxu0  ;;  %v1096_v51 = vpop.f32.mrb[18].mxu1 }
 0x262   : > { %v1101_v55 = vadd.f32 %v1025_v50, %v891_v49  ;;  %v1027_v63 = vpop.f32.mrb[19].mxu0  ;;  %v1098_v1 = vpop.f32.mrb[19].mxu1  ;;  %v1103_v40 = vadd.f32 %v1096_v51, %v893_v31  ;;  %v1403_v49 = vld [vmem:[%s3879_s28 + $0xa0] sm:$0xff]  ;;  %v1409_v31 = vld [vmem:[%s3879_s28 + $0xd0] sm:$0xff] }
 0x263   : > { %v1102_v5 = vadd.f32 %v1027_v63, %v892_v62  ;;  %v1104_v26 = vadd.f32 %v1098_v1, %v894_v18  ;;  %v4357_v51 = vpack.c.bf16 %v1403_v49, %v1399_v53  ;;  %v1405_v62 = vld [vmem:[%s3879_s28 + $0xb0] sm:$0xff]  ;;  %v1408_v1 = vld [vmem:[%s3879_s28 + $0xc8] sm:$0xff]  ;;  %v1407_v18 = vld [vmem:[%s3879_s28 + $0xc0] sm:$0xff] }
 0x264   : > { %v1105_v12 = vsub.f32 0.0, %v1101_v55  ;;  %v1401_v55 = vld [vmem:[%s3879_s28 + $0x90] sm:$0xff]  ;;  %v1440_v49 = vld [vmem:[%s3879_s28 + $0x1c8] sm:$0xff] }
 0x265   : > { %v1110_v13 = vsub.f32 0.0, %v1102_v5  ;;  %v1116_v27 = vsub.f32 0.0, %v1104_v26  ;;  %v4362_v63 = vpack.c.bf16 %v1405_v62, %v1401_v55  ;;  %v1412_v5 = vld [vmem:[%s3879_s28 + $0xe8] sm:$0xff]  ;;  %v1437_v53 = vld [vmem:[%s3879_s28 + $0x1b0] sm:$0xff] }
 0x266   : > { %v1106_v14 = vmul.f32 1.442695, %v1105_v12  ;;  %v1410_v12 = vld [vmem:[%s3879_s28 + $0xd8] sm:$0xff]  ;;  %v1444_v55 = vld [vmem:[%s3879_s28 + $0x1e8] sm:$0xff] }
 0x267   : > { %v1111_v25 = vmul.f32 1.442695, %v1110_v13  ;;  %v1117_v39 = vmul.f32 1.442695, %v1116_v27  ;;  %v4370_v13 = vpack.c.bf16 %v1412_v5, %v1408_v1  ;;  %v4446_v1 = vpack.c.bf16 %v1444_v55, %v1440_v49  ;;  %v1442_v5 = vld [vmem:[%s3879_s28 + $0x1d8] sm:$0xff] }
 0x268   : > { %3524 = vpow2.f32 %v1106_v14  ;;  %v1414_v14 = vld [vmem:[%s3879_s28 + $0xf8] sm:$0xff] }
 0x269   : > { %3526 = vpow2.f32 %v1111_v25  ;;  %v1411_v25 = vld [vmem:[%s3879_s28 + $0xe0] sm:$0xff]  ;;  %v4375_v26 = vpack.c.bf16 %v1414_v14, %v1410_v12  ;;  %v1446_v12 = vld [vmem:[%s3879_s28 + $0x1f8] sm:$0xff] }
 0x26a   : > { %3528 = vpow2.f32 %v1117_v39  ;;  %v4377_v27 = vpack.c.bf16 %v1411_v25, %v1407_v18  ;;  %v1413_v39 = vld [vmem:[%s3879_s28 + $0xf0] sm:$0xff]  ;;  %v1439_v14 = vld [vmem:[%s3879_s28 + $0x1c0] sm:$0xff]  ;;  %v4452_v18 = vpack.c.bf16 %v1446_v12, %v1442_v5 }
 0x26b   : > { %3530 = vtanh.f32 %v1103_v40  ;;  %v4382_v40 = vpack.c.bf16 %v1413_v39, %v1409_v31  ;;  %v1443_v25 = vld [vmem:[%s3879_s28 + $0x1e0] sm:$0xff]  ;;  %v1441_v31 = vld [vmem:[%s3879_s28 + $0x1d0] sm:$0xff] }
 0x26c   : > { %v1445_v39 = vld [vmem:[%s3879_s28 + $0x1f0] sm:$0xff] }
 0x272   : > { %v3525_v42 = vpop.eup %3524 }
 0x273   : > { %v3527_v46 = vpop.eup %3526  ;;  %v1108_v57 = vadd.f32 1.0, %v3525_v42  ;;  %v1416_v42 = vld [vmem:[%s3879_s28 + $0x108] sm:$0xff] }
 0x274   : > { %v1113_v58 = vadd.f32 1.0, %v3527_v46  ;;  %v3529_v59 = vpop.eup %3528  ;;  %v1420_v46 = vld [vmem:[%s3879_s28 + $0x128] sm:$0xff] }
 0x275   : > { %3532 = vrcp.f32 %v1108_v57  ;;  %v3531_v3 = vpop.eup %3530  ;;  %v1119_v20 = vadd.f32 1.0, %v3529_v59  ;;  %v1418_v57 = vld [vmem:[%s3879_s28 + $0x118] sm:$0xff] }
 0x276   : > { %3534 = vrcp.f32 %v1113_v58  ;;  %v4390_v58 = vpack.c.bf16 %v1420_v46, %v1416_v42  ;;  %v1422_v59 = vld [vmem:[%s3879_s28 + $0x138] sm:$0xff]  ;;  %v4458_v42 = vpack.c.bf16 %v1443_v25, %v1439_v14  ;;  %v4462_v46 = vpack.c.bf16 %v1445_v39, %v1441_v31 }
 0x277   : > { %3536 = vrcp.f32 %v1119_v20  ;;  %v1417_v20 = vld [vmem:[%s3879_s28 + $0x110] sm:$0xff] }
 0x27f   : > { %v3533_v11 = vpop.eup %3532 }
 0x280   : > { %v3535_v15 = vpop.eup %3534  ;;  %v1122_v16 = vmul.f32 %v3533_v11, %v3531_v3  ;;  %v1415_v3 = vld [vmem:[%s3879_s28 + $0x100] sm:$0xff] }
 0x281   : > { %v1121_v24 = vmul.f32 %v3535_v15, %v4250_v47  ;;  %v3537_v54 = vpop.eup %3536  ;;  %v1402_v47 = vld [vmem:[%s3879_s28 + $0x98] sm:$0xff]  ;;  %v1419_v11 = vld [vmem:[%s3879_s28 + $0x120] sm:$0xff]  ;;  %v4395_v15 = vpack.c.bf16 %v1422_v59, %v1418_v57 }
 0x282   : > { %v4355_v50 = vpack.c.bf16 %v1406_v52, %v1402_v47  ;;  %v1433_v47 = vld [vmem:[%s3879_s28 + $0x190] sm:$0xff]  ;;  %v4437_v52 = vpack.c.bf16 %v1435_v45, %v1431_v41  ;;  %v1135_v57 = vld [vmem:[%s1134_s15] sm:$0xff] }
 0x283   : > { %v4299_v28 = vadd.f32 %v1122_v16, %v1121_v24  ;;  %v4397_v16 = vpack.c.bf16 %v1419_v11, %v1415_v3  ;;  %v1421_v24 = vld [vmem:[%s3879_s28 + $0x130] sm:$0xff]  ;;  %v4444_v62 = vpack.c.bf16 %v1437_v53, %v1433_v47 }
 0x285   : > { %3538 = vtanh.f32 %v4299_v28 }
 0x28f   : > { %v3539_v56 = vpop.eup %3538 }
 0x290   : > { %v1125_v60 = vmul.f32 %v3539_v56, %v3537_v54  ;;  %v4402_v54 = vpack.c.bf16 %v1421_v24, %v1417_v20  ;;  %v1424_v56 = vld [vmem:[%s3879_s28 + $0x148] sm:$0xff] }
 0x291   : > { %v1136_v20 = vld [vmem:[%s1134_s15 + $0x8] sm:$0xff] }
 0x292   : > { %1127 = vst [vmem:[%s1126_s17] sm:$0xff] %v1125_v60  ;;  %1268 = vmatmul.mubr.f32.vlgmr.msra.gmra.mrb[20].mxu0 %v1125_v60  ;;  %1339 = vmatmul.mubr.f32.vlgmr.msra.gmra.mrb[20].mxu1 %v1125_v60  ;;  %v1428_v60 = vld [vmem:[%s3879_s28 + $0x168] sm:$0xff]  ;;  %s4565_s17 = scalar_select %p4877_p10, 4, 3 }
 0x293   : > { %1511 = vmatprep.mubr.f32.mxu0 %v3737_v0  ;;  %1582 = vmatprep.mubr.f32.mxu1 %v3737_v0  ;;  %v4409_v61 = vpack.c.bf16 %v1428_v60, %v1424_v56 }
 0x294   : > { %3142 = vmatpush1.bf16.msra.mxu0 %v4317_v8  ;;  %3174 = vmatpush1.bf16.msra.mxu1 %v4322_v38  ;;  %s2855_s12 = sshll.u32 %s4565_s17, 3 }
 0x295   : > { %3144 = vmatprep.subr.bf16.mxu0 %v4330_v22  ;;  %3176 = vmatprep.subr.bf16.mxu1 %v4335_v32  ;;  %s1618_s25 = sshra.s32 %s2855_s12, 3  ;;  %s1858_s15 = scalar_lea.vmem %s4254_s8, %s2855_s12 [#allocation6] }
 0x296   : > { %s2879_s26 = sshll.u32 %s1618_s25, 5 }
 0x297   : > { %s1622_s14 = scalar_lea.vmem [#allocation2], %s2879_s26 }
 0x298   : > { %3146 = vmatpush1.bf16.msra.mxu0 %v4337_v33  ;;  %3178 = vmatpush1.bf16.msra.mxu1 %v4342_v36 }
 0x299   : > { %3148 = vmatprep.subr.bf16.mxu0 %v4350_v48  ;;  %3180 = vmatprep.subr.bf16.mxu1 %v4355_v50 }
 0x29c   : > { %3150 = vmatpush1.bf16.msra.mxu0 %v4357_v51  ;;  %3182 = vmatpush1.bf16.msra.mxu1 %v4362_v63 }
 0x29d   : > { %3152 = vmatprep.subr.bf16.mxu0 %v4370_v13  ;;  %3184 = vmatprep.subr.bf16.mxu1 %v4375_v26 }
 0x2a0   : > { %3154 = vmatpush1.bf16.msra.mxu0 %v4377_v27  ;;  %3186 = vmatpush1.bf16.msra.mxu1 %v4382_v40 }
 0x2a1   : > { %3156 = vmatprep.subr.bf16.mxu0 %v4390_v58  ;;  %3188 = vmatprep.subr.bf16.mxu1 %v4395_v15 }
 0x2a4   : > { %3158 = vmatpush1.bf16.msra.mxu0 %v4397_v16  ;;  %3190 = vmatpush1.bf16.msra.mxu1 %v4402_v54 }
 0x2a5   : > { %3160 = vmatprep.subr.bf16.mxu0 %v4409_v61  ;;  %3192 = vmatprep.subr.bf16.mxu1 %v4415_v7 }
 0x2a8   : > { %3162 = vmatpush1.bf16.msra.mxu0 %v4417_v9  ;;  %3194 = vmatpush1.bf16.msra.mxu1 %v4423_v21 }
 0x2a9   : > { %3164 = vmatprep.subr.bf16.mxu0 %v4429_v34  ;;  %3196 = vmatprep.subr.bf16.mxu1 %v4431_v35 }
 0x2ac   : > { %3166 = vmatpush1.bf16.msra.mxu0 %v4437_v52  ;;  %3198 = vmatpush1.bf16.msra.mxu1 %v4444_v62 }
 0x2ad   : > { %3168 = vmatprep.subr.bf16.mxu0 %v4446_v1  ;;  %3200 = vmatprep.subr.bf16.mxu1 %v4452_v18 }
 0x2b0   : > { %3170 = vmatpush1.bf16.msra.mxu0 %v4458_v42  ;;  %3202 = vmatpush1.bf16.msra.mxu1 %v4462_v46 }
 0x2b1   : > { %3204 = vmatprep.subr.bf16.mxu0 %v4310_v4  ;;  %3236 = vmatprep.subr.bf16.mxu1 %v4315_v43 }
 0x365   : > { %v1269_v59 = vpop.f32.mrb[20].mxu0  ;;  %v1340_v3 = vpop.f32.mrb[20].mxu1 }
 0x366   : > { %v1345_v11 = vadd.f32 %v1269_v59, %v1135_v57  ;;  %v1271_v24 = vpop.f32.mrb[21].mxu0  ;;  %v1342_v56 = vpop.f32.mrb[21].mxu1  ;;  %v1347_v30 = vadd.f32 %v1340_v3, %v1137_v23  ;;  %v1381_v23 = vld [vmem:[%s1378_s11 + $0x10] sm:$0xff] }
 0x367   : > { %v1346_v60 = vadd.f32 %v1271_v24, %v1136_v20  ;;  %v1348_v17 = vadd.f32 %v1342_v56, %v1138_v44  ;;  %v1380_v56 = vld [vmem:[%s1378_s11 + $0x8] sm:$0xff]  ;;  %v1382_v44 = vld [vmem:[%s1378_s11 + $0x18] sm:$0xff] }
 0x368   : > { %v1349_v37 = vsub.f32 0.0, %v1345_v11 }
 0x369   : > { %v1354_v2 = vsub.f32 0.0, %v1346_v60  ;;  %v1360_v19 = vsub.f32 0.0, %v1348_v17 }
 0x36a   : > { %v1350_v6 = vmul.f32 1.442695, %v1349_v37 }
 0x36b   : > { %v1355_v10 = vmul.f32 1.442695, %v1354_v2  ;;  %v1361_v29 = vmul.f32 1.442695, %v1360_v19 }
 0x36c   : > { %3540 = vpow2.f32 %v1350_v6 }
 0x36d   : > { %3542 = vpow2.f32 %v1355_v10 }
 0x36e   : > { %3544 = vpow2.f32 %v1361_v29 }
 0x36f   : > { %3546 = vtanh.f32 %v1347_v30 }
 0x376   : > { %v3541_v41 = vpop.eup %3540 }
 0x377   : > { %v3543_v45 = vpop.eup %3542  ;;  %v1352_v47 = vadd.f32 1.0, %v3541_v41 }
 0x378   : > { %v1357_v53 = vadd.f32 1.0, %v3543_v45  ;;  %v3545_v49 = vpop.eup %3544 }
 0x379   : > { %3548 = vrcp.f32 %v1352_v47  ;;  %v3547_v55 = vpop.eup %3546  ;;  %v1363_v25 = vadd.f32 1.0, %v3545_v49 }
 0x37a   : > { %3550 = vrcp.f32 %v1357_v53 }
 0x37b   : > { %3552 = vrcp.f32 %v1363_v25 }
 0x383   : > { %v3549_v5 = vpop.eup %3548 }
 0x384   : > { %v3551_v12 = vpop.eup %3550  ;;  %v1366_v14 = vmul.f32 %v3549_v5, %v3547_v55 }
 0x385   : > { %v1365_v31 = vmul.f32 %v3551_v12, %v4299_v28  ;;  %v3553_v57 = vpop.eup %3552  ;;  %v1379_v28 = vld [vmem:[%s1378_s11] sm:$0xff]  ;;  %s4789_s11 = scalar_select %p4879_p2, 6, 1 }
 0x387   : > { %v4477_v39 = vadd.f32 %v1366_v14, %v1365_v31 }
 0x389   : > { %3554 = vtanh.f32 %v4477_v39 }
 0x393   : > { %v3555_v59 = vpop.eup %3554 }
 0x394   : > { %v1369_v3 = vmul.f32 %v3555_v59, %v3553_v57 }
 0x396   : > { %1371 = vst [vmem:[%s1370_s16] sm:$0xff] %v1369_v3  ;;  %1512 = vmatmul.mubr.f32.vlgmr.msra.gmra.mrb[22].mxu0 %v1369_v3  ;;  %1583 = vmatmul.mubr.f32.vlgmr.msra.gmra.mrb[22].mxu1 %v1369_v3 }
 0x397   : > { %3206 = vmatpush1.bf16.msra.mxu0 %v4317_v8  ;;  %3238 = vmatpush1.bf16.msra.mxu1 %v4322_v38 }
 0x398   : > { %3208 = vmatprep.subr.bf16.mxu0 %v4330_v22  ;;  %3240 = vmatprep.subr.bf16.mxu1 %v4335_v32 }
 0x399   : > { %1755 = vmatprep.mubr.f32.mxu0 %v3737_v0  ;;  %1826 = vmatprep.mubr.f32.mxu1 %v3737_v0 }
 0x39b   : > { %3210 = vmatpush1.bf16.msra.mxu0 %v4337_v33  ;;  %3242 = vmatpush1.bf16.msra.mxu1 %v4342_v36 }
 0x39c   : > { %3212 = vmatprep.subr.bf16.mxu0 %v4350_v48  ;;  %3244 = vmatprep.subr.bf16.mxu1 %v4355_v50 }
 0x39f   : > { %3214 = vmatpush1.bf16.msra.mxu0 %v4357_v51  ;;  %3246 = vmatpush1.bf16.msra.mxu1 %v4362_v63 }
 0x3a0   : > { %3216 = vmatprep.subr.bf16.mxu0 %v4370_v13  ;;  %3248 = vmatprep.subr.bf16.mxu1 %v4375_v26 }
 0x3a3   : > { %3218 = vmatpush1.bf16.msra.mxu0 %v4377_v27  ;;  %3250 = vmatpush1.bf16.msra.mxu1 %v4382_v40 }
 0x3a4   : > { %3220 = vmatprep.subr.bf16.mxu0 %v4390_v58  ;;  %3252 = vmatprep.subr.bf16.mxu1 %v4395_v15 }
 0x3a7   : > { %3222 = vmatpush1.bf16.msra.mxu0 %v4397_v16  ;;  %3254 = vmatpush1.bf16.msra.mxu1 %v4402_v54 }
 0x3a8   : > { %3224 = vmatprep.subr.bf16.mxu0 %v4409_v61  ;;  %3256 = vmatprep.subr.bf16.mxu1 %v4415_v7 }
 0x3ab   : > { %3226 = vmatpush1.bf16.msra.mxu0 %v4417_v9  ;;  %3258 = vmatpush1.bf16.msra.mxu1 %v4423_v21 }
 0x3ac   : > { %3228 = vmatprep.subr.bf16.mxu0 %v4429_v34  ;;  %3260 = vmatprep.subr.bf16.mxu1 %v4431_v35 }
 0x3af   : > { %3230 = vmatpush1.bf16.msra.mxu0 %v4437_v52  ;;  %3262 = vmatpush1.bf16.msra.mxu1 %v4444_v62 }
 0x3b0   : > { %3232 = vmatprep.subr.bf16.mxu0 %v4446_v1  ;;  %3264 = vmatprep.subr.bf16.mxu1 %v4452_v18 }
 0x3b3   : > { %3234 = vmatpush1.bf16.msra.mxu0 %v4458_v42  ;;  %3266 = vmatpush1.bf16.msra.mxu1 %v4462_v46 }
 0x3b4   : > { %3268 = vmatprep.subr.bf16.mxu0 %v4310_v4  ;;  %3300 = vmatprep.subr.bf16.mxu1 %v4315_v43 }
 0x469   : > { %v1513_v11 = vpop.f32.mrb[22].mxu0  ;;  %v1584_v20 = vpop.f32.mrb[22].mxu1 }
 0x46a   : > { %v1589_v24 = vadd.f32 %v1513_v11, %v1379_v28  ;;  %v1515_v60 = vpop.f32.mrb[23].mxu0  ;;  %v1586_v37 = vpop.f32.mrb[23].mxu1  ;;  %v1591_v30 = vadd.f32 %v1584_v20, %v1381_v23  ;;  %v2124_v23 = vld [vmem:[%s3879_s28 + $0x48] sm:$0xff] }
 0x46b   : > { %v1590_v4 = vadd.f32 %v1515_v60, %v1380_v56  ;;  %v1592_v17 = vadd.f32 %v1586_v37, %v1382_v44  ;;  %v2120_v56 = vld [vmem:[%s3879_s28 + $0x28] sm:$0xff]  ;;  %v2118_v60 = vld [vmem:[%s3879_s28 + $0x18] sm:$0xff] }
 0x46c   : > { %v1593_v2 = vsub.f32 0.0, %v1589_v24  ;;  %v2116_v24 = vld [vmem:[%s3879_s28 + $0x8] sm:$0xff] }
 0x46d   : > { %v1598_v43 = vsub.f32 0.0, %v1590_v4  ;;  %v1604_v19 = vsub.f32 0.0, %v1592_v17  ;;  %v4582_v37 = vpack.c.bf16 %v2120_v56, %v2116_v24  ;;  %v2122_v4 = vld [vmem:[%s3879_s28 + $0x38] sm:$0xff]  ;;  %v2121_v17 = vld [vmem:[%s3879_s28 + $0x30] sm:$0xff] }
 0x46e   : > { %v1594_v6 = vmul.f32 1.442695, %v1593_v2  ;;  %v2115_v2 = vld [vmem:[%s3879_s28] sm:$0xff]  ;;  %v2158_v24 = vld [vmem:[%s3879_s28 + $0x158] sm:$0xff] }
 0x46f   : > { %v1599_v10 = vmul.f32 1.442695, %v1598_v43  ;;  %v1605_v29 = vmul.f32 1.442695, %v1604_v19  ;;  %v2119_v43 = vld [vmem:[%s3879_s28 + $0x20] sm:$0xff] }
 0x470   : > { %3556 = vpow2.f32 %v1594_v6  ;;  %v4587_v6 = vpack.c.bf16 %v2122_v4, %v2118_v60  ;;  %v4589_v44 = vpack.c.bf16 %v2119_v43, %v2115_v2  ;;  %v2162_v60 = vld [vmem:[%s3879_s28 + $0x178] sm:$0xff]  ;;  %v2155_v4 = vld [vmem:[%s3879_s28 + $0x140] sm:$0xff] }
 0x471   : > { %3558 = vpow2.f32 %v1599_v10  ;;  %v2117_v10 = vld [vmem:[%s3879_s28 + $0x10] sm:$0xff]  ;;  %v2159_v2 = vld [vmem:[%s3879_s28 + $0x160] sm:$0xff]  ;;  %v4687_v43 = vpack.c.bf16 %v2162_v60, %v2158_v24 }
 0x472   : > { %3560 = vpow2.f32 %v1605_v29  ;;  %v4594_v19 = vpack.c.bf16 %v2121_v17, %v2117_v10  ;;  %v2128_v29 = vld [vmem:[%s3879_s28 + $0x68] sm:$0xff]  ;;  %v4689_v10 = vpack.c.bf16 %v2159_v2, %v2155_v4  ;;  %v2157_v17 = vld [vmem:[%s3879_s28 + $0x150] sm:$0xff] }
 0x473   : > { %3562 = vtanh.f32 %v1591_v30  ;;  %v2126_v30 = vld [vmem:[%s3879_s28 + $0x58] sm:$0xff] }
 0x47a   : > { %v3557_v41 = vpop.eup %3556 }
 0x47b   : > { %v3559_v45 = vpop.eup %3558  ;;  %v1596_v47 = vadd.f32 1.0, %v3557_v41  ;;  %v4602_v41 = vpack.c.bf16 %v2128_v29, %v2124_v23  ;;  %v2161_v23 = vld [vmem:[%s3879_s28 + $0x170] sm:$0xff]  ;;  %v2164_v29 = vld [vmem:[%s3879_s28 + $0x188] sm:$0xff] }
 0x47c   : > { %v1601_v53 = vadd.f32 1.0, %v3559_v45  ;;  %v3561_v49 = vpop.eup %3560  ;;  %v2130_v45 = vld [vmem:[%s3879_s28 + $0x78] sm:$0xff] }
 0x47d   : > { %3564 = vrcp.f32 %v1596_v47  ;;  %v3563_v55 = vpop.eup %3562  ;;  %v1607_v25 = vadd.f32 1.0, %v3561_v49  ;;  %v2123_v47 = vld [vmem:[%s3879_s28 + $0x40] sm:$0xff]  ;;  %v4607_v49 = vpack.c.bf16 %v2130_v45, %v2126_v30  ;;  %v4695_v30 = vpack.c.bf16 %v2161_v23, %v2157_v17  ;;  %v2168_v45 = vld [vmem:[%s3879_s28 + $0x1a8] sm:$0xff] }
 0x47e   : > { %3566 = vrcp.f32 %v1601_v53  ;;  %v2127_v53 = vld [vmem:[%s3879_s28 + $0x60] sm:$0xff] }
 0x47f   : > { %3568 = vrcp.f32 %v1607_v25  ;;  %v2132_v25 = vld [vmem:[%s3879_s28 + $0x88] sm:$0xff] }
 0x487   : > { %v3565_v5 = vpop.eup %3564 }
 0x488   : > { %v3567_v12 = vpop.eup %3566  ;;  %v1610_v14 = vmul.f32 %v3565_v5, %v3563_v55  ;;  %v4609_v55 = vpack.c.bf16 %v2127_v53, %v2123_v47  ;;  %v2125_v5 = vld [vmem:[%s3879_s28 + $0x50] sm:$0xff]  ;;  %v2166_v47 = vld [vmem:[%s3879_s28 + $0x198] sm:$0xff] }
 0x489   : > { %v1609_v31 = vmul.f32 %v3567_v12, %v4477_v39  ;;  %v3569_v59 = vpop.eup %3568  ;;  %v2129_v12 = vld [vmem:[%s3879_s28 + $0x70] sm:$0xff]  ;;  %v2170_v53 = vld [vmem:[%s3879_s28 + $0x1b8] sm:$0xff] }
 0x48b   : > { %v4525_v57 = vadd.f32 %v1610_v14, %v1609_v31  ;;  %v4614_v14 = vpack.c.bf16 %v2129_v12, %v2125_v5  ;;  %v2136_v31 = vld [vmem:[%s3879_s28 + $0xa8] sm:$0xff]  ;;  %v4701_v5 = vpack.c.bf16 %v2168_v45, %v2164_v29  ;;  %v4703_v12 = vpack.c.bf16 %v2170_v53, %v2166_v47 }
 0x48d   : > { %3570 = vtanh.f32 %v4525_v57 }
 0x497   : > { %v3571_v3 = vpop.eup %3570 }
 0x498   : > { %v1613_v28 = vmul.f32 %v3571_v3, %v3569_v59  ;;  %v4622_v59 = vpack.c.bf16 %v2136_v31, %v2132_v25  ;;  %v2138_v3 = vld [vmem:[%s3879_s28 + $0xb8] sm:$0xff]  ;;  %v2163_v25 = vld [vmem:[%s3879_s28 + $0x180] sm:$0xff] }
 0x499   : > { %v2167_v31 = vld [vmem:[%s3879_s28 + $0x1a0] sm:$0xff] }
 0x49a   : > { %1615 = vst [vmem:[%s1614_s13] sm:$0xff] %v1613_v28  ;;  %1756 = vmatmul.mubr.f32.vlgmr.msra.gmra.mrb[24].mxu0 %v1613_v28  ;;  %1827 = vmatmul.mubr.f32.vlgmr.msra.gmra.mrb[24].mxu1 %v1613_v28  ;;  %v2131_v28 = vld [vmem:[%s3879_s28 + $0x80] sm:$0xff]  ;;  %s2861_s13 = sshll.u32 %s4789_s11, 3  ;;  %s2598_s11 = scalar_lea.sflag [#allocation5], %s3875_s23 }
 0x49b   : > { %3270 = vmatpush1.bf16.msra.mxu0 %v4317_v8  ;;  %3302 = vmatpush1.bf16.msra.mxu1 %v4322_v38  ;;  %v1623_v8 = vld [vmem:[%s1622_s14] sm:$0xff]  ;;  %s2106_s17 = sshra.s32 %s2861_s13, 3  ;;  %s2346_s26 = scalar_lea.vmem %s4254_s8, %s2861_s13 [#allocation6] }
 0x49c   : > { %3272 = vmatprep.subr.bf16.mxu0 %v4330_v22  ;;  %3304 = vmatprep.subr.bf16.mxu1 %v4335_v32  ;;  %s2881_s12 = sshll.u32 %s2106_s17, 5  ;;  %s2869_s13 = sshll.u32 (%p4881_p7), %s3790_s22, 3 }
 0x49d   : > { %1999 = vmatprep.mubr.f32.mxu0 %v3737_v0  ;;  %2070 = vmatprep.mubr.f32.mxu1 %v3737_v0  ;;  %s2110_s25 = scalar_lea.vmem [#allocation2], %s2881_s12 }
 0x49f   : > { %3274 = vmatpush1.bf16.msra.mxu0 %v4337_v33  ;;  %3306 = vmatpush1.bf16.msra.mxu1 %v4342_v36  ;;  %v1624_v33 = vld [vmem:[%s1622_s14 + $0x8] sm:$0xff] }
 0x4a0   : > { %3276 = vmatprep.subr.bf16.mxu0 %v4350_v48  ;;  %3308 = vmatprep.subr.bf16.mxu1 %v4355_v50 }
 0x4a3   : > { %3278 = vmatpush1.bf16.msra.mxu0 %v4357_v51  ;;  %3310 = vmatpush1.bf16.msra.mxu1 %v4362_v63 }
 0x4a4   : > { %3280 = vmatprep.subr.bf16.mxu0 %v4370_v13  ;;  %3312 = vmatprep.subr.bf16.mxu1 %v4375_v26  ;;  %v1626_v26 = vld [vmem:[%s1622_s14 + $0x18] sm:$0xff] }
 0x4a7   : > { %3282 = vmatpush1.bf16.msra.mxu0 %v4377_v27  ;;  %3314 = vmatpush1.bf16.msra.mxu1 %v4382_v40 }
 0x4a8   : > { %3284 = vmatprep.subr.bf16.mxu0 %v4390_v58  ;;  %3316 = vmatprep.subr.bf16.mxu1 %v4395_v15  ;;  %v1625_v15 = vld [vmem:[%s1622_s14 + $0x10] sm:$0xff]  ;;  %s4800_s14 = scalar_select %p4880_p5, 7, 0 }
 0x4ab   : > { %3286 = vmatpush1.bf16.msra.mxu0 %v4397_v16  ;;  %3318 = vmatpush1.bf16.msra.mxu1 %v4402_v54 }
 0x4ac   : > { %3288 = vmatprep.subr.bf16.mxu0 %v4409_v61  ;;  %3320 = vmatprep.subr.bf16.mxu1 %v4415_v7 }
 0x4af   : > { %3290 = vmatpush1.bf16.msra.mxu0 %v4417_v9  ;;  %3322 = vmatpush1.bf16.msra.mxu1 %v4423_v21 }
 0x4b0   : > { %3292 = vmatprep.subr.bf16.mxu0 %v4429_v34  ;;  %3324 = vmatprep.subr.bf16.mxu1 %v4431_v35 }
 0x4b3   : > { %3294 = vmatpush1.bf16.msra.mxu0 %v4437_v52  ;;  %3326 = vmatpush1.bf16.msra.mxu1 %v4444_v62 }
 0x4b4   : > { %3296 = vmatprep.subr.bf16.mxu0 %v4446_v1  ;;  %3328 = vmatprep.subr.bf16.mxu1 %v4452_v18 }
 0x4b7   : > { %3298 = vmatpush1.bf16.msra.mxu0 %v4458_v42  ;;  %3330 = vmatpush1.bf16.msra.mxu1 %v4462_v46 }
 0x4b8   : > { %3332 = vmatprep.subr.bf16.mxu0 %v4582_v37  ;;  %3364 = vmatprep.subr.bf16.mxu1 %v4587_v6 }
 0x56d   : > { %v1757_v38 = vpop.f32.mrb[24].mxu0  ;;  %v1828_v22 = vpop.f32.mrb[24].mxu1 }
 0x56e   : > { %v1833_v32 = vadd.f32 %v1757_v38, %v1623_v8  ;;  %v1759_v36 = vpop.f32.mrb[25].mxu0  ;;  %v1830_v48 = vpop.f32.mrb[25].mxu1  ;;  %v1835_v54 = vadd.f32 %v1828_v22, %v1625_v15  ;;  %v2135_v8 = vld [vmem:[%s3879_s28 + $0xa0] sm:$0xff]  ;;  %v2141_v15 = vld [vmem:[%s3879_s28 + $0xd0] sm:$0xff] }
 0x56f   : > { %v1834_v50 = vadd.f32 %v1759_v36, %v1624_v33  ;;  %v1836_v40 = vadd.f32 %v1830_v48, %v1626_v26  ;;  %v4629_v22 = vpack.c.bf16 %v2135_v8, %v2131_v28  ;;  %v2137_v33 = vld [vmem:[%s3879_s28 + $0xb0] sm:$0xff]  ;;  %v2140_v48 = vld [vmem:[%s3879_s28 + $0xc8] sm:$0xff]  ;;  %v2139_v26 = vld [vmem:[%s3879_s28 + $0xc0] sm:$0xff] }
 0x570   : > { %v1837_v51 = vsub.f32 0.0, %v1833_v32  ;;  %v2133_v32 = vld [vmem:[%s3879_s28 + $0x90] sm:$0xff]  ;;  %v2172_v8 = vld [vmem:[%s3879_s28 + $0x1c8] sm:$0xff] }
 0x571   : > { %v1842_v63 = vsub.f32 0.0, %v1834_v50  ;;  %v1848_v58 = vsub.f32 0.0, %v1836_v40  ;;  %v4634_v36 = vpack.c.bf16 %v2137_v33, %v2133_v32  ;;  %v2144_v50 = vld [vmem:[%s3879_s28 + $0xe8] sm:$0xff]  ;;  %v2169_v28 = vld [vmem:[%s3879_s28 + $0x1b0] sm:$0xff] }
 0x572   : > { %v1838_v13 = vmul.f32 1.442695, %v1837_v51  ;;  %v2142_v51 = vld [vmem:[%s3879_s28 + $0xd8] sm:$0xff]  ;;  %v2176_v32 = vld [vmem:[%s3879_s28 + $0x1e8] sm:$0xff] }
 0x573   : > { %v1843_v27 = vmul.f32 1.442695, %v1842_v63  ;;  %v1849_v16 = vmul.f32 1.442695, %v1848_v58  ;;  %v4642_v63 = vpack.c.bf16 %v2144_v50, %v2140_v48  ;;  %v4718_v48 = vpack.c.bf16 %v2176_v32, %v2172_v8  ;;  %v2174_v50 = vld [vmem:[%s3879_s28 + $0x1d8] sm:$0xff] }
 0x574   : > { %3572 = vpow2.f32 %v1838_v13  ;;  %v2146_v13 = vld [vmem:[%s3879_s28 + $0xf8] sm:$0xff] }
 0x575   : > { %3574 = vpow2.f32 %v1843_v27  ;;  %v2143_v27 = vld [vmem:[%s3879_s28 + $0xe0] sm:$0xff]  ;;  %v4647_v40 = vpack.c.bf16 %v2146_v13, %v2142_v51  ;;  %v2178_v51 = vld [vmem:[%s3879_s28 + $0x1f8] sm:$0xff] }
 0x576   : > { %3576 = vpow2.f32 %v1849_v16  ;;  %v4649_v58 = vpack.c.bf16 %v2143_v27, %v2139_v26  ;;  %v2145_v16 = vld [vmem:[%s3879_s28 + $0xf0] sm:$0xff]  ;;  %v2171_v13 = vld [vmem:[%s3879_s28 + $0x1c0] sm:$0xff]  ;;  %v4724_v26 = vpack.c.bf16 %v2178_v51, %v2174_v50 }
 0x577   : > { %3578 = vtanh.f32 %v1835_v54  ;;  %v4654_v54 = vpack.c.bf16 %v2145_v16, %v2141_v15  ;;  %v2175_v27 = vld [vmem:[%s3879_s28 + $0x1e0] sm:$0xff]  ;;  %v2173_v15 = vld [vmem:[%s3879_s28 + $0x1d0] sm:$0xff] }
 0x578   : > { %v2177_v16 = vld [vmem:[%s3879_s28 + $0x1f0] sm:$0xff] }
 0x57e   : > { %v3573_v61 = vpop.eup %3572 }
 0x57f   : > { %v3575_v7 = vpop.eup %3574  ;;  %v1840_v9 = vadd.f32 1.0, %v3573_v61  ;;  %v2148_v61 = vld [vmem:[%s3879_s28 + $0x108] sm:$0xff] }
 0x580   : > { %v1845_v21 = vadd.f32 1.0, %v3575_v7  ;;  %v3577_v34 = vpop.eup %3576  ;;  %v2152_v7 = vld [vmem:[%s3879_s28 + $0x128] sm:$0xff] }
 0x581   : > { %3580 = vrcp.f32 %v1840_v9  ;;  %v3579_v35 = vpop.eup %3578  ;;  %v1851_v18 = vadd.f32 1.0, %v3577_v34  ;;  %v2150_v9 = vld [vmem:[%s3879_s28 + $0x118] sm:$0xff] }
 0x582   : > { %3582 = vrcp.f32 %v1845_v21  ;;  %v4662_v21 = vpack.c.bf16 %v2152_v7, %v2148_v61  ;;  %v2154_v34 = vld [vmem:[%s3879_s28 + $0x138] sm:$0xff]  ;;  %v4730_v61 = vpack.c.bf16 %v2175_v27, %v2171_v13  ;;  %v4734_v7 = vpack.c.bf16 %v2177_v16, %v2173_v15 }
 0x583   : > { %3584 = vrcp.f32 %v1851_v18  ;;  %v2149_v18 = vld [vmem:[%s3879_s28 + $0x110] sm:$0xff] }
 0x58b   : > { %v3581_v52 = vpop.eup %3580 }
 0x58c   : > { %v3583_v62 = vpop.eup %3582  ;;  %v1854_v1 = vmul.f32 %v3581_v52, %v3579_v35  ;;  %v2147_v35 = vld [vmem:[%s3879_s28 + $0x100] sm:$0xff] }
 0x58d   : > { %v1853_v42 = vmul.f32 %v3583_v62, %v4525_v57  ;;  %v3585_v39 = vpop.eup %3584  ;;  %v2134_v57 = vld [vmem:[%s3879_s28 + $0x98] sm:$0xff]  ;;  %v2151_v52 = vld [vmem:[%s3879_s28 + $0x120] sm:$0xff]  ;;  %v4667_v62 = vpack.c.bf16 %v2154_v34, %v2150_v9 }
 0x58e   : > { %v4627_v38 = vpack.c.bf16 %v2138_v3, %v2134_v57  ;;  %v2165_v57 = vld [vmem:[%s3879_s28 + $0x190] sm:$0xff]  ;;  %v4709_v3 = vpack.c.bf16 %v2167_v31, %v2163_v25 }
 0x58f   : > { %v4571_v46 = vadd.f32 %v1854_v1, %v1853_v42  ;;  %v4669_v1 = vpack.c.bf16 %v2151_v52, %v2147_v35  ;;  %v2153_v42 = vld [vmem:[%s3879_s28 + $0x130] sm:$0xff]  ;;  %v4716_v33 = vpack.c.bf16 %v2169_v28, %v2165_v57 }
 0x591   : > { %3586 = vtanh.f32 %v4571_v46 }
 0x59b   : > { %v3587_v11 = vpop.eup %3586 }
 0x59c   : > { %v1857_v20 = vmul.f32 %v3587_v11, %v3585_v39  ;;  %v4674_v39 = vpack.c.bf16 %v2153_v42, %v2149_v18  ;;  %v2156_v11 = vld [vmem:[%s3879_s28 + $0x148] sm:$0xff] }
 0x59e   : > { %1859 = vst [vmem:[%s1858_s15] sm:$0xff] %v1857_v20  ;;  %2000 = vmatmul.mubr.f32.vlgmr.msra.gmra.mrb[26].mxu0 %v1857_v20  ;;  %2071 = vmatmul.mubr.f32.vlgmr.msra.gmra.mrb[26].mxu1 %v1857_v20  ;;  %v2160_v20 = vld [vmem:[%s3879_s28 + $0x168] sm:$0xff]  ;;  %s4743_s28 = scalar_select %p4878_p0, 5, 2 }
 0x59f   : > { %2243 = vmatprep.mubr.f32.mxu0 %v3737_v0  ;;  %2314 = vmatprep.mubr.f32.mxu1 %v3737_v0  ;;  %v4681_v56 = vpack.c.bf16 %v2160_v20, %v2156_v11  ;;  %s2864_s15 = sshll.u32 %s4800_s14, 3 }
 0x5a0   : > { %3334 = vmatpush1.bf16.msra.mxu0 %v4589_v44  ;;  %3366 = vmatpush1.bf16.msra.mxu1 %v4594_v19  ;;  %s2858_s16 = sshll.u32 %s4743_s28, 3  ;;  %s2350_s28 = sshra.s32 %s2864_s15, 3 }
 0x5a1   : > { %3336 = vmatprep.subr.bf16.mxu0 %v4602_v41  ;;  %3368 = vmatprep.subr.bf16.mxu1 %v4607_v49  ;;  %s1862_s29 = sshra.s32 %s2858_s16, 3  ;;  %s2102_s10 = scalar_lea.vmem %s4254_s8, %s2858_s16 [#allocation6] }
 0x5a2   : > { %s2880_s7 = sshll.u32 %s1862_s29, 5  ;;  %s2882_s16 = sshll.u32 %s2350_s28, 5 }
 0x5a3   : > { %s1866_s9 = scalar_lea.vmem [#allocation2], %s2880_s7  ;;  %s2354_s29 = scalar_lea.vmem [#allocation2], %s2882_s16 }
 0x5a4   : > { %3338 = vmatpush1.bf16.msra.mxu0 %v4609_v55  ;;  %3370 = vmatpush1.bf16.msra.mxu1 %v4614_v14  ;;  %v1867_v9 = vld [vmem:[%s1866_s9] sm:$0xff]  ;;  %v1868_v18 = vld [vmem:[%s1866_s9 + $0x8] sm:$0xff]  ;;  %v1870_v60 = vld [vmem:[%s1866_s9 + $0x18] sm:$0xff]  ;;  %s2839_s7 = sshll.u32 %s3875_s23, 3 }
 0x5a5   : > { %3340 = vmatprep.subr.bf16.mxu0 %v4622_v59  ;;  %3372 = vmatprep.subr.bf16.mxu1 %v4627_v38  ;;  %v1869_v23 = vld [vmem:[%s1866_s9 + $0x10] sm:$0xff]  ;;  %s2590_s9 = scalar_lea.vmem %s4254_s8, %s2864_s15 [#allocation6] }
 0x5a8   : > { %3342 = vmatpush1.bf16.msra.mxu0 %v4629_v22  ;;  %3374 = vmatpush1.bf16.msra.mxu1 %v4634_v36 }
 0x5a9   : > { %3344 = vmatprep.subr.bf16.mxu0 %v4642_v63  ;;  %3376 = vmatprep.subr.bf16.mxu1 %v4647_v40 }
 0x5ac   : > { %3346 = vmatpush1.bf16.msra.mxu0 %v4649_v58  ;;  %3378 = vmatpush1.bf16.msra.mxu1 %v4654_v54 }
 0x5ad   : > { %3348 = vmatprep.subr.bf16.mxu0 %v4662_v21  ;;  %3380 = vmatprep.subr.bf16.mxu1 %v4667_v62 }
 0x5b0   : > { %3350 = vmatpush1.bf16.msra.mxu0 %v4669_v1  ;;  %3382 = vmatpush1.bf16.msra.mxu1 %v4674_v39 }
 0x5b1   : > { %3352 = vmatprep.subr.bf16.mxu0 %v4681_v56  ;;  %3384 = vmatprep.subr.bf16.mxu1 %v4687_v43 }
 0x5b4   : > { %3354 = vmatpush1.bf16.msra.mxu0 %v4689_v10  ;;  %3386 = vmatpush1.bf16.msra.mxu1 %v4695_v30 }
 0x5b5   : > { %3356 = vmatprep.subr.bf16.mxu0 %v4701_v5  ;;  %3388 = vmatprep.subr.bf16.mxu1 %v4703_v12 }
 0x5b8   : > { %3358 = vmatpush1.bf16.msra.mxu0 %v4709_v3  ;;  %3390 = vmatpush1.bf16.msra.mxu1 %v4716_v33 }
 0x5b9   : > { %3360 = vmatprep.subr.bf16.mxu0 %v4718_v48  ;;  %3392 = vmatprep.subr.bf16.mxu1 %v4724_v26 }
 0x5bc   : > { %3362 = vmatpush1.bf16.msra.mxu0 %v4730_v61  ;;  %3394 = vmatpush1.bf16.msra.mxu1 %v4734_v7 }
 0x5bd   : > { %3396 = vmatprep.subr.bf16.mxu0 %v4582_v37  ;;  %3428 = vmatprep.subr.bf16.mxu1 %v4587_v6 }
 0x671   : > { %v2001_v34 = vpop.f32.mrb[26].mxu0  ;;  %v2072_v35 = vpop.f32.mrb[26].mxu1 }
 0x672   : > { %v2077_v52 = vadd.f32 %v2001_v34, %v1867_v9  ;;  %v2003_v42 = vpop.f32.mrb[27].mxu0  ;;  %v2074_v11 = vpop.f32.mrb[27].mxu1  ;;  %v2079_v45 = vadd.f32 %v2072_v35, %v1869_v23  ;;  %v2355_v35 = vld [vmem:[%s2354_s29] sm:$0xff] }
 0x673   : > { %v2078_v37 = vadd.f32 %v2003_v42, %v1868_v18  ;;  %v2080_v2 = vadd.f32 %v2074_v11, %v1870_v60  ;;  %v2356_v11 = vld [vmem:[%s2354_s29 + $0x8] sm:$0xff] }
 0x674   : > { %v2081_v20 = vsub.f32 0.0, %v2077_v52 }
 0x675   : > { %v2086_v6 = vsub.f32 0.0, %v2078_v37  ;;  %v2092_v17 = vsub.f32 0.0, %v2080_v2  ;;  %v2358_v2 = vld [vmem:[%s2354_s29 + $0x18] sm:$0xff] }
 0x676   : > { %v2082_v24 = vmul.f32 1.442695, %v2081_v20 }
 0x677   : > { %v2087_v4 = vmul.f32 1.442695, %v2086_v6  ;;  %v2093_v29 = vmul.f32 1.442695, %v2092_v17 }
 0x678   : > { %3588 = vpow2.f32 %v2082_v24 }
 0x679   : > { %3590 = vpow2.f32 %v2087_v4 }
 0x67a   : > { %3592 = vpow2.f32 %v2093_v29 }
 0x67b   : > { %3594 = vtanh.f32 %v2079_v45  ;;  %v2357_v45 = vld [vmem:[%s2354_s29 + $0x10] sm:$0xff] }
 0x682   : > { %v3589_v47 = vpop.eup %3588 }
 0x683   : > { %v3591_v53 = vpop.eup %3590  ;;  %v2084_v25 = vadd.f32 1.0, %v3589_v47 }
 0x684   : > { %v2089_v31 = vadd.f32 1.0, %v3591_v53  ;;  %v3593_v57 = vpop.eup %3592 }
 0x685   : > { %3596 = vrcp.f32 %v2084_v25  ;;  %v3595_v28 = vpop.eup %3594  ;;  %v2095_v51 = vadd.f32 1.0, %v3593_v57 }
 0x686   : > { %3598 = vrcp.f32 %v2089_v31 }
 0x687   : > { %3600 = vrcp.f32 %v2095_v51 }
 0x68f   : > { %v3597_v8 = vpop.eup %3596 }
 0x690   : > { %v3599_v32 = vpop.eup %3598  ;;  %v2098_v50 = vmul.f32 %v3597_v8, %v3595_v28 }
 0x691   : > { %v2097_v13 = vmul.f32 %v3599_v32, %v4571_v46  ;;  %v3601_v15 = vpop.eup %3600 }
 0x693   : > { %v4749_v27 = vadd.f32 %v2098_v50, %v2097_v13 }
 0x695   : > { %3602 = vtanh.f32 %v4749_v27 }
 0x69f   : > { %v3603_v16 = vpop.eup %3602 }
 0x6a0   : > { %v2101_v9 = vmul.f32 %v3603_v16, %v3601_v15 }
 0x6a2   : > { %2103 = vst [vmem:[%s2102_s10] sm:$0xff] %v2101_v9  ;;  %2244 = vmatmul.mubr.f32.vlgmr.msra.gmra.mrb[28].mxu0 %v2101_v9  ;;  %2315 = vmatmul.mubr.f32.vlgmr.msra.gmra.mrb[28].mxu1 %v2101_v9  ;;  %s277_s10 = scalar_lea.vmem [#allocation7], %s2839_s7 }
 0x6a3   : > { %3398 = vmatpush1.bf16.msra.mxu0 %v4589_v44  ;;  %3430 = vmatpush1.bf16.msra.mxu1 %v4594_v19 }
 0x6a4   : > { %3400 = vmatprep.subr.bf16.mxu0 %v4602_v41  ;;  %3432 = vmatprep.subr.bf16.mxu1 %v4607_v49  ;;  %v2112_v41 = vld [vmem:[%s2110_s25 + $0x8] sm:$0xff] }
 0x6a5   : > { %2487 = vmatprep.mubr.f32.mxu0 %v3737_v0  ;;  %2558 = vmatprep.mubr.f32.mxu1 %v3737_v0  ;;  %v2111_v0 = vld [vmem:[%s2110_s25] sm:$0xff] }
 0x6a7   : > { %3402 = vmatpush1.bf16.msra.mxu0 %v4609_v55  ;;  %3434 = vmatpush1.bf16.msra.mxu1 %v4614_v14 }
 0x6a8   : > { %3404 = vmatprep.subr.bf16.mxu0 %v4622_v59  ;;  %3436 = vmatprep.subr.bf16.mxu1 %v4627_v38 }
 0x6ab   : > { %3406 = vmatpush1.bf16.msra.mxu0 %v4629_v22  ;;  %3438 = vmatpush1.bf16.msra.mxu1 %v4634_v36  ;;  %v2114_v36 = vld [vmem:[%s2110_s25 + $0x18] sm:$0xff] }
 0x6ac   : > { %3408 = vmatprep.subr.bf16.mxu0 %v4642_v63  ;;  %3440 = vmatprep.subr.bf16.mxu1 %v4647_v40 }
 0x6af   : > { %3410 = vmatpush1.bf16.msra.mxu0 %v4649_v58  ;;  %3442 = vmatpush1.bf16.msra.mxu1 %v4654_v54  ;;  %v2113_v54 = vld [vmem:[%s2110_s25 + $0x10] sm:$0xff]  ;;  %s2606_s25 = scalar_lea.vmem (%p4881_p7), %s4864_s4, %s2869_s13 }
 0x6b0   : > { %3412 = vmatprep.subr.bf16.mxu0 %v4662_v21  ;;  %3444 = vmatprep.subr.bf16.mxu1 %v4667_v62 }
 0x6b3   : > { %3414 = vmatpush1.bf16.msra.mxu0 %v4669_v1  ;;  %3446 = vmatpush1.bf16.msra.mxu1 %v4674_v39 }
 0x6b4   : > { %3416 = vmatprep.subr.bf16.mxu0 %v4681_v56  ;;  %3448 = vmatprep.subr.bf16.mxu1 %v4687_v43 }
 0x6b7   : > { %3418 = vmatpush1.bf16.msra.mxu0 %v4689_v10  ;;  %3450 = vmatpush1.bf16.msra.mxu1 %v4695_v30 }
 0x6b8   : > { %3420 = vmatprep.subr.bf16.mxu0 %v4701_v5  ;;  %3452 = vmatprep.subr.bf16.mxu1 %v4703_v12 }
 0x6bb   : > { %3422 = vmatpush1.bf16.msra.mxu0 %v4709_v3  ;;  %3454 = vmatpush1.bf16.msra.mxu1 %v4716_v33 }
 0x6bc   : > { %3424 = vmatprep.subr.bf16.mxu0 %v4718_v48  ;;  %3456 = vmatprep.subr.bf16.mxu1 %v4724_v26 }
 0x6bf   : > { %3426 = vmatpush1.bf16.msra.mxu0 %v4730_v61  ;;  %3458 = vmatpush1.bf16.msra.mxu1 %v4734_v7 }
 0x775   : > { %v2245_v46 = vpop.f32.mrb[28].mxu0  ;;  %v2316_v44 = vpop.f32.mrb[28].mxu1 }
 0x776   : > { %v2321_v19 = vadd.f32 %v2245_v46, %v2111_v0  ;;  %v2247_v49 = vpop.f32.mrb[29].mxu0  ;;  %v2318_v55 = vpop.f32.mrb[29].mxu1  ;;  %v2323_v62 = vadd.f32 %v2316_v44, %v2113_v54 }
 0x777   : > { %v2322_v14 = vadd.f32 %v2247_v49, %v2112_v41  ;;  %v2324_v40 = vadd.f32 %v2318_v55, %v2114_v36 }
 0x778   : > { %v2325_v59 = vsub.f32 0.0, %v2321_v19 }
 0x779   : > { %v2330_v38 = vsub.f32 0.0, %v2322_v14  ;;  %v2336_v58 = vsub.f32 0.0, %v2324_v40 }
 0x77a   : > { %v2326_v22 = vmul.f32 1.442695, %v2325_v59 }
 0x77b   : > { %v2331_v63 = vmul.f32 1.442695, %v2330_v38  ;;  %v2337_v21 = vmul.f32 1.442695, %v2336_v58 }
 0x77c   : > { %3604 = vpow2.f32 %v2326_v22 }
 0x77d   : > { %3606 = vpow2.f32 %v2331_v63 }
 0x77e   : > { %3608 = vpow2.f32 %v2337_v21 }
 0x77f   : > { %3610 = vtanh.f32 %v2323_v62 }
 0x786   : > { %v3605_v1 = vpop.eup %3604 }
 0x787   : > { %v3607_v39 = vpop.eup %3606  ;;  %v2328_v56 = vadd.f32 1.0, %v3605_v1 }
 0x788   : > { %v2333_v43 = vadd.f32 1.0, %v3607_v39  ;;  %v3609_v10 = vpop.eup %3608 }
 0x789   : > { %3612 = vrcp.f32 %v2328_v56  ;;  %v3611_v30 = vpop.eup %3610  ;;  %v2339_v33 = vadd.f32 1.0, %v3609_v10 }
 0x78a   : > { %3614 = vrcp.f32 %v2333_v43 }
 0x78b   : > { %3616 = vrcp.f32 %v2339_v33 }
 0x793   : > { %v3613_v5 = vpop.eup %3612 }
 0x794   : > { %v3615_v12 = vpop.eup %3614  ;;  %v2342_v3 = vmul.f32 %v3613_v5, %v3611_v30 }
 0x795   : > { %v2341_v48 = vmul.f32 %v3615_v12, %v4749_v27  ;;  %v3617_v61 = vpop.eup %3616 }
 0x797   : > { %v2343_v26 = vadd.f32 %v2342_v3, %v2341_v48 }
 0x799   : > { %3618 = vtanh.f32 %v2343_v26 }
 0x7a3   : > { %v3619_v7 = vpop.eup %3618 }
 0x7a4   : > { %v2345_v34 = vmul.f32 %v3619_v7, %v3617_v61 }
 0x7a6   : > { %2347 = vst [vmem:[%s2346_s26] sm:$0xff] %v2345_v34  ;;  %2488 = vmatmul.mubr.f32.vlgmr.msra.gmra.mrb[30].mxu0 %v2345_v34  ;;  %2559 = vmatmul.mubr.f32.vlgmr.msra.gmra.mrb[30].mxu1 %v2345_v34 }
 0x879   : > { %v2489_v52 = vpop.f32.mrb[30].mxu0  ;;  %v2560_v18 = vpop.f32.mrb[30].mxu1 }
 0x87a   : > { %v2565_v42 = vadd.f32 %v2489_v52, %v2355_v35  ;;  %v2491_v37 = vpop.f32.mrb[31].mxu0  ;;  %v2562_v20 = vpop.f32.mrb[31].mxu1  ;;  %v2567_v53 = vadd.f32 %v2560_v18, %v2357_v45 }
 0x87b   : > { %v2566_v6 = vadd.f32 %v2491_v37, %v2356_v11  ;;  %v2568_v23 = vadd.f32 %v2562_v20, %v2358_v2 }
 0x87c   : > { %v2569_v24 = vsub.f32 0.0, %v2565_v42 }
 0x87d   : > { %v2574_v60 = vsub.f32 0.0, %v2566_v6  ;;  %v2580_v29 = vsub.f32 0.0, %v2568_v23 }
 0x87e   : > { %v2570_v4 = vmul.f32 1.442695, %v2569_v24 }
 0x87f   : > { %v2575_v17 = vmul.f32 1.442695, %v2574_v60  ;;  %v2581_v47 = vmul.f32 1.442695, %v2580_v29 }
 0x880   : > { %3620 = vpow2.f32 %v2570_v4 }
 0x881   : > { %3622 = vpow2.f32 %v2575_v17 }
 0x882   : > { %3624 = vpow2.f32 %v2581_v47 }
 0x883   : > { %3626 = vtanh.f32 %v2567_v53 }
 0x88a   : > { %v3621_v25 = vpop.eup %3620 }
 0x88b   : > { %v3623_v31 = vpop.eup %3622  ;;  %v2572_v57 = vadd.f32 1.0, %v3621_v25 }
 0x88c   : > { %v2577_v28 = vadd.f32 1.0, %v3623_v31  ;;  %v3625_v8 = vpop.eup %3624 }
 0x88d   : > { %3628 = vrcp.f32 %v2572_v57  ;;  %v3627_v32 = vpop.eup %3626  ;;  %v2583_v27 = vadd.f32 1.0, %v3625_v8 }
 0x88e   : > { %3630 = vrcp.f32 %v2577_v28 }
 0x88f   : > { %3632 = vrcp.f32 %v2583_v27 }
 0x897   : > { %v3629_v50 = vpop.eup %3628 }
 0x898   : > { %v3631_v51 = vpop.eup %3630  ;;  %v2586_v13 = vmul.f32 %v3629_v50, %v3627_v32 }
 0x899   : > { %v2585_v15 = vmul.f32 %v3631_v51, %v2343_v26  ;;  %v3633_v9 = vpop.eup %3632 }
 0x89b   : > { %v2587_v16 = vadd.f32 %v2586_v13, %v2585_v15 }
 0x89d   : > { %3634 = vtanh.f32 %v2587_v16 }
 0x8a4   : > { %2604 = sbr.rel (!%p4881_p7) target bundleno = 2231 (0x8b7), region = 44 }
 0x8a7   : > { %v3635_v0 = vpop.eup %3634 }
 0x8a8   : > { %v2589_v46 = vmul.f32 %v3635_v0, %v3633_v9 }
 0x8aa   : > { %2591 = vst [vmem:[%s2590_s9] sm:$0xff] %v2589_v46  ;;  %2592 = vst [vmem:[%s277_s10] sm:$0xff] %v2589_v46 }
 0x8b1   : > { %v2648_v44 = vld [vmem:[%s4254_s8] sm:$0xff]  ;;  %v2650_v19 = vld [vmem:[%s4254_s8 + $0x8] sm:$0xff]  ;;  %v2652_v41 = vld [vmem:[%s4254_s8 + $0x10] sm:$0xff] }
 0x8b2   : > { %v2654_v49 = vld [vmem:[%s4254_s8 + $0x18] sm:$0xff]  ;;  %v2656_v55 = vld [vmem:[%s4254_s8 + $0x20] sm:$0xff]  ;;  %v2658_v14 = vld [vmem:[%s4254_s8 + $0x28] sm:$0xff]  ;;  %2649 = vst [vmem:[%s2606_s25] sm:$0xff] %v2648_v44 }
 0x8b3   : > { %2651 = vst [vmem:[%s2606_s25 + $0x10] sm:$0xff] %v2650_v19  ;;  %2653 = vst [vmem:[%s2606_s25 + $0x20] sm:$0xff] %v2652_v41  ;;  %v2660_v59 = vld [vmem:[%s4254_s8 + $0x30] sm:$0xff]  ;;  %v2662_v38 = vld [vmem:[%s4254_s8 + $0x38] sm:$0xff] }
 0x8b4   : > { %2655 = vst [vmem:[%s2606_s25 + $0x30] sm:$0xff] %v2654_v49  ;;  %2657 = vst [vmem:[%s2606_s25 + $0x40] sm:$0xff] %v2656_v55 }
 0x8b5   : > { %2659 = vst [vmem:[%s2606_s25 + $0x50] sm:$0xff] %v2658_v14  ;;  %2661 = vst [vmem:[%s2606_s25 + $0x60] sm:$0xff] %v2660_v59 }
 0x8b6   : > { %2663 = vst [vmem:[%s2606_s25 + $0x70] sm:$0xff] %v2662_v38 }
 0x8b7 PF: > { %s2870_s26 = sshll.u32 %s3790_s22, 7  ;;  %s2676_s14 = sshll.u32 %s277_s10, 4  ;;  %s2677_s14 = int_to_ptr.vmem [resolvable:$true] %s2676_s14 }
 0x8b8   : > { %s2674_s16 = scalar_lea.hbm %s4865_s5, %s2870_s26  ;;  %s3666_s29 = scalar_lea.vmem %s2677_s14, 128 }
 0x8b9   : > { %p3667_p8 = scmp.ne.s32.totalorder %s2677_s14, %s3666_s29  ;;  %p4882_p4 = scmp.ne.s32.totalorder %s4870_s30, 0 }
 0x8ba   : > { %s3738_s7 = smov [#allocation7]  }
 0x8bb   : > { %p3668_p9 = pnand %p3667_p8, %p4882_p4  ;;  %s3670_s9 = sshll.u32 %s3738_s7, 4  ;;  %s3671_s9 = int_to_ptr.vmem [resolvable:$false] %s3670_s9 }
 0x8bc   : > { %s3672_s8 = scalar_lea.vmem %s3671_s9, 256  ;;  %p3673_p11 = scmp.lt.s32.totalorder %s2677_s14, %s3671_s9 }
 0x8bd   : > { %p3669_p1 = pneg %p3668_p9  ;;  %p3674_p6 = scmp.lt.s32.totalorder %s3672_s8, %s3666_s29 }
 0x8bf   : > { %p3675_p12 = por %p3674_p6, %p3673_p11 }
 0x8c1   : > { %p3676_p13 = pnand %p3675_p12, %p3669_p1 }
 0x8c3   : > { %3679 = shalt.err (!%p3676_p13)
}
 0x8c4   : > { %s3680_s22 = scalar_lea.hbm %s2674_s16, 128  ;;  %s3684_s17 = scalar_lea.hbm %s4865_s5, 256 }
 0x8c5   : > { %p3681_p3 = scmp.ne.s32.totalorder %s2674_s16, %s3680_s22  ;;  %p3685_p2 = scmp.lt.u32.totalorder %s2674_s16, %s4865_s5 }
 0x8c6   : > { %p3686_p5 = scmp.lt.u32.totalorder %s3684_s17, %s3680_s22  ;;  %p3688_p8 = scmp.lt.u32.totalorder %s3680_s22, %s2674_s16 }
 0x8c7   : > { %p3682_p10 = pnand %p3681_p3, %p4882_p4 }
 0x8c8   : > { %p3687_p7 = por %p3686_p5, %p3685_p2 }
 0x8c9   : > { %p3683_p0 = pneg %p3682_p10 }
 0x8ca   : > { %p3689_p9 = por %p3688_p8, %p3687_p7 }
 0x8cc   : > { %p3690_p1 = pnand %p3689_p9, %p3683_p0 }
 0x8ce   : > { %3693 = shalt.err (!%p3690_p1)
}
 0x8cf   : > { %3461 = dma.vmem_to_hbm [thread:$0]  (%p4882_p4), %s2677_s14, 128, %s2674_s16, %s2598_s11  }
 0x8d0 PF: > { %s2695_s26 = sand.u32 1, %s3720_s18   ;;  %p4883_p11 = scmp.ne.s32.totalorder %s4871_s6, 0 }
 0x8d1   : > { %p4884_p6 = scmp.ge.s32.totalorder %s3732_s21, 2  ;;  %s2696_s15 = scalar_lea.sflag [#allocation5], %s2695_s26 }
 0x8d3   : > { %p3468_p12 = pnand %p4884_p6, %p4883_p11 }
 0x8d5   : > { %3715 = dma.done.wait (!%p3468_p12), %s2696_s15, 128  }
 0x8d6   : > { %3717 = vsyncadd (!%p3468_p12), %s2696_s15, 4294967168  ;;  %p19_p13 = scmp.ge.s32.totalorder %s3794_s24, 4   ;;  %s4885_s18 = smov %s3724_s19 }
 0x8d7   : > { %s4886_s19 = smov %s3728_s20  ;;  %s4887_s20 = smov %s3806_s27 }
 0x8d8   : > { %s4888_s21 = smov %s3794_s24  ;;  %21 = sbr.rel (!%p19_p13) target bundleno = 5 (0x5), region = 153 }
 0x8df   :  { %2701 = vsyncpa [#allocation4], 1 }
 0x8e0   :  { %2703 = vsyncpa [#allocation4 + $0x1], 1 }
 0x8e1   :  { %2704 = vsyncpa [#allocation5], 1 }
 0x8e2   :  { %2706 = vsyncpa [#allocation5 + $0x1], 1 }

// kernel: forward.10
= control target key start
LH: loop header
LB: loop body
LE: loop exit
PB: predicated region body
PF: predicated region fallthrough
CT: control target
= control target key end

     0   :  { %11 = vsyncpa [#allocation4], 0  ;;  %s5018_s0 = inlined_call_operand.vmem [shape: f32[64,256], index: 0, kind: input, shape index: {}]   ;;  %s5019_s1 = inlined_call_operand.vmem [shape: f32[2,256,512], index: 1, kind: input, shape index: {}]   ;;  %s5020_s2 = inlined_call_operand.vmem [shape: f32[2,128,512], index: 2, kind: input, shape index: {}]   ;;  %s5021_s3 = inlined_call_operand.hbm [shape: f32[2,1,512], index: 3, kind: input, shape index: {}]   ;;  %s5022_s4 = inlined_call_operand.hbm [shape: f32[8,8,256], index: 4, kind: output, shape index: {0}]   ;;  %s5023_s5 = inlined_call_operand.vmem [shape: f32[8,256], index: 5, kind: output, shape index: {1}]  }
   0x1   :  { %13 = vsyncpa [#allocation4 + $0x1], 0 }
   0x2   :  { %14 = vsyncpa [#allocation5], 0 }
   0x3   :  { %16 = vsyncpa [#allocation5 + $0x1], 0  ;;  %s3848_s18 = smov 0   ;;  %s3850_s19 = smov 0  }
   0x4   :  { %s3852_s20 = smov 0   ;;  %s3854_s21 = smov 0  }
   0x5 LB: > { %s3869_s22 = sadd.s32 4294967295, %s3810_s21   ;;  %s2843_s23 = sadd.s32 4294967294, %s3810_s21   ;;  %s3810_s21 = sphi %s3854_s21, %s5047_s21   ;;  %s3806_s20 = sphi %s3852_s20, %s5046_s20   ;;  %s3802_s19 = sphi %s3850_s19, %s5045_s19   ;;  %s3798_s18 = sphi %s3848_s18, %s5044_s18  }
   0x6   : > { %s3873_s24 = sadd.s32 1, %s3810_s21   ;;  %s102_s25 = sadd.s32 1, %s3806_s20 }
   0x7   : > { %s99_s26 = ssub.s32 %s3810_s21, %s3873_s24  ;;  %p109_p0 = scmp.ne.s32.totalorder %s3806_s20, %s3802_s19 }
   0x8   : > { %p100_p1 = scmp.eq.s32.totalorder %s99_s26, 0  ;;  %p110_p2 = scmp.eq.s32.totalorder %s3810_s21, 0 }
   0x9   : > { %p115_p3 = scmp.ne.s32.totalorder %s3802_s19, %s3798_s18  ;;  %p5024_p4 = scmp.eq.s32.totalorder %s3869_s22, 0 }
   0xa   : > { %s3885_s27 = scalar_select %p100_p1, %s3806_s20, %s102_s25  }
   0xb   : > { %p3887_p5 = por %p110_p2, %p109_p0  ;;  %p3893_p6 = por %p5024_p4, %p115_p3 }
   0xc   : > { %p139_p7 = scmp.eq.s32.totalorder %s3869_s22, 1  ;;  %p145_p8 = scmp.eq.s32.totalorder %s2843_s23, 1 }
   0xd   : > { %p3548_p10 = scmp.lt.s32.totalorder %s3810_s21, 2  ;;  %s210_s7 = sand.u32 1, %s3806_s20  }
   0xe   : > { %p3900_p11 = por %p139_p7, %p109_p0  ;;  %p3904_p12 = por %p145_p8, %p115_p3 }
   0xf   : > { %s2885_s8 = sshll.u32 %s3810_s21, 6  ;;  %s2846_s9 = sshll.u32 %s210_s7, 2 }
  0x10   : > { %s5028_s30 = scalar_select %p3900_p11, 1, 0 }
  0x11   : > { %s5029_s6 = scalar_select %p3904_p12, 1, 0 }
  0x12   : > { %s3913_s12 = scalar_lea.hbm %s5021_s3, %s2885_s8  ;;  %s214_s13 = scalar_lea.vmem [#allocation3], %s2846_s9 }
  0x13   : > { %s222_s14 = sshll.u32 %s214_s13, 4  ;;  %p3917_p13 = pnand %p3548_p10, %p3887_p5  ;;  %s3921_s14 = int_to_ptr.vmem [resolvable:$true] %s222_s14 }
  0x14   : > { %s211_s16 = scalar_lea.sflag [#allocation4], %s210_s7  ;;  %s3714_s17 = scalar_lea.hbm %s3913_s12, 64 }
  0x15   : > { %p3715_p2 = scmp.ne.s32.totalorder %s3913_s12, %s3714_s17  ;;  %p3716_p3 = pneg %p3917_p13 }
  0x16   : > { %s3719_s26 = scalar_lea.hbm %s5021_s3, 128  ;;  %p3720_p5 = scmp.lt.u32.totalorder %s3913_s12, %s5021_s3 }
  0x17   : > { %p3717_p7 = pnand %p3716_p3, %p3715_p2  ;;  %p3721_p10 = scmp.lt.u32.totalorder %s3719_s26, %s3714_s17 }
  0x18   : > { %p3723_p4 = scmp.lt.u32.totalorder %s3714_s17, %s3913_s12 }
  0x19   : > { %p3718_p8 = pneg %p3717_p7  ;;  %p3722_p9 = por %p3721_p10, %p3720_p5 }
  0x1b   : > { %p3724_p0 = por %p3723_p4, %p3722_p9 }
  0x1d   : > { %p3725_p1 = pnand %p3724_p0, %p3718_p8 }
  0x1f   : > { %3728 = shalt.err (!%p3725_p1)
}
  0x20   : > { %s3729_s7 = scalar_lea.vmem %s3921_s14, 64  ;;  %s3812_s9 = smov [#allocation3]  }
  0x21   : > { %p3730_p2 = scmp.ne.s32.totalorder %s3921_s14, %s3729_s7  ;;  %s3734_s10 = sshll.u32 %s3812_s9, 4  ;;  %s3735_s10 = int_to_ptr.vmem [resolvable:$false] %s3734_s10 }
  0x22   : > { %s3736_s11 = scalar_lea.vmem %s3735_s10, 128  ;;  %p3737_p11 = scmp.lt.s32.totalorder %s3921_s14, %s3735_s10 }
  0x23   : > { %p3732_p7 = pnand %p3730_p2, %p3716_p3  ;;  %p3738_p5 = scmp.lt.s32.totalorder %s3736_s11, %s3729_s7 }
  0x25   : > { %p3733_p12 = pneg %p3732_p7  ;;  %p3739_p10 = por %p3738_p5, %p3737_p11 }
  0x27   : > { %p3740_p4 = pnand %p3739_p10, %p3733_p12 }
  0x29   : > { %3743 = shalt.err (!%p3740_p4)
}
  0x2a   : > { %3543 = dma.hbm_to_vmem [thread:$0]  (!%p3917_p13), %s3913_s12, 64, %s3921_s14, %s211_s16  }
  0x2b   : > { %p5031_p9 = scmp.lt.s32.totalorder %s3810_s21, 3  ;;  %p5032_p0 = scmp.ge.s32.totalorder %s3810_s21, 1 }
  0x2d   : > { %p228_p1 = pnand %p5032_p0, %p5031_p9 }
  0x2e   : > { %s3955_s13 = sand.u32 (!%p228_p1), 1, %s3802_s19  }
  0x2f   : > { %231 = sbr.rel (%p228_p1) target bundleno = 2265 (0x8d9), region = 36  ;;  %s2850_s17 = sshll.u32 (!%p228_p1), %s3955_s13, 2 }
  0x30   : > { %s234_s23 = scalar_lea.sflag (!%p228_p1), [#allocation4], %s3955_s13  ;;  %s3959_s25 = scalar_lea.vmem (!%p228_p1), [#allocation3], %s2850_s17 }
  0x36   : > { %3789 = dma.done.wait (%p3893_p6), %s234_s23, 64  }
  0x37   : > { %3791 = vsyncadd (%p3893_p6), %s234_s23, 4294967232  ;;  %p278_p11 = scmp.lt.s32.totalorder %s3869_s22, 1  ;;  %p5033_p6 = scmp.eq.s32.totalorder %s3869_s22, 0 }
  0x38   : > { %s2851_s7 = sshll.u32 %s3955_s13, 6  ;;  %p5041_p4 = scmp.ne.s32.totalorder %s5028_s30, 0 }
  0x39   : > { %s3967_s12 = scalar_select %p278_p11, %s3869_s22, 1 }
  0x3a   : > { %s4409_s9 = scalar_lea.vmem [#allocation6], %s2851_s7  ;;  %p5034_p12 = pmov %p5033_p6 }
  0x3b   : > { %s2886_s14 = sshll.u32 %s3967_s12, 10  ;;  %s2887_s8 = sshll.u32 %s3967_s12, 9 }
  0x3c   : > { %s3973_s26 = scalar_lea.vmem %s5019_s1, %s2886_s14  ;;  %s4104_s10 = scalar_lea.vmem %s5020_s2, %s2887_s8 }
  0x3d   : > { %v309_v0 = vld [vmem:[%s3973_s26 + $0x8] sm:$0xff]  ;;  %v311_v2 = vld [vmem:[%s3973_s26 + $0x18] sm:$0xff]  ;;  %v308_v5 = vld [vmem:[%s3973_s26] sm:$0xff]  ;;  %s4448_s17 = scalar_select %p5034_p12, 1, 6 }
  0x3e   : > { %v313_v1 = vld [vmem:[%s3973_s26 + $0x28] sm:$0xff]  ;;  %v315_v4 = vld [vmem:[%s3973_s26 + $0x38] sm:$0xff]  ;;  %v312_v6 = vld [vmem:[%s3973_s26 + $0x20] sm:$0xff]  ;;  %p5035_p13 = pmov %p5033_p6  ;;  %p5036_p3 = pmov %p5033_p6 }
  0x3f   : > { %v2896_v3 = vpack.c.bf16 %v313_v1, %v309_v0  ;;  %v2960_v7 = vpack.c.bf16 %v315_v4, %v311_v2  ;;  %v2898_v8 = vpack.c.bf16 %v312_v6, %v308_v5  ;;  %v310_v9 = vld [vmem:[%s3973_s26 + $0x10] sm:$0xff]  ;;  %v317_v11 = vld [vmem:[%s3973_s26 + $0x48] sm:$0xff]  ;;  %v319_v14 = vld [vmem:[%s3973_s26 + $0x58] sm:$0xff]  ;;  %s2860_s23 = sshll.u32 %s4448_s17, 3 }
  0x40   : > { %v314_v10 = vld [vmem:[%s3973_s26 + $0x30] sm:$0xff]  ;;  %v321_v13 = vld [vmem:[%s3973_s26 + $0x68] sm:$0xff]  ;;  %v323_v15 = vld [vmem:[%s3973_s26 + $0x78] sm:$0xff]  ;;  %s963_s14 = sshra.s32 %s2860_s23, 3  ;;  %p5037_p8 = pmov %p5036_p3 }
  0x41   : > { %2897 = vmatprep.subr.bf16.mxu0 %v2896_v3  ;;  %v2962_v12 = vpack.c.bf16 %v314_v10, %v310_v9  ;;  %2961 = vmatprep.subr.bf16.mxu1 %v2960_v7  ;;  %v2900_v16 = vpack.c.bf16 %v321_v13, %v317_v11  ;;  %v2964_v17 = vpack.c.bf16 %v323_v15, %v319_v14  ;;  %v316_v18 = vld [vmem:[%s3973_s26 + $0x40] sm:$0xff]  ;;  %v318_v20 = vld [vmem:[%s3973_s26 + $0x50] sm:$0xff]  ;;  %v325_v23 = vld [vmem:[%s3973_s26 + $0x88] sm:$0xff]  ;;  %s2889_s15 = sshll.u32 %s963_s14, 5  ;;  %p5038_p2 = pmov %p5036_p3 }
  0x42   : > { %2899 = vmatpush1.bf16.msra.mxu0 %v2898_v8  ;;  %v320_v19 = vld [vmem:[%s3973_s26 + $0x60] sm:$0xff]  ;;  %v322_v22 = vld [vmem:[%s3973_s26 + $0x70] sm:$0xff]  ;;  %v329_v24 = vld [vmem:[%s3973_s26 + $0xa8] sm:$0xff]  ;;  %s967_s16 = scalar_lea.vmem [#allocation2], %s2889_s15 }
  0x43   : > { %2963 = vmatpush1.bf16.msra.mxu1 %v2962_v12  ;;  %v2902_v21 = vpack.c.bf16 %v320_v19, %v316_v18  ;;  %2901 = vmatprep.subr.bf16.mxu0 %v2900_v16  ;;  %v2966_v25 = vpack.c.bf16 %v322_v22, %v318_v20  ;;  %v2904_v26 = vpack.c.bf16 %v329_v24, %v325_v23  ;;  %v327_v27 = vld [vmem:[%s3973_s26 + $0x98] sm:$0xff]  ;;  %v324_v29 = vld [vmem:[%s3973_s26 + $0x80] sm:$0xff]  ;;  %v326_v32 = vld [vmem:[%s3973_s26 + $0x90] sm:$0xff]  ;;  %s4674_s17 = scalar_select %p5036_p3, 3, 4 }
  0x44   : > { %2965 = vmatprep.subr.bf16.mxu1 %v2964_v17  ;;  %v331_v28 = vld [vmem:[%s3973_s26 + $0xb8] sm:$0xff]  ;;  %v328_v31 = vld [vmem:[%s3973_s26 + $0xa0] sm:$0xff]  ;;  %v330_v33 = vld [vmem:[%s3973_s26 + $0xb0] sm:$0xff]  ;;  %p5039_p7 = pmov %p5038_p2  ;;  %p5040_p5 = pmov %p5038_p2 }
  0x45   : > { %v2968_v30 = vpack.c.bf16 %v331_v28, %v327_v27  ;;  %v2906_v34 = vpack.c.bf16 %v328_v31, %v324_v29  ;;  %v333_v35 = vld [vmem:[%s3973_s26 + $0xc8] sm:$0xff]  ;;  %v335_v37 = vld [vmem:[%s3973_s26 + $0xd8] sm:$0xff]  ;;  %v2970_v38 = vpack.c.bf16 %v330_v33, %v326_v32  ;;  %v332_v41 = vld [vmem:[%s3973_s26 + $0xc0] sm:$0xff] }
  0x46   : > { %2903 = vmatpush1.bf16.msra.mxu0 %v2902_v21  ;;  %v337_v36 = vld [vmem:[%s3973_s26 + $0xe8] sm:$0xff]  ;;  %v339_v40 = vld [vmem:[%s3973_s26 + $0xf8] sm:$0xff]  ;;  %v336_v42 = vld [vmem:[%s3973_s26 + $0xe0] sm:$0xff] }
  0x47   : > { %2967 = vmatpush1.bf16.msra.mxu1 %v2966_v25  ;;  %2905 = vmatprep.subr.bf16.mxu0 %v2904_v26  ;;  %v2908_v39 = vpack.c.bf16 %v337_v36, %v333_v35  ;;  %v2972_v43 = vpack.c.bf16 %v339_v40, %v335_v37  ;;  %v334_v44 = vld [vmem:[%s3973_s26 + $0xd0] sm:$0xff]  ;;  %v341_v46 = vld [vmem:[%s3973_s26 + $0x108] sm:$0xff]  ;;  %v343_v48 = vld [vmem:[%s3973_s26 + $0x118] sm:$0xff]  ;;  %v2910_v50 = vpack.c.bf16 %v336_v42, %v332_v41 }
  0x48   : > { %2969 = vmatprep.subr.bf16.mxu1 %v2968_v30  ;;  %v338_v45 = vld [vmem:[%s3973_s26 + $0xf0] sm:$0xff]  ;;  %v345_v47 = vld [vmem:[%s3973_s26 + $0x128] sm:$0xff]  ;;  %v347_v49 = vld [vmem:[%s3973_s26 + $0x138] sm:$0xff] }
  0x49   : > { %v2974_v51 = vpack.c.bf16 %v338_v45, %v334_v44  ;;  %v2912_v52 = vpack.c.bf16 %v345_v47, %v341_v46  ;;  %v340_v53 = vld [vmem:[%s3973_s26 + $0x100] sm:$0xff]  ;;  %v342_v55 = vld [vmem:[%s3973_s26 + $0x110] sm:$0xff]  ;;  %v2976_v56 = vpack.c.bf16 %v347_v49, %v343_v48  ;;  %v349_v58 = vld [vmem:[%s3973_s26 + $0x148] sm:$0xff] }
  0x4a   : > { %2907 = vmatpush1.bf16.msra.mxu0 %v2906_v34  ;;  %v344_v54 = vld [vmem:[%s3973_s26 + $0x120] sm:$0xff]  ;;  %v346_v57 = vld [vmem:[%s3973_s26 + $0x130] sm:$0xff]  ;;  %v353_v59 = vld [vmem:[%s3973_s26 + $0x168] sm:$0xff] }
  0x4b   : > { %2971 = vmatpush1.bf16.msra.mxu1 %v2970_v38  ;;  %2909 = vmatprep.subr.bf16.mxu0 %v2908_v39  ;;  %v351_v60 = vld [vmem:[%s3973_s26 + $0x158] sm:$0xff]  ;;  %v2914_v62 = vpack.c.bf16 %v344_v54, %v340_v53  ;;  %v2978_v63 = vpack.c.bf16 %v346_v57, %v342_v55  ;;  %v2916_v0 = vpack.c.bf16 %v353_v59, %v349_v58  ;;  %v348_v1 = vld [vmem:[%s3973_s26 + $0x140] sm:$0xff]  ;;  %v350_v3 = vld [vmem:[%s3973_s26 + $0x150] sm:$0xff] }
  0x4c   : > { %2973 = vmatprep.subr.bf16.mxu1 %v2972_v43  ;;  %v355_v61 = vld [vmem:[%s3973_s26 + $0x178] sm:$0xff]  ;;  %v352_v2 = vld [vmem:[%s3973_s26 + $0x160] sm:$0xff]  ;;  %v354_v5 = vld [vmem:[%s3973_s26 + $0x170] sm:$0xff] }
  0x4d   : > { %v2980_v4 = vpack.c.bf16 %v355_v61, %v351_v60  ;;  %v357_v6 = vld [vmem:[%s3973_s26 + $0x188] sm:$0xff]  ;;  %v359_v8 = vld [vmem:[%s3973_s26 + $0x198] sm:$0xff]  ;;  %v2918_v10 = vpack.c.bf16 %v352_v2, %v348_v1  ;;  %v2982_v11 = vpack.c.bf16 %v354_v5, %v350_v3  ;;  %v356_v13 = vld [vmem:[%s3973_s26 + $0x180] sm:$0xff] }
  0x4e   : > { %2911 = vmatpush1.bf16.msra.mxu0 %v2910_v50  ;;  %v361_v7 = vld [vmem:[%s3973_s26 + $0x1a8] sm:$0xff]  ;;  %v363_v9 = vld [vmem:[%s3973_s26 + $0x1b8] sm:$0xff]  ;;  %v360_v14 = vld [vmem:[%s3973_s26 + $0x1a0] sm:$0xff] }
  0x4f   : > { %2975 = vmatpush1.bf16.msra.mxu1 %v2974_v51  ;;  %2913 = vmatprep.subr.bf16.mxu0 %v2912_v52  ;;  %v2920_v12 = vpack.c.bf16 %v361_v7, %v357_v6  ;;  %v358_v15 = vld [vmem:[%s3973_s26 + $0x190] sm:$0xff]  ;;  %v2984_v16 = vpack.c.bf16 %v363_v9, %v359_v8  ;;  %v365_v18 = vld [vmem:[%s3973_s26 + $0x1c8] sm:$0xff]  ;;  %v367_v20 = vld [vmem:[%s3973_s26 + $0x1d8] sm:$0xff]  ;;  %v2922_v22 = vpack.c.bf16 %v360_v14, %v356_v13 }
  0x50   : > { %2977 = vmatprep.subr.bf16.mxu1 %v2976_v56  ;;  %v362_v17 = vld [vmem:[%s3973_s26 + $0x1b0] sm:$0xff]  ;;  %v369_v19 = vld [vmem:[%s3973_s26 + $0x1e8] sm:$0xff]  ;;  %v371_v21 = vld [vmem:[%s3973_s26 + $0x1f8] sm:$0xff] }
  0x51   : > { %v2986_v23 = vpack.c.bf16 %v362_v17, %v358_v15  ;;  %v2924_v24 = vpack.c.bf16 %v369_v19, %v365_v18  ;;  %v364_v25 = vld [vmem:[%s3973_s26 + $0x1c0] sm:$0xff]  ;;  %v366_v27 = vld [vmem:[%s3973_s26 + $0x1d0] sm:$0xff]  ;;  %v2988_v28 = vpack.c.bf16 %v371_v21, %v367_v20  ;;  %v373_v30 = vld [vmem:[%s3973_s26 + $0x208] sm:$0xff] }
  0x52   : > { %2915 = vmatpush1.bf16.msra.mxu0 %v2914_v62  ;;  %v368_v26 = vld [vmem:[%s3973_s26 + $0x1e0] sm:$0xff]  ;;  %v370_v29 = vld [vmem:[%s3973_s26 + $0x1f0] sm:$0xff]  ;;  %v377_v31 = vld [vmem:[%s3973_s26 + $0x228] sm:$0xff] }
  0x53   : > { %2979 = vmatpush1.bf16.msra.mxu1 %v2978_v63  ;;  %2917 = vmatprep.subr.bf16.mxu0 %v2916_v0  ;;  %v375_v32 = vld [vmem:[%s3973_s26 + $0x218] sm:$0xff]  ;;  %v2926_v34 = vpack.c.bf16 %v368_v26, %v364_v25  ;;  %v2990_v35 = vpack.c.bf16 %v370_v29, %v366_v27  ;;  %v2928_v36 = vpack.c.bf16 %v377_v31, %v373_v30  ;;  %v372_v37 = vld [vmem:[%s3973_s26 + $0x200] sm:$0xff]  ;;  %v374_v39 = vld [vmem:[%s3973_s26 + $0x210] sm:$0xff] }
  0x54   : > { %2981 = vmatprep.subr.bf16.mxu1 %v2980_v4  ;;  %v379_v33 = vld [vmem:[%s3973_s26 + $0x238] sm:$0xff]  ;;  %v376_v38 = vld [vmem:[%s3973_s26 + $0x220] sm:$0xff]  ;;  %v378_v41 = vld [vmem:[%s3973_s26 + $0x230] sm:$0xff] }
  0x55   : > { %v2992_v40 = vpack.c.bf16 %v379_v33, %v375_v32  ;;  %v381_v42 = vld [vmem:[%s3973_s26 + $0x248] sm:$0xff]  ;;  %v383_v44 = vld [vmem:[%s3973_s26 + $0x258] sm:$0xff]  ;;  %v2930_v46 = vpack.c.bf16 %v376_v38, %v372_v37  ;;  %v2994_v47 = vpack.c.bf16 %v378_v41, %v374_v39  ;;  %v380_v49 = vld [vmem:[%s3973_s26 + $0x240] sm:$0xff] }
  0x56   : > { %2919 = vmatpush1.bf16.msra.mxu0 %v2918_v10  ;;  %v385_v43 = vld [vmem:[%s3973_s26 + $0x268] sm:$0xff]  ;;  %v387_v45 = vld [vmem:[%s3973_s26 + $0x278] sm:$0xff]  ;;  %v384_v50 = vld [vmem:[%s3973_s26 + $0x260] sm:$0xff] }
  0x57   : > { %2983 = vmatpush1.bf16.msra.mxu1 %v2982_v11  ;;  %2921 = vmatprep.subr.bf16.mxu0 %v2920_v12  ;;  %v2932_v48 = vpack.c.bf16 %v385_v43, %v381_v42  ;;  %v382_v51 = vld [vmem:[%s3973_s26 + $0x250] sm:$0xff]  ;;  %v2996_v52 = vpack.c.bf16 %v387_v45, %v383_v44  ;;  %v389_v54 = vld [vmem:[%s3973_s26 + $0x288] sm:$0xff]  ;;  %v391_v56 = vld [vmem:[%s3973_s26 + $0x298] sm:$0xff]  ;;  %v2934_v58 = vpack.c.bf16 %v384_v50, %v380_v49 }
  0x58   : > { %2985 = vmatprep.subr.bf16.mxu1 %v2984_v16  ;;  %v386_v53 = vld [vmem:[%s3973_s26 + $0x270] sm:$0xff]  ;;  %v393_v55 = vld [vmem:[%s3973_s26 + $0x2a8] sm:$0xff]  ;;  %v395_v57 = vld [vmem:[%s3973_s26 + $0x2b8] sm:$0xff] }
  0x59   : > { %v2998_v59 = vpack.c.bf16 %v386_v53, %v382_v51  ;;  %v2936_v60 = vpack.c.bf16 %v393_v55, %v389_v54  ;;  %v388_v61 = vld [vmem:[%s3973_s26 + $0x280] sm:$0xff]  ;;  %v390_v63 = vld [vmem:[%s3973_s26 + $0x290] sm:$0xff]  ;;  %v3000_v0 = vpack.c.bf16 %v395_v57, %v391_v56  ;;  %v397_v2 = vld [vmem:[%s3973_s26 + $0x2c8] sm:$0xff] }
  0x5a   : > { %2923 = vmatpush1.bf16.msra.mxu0 %v2922_v22  ;;  %v392_v62 = vld [vmem:[%s3973_s26 + $0x2a0] sm:$0xff]  ;;  %v394_v1 = vld [vmem:[%s3973_s26 + $0x2b0] sm:$0xff]  ;;  %v401_v3 = vld [vmem:[%s3973_s26 + $0x2e8] sm:$0xff] }
  0x5b   : > { %2987 = vmatpush1.bf16.msra.mxu1 %v2986_v23  ;;  %2925 = vmatprep.subr.bf16.mxu0 %v2924_v24  ;;  %v399_v4 = vld [vmem:[%s3973_s26 + $0x2d8] sm:$0xff]  ;;  %v2938_v6 = vpack.c.bf16 %v392_v62, %v388_v61  ;;  %v396_v7 = vld [vmem:[%s3973_s26 + $0x2c0] sm:$0xff]  ;;  %v3002_v8 = vpack.c.bf16 %v394_v1, %v390_v63  ;;  %v2940_v9 = vpack.c.bf16 %v401_v3, %v397_v2  ;;  %v398_v11 = vld [vmem:[%s3973_s26 + $0x2d0] sm:$0xff] }
  0x5c   : > { %2989 = vmatprep.subr.bf16.mxu1 %v2988_v28  ;;  %v403_v5 = vld [vmem:[%s3973_s26 + $0x2f8] sm:$0xff]  ;;  %v400_v10 = vld [vmem:[%s3973_s26 + $0x2e0] sm:$0xff]  ;;  %v402_v12 = vld [vmem:[%s3973_s26 + $0x2f0] sm:$0xff] }
  0x5d   : > { %v3004_v13 = vpack.c.bf16 %v403_v5, %v399_v4  ;;  %v405_v14 = vld [vmem:[%s3973_s26 + $0x308] sm:$0xff]  ;;  %v407_v17 = vld [vmem:[%s3973_s26 + $0x318] sm:$0xff]  ;;  %v2942_v19 = vpack.c.bf16 %v400_v10, %v396_v7  ;;  %v3006_v20 = vpack.c.bf16 %v402_v12, %v398_v11  ;;  %v404_v22 = vld [vmem:[%s3973_s26 + $0x300] sm:$0xff] }
  0x5e   : > { %2927 = vmatpush1.bf16.msra.mxu0 %v2926_v34  ;;  %v409_v15 = vld [vmem:[%s3973_s26 + $0x328] sm:$0xff]  ;;  %v411_v18 = vld [vmem:[%s3973_s26 + $0x338] sm:$0xff]  ;;  %v408_v23 = vld [vmem:[%s3973_s26 + $0x320] sm:$0xff] }
  0x5f   : > { %2991 = vmatpush1.bf16.msra.mxu1 %v2990_v35  ;;  %2929 = vmatprep.subr.bf16.mxu0 %v2928_v36  ;;  %v293_v16 = vld [vmem:[%s5018_s0 + $0x8] sm:$0xff]  ;;  %v2944_v21 = vpack.c.bf16 %v409_v15, %v405_v14  ;;  %v406_v24 = vld [vmem:[%s3973_s26 + $0x310] sm:$0xff]  ;;  %v3008_v25 = vpack.c.bf16 %v411_v18, %v407_v17  ;;  %v415_v29 = vld [vmem:[%s3973_s26 + $0x358] sm:$0xff]  ;;  %v2946_v31 = vpack.c.bf16 %v408_v23, %v404_v22 }
  0x60   : > { %2993 = vmatprep.subr.bf16.mxu1 %v2992_v40  ;;  %522 = vmatprep.mubr.f32.mxu0 %v293_v16  ;;  %v410_v26 = vld [vmem:[%s3973_s26 + $0x330] sm:$0xff]  ;;  %v413_v27 = vld [vmem:[%s3973_s26 + $0x348] sm:$0xff]  ;;  %v419_v30 = vld [vmem:[%s3973_s26 + $0x378] sm:$0xff] }
  0x61   : > { %635 = vmatprep.mubr.f32.mxu1 %v293_v16  ;;  %v417_v28 = vld [vmem:[%s3973_s26 + $0x368] sm:$0xff]  ;;  %v3010_v32 = vpack.c.bf16 %v410_v26, %v406_v24  ;;  %v412_v34 = vld [vmem:[%s3973_s26 + $0x340] sm:$0xff]  ;;  %v414_v36 = vld [vmem:[%s3973_s26 + $0x350] sm:$0xff]  ;;  %v3012_v37 = vpack.c.bf16 %v419_v30, %v415_v29 }
  0x62   : > { %2931 = vmatpush1.bf16.msra.mxu0 %v2930_v46  ;;  %v2948_v33 = vpack.c.bf16 %v417_v28, %v413_v27  ;;  %v416_v35 = vld [vmem:[%s3973_s26 + $0x360] sm:$0xff]  ;;  %v418_v38 = vld [vmem:[%s3973_s26 + $0x370] sm:$0xff]  ;;  %v421_v39 = vld [vmem:[%s3973_s26 + $0x388] sm:$0xff] }
  0x63   : > { %2995 = vmatpush1.bf16.msra.mxu1 %v2994_v47  ;;  %2933 = vmatprep.subr.bf16.mxu0 %v2932_v48  ;;  %v425_v40 = vld [vmem:[%s3973_s26 + $0x3a8] sm:$0xff]  ;;  %v423_v41 = vld [vmem:[%s3973_s26 + $0x398] sm:$0xff]  ;;  %v2950_v43 = vpack.c.bf16 %v416_v35, %v412_v34  ;;  %v3014_v44 = vpack.c.bf16 %v418_v38, %v414_v36  ;;  %v420_v46 = vld [vmem:[%s3973_s26 + $0x380] sm:$0xff] }
  0x64   : > { %2997 = vmatprep.subr.bf16.mxu1 %v2996_v52  ;;  %v427_v42 = vld [vmem:[%s3973_s26 + $0x3b8] sm:$0xff]  ;;  %v2952_v45 = vpack.c.bf16 %v425_v40, %v421_v39  ;;  %v424_v47 = vld [vmem:[%s3973_s26 + $0x3a0] sm:$0xff]  ;;  %v422_v48 = vld [vmem:[%s3973_s26 + $0x390] sm:$0xff] }
  0x65   : > { %v3016_v49 = vpack.c.bf16 %v427_v42, %v423_v41  ;;  %v426_v50 = vld [vmem:[%s3973_s26 + $0x3b0] sm:$0xff]  ;;  %v429_v51 = vld [vmem:[%s3973_s26 + $0x3c8] sm:$0xff]  ;;  %v431_v53 = vld [vmem:[%s3973_s26 + $0x3d8] sm:$0xff]  ;;  %v2954_v55 = vpack.c.bf16 %v424_v47, %v420_v46 }
  0x66   : > { %2935 = vmatpush1.bf16.msra.mxu0 %v2934_v58  ;;  %v433_v52 = vld [vmem:[%s3973_s26 + $0x3e8] sm:$0xff]  ;;  %v435_v54 = vld [vmem:[%s3973_s26 + $0x3f8] sm:$0xff]  ;;  %v3018_v56 = vpack.c.bf16 %v426_v50, %v422_v48  ;;  %v428_v58 = vld [vmem:[%s3973_s26 + $0x3c0] sm:$0xff] }
  0x67   : > { %2999 = vmatpush1.bf16.msra.mxu1 %v2998_v59  ;;  %2937 = vmatprep.subr.bf16.mxu0 %v2936_v60  ;;  %v2956_v57 = vpack.c.bf16 %v433_v52, %v429_v51  ;;  %v432_v59 = vld [vmem:[%s3973_s26 + $0x3e0] sm:$0xff]  ;;  %v430_v60 = vld [vmem:[%s3973_s26 + $0x3d0] sm:$0xff]  ;;  %v3020_v61 = vpack.c.bf16 %v435_v54, %v431_v53  ;;  %v729_v63 = vld [vmem:[%s4104_s10 + $0x8] sm:$0xff] }
  0x68   : > { %3001 = vmatprep.subr.bf16.mxu1 %v3000_v0  ;;  %v434_v62 = vld [vmem:[%s3973_s26 + $0x3f0] sm:$0xff]  ;;  %v733_v0 = vld [vmem:[%s4104_s10 + $0x28] sm:$0xff]  ;;  %v731_v1 = vld [vmem:[%s4104_s10 + $0x18] sm:$0xff]  ;;  %v2958_v3 = vpack.c.bf16 %v432_v59, %v428_v58 }
  0x69   : > { %v735_v2 = vld [vmem:[%s4104_s10 + $0x38] sm:$0xff]  ;;  %v3022_v4 = vpack.c.bf16 %v434_v62, %v430_v60  ;;  %v4116_v5 = vpack.c.bf16 %v733_v0, %v729_v63  ;;  %v732_v7 = vld [vmem:[%s4104_s10 + $0x20] sm:$0xff]  ;;  %v734_v10 = vld [vmem:[%s4104_s10 + $0x30] sm:$0xff] }
  0x6a   : > { %2939 = vmatpush1.bf16.msra.mxu0 %v2938_v6  ;;  %v728_v6 = vld [vmem:[%s4104_s10] sm:$0xff]  ;;  %v737_v11 = vld [vmem:[%s4104_s10 + $0x48] sm:$0xff]  ;;  %v739_v14 = vld [vmem:[%s4104_s10 + $0x58] sm:$0xff] }
  0x6b   : > { %3003 = vmatpush1.bf16.msra.mxu1 %v3002_v8  ;;  %2941 = vmatprep.subr.bf16.mxu0 %v2940_v9  ;;  %v4120_v8 = vpack.c.bf16 %v735_v2, %v731_v1  ;;  %v730_v9 = vld [vmem:[%s4104_s10 + $0x10] sm:$0xff]  ;;  %v741_v12 = vld [vmem:[%s4104_s10 + $0x68] sm:$0xff]  ;;  %v743_v15 = vld [vmem:[%s4104_s10 + $0x78] sm:$0xff]  ;;  %v4135_v17 = vpack.c.bf16 %v732_v7, %v728_v6 }
  0x6c   : > { %3005 = vmatprep.subr.bf16.mxu1 %v3004_v13  ;;  %v292_v13 = vld [vmem:[%s5018_s0] sm:$0xff]  ;;  %v295_v16 = vld [vmem:[%s5018_s0 + $0x18] sm:$0xff]  ;;  %v4138_v18 = vpack.c.bf16 %v734_v10, %v730_v9  ;;  %v738_v22 = vld [vmem:[%s4104_s10 + $0x50] sm:$0xff]  ;;  %v4145_v23 = vpack.c.bf16 %v743_v15, %v739_v14 }
  0x6d   : > { %v742_v24 = vld [vmem:[%s4104_s10 + $0x70] sm:$0xff]  ;;  %v749_v26 = vld [vmem:[%s4104_s10 + $0xa8] sm:$0xff]  ;;  %v747_v28 = vld [vmem:[%s4104_s10 + $0x98] sm:$0xff] }
  0x6e   : > { %2943 = vmatpush1.bf16.msra.mxu0 %v2942_v19  ;;  %v4140_v19 = vpack.c.bf16 %v741_v12, %v737_v11  ;;  %v294_v27 = vld [vmem:[%s5018_s0 + $0x10] sm:$0xff]  ;;  %v751_v29 = vld [vmem:[%s4104_s10 + $0xb8] sm:$0xff]  ;;  %v297_v30 = vld [vmem:[%s5018_s0 + $0x28] sm:$0xff] }
  0x6f   : > { %3007 = vmatpush1.bf16.msra.mxu1 %v3006_v20  ;;  %2945 = vmatprep.subr.bf16.mxu0 %v2944_v21  ;;  %v736_v20 = vld [vmem:[%s4104_s10 + $0x40] sm:$0xff]  ;;  %v746_v36 = vld [vmem:[%s4104_s10 + $0x90] sm:$0xff]  ;;  %v753_v39 = vld [vmem:[%s4104_s10 + $0xc8] sm:$0xff] }
  0x70   : > { %3009 = vmatprep.subr.bf16.mxu1 %v3008_v25  ;;  %v740_v21 = vld [vmem:[%s4104_s10 + $0x60] sm:$0xff]  ;;  %v745_v25 = vld [vmem:[%s4104_s10 + $0x88] sm:$0xff]  ;;  %v750_v38 = vld [vmem:[%s4104_s10 + $0xb0] sm:$0xff] }
  0x71   : > { %v744_v34 = vld [vmem:[%s4104_s10 + $0x80] sm:$0xff]  ;;  %v757_v40 = vld [vmem:[%s4104_s10 + $0xe8] sm:$0xff]  ;;  %v755_v42 = vld [vmem:[%s4104_s10 + $0xd8] sm:$0xff]  ;;  %v4189_v46 = vpack.c.bf16 %v750_v38, %v746_v36 }
  0x72   : > { %2947 = vmatpush1.bf16.msra.mxu0 %v2946_v31  ;;  %v4159_v31 = vpack.c.bf16 %v740_v21, %v736_v20  ;;  %v748_v35 = vld [vmem:[%s4104_s10 + $0xa0] sm:$0xff]  ;;  %v4191_v47 = vpack.c.bf16 %v757_v40, %v753_v39  ;;  %v754_v50 = vld [vmem:[%s4104_s10 + $0xd0] sm:$0xff]  ;;  %v761_v53 = vld [vmem:[%s4104_s10 + $0x108] sm:$0xff] }
  0x73   : > { %3011 = vmatpush1.bf16.msra.mxu1 %v3010_v32  ;;  %2949 = vmatprep.subr.bf16.mxu0 %v2948_v33  ;;  %v4163_v32 = vpack.c.bf16 %v742_v24, %v738_v22  ;;  %v4165_v33 = vpack.c.bf16 %v749_v26, %v745_v25  ;;  %v296_v41 = vld [vmem:[%s5018_s0 + $0x20] sm:$0xff]  ;;  %v758_v52 = vld [vmem:[%s4104_s10 + $0xf0] sm:$0xff]  ;;  %v765_v54 = vld [vmem:[%s4104_s10 + $0x128] sm:$0xff] }
  0x74   : > { %3013 = vmatprep.subr.bf16.mxu1 %v3012_v37  ;;  %v4171_v37 = vpack.c.bf16 %v751_v29, %v747_v28  ;;  %v752_v48 = vld [vmem:[%s4104_s10 + $0xc0] sm:$0xff]  ;;  %v301_v58 = vld [vmem:[%s5018_s0 + $0x48] sm:$0xff]  ;;  %v4215_v60 = vpack.c.bf16 %v758_v52, %v754_v50  ;;  %v762_v0 = vld [vmem:[%s4104_s10 + $0x110] sm:$0xff] }
  0x75   : > { %v760_v62 = vld [vmem:[%s4104_s10 + $0x100] sm:$0xff]  ;;  %v766_v2 = vld [vmem:[%s4104_s10 + $0x130] sm:$0xff]  ;;  %v771_v7 = vld [vmem:[%s4104_s10 + $0x158] sm:$0xff] }
  0x76   : > { %2951 = vmatpush1.bf16.msra.mxu0 %v2950_v43  ;;  %v759_v43 = vld [vmem:[%s4104_s10 + $0xf8] sm:$0xff]  ;;  %v764_v63 = vld [vmem:[%s4104_s10 + $0x120] sm:$0xff]  ;;  %v4241_v12 = vpack.c.bf16 %v766_v2, %v762_v0  ;;  %v774_v21 = vld [vmem:[%s4104_s10 + $0x170] sm:$0xff]  ;;  %v3813_v2 = vmov 0.0  }
  0x77   : > { %3015 = vmatpush1.bf16.msra.mxu1 %v3014_v44  ;;  %2953 = vmatprep.subr.bf16.mxu0 %v2952_v45  ;;  %v299_v44 = vld [vmem:[%s5018_s0 + $0x38] sm:$0xff]  ;;  %v4185_v45 = vpack.c.bf16 %v748_v35, %v744_v34  ;;  %v4197_v51 = vpack.c.bf16 %v759_v43, %v755_v42  ;;  %v300_v6 = vld [vmem:[%s5018_s0 + $0x40] sm:$0xff]  ;;  %v4237_v11 = vpack.c.bf16 %v764_v63, %v760_v62  ;;  %v777_v22 = vld [vmem:[%s4104_s10 + $0x188] sm:$0xff] }
  0x78   : > { %3017 = vmatprep.subr.bf16.mxu1 %v3016_v49  ;;  %v756_v49 = vld [vmem:[%s4104_s10 + $0xe0] sm:$0xff]  ;;  %v775_v9 = vld [vmem:[%s4104_s10 + $0x178] sm:$0xff]  ;;  %v781_v24 = vld [vmem:[%s4104_s10 + $0x1a8] sm:$0xff] }
  0x79   : > { %v4211_v59 = vpack.c.bf16 %v756_v49, %v752_v48  ;;  %v303_v10 = vld [vmem:[%s5018_s0 + $0x58] sm:$0xff]  ;;  %v768_v14 = vld [vmem:[%s4104_s10 + $0x140] sm:$0xff]  ;;  %v4249_v20 = vpack.c.bf16 %v775_v9, %v771_v7  ;;  %v302_v25 = vld [vmem:[%s5018_s0 + $0x50] sm:$0xff]  ;;  %v4269_v34 = vpack.c.bf16 %v781_v24, %v777_v22 }
  0x7a   : > { %2955 = vmatpush1.bf16.msra.mxu0 %v2954_v55  ;;  %v298_v55 = vld [vmem:[%s5018_s0 + $0x30] sm:$0xff]  ;;  %v772_v15 = vld [vmem:[%s4104_s10 + $0x160] sm:$0xff]  ;;  %v779_v26 = vld [vmem:[%s4104_s10 + $0x198] sm:$0xff] }
  0x7b   : > { %3019 = vmatpush1.bf16.msra.mxu1 %v3018_v56  ;;  %2957 = vmatprep.subr.bf16.mxu0 %v2956_v57  ;;  %v763_v56 = vld [vmem:[%s4104_s10 + $0x118] sm:$0xff]  ;;  %v305_v28 = vld [vmem:[%s5018_s0 + $0x68] sm:$0xff]  ;;  %v4263_v29 = vpack.c.bf16 %v772_v15, %v768_v14  ;;  %v776_v35 = vld [vmem:[%s4104_s10 + $0x180] sm:$0xff] }
  0x7c   : > { %3021 = vmatprep.subr.bf16.mxu1 %v3020_v61  ;;  %v767_v57 = vld [vmem:[%s4104_s10 + $0x138] sm:$0xff]  ;;  %v4217_v61 = vpack.c.bf16 %v765_v54, %v761_v53  ;;  %v780_v36 = vld [vmem:[%s4104_s10 + $0x1a0] sm:$0xff]  ;;  %v778_v38 = vld [vmem:[%s4104_s10 + $0x190] sm:$0xff] }
  0x7d   : > { %v4223_v1 = vpack.c.bf16 %v767_v57, %v763_v56  ;;  %v782_v40 = vld [vmem:[%s4104_s10 + $0x1b0] sm:$0xff]  ;;  %v789_v42 = vld [vmem:[%s4104_s10 + $0x1e8] sm:$0xff]  ;;  %v304_v43 = vld [vmem:[%s5018_s0 + $0x60] sm:$0xff]  ;;  %v4289_v50 = vpack.c.bf16 %v780_v36, %v776_v35 }
  0x7e   : > { %2959 = vmatpush1.bf16.msra.mxu0 %v2958_v3  ;;  %v769_v3 = vld [vmem:[%s4104_s10 + $0x148] sm:$0xff]  ;;  %v791_v48 = vld [vmem:[%s4104_s10 + $0x1f8] sm:$0xff]  ;;  %v4293_v52 = vpack.c.bf16 %v782_v40, %v778_v38  ;;  %v784_v54 = vld [vmem:[%s4104_s10 + $0x1c0] sm:$0xff] }
  0x7f   : > { %3023 = vmatpush1.bf16.msra.mxu1 %v3022_v4  ;;  %3025 = vmatprep.subr.bf16.mxu0 %v4116_v5  ;;  %v773_v4 = vld [vmem:[%s4104_s10 + $0x168] sm:$0xff]  ;;  %v307_v49 = vld [vmem:[%s5018_s0 + $0x78] sm:$0xff]  ;;  %v786_v57 = vld [vmem:[%s4104_s10 + $0x1d0] sm:$0xff] }
  0x80   : > { %3057 = vmatprep.subr.bf16.mxu1 %v4120_v8  ;;  %v306_v62 = vld [vmem:[%s5018_s0 + $0x70] sm:$0xff]  ;;  %v436_v7 = vld [vmem:[%s3959_s25] sm:$0xf]  ;;  %s4391_s25 = scalar_select %p5033_p6, 0, 7 }
  0x81   : > { %523 = vmatmul.mubr.f32.vlgmr.msra.gmra.mrb[0].mxu0 %v292_v13 }
  0x82   : > { %636 = vmatmul.mubr.f32.vlgmr.msra.gmra.mrb[0].mxu1 %v292_v13  ;;  %528 = vmatprep.mubr.f32.mxu0 %v295_v16  ;;  %v4243_v13 = vpack.c.bf16 %v773_v4, %v769_v3  ;;  %v438_v3 = vlaneseq  ;;  %s2857_s26 = sshll.u32 %s4391_s25, 3  ;;  %s1203_s25 = scalar_lea.vmem %s4409_s9, %s2860_s23 [#allocation6] }
  0x83   : > { %641 = vmatprep.mubr.f32.mxu1 %v295_v16  ;;  %3027 = vmatpush1.bf16.msra.mxu0 %v4135_v17  ;;  %v770_v16 = vld [vmem:[%s4104_s10 + $0x150] sm:$0xff]  ;;  %s719_s29 = sshra.s32 %s2857_s26, 3  ;;  %s959_s11 = scalar_lea.vmem %s4409_s9, %s2857_s26 [#allocation6] }
  0x84   : > { %3059 = vmatpush1.bf16.msra.mxu1 %v4138_v18  ;;  %3029 = vmatprep.subr.bf16.mxu0 %v4140_v19  ;;  %v439_v4 = vshrl.u32 %v438_v3, 7  ;;  %s2888_s28 = sshll.u32 %s719_s29, 5  ;;  %s2866_s23 = sshll.u32 %s4674_s17, 3 }
  0x85   : > { %529 = vmatmul.mubr.f32.gmra.mrb[2].mxu0 %v294_v27  ;;  %3061 = vmatprep.subr.bf16.mxu1 %v4145_v23  ;;  %s723_s8 = scalar_lea.vmem [#allocation2], %s2888_s28  ;;  %s1451_s14 = sshra.s32 %s2866_s23, 3 }
  0x86   : > { %642 = vmatmul.mubr.f32.gmra.mrb[2].mxu1 %v294_v27  ;;  %534 = vmatprep.mubr.f32.mxu0 %v297_v30  ;;  %v783_v27 = vld [vmem:[%s4104_s10 + $0x1b8] sm:$0xff]  ;;  %v444_v9 = vsub.s32 1, %v439_v4  ;;  %v452_v14 = vsub.s32 3, %v439_v4  ;;  %s4626_s26 = scalar_select %p5035_p13, 2, 5 }
  0x87   : > { %647 = vmatprep.mubr.f32.mxu1 %v297_v30  ;;  %3031 = vmatpush1.bf16.msra.mxu0 %v4159_v31  ;;  %v4267_v30 = vpack.c.bf16 %v774_v21, %v770_v16  ;;  %v4275_v39 = vpack.c.bf16 %v783_v27, %v779_v26  ;;  %s2891_s15 = sshll.u32 %s1451_s14, 5 }
  0x88   : > { %3063 = vmatpush1.bf16.msra.mxu1 %v4163_v32  ;;  %3033 = vmatprep.subr.bf16.mxu0 %v4165_v33  ;;  %v4360_v16 = vrot.slane %v436_v7, %v444_v9  ;;  %v4364_v22 = vrot.slane %v436_v7, %v452_v14  ;;  %s2863_s29 = sshll.u32 %s4626_s26, 3 }
  0x89   : > { %535 = vmatmul.mubr.f32.gmra.mrb[4].mxu0 %v296_v41  ;;  %3065 = vmatprep.subr.bf16.mxu1 %v4171_v37  ;;  %s1207_s28 = sshra.s32 %s2863_s29, 3 }
  0x8a   : > { %648 = vmatmul.mubr.f32.gmra.mrb[4].mxu1 %v296_v41  ;;  %540 = vmatprep.mubr.f32.mxu0 %v299_v44  ;;  %v785_v41 = vld [vmem:[%s4104_s10 + $0x1c8] sm:$0xff]  ;;  %s4720_s26 = scalar_select %p5037_p8, 4, 3 }
  0x8b   : > { %653 = vmatprep.mubr.f32.mxu1 %v299_v44  ;;  %3035 = vmatpush1.bf16.msra.mxu0 %v4185_v45  ;;  %v787_v44 = vld [vmem:[%s4104_s10 + $0x1d8] sm:$0xff]  ;;  %v4295_v53 = vpack.c.bf16 %v789_v42, %v785_v41 }
  0x8c   : > { %3067 = vmatpush1.bf16.msra.mxu1 %v4189_v46  ;;  %3037 = vmatprep.subr.bf16.mxu0 %v4191_v47  ;;  %v4300_v56 = vpack.c.bf16 %v791_v48, %v787_v44 }
  0x8d   : > { %541 = vmatmul.mubr.f32.gmra.mrb[6].mxu0 %v298_v55  ;;  %3069 = vmatprep.subr.bf16.mxu1 %v4197_v51 }
  0x8e   : > { %654 = vmatmul.mubr.f32.gmra.mrb[6].mxu1 %v298_v55  ;;  %546 = vmatprep.mubr.f32.mxu0 %v301_v58  ;;  %v788_v55 = vld [vmem:[%s4104_s10 + $0x1e0] sm:$0xff] }
  0x8f   : > { %659 = vmatprep.mubr.f32.mxu1 %v301_v58  ;;  %3039 = vmatpush1.bf16.msra.mxu0 %v4211_v59  ;;  %v790_v58 = vld [vmem:[%s4104_s10 + $0x1f0] sm:$0xff]  ;;  %v4308_v63 = vpack.c.bf16 %v788_v55, %v784_v54 }
  0x90   : > { %3071 = vmatpush1.bf16.msra.mxu1 %v4215_v60  ;;  %3041 = vmatprep.subr.bf16.mxu0 %v4217_v61  ;;  %v4312_v0 = vpack.c.bf16 %v790_v58, %v786_v57 }
  0x91   : > { %547 = vmatmul.mubr.f32.gmra.mrb[8].mxu0 %v300_v6  ;;  %3073 = vmatprep.subr.bf16.mxu1 %v4223_v1 }
  0x92   : > { %660 = vmatmul.mubr.f32.gmra.mrb[8].mxu1 %v300_v6  ;;  %552 = vmatprep.mubr.f32.mxu0 %v303_v10  ;;  %v440_v6 = vsub.s32 0, %v439_v4 }
  0x93   : > { %665 = vmatprep.mubr.f32.mxu1 %v303_v10  ;;  %3043 = vmatpush1.bf16.msra.mxu0 %v4237_v11  ;;  %v448_v10 = vsub.s32 2, %v439_v4 }
  0x94   : > { %3075 = vmatpush1.bf16.msra.mxu1 %v4241_v12  ;;  %3045 = vmatprep.subr.bf16.mxu0 %v4243_v13  ;;  %v4358_v15 = vrot.slane %v436_v7, %v440_v6 }
  0x95   : > { %553 = vmatmul.mubr.f32.gmra.mrb[10].mxu0 %v302_v25  ;;  %3077 = vmatprep.subr.bf16.mxu1 %v4249_v20  ;;  %v4362_v21 = vrot.slane %v436_v7, %v448_v10 }
  0x96   : > { %666 = vmatmul.mubr.f32.gmra.mrb[10].mxu1 %v302_v25  ;;  %558 = vmatprep.mubr.f32.mxu0 %v305_v28 }
  0x97   : > { %671 = vmatprep.mubr.f32.mxu1 %v305_v28  ;;  %3047 = vmatpush1.bf16.msra.mxu0 %v4263_v29 }
  0x98   : > { %3079 = vmatpush1.bf16.msra.mxu1 %v4267_v30  ;;  %3049 = vmatprep.subr.bf16.mxu0 %v4269_v34 }
  0x99   : > { %559 = vmatmul.mubr.f32.gmra.mrb[12].mxu0 %v304_v43  ;;  %3081 = vmatprep.subr.bf16.mxu1 %v4275_v39 }
  0x9a   : > { %672 = vmatmul.mubr.f32.gmra.mrb[12].mxu1 %v304_v43  ;;  %564 = vmatprep.mubr.f32.mxu0 %v307_v49 }
  0x9b   : > { %677 = vmatprep.mubr.f32.mxu1 %v307_v49  ;;  %3051 = vmatpush1.bf16.msra.mxu0 %v4289_v50 }
  0x9c   : > { %3083 = vmatpush1.bf16.msra.mxu1 %v4293_v52  ;;  %3053 = vmatprep.subr.bf16.mxu0 %v4295_v53 }
  0x9d   : > { %565 = vmatmul.mubr.f32.gmra.mrb[14].mxu0 %v306_v62  ;;  %3085 = vmatprep.subr.bf16.mxu1 %v4300_v56 }
  0x9e   : > { %678 = vmatmul.mubr.f32.gmra.mrb[14].mxu1 %v306_v62  ;;  %856 = vmatprep.mubr.f32.mxu0 %v3813_v2 }
  0x9f   : > { %3055 = vmatpush1.bf16.msra.mxu0 %v4308_v63  ;;  %927 = vmatprep.mubr.f32.mxu1 %v3813_v2 }
  0xa0   : > { %3087 = vmatpush1.bf16.msra.mxu1 %v4312_v0  ;;  %3089 = vmatprep.subr.bf16.mxu0 %v4116_v5 }
  0xa1   : > { %3121 = vmatprep.subr.bf16.mxu1 %v4120_v8 }
  0xa2   : > { %857 = vmatmul.mubr.f32.vlgmr.msra.gmra.mrb[16].mxu0 %v3813_v2 }
  0xa3   : > { %928 = vmatmul.mubr.f32.vlgmr.msra.gmra.mrb[16].mxu1 %v3813_v2  ;;  %3091 = vmatpush1.bf16.msra.mxu0 %v4135_v17 }
  0xa4   : > { %3123 = vmatpush1.bf16.msra.mxu1 %v4138_v18  ;;  %3093 = vmatprep.subr.bf16.mxu0 %v4140_v19 }
  0xa5   : > { %3125 = vmatprep.subr.bf16.mxu1 %v4145_v23  ;;  %1100 = vmatprep.mubr.f32.mxu0 %v3813_v2 }
  0xa6   : > { %1171 = vmatprep.mubr.f32.mxu1 %v3813_v2 }
  0xa7   : > { %3095 = vmatpush1.bf16.msra.mxu0 %v4159_v31 }
  0xa8   : > { %3127 = vmatpush1.bf16.msra.mxu1 %v4163_v32  ;;  %3097 = vmatprep.subr.bf16.mxu0 %v4165_v33 }
  0xa9   : > { %3129 = vmatprep.subr.bf16.mxu1 %v4171_v37 }
  0xab   : > { %3099 = vmatpush1.bf16.msra.mxu0 %v4185_v45 }
  0xac   : > { %3131 = vmatpush1.bf16.msra.mxu1 %v4189_v46  ;;  %3101 = vmatprep.subr.bf16.mxu0 %v4191_v47 }
  0xad   : > { %3133 = vmatprep.subr.bf16.mxu1 %v4197_v51 }
  0xaf   : > { %3103 = vmatpush1.bf16.msra.mxu0 %v4211_v59 }
  0xb0   : > { %3135 = vmatpush1.bf16.msra.mxu1 %v4215_v60  ;;  %3105 = vmatprep.subr.bf16.mxu0 %v4217_v61 }
  0xb1   : > { %3137 = vmatprep.subr.bf16.mxu1 %v4223_v1 }
  0xb3   : > { %3107 = vmatpush1.bf16.msra.mxu0 %v4237_v11 }
  0xb4   : > { %3139 = vmatpush1.bf16.msra.mxu1 %v4241_v12  ;;  %3109 = vmatprep.subr.bf16.mxu0 %v4243_v13 }
  0xb5   : > { %3141 = vmatprep.subr.bf16.mxu1 %v4249_v20 }
  0xb7   : > { %3111 = vmatpush1.bf16.msra.mxu0 %v4263_v29 }
  0xb8   : > { %3143 = vmatpush1.bf16.msra.mxu1 %v4267_v30  ;;  %3113 = vmatprep.subr.bf16.mxu0 %v4269_v34 }
  0xb9   : > { %3145 = vmatprep.subr.bf16.mxu1 %v4275_v39 }
  0xbb   : > { %3115 = vmatpush1.bf16.msra.mxu0 %v4289_v50 }
  0xbc   : > { %3147 = vmatpush1.bf16.msra.mxu1 %v4293_v52  ;;  %3117 = vmatprep.subr.bf16.mxu0 %v4295_v53 }
  0xbd   : > { %3149 = vmatprep.subr.bf16.mxu1 %v4300_v56 }
  0xbf   : > { %3119 = vmatpush1.bf16.msra.mxu0 %v4308_v63 }
  0xc0   : > { %3151 = vmatpush1.bf16.msra.mxu1 %v4312_v0  ;;  %3153 = vmatprep.subr.bf16.mxu0 %v4116_v5 }
  0xc1   : > { %3185 = vmatprep.subr.bf16.mxu1 %v4120_v8 }
 0x154   : > { %v524_v24 = vpop.f32.mrb[0].mxu0 }
 0x155   : > { %v525_v5 = vadd.f32 %v524_v24, %v4358_v15  ;;  %v526_v25 = vpop.f32.mrb[1].mxu0  ;;  %v637_v8 = vpop.f32.mrb[0].mxu1 }
 0x156   : > { %v527_v26 = vadd.f32 %v526_v25, %v4360_v16  ;;  %v638_v27 = vadd.f32 %v637_v8, %v4362_v21  ;;  %v639_v28 = vpop.f32.mrb[1].mxu1 }
 0x157   : > { %684 = vst [vmem:[#allocation2] sm:$0xff] %v525_v5  ;;  %v640_v35 = vadd.f32 %v639_v28, %v4364_v22 }
 0x158   : > { %685 = vst [vmem:[#allocation2 + $0x8] sm:$0xff] %v527_v26  ;;  %v530_v36 = vpop.f32.mrb[2].mxu0  ;;  %686 = vst [vmem:[#allocation2 + $0x10] sm:$0xff] %v638_v27 }
 0x159   : > { %v531_v38 = vadd.f32 %v530_v36, %v4358_v15  ;;  %v532_v40 = vpop.f32.mrb[3].mxu0  ;;  %687 = vst [vmem:[#allocation2 + $0x18] sm:$0xff] %v640_v35  ;;  %v643_v41 = vpop.f32.mrb[2].mxu1 }
 0x15a   : > { %v533_v42 = vadd.f32 %v532_v40, %v4360_v16  ;;  %v644_v43 = vadd.f32 %v643_v41, %v4362_v21  ;;  %v645_v44 = vpop.f32.mrb[3].mxu1 }
 0x15b   : > { %688 = vst [vmem:[#allocation2 + $0x20] sm:$0xff] %v531_v38  ;;  %v646_v48 = vadd.f32 %v645_v44, %v4364_v22 }
 0x15c   : > { %689 = vst [vmem:[#allocation2 + $0x28] sm:$0xff] %v533_v42  ;;  %v536_v49 = vpop.f32.mrb[4].mxu0  ;;  %690 = vst [vmem:[#allocation2 + $0x30] sm:$0xff] %v644_v43 }
 0x15d   : > { %v537_v54 = vadd.f32 %v536_v49, %v4358_v15  ;;  %v538_v55 = vpop.f32.mrb[5].mxu0  ;;  %691 = vst [vmem:[#allocation2 + $0x38] sm:$0xff] %v646_v48  ;;  %v649_v57 = vpop.f32.mrb[4].mxu1 }
 0x15e   : > { %v539_v58 = vadd.f32 %v538_v55, %v4360_v16  ;;  %v650_v62 = vadd.f32 %v649_v57, %v4362_v21  ;;  %v651_v3 = vpop.f32.mrb[5].mxu1 }
 0x15f   : > { %692 = vst [vmem:[#allocation2 + $0x40] sm:$0xff] %v537_v54  ;;  %v652_v4 = vadd.f32 %v651_v3, %v4364_v22 }
 0x160   : > { %693 = vst [vmem:[#allocation2 + $0x48] sm:$0xff] %v539_v58  ;;  %v542_v6 = vpop.f32.mrb[6].mxu0  ;;  %694 = vst [vmem:[#allocation2 + $0x50] sm:$0xff] %v650_v62 }
 0x161   : > { %v543_v7 = vadd.f32 %v542_v6, %v4358_v15  ;;  %v544_v9 = vpop.f32.mrb[7].mxu0  ;;  %695 = vst [vmem:[#allocation2 + $0x58] sm:$0xff] %v652_v4  ;;  %v655_v10 = vpop.f32.mrb[6].mxu1 }
 0x162   : > { %v545_v14 = vadd.f32 %v544_v9, %v4360_v16  ;;  %v656_v24 = vadd.f32 %v655_v10, %v4362_v21  ;;  %v657_v5 = vpop.f32.mrb[7].mxu1 }
 0x163   : > { %696 = vst [vmem:[#allocation2 + $0x60] sm:$0xff] %v543_v7  ;;  %v658_v25 = vadd.f32 %v657_v5, %v4364_v22 }
 0x164   : > { %697 = vst [vmem:[#allocation2 + $0x68] sm:$0xff] %v545_v14  ;;  %v548_v8 = vpop.f32.mrb[8].mxu0  ;;  %698 = vst [vmem:[#allocation2 + $0x70] sm:$0xff] %v656_v24 }
 0x165   : > { %v549_v26 = vadd.f32 %v548_v8, %v4358_v15  ;;  %v550_v27 = vpop.f32.mrb[9].mxu0  ;;  %699 = vst [vmem:[#allocation2 + $0x78] sm:$0xff] %v658_v25  ;;  %v661_v28 = vpop.f32.mrb[8].mxu1 }
 0x166   : > { %v551_v35 = vadd.f32 %v550_v27, %v4360_v16  ;;  %v662_v36 = vadd.f32 %v661_v28, %v4362_v21  ;;  %v663_v38 = vpop.f32.mrb[9].mxu1 }
 0x167   : > { %700 = vst [vmem:[#allocation2 + $0x80] sm:$0xff] %v549_v26  ;;  %v664_v40 = vadd.f32 %v663_v38, %v4364_v22 }
 0x168   : > { %701 = vst [vmem:[#allocation2 + $0x88] sm:$0xff] %v551_v35  ;;  %v554_v41 = vpop.f32.mrb[10].mxu0  ;;  %702 = vst [vmem:[#allocation2 + $0x90] sm:$0xff] %v662_v36 }
 0x169   : > { %v555_v42 = vadd.f32 %v554_v41, %v4358_v15  ;;  %v556_v43 = vpop.f32.mrb[11].mxu0  ;;  %703 = vst [vmem:[#allocation2 + $0x98] sm:$0xff] %v664_v40  ;;  %v667_v44 = vpop.f32.mrb[10].mxu1 }
 0x16a   : > { %v557_v48 = vadd.f32 %v556_v43, %v4360_v16  ;;  %v668_v49 = vadd.f32 %v667_v44, %v4362_v21  ;;  %v669_v54 = vpop.f32.mrb[11].mxu1 }
 0x16b   : > { %704 = vst [vmem:[#allocation2 + $0xa0] sm:$0xff] %v555_v42  ;;  %v670_v55 = vadd.f32 %v669_v54, %v4364_v22 }
 0x16c   : > { %705 = vst [vmem:[#allocation2 + $0xa8] sm:$0xff] %v557_v48  ;;  %706 = vst [vmem:[#allocation2 + $0xb0] sm:$0xff] %v668_v49  ;;  %v560_v57 = vpop.f32.mrb[12].mxu0 }
 0x16d   : > { %707 = vst [vmem:[#allocation2 + $0xb8] sm:$0xff] %v670_v55  ;;  %v561_v58 = vadd.f32 %v560_v57, %v4358_v15  ;;  %v673_v62 = vpop.f32.mrb[12].mxu1  ;;  %v562_v3 = vpop.f32.mrb[13].mxu0 }
 0x16e   : > { %v674_v4 = vadd.f32 %v673_v62, %v4362_v21  ;;  %v563_v6 = vadd.f32 %v562_v3, %v4360_v16  ;;  %v675_v7 = vpop.f32.mrb[13].mxu1 }
 0x16f   : > { %708 = vst [vmem:[#allocation2 + $0xc0] sm:$0xff] %v561_v58  ;;  %v676_v9 = vadd.f32 %v675_v7, %v4364_v22 }
 0x170   : > { %710 = vst [vmem:[#allocation2 + $0xd0] sm:$0xff] %v674_v4  ;;  %709 = vst [vmem:[#allocation2 + $0xc8] sm:$0xff] %v563_v6  ;;  %v566_v10 = vpop.f32.mrb[14].mxu0 }
 0x171   : > { %711 = vst [vmem:[#allocation2 + $0xd8] sm:$0xff] %v676_v9  ;;  %v567_v14 = vadd.f32 %v566_v10, %v4358_v15  ;;  %v679_v24 = vpop.f32.mrb[14].mxu1  ;;  %v568_v5 = vpop.f32.mrb[15].mxu0 }
 0x172   : > { %v680_v25 = vadd.f32 %v679_v24, %v4362_v21  ;;  %v569_v8 = vadd.f32 %v568_v5, %v4360_v16  ;;  %v681_v26 = vpop.f32.mrb[15].mxu1 }
 0x173   : > { %712 = vst [vmem:[#allocation2 + $0xe0] sm:$0xff] %v567_v14  ;;  %v682_v27 = vadd.f32 %v681_v26, %v4364_v22 }
 0x174   : > { %714 = vst [vmem:[#allocation2 + $0xf0] sm:$0xff] %v680_v25  ;;  %713 = vst [vmem:[#allocation2 + $0xe8] sm:$0xff] %v569_v8 }
 0x175   : > { %715 = vst [vmem:[#allocation2 + $0xf8] sm:$0xff] %v682_v27  ;;  %v858_v28 = vpop.f32.mrb[16].mxu0 }
 0x176   : > { %v860_v35 = vpop.f32.mrb[17].mxu0  ;;  %v929_v36 = vpop.f32.mrb[16].mxu1 }
 0x177   : > { %v931_v15 = vpop.f32.mrb[17].mxu1 }
 0x17c   : > { %v724_v38 = vld [vmem:[%s723_s8] sm:$0xff]  ;;  %v725_v41 = vld [vmem:[%s723_s8 + $0x8] sm:$0xff]  ;;  %v727_v43 = vld [vmem:[%s723_s8 + $0x18] sm:$0xff] }
 0x17d   : > { %v934_v40 = vadd.f32 %v858_v28, %v724_v38  ;;  %v935_v42 = vadd.f32 %v860_v35, %v725_v41  ;;  %v937_v49 = vadd.f32 %v931_v15, %v727_v43  ;;  %v726_v54 = vld [vmem:[%s723_s8 + $0x10] sm:$0xff]  ;;  %v1461_v15 = vld [vmem:[%s4104_s10 + $0x8] sm:$0xff]  ;;  %v1464_v43 = vld [vmem:[%s4104_s10 + $0x20] sm:$0xff]  ;;  %s2890_s8 = sshll.u32 %s1207_s28, 5 }
 0x17e   : > { %v936_v57 = vadd.f32 %v929_v36, %v726_v54  ;;  %v1465_v38 = vld [vmem:[%s4104_s10 + $0x28] sm:$0xff]  ;;  %s1211_s7 = scalar_lea.vmem [#allocation2], %s2890_s8 }
 0x17f   : > { %v938_v21 = vsub.f32 0.0, %v934_v40  ;;  %v943_v16 = vsub.f32 0.0, %v935_v42  ;;  %v949_v22 = vsub.f32 0.0, %v937_v49  ;;  %v1463_v40 = vld [vmem:[%s4104_s10 + $0x18] sm:$0xff]  ;;  %v4465_v41 = vpack.c.bf16 %v1465_v38, %v1461_v15  ;;  %v1466_v49 = vld [vmem:[%s4104_s10 + $0x30] sm:$0xff]  ;;  %v1469_v54 = vld [vmem:[%s4104_s10 + $0x48] sm:$0xff] }
 0x180   : > { %v1467_v42 = vld [vmem:[%s4104_s10 + $0x38] sm:$0xff] }
 0x181   : > { %v939_v44 = vmul.f32 1.442695, %v938_v21  ;;  %v944_v48 = vmul.f32 1.442695, %v943_v16  ;;  %v950_v55 = vmul.f32 1.442695, %v949_v22  ;;  %v4470_v16 = vpack.c.bf16 %v1467_v42, %v1463_v40 }
 0x182   : > { %v1460_v21 = vld [vmem:[%s4104_s10] sm:$0xff]  ;;  %v1503_v15 = vld [vmem:[%s4104_s10 + $0x158] sm:$0xff] }
 0x183   : > { %3586 = vpow2.f32 %v939_v44  ;;  %v4472_v44 = vpack.c.bf16 %v1464_v43, %v1460_v21  ;;  %v1507_v40 = vld [vmem:[%s4104_s10 + $0x178] sm:$0xff]  ;;  %v1500_v42 = vld [vmem:[%s4104_s10 + $0x140] sm:$0xff] }
 0x184   : > { %3588 = vpow2.f32 %v944_v48  ;;  %v1462_v48 = vld [vmem:[%s4104_s10 + $0x10] sm:$0xff]  ;;  %v1504_v21 = vld [vmem:[%s4104_s10 + $0x160] sm:$0xff]  ;;  %v4570_v43 = vpack.c.bf16 %v1507_v40, %v1503_v15 }
 0x185   : > { %3590 = vpow2.f32 %v950_v55  ;;  %v4477_v22 = vpack.c.bf16 %v1466_v49, %v1462_v48  ;;  %v1473_v55 = vld [vmem:[%s4104_s10 + $0x68] sm:$0xff]  ;;  %v4572_v48 = vpack.c.bf16 %v1504_v21, %v1500_v42  ;;  %v1502_v49 = vld [vmem:[%s4104_s10 + $0x150] sm:$0xff]  ;;  %v1215_v21 = vld [vmem:[%s1211_s7 + $0x18] sm:$0xff] }
 0x186   : > { %3592 = vtanh.f32 %v936_v57  ;;  %v1471_v57 = vld [vmem:[%s4104_s10 + $0x58] sm:$0xff] }
 0x18d   : > { %v3587_v58 = vpop.eup %3586 }
 0x18e   : > { %v3589_v62 = vpop.eup %3588  ;;  %v941_v3 = vadd.f32 1.0, %v3587_v58  ;;  %v4485_v58 = vpack.c.bf16 %v1473_v55, %v1469_v54  ;;  %v1506_v54 = vld [vmem:[%s4104_s10 + $0x170] sm:$0xff]  ;;  %v1509_v55 = vld [vmem:[%s4104_s10 + $0x188] sm:$0xff] }
 0x18f   : > { %v946_v4 = vadd.f32 1.0, %v3589_v62  ;;  %v3591_v6 = vpop.eup %3590  ;;  %v1475_v62 = vld [vmem:[%s4104_s10 + $0x78] sm:$0xff] }
 0x190   : > { %3594 = vrcp.f32 %v941_v3  ;;  %v3593_v7 = vpop.eup %3592  ;;  %v952_v24 = vadd.f32 1.0, %v3591_v6  ;;  %v1468_v3 = vld [vmem:[%s4104_s10 + $0x40] sm:$0xff]  ;;  %v4490_v6 = vpack.c.bf16 %v1475_v62, %v1471_v57  ;;  %v4578_v57 = vpack.c.bf16 %v1506_v54, %v1502_v49  ;;  %v1513_v62 = vld [vmem:[%s4104_s10 + $0x1a8] sm:$0xff] }
 0x191   : > { %3596 = vrcp.f32 %v946_v4  ;;  %v1472_v4 = vld [vmem:[%s4104_s10 + $0x60] sm:$0xff] }
 0x192   : > { %3598 = vrcp.f32 %v952_v24  ;;  %v1477_v24 = vld [vmem:[%s4104_s10 + $0x88] sm:$0xff] }
 0x19a   : > { %v3595_v9 = vpop.eup %3594 }
 0x19b   : > { %v3597_v10 = vpop.eup %3596  ;;  %v955_v14 = vmul.f32 %v3595_v9, %v3593_v7  ;;  %v4492_v7 = vpack.c.bf16 %v1472_v4, %v1468_v3  ;;  %v1470_v9 = vld [vmem:[%s4104_s10 + $0x50] sm:$0xff]  ;;  %v1511_v3 = vld [vmem:[%s4104_s10 + $0x198] sm:$0xff] }
 0x19c   : > { %v954_v5 = vmul.f32 0.0, %v3597_v10  ;;  %v3599_v8 = vpop.eup %3598  ;;  %v1474_v10 = vld [vmem:[%s4104_s10 + $0x70] sm:$0xff]  ;;  %v1515_v4 = vld [vmem:[%s4104_s10 + $0x1b8] sm:$0xff] }
 0x19e   : > { %v4405_v25 = vadd.f32 %v955_v14, %v954_v5  ;;  %v4497_v14 = vpack.c.bf16 %v1474_v10, %v1470_v9  ;;  %v1481_v5 = vld [vmem:[%s4104_s10 + $0xa8] sm:$0xff]  ;;  %v4584_v9 = vpack.c.bf16 %v1513_v62, %v1509_v55  ;;  %v4586_v10 = vpack.c.bf16 %v1515_v4, %v1511_v3  ;;  %v1214_v62 = vld [vmem:[%s1211_s7 + $0x10] sm:$0xff] }
 0x1a0   : > { %3600 = vtanh.f32 %v4405_v25 }
 0x1aa   : > { %v3601_v26 = vpop.eup %3600 }
 0x1ab   : > { %v958_v27 = vmul.f32 %v3601_v26, %v3599_v8  ;;  %v4505_v8 = vpack.c.bf16 %v1481_v5, %v1477_v24  ;;  %v1483_v26 = vld [vmem:[%s4104_s10 + $0xb8] sm:$0xff]  ;;  %v1508_v24 = vld [vmem:[%s4104_s10 + $0x180] sm:$0xff] }
 0x1ac   : > { %v1512_v5 = vld [vmem:[%s4104_s10 + $0x1a0] sm:$0xff] }
 0x1ad   : > { %960 = vst [vmem:[%s959_s11] sm:$0xff] %v958_v27  ;;  %1101 = vmatmul.mubr.f32.vlgmr.msra.gmra.mrb[18].mxu0 %v958_v27  ;;  %1172 = vmatmul.mubr.f32.vlgmr.msra.gmra.mrb[18].mxu1 %v958_v27  ;;  %v1476_v27 = vld [vmem:[%s4104_s10 + $0x80] sm:$0xff]  ;;  %s1447_s11 = scalar_lea.vmem %s4409_s9, %s2863_s29 [#allocation6]  ;;  %s2869_s29 = sshll.u32 %s4720_s26, 3 }
 0x1ae   : > { %3155 = vmatpush1.bf16.msra.mxu0 %v4135_v17  ;;  %3187 = vmatpush1.bf16.msra.mxu1 %v4138_v18  ;;  %v968_v17 = vld [vmem:[%s967_s16] sm:$0xff]  ;;  %s1695_s28 = sshra.s32 %s2869_s29, 3 }
 0x1af   : > { %3157 = vmatprep.subr.bf16.mxu0 %v4140_v19  ;;  %3189 = vmatprep.subr.bf16.mxu1 %v4145_v23  ;;  %s2892_s8 = sshll.u32 %s1695_s28, 5 }
 0x1b0   : > { %1344 = vmatprep.mubr.f32.mxu0 %v3813_v2  ;;  %1415 = vmatprep.mubr.f32.mxu1 %v3813_v2 }
 0x1b2   : > { %3159 = vmatpush1.bf16.msra.mxu0 %v4159_v31  ;;  %3191 = vmatpush1.bf16.msra.mxu1 %v4163_v32  ;;  %v969_v31 = vld [vmem:[%s967_s16 + $0x8] sm:$0xff] }
 0x1b3   : > { %3161 = vmatprep.subr.bf16.mxu0 %v4165_v33  ;;  %3193 = vmatprep.subr.bf16.mxu1 %v4171_v37 }
 0x1b6   : > { %3163 = vmatpush1.bf16.msra.mxu0 %v4185_v45  ;;  %3195 = vmatpush1.bf16.msra.mxu1 %v4189_v46 }
 0x1b7   : > { %3165 = vmatprep.subr.bf16.mxu0 %v4191_v47  ;;  %3197 = vmatprep.subr.bf16.mxu1 %v4197_v51  ;;  %v971_v51 = vld [vmem:[%s967_s16 + $0x18] sm:$0xff] }
 0x1ba   : > { %3167 = vmatpush1.bf16.msra.mxu0 %v4211_v59  ;;  %3199 = vmatpush1.bf16.msra.mxu1 %v4215_v60 }
 0x1bb   : > { %3169 = vmatprep.subr.bf16.mxu0 %v4217_v61  ;;  %3201 = vmatprep.subr.bf16.mxu1 %v4223_v1  ;;  %v970_v1 = vld [vmem:[%s967_s16 + $0x10] sm:$0xff]  ;;  %s1455_s16 = scalar_lea.vmem [#allocation2], %s2891_s15 }
 0x1be   : > { %3171 = vmatpush1.bf16.msra.mxu0 %v4237_v11  ;;  %3203 = vmatpush1.bf16.msra.mxu1 %v4241_v12 }
 0x1bf   : > { %3173 = vmatprep.subr.bf16.mxu0 %v4243_v13  ;;  %3205 = vmatprep.subr.bf16.mxu1 %v4249_v20 }
 0x1c2   : > { %3175 = vmatpush1.bf16.msra.mxu0 %v4263_v29  ;;  %3207 = vmatpush1.bf16.msra.mxu1 %v4267_v30 }
 0x1c3   : > { %3177 = vmatprep.subr.bf16.mxu0 %v4269_v34  ;;  %3209 = vmatprep.subr.bf16.mxu1 %v4275_v39 }
 0x1c6   : > { %3179 = vmatpush1.bf16.msra.mxu0 %v4289_v50  ;;  %3211 = vmatpush1.bf16.msra.mxu1 %v4293_v52 }
 0x1c7   : > { %3181 = vmatprep.subr.bf16.mxu0 %v4295_v53  ;;  %3213 = vmatprep.subr.bf16.mxu1 %v4300_v56 }
 0x1ca   : > { %3183 = vmatpush1.bf16.msra.mxu0 %v4308_v63  ;;  %3215 = vmatpush1.bf16.msra.mxu1 %v4312_v0 }
 0x1cb   : > { %3217 = vmatprep.subr.bf16.mxu0 %v4465_v41  ;;  %3249 = vmatprep.subr.bf16.mxu1 %v4470_v16 }
 0x280   : > { %v1102_v18 = vpop.f32.mrb[18].mxu0  ;;  %v1173_v19 = vpop.f32.mrb[18].mxu1 }
 0x281   : > { %v1178_v23 = vadd.f32 %v1102_v18, %v968_v17  ;;  %v1104_v32 = vpop.f32.mrb[19].mxu0  ;;  %v1175_v33 = vpop.f32.mrb[19].mxu1  ;;  %v1180_v12 = vadd.f32 %v1173_v19, %v970_v1  ;;  %v1480_v17 = vld [vmem:[%s4104_s10 + $0xa0] sm:$0xff]  ;;  %v1486_v1 = vld [vmem:[%s4104_s10 + $0xd0] sm:$0xff] }
 0x282   : > { %v1179_v37 = vadd.f32 %v1104_v32, %v969_v31  ;;  %v1181_v60 = vadd.f32 %v1175_v33, %v971_v51  ;;  %v4512_v19 = vpack.c.bf16 %v1480_v17, %v1476_v27  ;;  %v1482_v31 = vld [vmem:[%s4104_s10 + $0xb0] sm:$0xff]  ;;  %v1485_v33 = vld [vmem:[%s4104_s10 + $0xc8] sm:$0xff]  ;;  %v1484_v51 = vld [vmem:[%s4104_s10 + $0xc0] sm:$0xff] }
 0x283   : > { %v1182_v45 = vsub.f32 0.0, %v1178_v23  ;;  %v1478_v23 = vld [vmem:[%s4104_s10 + $0x90] sm:$0xff]  ;;  %v1517_v17 = vld [vmem:[%s4104_s10 + $0x1c8] sm:$0xff] }
 0x284   : > { %v1187_v46 = vsub.f32 0.0, %v1179_v37  ;;  %v1193_v61 = vsub.f32 0.0, %v1181_v60  ;;  %v4517_v32 = vpack.c.bf16 %v1482_v31, %v1478_v23  ;;  %v1489_v37 = vld [vmem:[%s4104_s10 + $0xe8] sm:$0xff]  ;;  %v1514_v27 = vld [vmem:[%s4104_s10 + $0x1b0] sm:$0xff] }
 0x285   : > { %v1183_v47 = vmul.f32 1.442695, %v1182_v45  ;;  %v1487_v45 = vld [vmem:[%s4104_s10 + $0xd8] sm:$0xff]  ;;  %v1521_v23 = vld [vmem:[%s4104_s10 + $0x1e8] sm:$0xff] }
 0x286   : > { %v1188_v59 = vmul.f32 1.442695, %v1187_v46  ;;  %v1194_v11 = vmul.f32 1.442695, %v1193_v61  ;;  %v4525_v46 = vpack.c.bf16 %v1489_v37, %v1485_v33  ;;  %v4601_v33 = vpack.c.bf16 %v1521_v23, %v1517_v17  ;;  %v1519_v37 = vld [vmem:[%s4104_s10 + $0x1d8] sm:$0xff] }
 0x287   : > { %3602 = vpow2.f32 %v1183_v47  ;;  %v1491_v47 = vld [vmem:[%s4104_s10 + $0xf8] sm:$0xff] }
 0x288   : > { %3604 = vpow2.f32 %v1188_v59  ;;  %v1488_v59 = vld [vmem:[%s4104_s10 + $0xe0] sm:$0xff]  ;;  %v4530_v60 = vpack.c.bf16 %v1491_v47, %v1487_v45  ;;  %v1523_v45 = vld [vmem:[%s4104_s10 + $0x1f8] sm:$0xff] }
 0x289   : > { %3606 = vpow2.f32 %v1194_v11  ;;  %v4532_v61 = vpack.c.bf16 %v1488_v59, %v1484_v51  ;;  %v1490_v11 = vld [vmem:[%s4104_s10 + $0xf0] sm:$0xff]  ;;  %v1516_v47 = vld [vmem:[%s4104_s10 + $0x1c0] sm:$0xff]  ;;  %v4607_v51 = vpack.c.bf16 %v1523_v45, %v1519_v37 }
 0x28a   : > { %3608 = vtanh.f32 %v1180_v12  ;;  %v4537_v12 = vpack.c.bf16 %v1490_v11, %v1486_v1  ;;  %v1520_v59 = vld [vmem:[%s4104_s10 + $0x1e0] sm:$0xff]  ;;  %v1518_v1 = vld [vmem:[%s4104_s10 + $0x1d0] sm:$0xff] }
 0x28b   : > { %v1522_v11 = vld [vmem:[%s4104_s10 + $0x1f0] sm:$0xff] }
 0x291   : > { %v3603_v13 = vpop.eup %3602 }
 0x292   : > { %v3605_v20 = vpop.eup %3604  ;;  %v1185_v29 = vadd.f32 1.0, %v3603_v13  ;;  %v1493_v13 = vld [vmem:[%s4104_s10 + $0x108] sm:$0xff] }
 0x293   : > { %v1190_v30 = vadd.f32 1.0, %v3605_v20  ;;  %v3607_v34 = vpop.eup %3606  ;;  %v1497_v20 = vld [vmem:[%s4104_s10 + $0x128] sm:$0xff] }
 0x294   : > { %3610 = vrcp.f32 %v1185_v29  ;;  %v3609_v39 = vpop.eup %3608  ;;  %v1196_v56 = vadd.f32 1.0, %v3607_v34  ;;  %v1495_v29 = vld [vmem:[%s4104_s10 + $0x118] sm:$0xff] }
 0x295   : > { %3612 = vrcp.f32 %v1190_v30  ;;  %v4545_v30 = vpack.c.bf16 %v1497_v20, %v1493_v13  ;;  %v1499_v34 = vld [vmem:[%s4104_s10 + $0x138] sm:$0xff]  ;;  %v4613_v13 = vpack.c.bf16 %v1520_v59, %v1516_v47  ;;  %v4617_v20 = vpack.c.bf16 %v1522_v11, %v1518_v1 }
 0x296   : > { %3614 = vrcp.f32 %v1196_v56  ;;  %v1494_v56 = vld [vmem:[%s4104_s10 + $0x110] sm:$0xff] }
 0x29e   : > { %v3611_v50 = vpop.eup %3610 }
 0x29f   : > { %v3613_v52 = vpop.eup %3612  ;;  %v1199_v53 = vmul.f32 %v3611_v50, %v3609_v39  ;;  %v1492_v39 = vld [vmem:[%s4104_s10 + $0x100] sm:$0xff] }
 0x2a0   : > { %v1198_v63 = vmul.f32 %v3613_v52, %v4405_v25  ;;  %v3615_v28 = vpop.eup %3614  ;;  %v1479_v25 = vld [vmem:[%s4104_s10 + $0x98] sm:$0xff]  ;;  %v1496_v50 = vld [vmem:[%s4104_s10 + $0x120] sm:$0xff]  ;;  %v4550_v52 = vpack.c.bf16 %v1499_v34, %v1495_v29 }
 0x2a1   : > { %v4510_v18 = vpack.c.bf16 %v1483_v26, %v1479_v25  ;;  %v1510_v25 = vld [vmem:[%s4104_s10 + $0x190] sm:$0xff]  ;;  %v4592_v26 = vpack.c.bf16 %v1512_v5, %v1508_v24  ;;  %v1212_v29 = vld [vmem:[%s1211_s7] sm:$0xff] }
 0x2a2   : > { %v4454_v0 = vadd.f32 %v1199_v53, %v1198_v63  ;;  %v4552_v53 = vpack.c.bf16 %v1496_v50, %v1492_v39  ;;  %v1498_v63 = vld [vmem:[%s4104_s10 + $0x130] sm:$0xff]  ;;  %v4599_v31 = vpack.c.bf16 %v1514_v27, %v1510_v25 }
 0x2a4   : > { %3616 = vtanh.f32 %v4454_v0 }
 0x2ae   : > { %v3617_v35 = vpop.eup %3616 }
 0x2af   : > { %v1202_v36 = vmul.f32 %v3617_v35, %v3615_v28  ;;  %v4557_v28 = vpack.c.bf16 %v1498_v63, %v1494_v56  ;;  %v1501_v35 = vld [vmem:[%s4104_s10 + $0x148] sm:$0xff] }
 0x2b0   : > { %v1213_v56 = vld [vmem:[%s1211_s7 + $0x8] sm:$0xff]  ;;  %s1699_s7 = scalar_lea.vmem [#allocation2], %s2892_s8 }
 0x2b1   : > { %1204 = vst [vmem:[%s1203_s25] sm:$0xff] %v1202_v36  ;;  %1345 = vmatmul.mubr.f32.vlgmr.msra.gmra.mrb[20].mxu0 %v1202_v36  ;;  %1416 = vmatmul.mubr.f32.vlgmr.msra.gmra.mrb[20].mxu1 %v1202_v36  ;;  %v1505_v36 = vld [vmem:[%s4104_s10 + $0x168] sm:$0xff]  ;;  %s1691_s25 = scalar_lea.vmem %s4409_s9, %s2866_s23 [#allocation6] }
 0x2b2   : > { %1588 = vmatprep.mubr.f32.mxu0 %v3813_v2  ;;  %1659 = vmatprep.mubr.f32.mxu1 %v3813_v2  ;;  %v4564_v38 = vpack.c.bf16 %v1505_v36, %v1501_v35 }
 0x2b3   : > { %3219 = vmatpush1.bf16.msra.mxu0 %v4472_v44  ;;  %3251 = vmatpush1.bf16.msra.mxu1 %v4477_v22 }
 0x2b4   : > { %3221 = vmatprep.subr.bf16.mxu0 %v4485_v58  ;;  %3253 = vmatprep.subr.bf16.mxu1 %v4490_v6 }
 0x2b7   : > { %3223 = vmatpush1.bf16.msra.mxu0 %v4492_v7  ;;  %3255 = vmatpush1.bf16.msra.mxu1 %v4497_v14 }
 0x2b8   : > { %3225 = vmatprep.subr.bf16.mxu0 %v4505_v8  ;;  %3257 = vmatprep.subr.bf16.mxu1 %v4510_v18 }
 0x2bb   : > { %3227 = vmatpush1.bf16.msra.mxu0 %v4512_v19  ;;  %3259 = vmatpush1.bf16.msra.mxu1 %v4517_v32 }
 0x2bc   : > { %3229 = vmatprep.subr.bf16.mxu0 %v4525_v46  ;;  %3261 = vmatprep.subr.bf16.mxu1 %v4530_v60 }
 0x2bf   : > { %3231 = vmatpush1.bf16.msra.mxu0 %v4532_v61  ;;  %3263 = vmatpush1.bf16.msra.mxu1 %v4537_v12 }
 0x2c0   : > { %3233 = vmatprep.subr.bf16.mxu0 %v4545_v30  ;;  %3265 = vmatprep.subr.bf16.mxu1 %v4550_v52 }
 0x2c3   : > { %3235 = vmatpush1.bf16.msra.mxu0 %v4552_v53  ;;  %3267 = vmatpush1.bf16.msra.mxu1 %v4557_v28 }
 0x2c4   : > { %3237 = vmatprep.subr.bf16.mxu0 %v4564_v38  ;;  %3269 = vmatprep.subr.bf16.mxu1 %v4570_v43 }
 0x2c7   : > { %3239 = vmatpush1.bf16.msra.mxu0 %v4572_v48  ;;  %3271 = vmatpush1.bf16.msra.mxu1 %v4578_v57 }
 0x2c8   : > { %3241 = vmatprep.subr.bf16.mxu0 %v4584_v9  ;;  %3273 = vmatprep.subr.bf16.mxu1 %v4586_v10 }
 0x2cb   : > { %3243 = vmatpush1.bf16.msra.mxu0 %v4592_v26  ;;  %3275 = vmatpush1.bf16.msra.mxu1 %v4599_v31 }
 0x2cc   : > { %3245 = vmatprep.subr.bf16.mxu0 %v4601_v33  ;;  %3277 = vmatprep.subr.bf16.mxu1 %v4607_v51 }
 0x2cf   : > { %3247 = vmatpush1.bf16.msra.mxu0 %v4613_v13  ;;  %3279 = vmatpush1.bf16.msra.mxu1 %v4617_v20 }
 0x2d0   : > { %3281 = vmatprep.subr.bf16.mxu0 %v4465_v41  ;;  %3313 = vmatprep.subr.bf16.mxu1 %v4470_v16 }
 0x384   : > { %v1346_v34 = vpop.f32.mrb[20].mxu0  ;;  %v1417_v39 = vpop.f32.mrb[20].mxu1 }
 0x385   : > { %v1422_v50 = vadd.f32 %v1346_v34, %v1212_v29  ;;  %v1348_v63 = vpop.f32.mrb[21].mxu0  ;;  %v1419_v35 = vpop.f32.mrb[21].mxu1  ;;  %v1424_v4 = vadd.f32 %v1417_v39, %v1214_v62  ;;  %v1458_v62 = vld [vmem:[%s1455_s16 + $0x10] sm:$0xff] }
 0x386   : > { %v1423_v36 = vadd.f32 %v1348_v63, %v1213_v56  ;;  %v1425_v54 = vadd.f32 %v1419_v35, %v1215_v21  ;;  %v1457_v35 = vld [vmem:[%s1455_s16 + $0x8] sm:$0xff]  ;;  %v1459_v21 = vld [vmem:[%s1455_s16 + $0x18] sm:$0xff] }
 0x387   : > { %v1426_v15 = vsub.f32 0.0, %v1422_v50 }
 0x388   : > { %v1431_v40 = vsub.f32 0.0, %v1423_v36  ;;  %v1437_v55 = vsub.f32 0.0, %v1425_v54 }
 0x389   : > { %v1427_v42 = vmul.f32 1.442695, %v1426_v15 }
 0x38a   : > { %v1432_v49 = vmul.f32 1.442695, %v1431_v40  ;;  %v1438_v3 = vmul.f32 1.442695, %v1437_v55 }
 0x38b   : > { %3618 = vpow2.f32 %v1427_v42 }
 0x38c   : > { %3620 = vpow2.f32 %v1432_v49 }
 0x38d   : > { %3622 = vpow2.f32 %v1438_v3 }
 0x38e   : > { %3624 = vtanh.f32 %v1424_v4 }
 0x395   : > { %v3619_v24 = vpop.eup %3618 }
 0x396   : > { %v3621_v5 = vpop.eup %3620  ;;  %v1429_v25 = vadd.f32 1.0, %v3619_v24 }
 0x397   : > { %v1434_v27 = vadd.f32 1.0, %v3621_v5  ;;  %v3623_v17 = vpop.eup %3622 }
 0x398   : > { %3626 = vrcp.f32 %v1429_v25  ;;  %v3625_v23 = vpop.eup %3624  ;;  %v1440_v59 = vadd.f32 1.0, %v3623_v17 }
 0x399   : > { %3628 = vrcp.f32 %v1434_v27 }
 0x39a   : > { %3630 = vrcp.f32 %v1440_v59 }
 0x3a2   : > { %v3627_v37 = vpop.eup %3626 }
 0x3a3   : > { %v3629_v45 = vpop.eup %3628  ;;  %v1443_v47 = vmul.f32 %v3627_v37, %v3625_v23 }
 0x3a4   : > { %v1442_v1 = vmul.f32 %v3629_v45, %v4454_v0  ;;  %v3631_v29 = vpop.eup %3630  ;;  %v1456_v0 = vld [vmem:[%s1455_s16] sm:$0xff] }
 0x3a6   : > { %v4632_v11 = vadd.f32 %v1443_v47, %v1442_v1 }
 0x3a8   : > { %3632 = vtanh.f32 %v4632_v11 }
 0x3b2   : > { %v3633_v34 = vpop.eup %3632 }
 0x3b3   : > { %v1446_v39 = vmul.f32 %v3633_v34, %v3631_v29 }
 0x3b5   : > { %1448 = vst [vmem:[%s1447_s11] sm:$0xff] %v1446_v39  ;;  %1589 = vmatmul.mubr.f32.vlgmr.msra.gmra.mrb[22].mxu0 %v1446_v39  ;;  %1660 = vmatmul.mubr.f32.vlgmr.msra.gmra.mrb[22].mxu1 %v1446_v39  ;;  %s1935_s11 = scalar_lea.vmem %s4409_s9, %s2869_s29 [#allocation6] }
 0x3b6   : > { %3283 = vmatpush1.bf16.msra.mxu0 %v4472_v44  ;;  %3315 = vmatpush1.bf16.msra.mxu1 %v4477_v22 }
 0x3b7   : > { %3285 = vmatprep.subr.bf16.mxu0 %v4485_v58  ;;  %3317 = vmatprep.subr.bf16.mxu1 %v4490_v6 }
 0x3b8   : > { %1832 = vmatprep.mubr.f32.mxu0 %v3813_v2  ;;  %1903 = vmatprep.mubr.f32.mxu1 %v3813_v2 }
 0x3ba   : > { %3287 = vmatpush1.bf16.msra.mxu0 %v4492_v7  ;;  %3319 = vmatpush1.bf16.msra.mxu1 %v4497_v14 }
 0x3bb   : > { %3289 = vmatprep.subr.bf16.mxu0 %v4505_v8  ;;  %3321 = vmatprep.subr.bf16.mxu1 %v4510_v18 }
 0x3be   : > { %3291 = vmatpush1.bf16.msra.mxu0 %v4512_v19  ;;  %3323 = vmatpush1.bf16.msra.mxu1 %v4517_v32 }
 0x3bf   : > { %3293 = vmatprep.subr.bf16.mxu0 %v4525_v46  ;;  %3325 = vmatprep.subr.bf16.mxu1 %v4530_v60 }
 0x3c2   : > { %3295 = vmatpush1.bf16.msra.mxu0 %v4532_v61  ;;  %3327 = vmatpush1.bf16.msra.mxu1 %v4537_v12 }
 0x3c3   : > { %3297 = vmatprep.subr.bf16.mxu0 %v4545_v30  ;;  %3329 = vmatprep.subr.bf16.mxu1 %v4550_v52 }
 0x3c6   : > { %3299 = vmatpush1.bf16.msra.mxu0 %v4552_v53  ;;  %3331 = vmatpush1.bf16.msra.mxu1 %v4557_v28 }
 0x3c7   : > { %3301 = vmatprep.subr.bf16.mxu0 %v4564_v38  ;;  %3333 = vmatprep.subr.bf16.mxu1 %v4570_v43 }
 0x3ca   : > { %3303 = vmatpush1.bf16.msra.mxu0 %v4572_v48  ;;  %3335 = vmatpush1.bf16.msra.mxu1 %v4578_v57 }
 0x3cb   : > { %3305 = vmatprep.subr.bf16.mxu0 %v4584_v9  ;;  %3337 = vmatprep.subr.bf16.mxu1 %v4586_v10 }
 0x3ce   : > { %3307 = vmatpush1.bf16.msra.mxu0 %v4592_v26  ;;  %3339 = vmatpush1.bf16.msra.mxu1 %v4599_v31 }
 0x3cf   : > { %3309 = vmatprep.subr.bf16.mxu0 %v4601_v33  ;;  %3341 = vmatprep.subr.bf16.mxu1 %v4607_v51 }
 0x3d2   : > { %3311 = vmatpush1.bf16.msra.mxu0 %v4613_v13  ;;  %3343 = vmatpush1.bf16.msra.mxu1 %v4617_v20 }
 0x3d3   : > { %3345 = vmatprep.subr.bf16.mxu0 %v4465_v41  ;;  %3377 = vmatprep.subr.bf16.mxu1 %v4470_v16 }
 0x488   : > { %v1590_v50 = vpop.f32.mrb[22].mxu0  ;;  %v1661_v56 = vpop.f32.mrb[22].mxu1 }
 0x489   : > { %v1666_v63 = vadd.f32 %v1590_v50, %v1456_v0  ;;  %v1592_v36 = vpop.f32.mrb[23].mxu0  ;;  %v1663_v15 = vpop.f32.mrb[23].mxu1  ;;  %v1668_v4 = vadd.f32 %v1661_v56, %v1458_v62  ;;  %v2201_v62 = vld [vmem:[%s4104_s10 + $0x48] sm:$0xff] }
 0x48a   : > { %v1667_v41 = vadd.f32 %v1592_v36, %v1457_v35  ;;  %v1669_v54 = vadd.f32 %v1663_v15, %v1459_v21  ;;  %v2197_v35 = vld [vmem:[%s4104_s10 + $0x28] sm:$0xff]  ;;  %v2195_v36 = vld [vmem:[%s4104_s10 + $0x18] sm:$0xff] }
 0x48b   : > { %v1670_v40 = vsub.f32 0.0, %v1666_v63  ;;  %v2193_v63 = vld [vmem:[%s4104_s10 + $0x8] sm:$0xff] }
 0x48c   : > { %v1675_v16 = vsub.f32 0.0, %v1667_v41  ;;  %v1681_v55 = vsub.f32 0.0, %v1669_v54  ;;  %v4737_v15 = vpack.c.bf16 %v2197_v35, %v2193_v63  ;;  %v2199_v41 = vld [vmem:[%s4104_s10 + $0x38] sm:$0xff]  ;;  %v2198_v54 = vld [vmem:[%s4104_s10 + $0x30] sm:$0xff] }
 0x48d   : > { %v1671_v42 = vmul.f32 1.442695, %v1670_v40  ;;  %v2192_v40 = vld [vmem:[%s4104_s10] sm:$0xff]  ;;  %v2235_v63 = vld [vmem:[%s4104_s10 + $0x158] sm:$0xff] }
 0x48e   : > { %v1676_v49 = vmul.f32 1.442695, %v1675_v16  ;;  %v1682_v3 = vmul.f32 1.442695, %v1681_v55  ;;  %v2196_v16 = vld [vmem:[%s4104_s10 + $0x20] sm:$0xff] }
 0x48f   : > { %3634 = vpow2.f32 %v1671_v42  ;;  %v4742_v42 = vpack.c.bf16 %v2199_v41, %v2195_v36  ;;  %v4744_v21 = vpack.c.bf16 %v2196_v16, %v2192_v40  ;;  %v2239_v36 = vld [vmem:[%s4104_s10 + $0x178] sm:$0xff]  ;;  %v2232_v41 = vld [vmem:[%s4104_s10 + $0x140] sm:$0xff] }
 0x490   : > { %3636 = vpow2.f32 %v1676_v49  ;;  %v2194_v49 = vld [vmem:[%s4104_s10 + $0x10] sm:$0xff]  ;;  %v2236_v40 = vld [vmem:[%s4104_s10 + $0x160] sm:$0xff]  ;;  %v4842_v16 = vpack.c.bf16 %v2239_v36, %v2235_v63 }
 0x491   : > { %3638 = vpow2.f32 %v1682_v3  ;;  %v4749_v55 = vpack.c.bf16 %v2198_v54, %v2194_v49  ;;  %v2205_v3 = vld [vmem:[%s4104_s10 + $0x68] sm:$0xff]  ;;  %v4844_v49 = vpack.c.bf16 %v2236_v40, %v2232_v41  ;;  %v2234_v54 = vld [vmem:[%s4104_s10 + $0x150] sm:$0xff] }
 0x492   : > { %3640 = vtanh.f32 %v1668_v4  ;;  %v2203_v4 = vld [vmem:[%s4104_s10 + $0x58] sm:$0xff] }
 0x499   : > { %v3635_v24 = vpop.eup %3634 }
 0x49a   : > { %v3637_v5 = vpop.eup %3636  ;;  %v1673_v25 = vadd.f32 1.0, %v3635_v24  ;;  %v4757_v24 = vpack.c.bf16 %v2205_v3, %v2201_v62  ;;  %v2238_v62 = vld [vmem:[%s4104_s10 + $0x170] sm:$0xff]  ;;  %v2241_v3 = vld [vmem:[%s4104_s10 + $0x188] sm:$0xff] }
 0x49b   : > { %v1678_v27 = vadd.f32 1.0, %v3637_v5  ;;  %v3639_v17 = vpop.eup %3638  ;;  %v2207_v5 = vld [vmem:[%s4104_s10 + $0x78] sm:$0xff] }
 0x49c   : > { %3642 = vrcp.f32 %v1673_v25  ;;  %v3641_v23 = vpop.eup %3640  ;;  %v1684_v59 = vadd.f32 1.0, %v3639_v17  ;;  %v2200_v25 = vld [vmem:[%s4104_s10 + $0x40] sm:$0xff]  ;;  %v4762_v17 = vpack.c.bf16 %v2207_v5, %v2203_v4  ;;  %v4850_v4 = vpack.c.bf16 %v2238_v62, %v2234_v54  ;;  %v2245_v5 = vld [vmem:[%s4104_s10 + $0x1a8] sm:$0xff] }
 0x49d   : > { %3644 = vrcp.f32 %v1678_v27  ;;  %v2204_v27 = vld [vmem:[%s4104_s10 + $0x60] sm:$0xff] }
 0x49e   : > { %3646 = vrcp.f32 %v1684_v59  ;;  %v2209_v59 = vld [vmem:[%s4104_s10 + $0x88] sm:$0xff] }
 0x4a6   : > { %v3643_v37 = vpop.eup %3642 }
 0x4a7   : > { %v3645_v45 = vpop.eup %3644  ;;  %v1687_v47 = vmul.f32 %v3643_v37, %v3641_v23  ;;  %v4764_v23 = vpack.c.bf16 %v2204_v27, %v2200_v25  ;;  %v2202_v37 = vld [vmem:[%s4104_s10 + $0x50] sm:$0xff]  ;;  %v2243_v25 = vld [vmem:[%s4104_s10 + $0x198] sm:$0xff] }
 0x4a8   : > { %v1686_v1 = vmul.f32 %v3645_v45, %v4632_v11  ;;  %v3647_v34 = vpop.eup %3646  ;;  %v2206_v45 = vld [vmem:[%s4104_s10 + $0x70] sm:$0xff]  ;;  %v2247_v27 = vld [vmem:[%s4104_s10 + $0x1b8] sm:$0xff] }
 0x4aa   : > { %v4680_v29 = vadd.f32 %v1687_v47, %v1686_v1  ;;  %v4769_v47 = vpack.c.bf16 %v2206_v45, %v2202_v37  ;;  %v2213_v1 = vld [vmem:[%s4104_s10 + $0xa8] sm:$0xff]  ;;  %v4856_v37 = vpack.c.bf16 %v2245_v5, %v2241_v3  ;;  %v4858_v45 = vpack.c.bf16 %v2247_v27, %v2243_v25 }
 0x4ac   : > { %3648 = vtanh.f32 %v4680_v29 }
 0x4b6   : > { %v3649_v39 = vpop.eup %3648 }
 0x4b7   : > { %v1690_v0 = vmul.f32 %v3649_v39, %v3647_v34  ;;  %v4777_v34 = vpack.c.bf16 %v2213_v1, %v2209_v59  ;;  %v2215_v39 = vld [vmem:[%s4104_s10 + $0xb8] sm:$0xff]  ;;  %v2240_v59 = vld [vmem:[%s4104_s10 + $0x180] sm:$0xff] }
 0x4b8   : > { %v2244_v1 = vld [vmem:[%s4104_s10 + $0x1a0] sm:$0xff] }
 0x4b9   : > { %1692 = vst [vmem:[%s1691_s25] sm:$0xff] %v1690_v0  ;;  %1833 = vmatmul.mubr.f32.vlgmr.msra.gmra.mrb[24].mxu0 %v1690_v0  ;;  %1904 = vmatmul.mubr.f32.vlgmr.msra.gmra.mrb[24].mxu1 %v1690_v0  ;;  %v2208_v0 = vld [vmem:[%s4104_s10 + $0x80] sm:$0xff]  ;;  %s4944_s25 = scalar_select %p5039_p7, 6, 1 }
 0x4ba   : > { %3347 = vmatpush1.bf16.msra.mxu0 %v4472_v44  ;;  %3379 = vmatpush1.bf16.msra.mxu1 %v4477_v22  ;;  %v1700_v44 = vld [vmem:[%s1699_s7] sm:$0xff] }
 0x4bb   : > { %3349 = vmatprep.subr.bf16.mxu0 %v4485_v58  ;;  %3381 = vmatprep.subr.bf16.mxu1 %v4490_v6  ;;  %s2875_s26 = sshll.u32 %s4944_s25, 3  ;;  %s2687_s25 = sshll.u32 %s4409_s9, 4  ;;  %s4974_s25 = int_to_ptr.vmem [resolvable:$true] %s2687_s25 }
 0x4bc   : > { %2076 = vmatprep.mubr.f32.mxu0 %v3813_v2  ;;  %2147 = vmatprep.mubr.f32.mxu1 %v3813_v2  ;;  %s2183_s29 = sshra.s32 %s2875_s26, 3 }
 0x4bd   : > { %s2894_s28 = sshll.u32 %s2183_s29, 5 }
 0x4be   : > { %3351 = vmatpush1.bf16.msra.mxu0 %v4492_v7  ;;  %3383 = vmatpush1.bf16.msra.mxu1 %v4497_v14  ;;  %v1701_v7 = vld [vmem:[%s1699_s7 + $0x8] sm:$0xff]  ;;  %s2187_s8 = scalar_lea.vmem [#allocation2], %s2894_s28 }
 0x4bf   : > { %3353 = vmatprep.subr.bf16.mxu0 %v4505_v8  ;;  %3385 = vmatprep.subr.bf16.mxu1 %v4510_v18 }
 0x4c2   : > { %3355 = vmatpush1.bf16.msra.mxu0 %v4512_v19  ;;  %3387 = vmatpush1.bf16.msra.mxu1 %v4517_v32 }
 0x4c3   : > { %3357 = vmatprep.subr.bf16.mxu0 %v4525_v46  ;;  %3389 = vmatprep.subr.bf16.mxu1 %v4530_v60  ;;  %v1703_v60 = vld [vmem:[%s1699_s7 + $0x18] sm:$0xff] }
 0x4c6   : > { %3359 = vmatpush1.bf16.msra.mxu0 %v4532_v61  ;;  %3391 = vmatpush1.bf16.msra.mxu1 %v4537_v12 }
 0x4c7   : > { %3361 = vmatprep.subr.bf16.mxu0 %v4545_v30  ;;  %3393 = vmatprep.subr.bf16.mxu1 %v4550_v52  ;;  %v1702_v52 = vld [vmem:[%s1699_s7 + $0x10] sm:$0xff]  ;;  %s2423_s7 = scalar_lea.vmem %s4409_s9, %s2875_s26 [#allocation6] }
 0x4ca   : > { %3363 = vmatpush1.bf16.msra.mxu0 %v4552_v53  ;;  %3395 = vmatpush1.bf16.msra.mxu1 %v4557_v28 }
 0x4cb   : > { %3365 = vmatprep.subr.bf16.mxu0 %v4564_v38  ;;  %3397 = vmatprep.subr.bf16.mxu1 %v4570_v43 }
 0x4ce   : > { %3367 = vmatpush1.bf16.msra.mxu0 %v4572_v48  ;;  %3399 = vmatpush1.bf16.msra.mxu1 %v4578_v57 }
 0x4cf   : > { %3369 = vmatprep.subr.bf16.mxu0 %v4584_v9  ;;  %3401 = vmatprep.subr.bf16.mxu1 %v4586_v10 }
 0x4d2   : > { %3371 = vmatpush1.bf16.msra.mxu0 %v4592_v26  ;;  %3403 = vmatpush1.bf16.msra.mxu1 %v4599_v31 }
 0x4d3   : > { %3373 = vmatprep.subr.bf16.mxu0 %v4601_v33  ;;  %3405 = vmatprep.subr.bf16.mxu1 %v4607_v51 }
 0x4d6   : > { %3375 = vmatpush1.bf16.msra.mxu0 %v4613_v13  ;;  %3407 = vmatpush1.bf16.msra.mxu1 %v4617_v20 }
 0x4d7   : > { %3409 = vmatprep.subr.bf16.mxu0 %v4737_v15  ;;  %3441 = vmatprep.subr.bf16.mxu1 %v4742_v42 }
 0x58c   : > { %v1834_v22 = vpop.f32.mrb[24].mxu0  ;;  %v1905_v58 = vpop.f32.mrb[24].mxu1 }
 0x58d   : > { %v1910_v6 = vadd.f32 %v1834_v22, %v1700_v44  ;;  %v1836_v14 = vpop.f32.mrb[25].mxu0  ;;  %v1907_v8 = vpop.f32.mrb[25].mxu1  ;;  %v1912_v28 = vadd.f32 %v1905_v58, %v1702_v52  ;;  %v2212_v44 = vld [vmem:[%s4104_s10 + $0xa0] sm:$0xff]  ;;  %v2218_v52 = vld [vmem:[%s4104_s10 + $0xd0] sm:$0xff] }
 0x58e   : > { %v1911_v18 = vadd.f32 %v1836_v14, %v1701_v7  ;;  %v1913_v12 = vadd.f32 %v1907_v8, %v1703_v60  ;;  %v4784_v58 = vpack.c.bf16 %v2212_v44, %v2208_v0  ;;  %v2214_v7 = vld [vmem:[%s4104_s10 + $0xb0] sm:$0xff]  ;;  %v2217_v8 = vld [vmem:[%s4104_s10 + $0xc8] sm:$0xff]  ;;  %v2216_v60 = vld [vmem:[%s4104_s10 + $0xc0] sm:$0xff] }
 0x58f   : > { %v1914_v19 = vsub.f32 0.0, %v1910_v6  ;;  %v2210_v6 = vld [vmem:[%s4104_s10 + $0x90] sm:$0xff]  ;;  %v2249_v44 = vld [vmem:[%s4104_s10 + $0x1c8] sm:$0xff] }
 0x590   : > { %v1919_v32 = vsub.f32 0.0, %v1911_v18  ;;  %v1925_v30 = vsub.f32 0.0, %v1913_v12  ;;  %v4789_v14 = vpack.c.bf16 %v2214_v7, %v2210_v6  ;;  %v2221_v18 = vld [vmem:[%s4104_s10 + $0xe8] sm:$0xff]  ;;  %v2246_v0 = vld [vmem:[%s4104_s10 + $0x1b0] sm:$0xff] }
 0x591   : > { %v1915_v46 = vmul.f32 1.442695, %v1914_v19  ;;  %v2219_v19 = vld [vmem:[%s4104_s10 + $0xd8] sm:$0xff]  ;;  %v2253_v6 = vld [vmem:[%s4104_s10 + $0x1e8] sm:$0xff] }
 0x592   : > { %v1920_v61 = vmul.f32 1.442695, %v1919_v32  ;;  %v1926_v53 = vmul.f32 1.442695, %v1925_v30  ;;  %v4797_v32 = vpack.c.bf16 %v2221_v18, %v2217_v8  ;;  %v4873_v8 = vpack.c.bf16 %v2253_v6, %v2249_v44  ;;  %v2251_v18 = vld [vmem:[%s4104_s10 + $0x1d8] sm:$0xff] }
 0x593   : > { %3650 = vpow2.f32 %v1915_v46  ;;  %v2223_v46 = vld [vmem:[%s4104_s10 + $0xf8] sm:$0xff] }
 0x594   : > { %3652 = vpow2.f32 %v1920_v61  ;;  %v2220_v61 = vld [vmem:[%s4104_s10 + $0xe0] sm:$0xff]  ;;  %v4802_v12 = vpack.c.bf16 %v2223_v46, %v2219_v19  ;;  %v2255_v19 = vld [vmem:[%s4104_s10 + $0x1f8] sm:$0xff] }
 0x595   : > { %3654 = vpow2.f32 %v1926_v53  ;;  %v4804_v30 = vpack.c.bf16 %v2220_v61, %v2216_v60  ;;  %v2222_v53 = vld [vmem:[%s4104_s10 + $0xf0] sm:$0xff]  ;;  %v2248_v46 = vld [vmem:[%s4104_s10 + $0x1c0] sm:$0xff]  ;;  %v4879_v60 = vpack.c.bf16 %v2255_v19, %v2251_v18 }
 0x596   : > { %3656 = vtanh.f32 %v1912_v28  ;;  %v4809_v28 = vpack.c.bf16 %v2222_v53, %v2218_v52  ;;  %v2252_v61 = vld [vmem:[%s4104_s10 + $0x1e0] sm:$0xff]  ;;  %v2250_v52 = vld [vmem:[%s4104_s10 + $0x1d0] sm:$0xff] }
 0x597   : > { %v2254_v53 = vld [vmem:[%s4104_s10 + $0x1f0] sm:$0xff] }
 0x59d   : > { %v3651_v38 = vpop.eup %3650 }
 0x59e   : > { %v3653_v43 = vpop.eup %3652  ;;  %v1917_v48 = vadd.f32 1.0, %v3651_v38  ;;  %v2225_v38 = vld [vmem:[%s4104_s10 + $0x108] sm:$0xff] }
 0x59f   : > { %v1922_v57 = vadd.f32 1.0, %v3653_v43  ;;  %v3655_v9 = vpop.eup %3654  ;;  %v2229_v43 = vld [vmem:[%s4104_s10 + $0x128] sm:$0xff] }
 0x5a0   : > { %3658 = vrcp.f32 %v1917_v48  ;;  %v3657_v10 = vpop.eup %3656  ;;  %v1928_v51 = vadd.f32 1.0, %v3655_v9  ;;  %v2227_v48 = vld [vmem:[%s4104_s10 + $0x118] sm:$0xff] }
 0x5a1   : > { %3660 = vrcp.f32 %v1922_v57  ;;  %v4817_v57 = vpack.c.bf16 %v2229_v43, %v2225_v38  ;;  %v2231_v9 = vld [vmem:[%s4104_s10 + $0x138] sm:$0xff]  ;;  %v4885_v38 = vpack.c.bf16 %v2252_v61, %v2248_v46  ;;  %v4889_v43 = vpack.c.bf16 %v2254_v53, %v2250_v52 }
 0x5a2   : > { %3662 = vrcp.f32 %v1928_v51  ;;  %v2226_v51 = vld [vmem:[%s4104_s10 + $0x110] sm:$0xff] }
 0x5aa   : > { %v3659_v26 = vpop.eup %3658 }
 0x5ab   : > { %v3661_v31 = vpop.eup %3660  ;;  %v1931_v33 = vmul.f32 %v3659_v26, %v3657_v10  ;;  %v2224_v10 = vld [vmem:[%s4104_s10 + $0x100] sm:$0xff] }
 0x5ac   : > { %v1930_v13 = vmul.f32 %v3661_v31, %v4680_v29  ;;  %v3663_v11 = vpop.eup %3662  ;;  %v2211_v29 = vld [vmem:[%s4104_s10 + $0x98] sm:$0xff]  ;;  %v2228_v26 = vld [vmem:[%s4104_s10 + $0x120] sm:$0xff]  ;;  %v4822_v31 = vpack.c.bf16 %v2231_v9, %v2227_v48 }
 0x5ad   : > { %v4782_v22 = vpack.c.bf16 %v2215_v39, %v2211_v29  ;;  %v2242_v29 = vld [vmem:[%s4104_s10 + $0x190] sm:$0xff]  ;;  %v4864_v39 = vpack.c.bf16 %v2244_v1, %v2240_v59 }
 0x5ae   : > { %v4726_v20 = vadd.f32 %v1931_v33, %v1930_v13  ;;  %v4824_v33 = vpack.c.bf16 %v2228_v26, %v2224_v10  ;;  %v2230_v13 = vld [vmem:[%s4104_s10 + $0x130] sm:$0xff]  ;;  %v4871_v7 = vpack.c.bf16 %v2246_v0, %v2242_v29 }
 0x5b0   : > { %3664 = vtanh.f32 %v4726_v20 }
 0x5ba   : > { %v3665_v50 = vpop.eup %3664 }
 0x5bb   : > { %v1934_v56 = vmul.f32 %v3665_v50, %v3663_v11  ;;  %v4829_v11 = vpack.c.bf16 %v2230_v13, %v2226_v51  ;;  %v2233_v50 = vld [vmem:[%s4104_s10 + $0x148] sm:$0xff] }
 0x5bd   : > { %1936 = vst [vmem:[%s1935_s11] sm:$0xff] %v1934_v56  ;;  %2077 = vmatmul.mubr.f32.vlgmr.msra.gmra.mrb[26].mxu0 %v1934_v56  ;;  %2148 = vmatmul.mubr.f32.vlgmr.msra.gmra.mrb[26].mxu1 %v1934_v56  ;;  %v2237_v56 = vld [vmem:[%s4104_s10 + $0x168] sm:$0xff]  ;;  %s4898_s10 = scalar_select %p5038_p2, 5, 2 }
 0x5be   : > { %2320 = vmatprep.mubr.f32.mxu0 %v3813_v2  ;;  %2391 = vmatprep.mubr.f32.mxu1 %v3813_v2  ;;  %v4836_v35 = vpack.c.bf16 %v2237_v56, %v2233_v50  ;;  %s4955_s11 = scalar_select %p5040_p5, 7, 0 }
 0x5bf   : > { %3411 = vmatpush1.bf16.msra.mxu0 %v4744_v21  ;;  %3443 = vmatpush1.bf16.msra.mxu1 %v4749_v55  ;;  %s2872_s17 = sshll.u32 %s4898_s10, 3 }
 0x5c0   : > { %3413 = vmatprep.subr.bf16.mxu0 %v4757_v24  ;;  %3445 = vmatprep.subr.bf16.mxu1 %v4762_v17  ;;  %s1939_s23 = sshra.s32 %s2872_s17, 3  ;;  %s2179_s16 = scalar_lea.vmem %s4409_s9, %s2872_s17 [#allocation6] }
 0x5c1   : > { %s2893_s14 = sshll.u32 %s1939_s23, 5  ;;  %s2878_s10 = sshll.u32 %s4955_s11, 3 }
 0x5c2   : > { %s1943_s15 = scalar_lea.vmem [#allocation2], %s2893_s14  ;;  %s2427_s17 = sshra.s32 %s2878_s10, 3 }
 0x5c3   : > { %3415 = vmatpush1.bf16.msra.mxu0 %v4764_v23  ;;  %3447 = vmatpush1.bf16.msra.mxu1 %v4769_v47  ;;  %v1944_v48 = vld [vmem:[%s1943_s15] sm:$0xff]  ;;  %v1945_v51 = vld [vmem:[%s1943_s15 + $0x8] sm:$0xff]  ;;  %v1947_v36 = vld [vmem:[%s1943_s15 + $0x18] sm:$0xff]  ;;  %s2895_s23 = sshll.u32 %s2427_s17, 5  ;;  %s2667_s26 = scalar_lea.vmem %s4409_s9, %s2878_s10 [#allocation6] }
 0x5c4   : > { %3417 = vmatprep.subr.bf16.mxu0 %v4777_v34  ;;  %3449 = vmatprep.subr.bf16.mxu1 %v4782_v22  ;;  %v1946_v62 = vld [vmem:[%s1943_s15 + $0x10] sm:$0xff]  ;;  %s2431_s14 = scalar_lea.vmem [#allocation2], %s2895_s23  ;;  %s2856_s15 = sshll.u32 %s3967_s12, 3 }
 0x5c5   : > { %s3744_s12 = scalar_lea.vmem %s4974_s25, 1024  ;;  %s3814_s9 = smov [#allocation6]  }
 0x5c6   : > { %p3745_p10 = scmp.ne.s32.totalorder %s4974_s25, %s3744_s12  ;;  %s3748_s11 = sshll.u32 %s3814_s9, 4  ;;  %s3749_s11 = int_to_ptr.vmem [resolvable:$false] %s3748_s11 }
 0x5c7   : > { %3419 = vmatpush1.bf16.msra.mxu0 %v4784_v58  ;;  %3451 = vmatpush1.bf16.msra.mxu1 %v4789_v14  ;;  %s3750_s10 = scalar_lea.vmem %s3749_s11, 2048  ;;  %p3751_p1 = scmp.lt.s32.totalorder %s4974_s25, %s3749_s11 }
 0x5c8   : > { %3421 = vmatprep.subr.bf16.mxu0 %v4797_v32  ;;  %3453 = vmatprep.subr.bf16.mxu1 %v4802_v12  ;;  %p3746_p9 = pnand %p3745_p10, %p5041_p4  ;;  %p3752_p11 = scmp.lt.s32.totalorder %s3750_s10, %s3744_s12 }
 0x5ca   : > { %p3747_p0 = pneg %p3746_p9  ;;  %p3753_p6 = por %p3752_p11, %p3751_p1 }
 0x5cb   : > { %3423 = vmatpush1.bf16.msra.mxu0 %v4804_v30  ;;  %3455 = vmatpush1.bf16.msra.mxu1 %v4809_v28 }
 0x5cc   : > { %3425 = vmatprep.subr.bf16.mxu0 %v4817_v57  ;;  %3457 = vmatprep.subr.bf16.mxu1 %v4822_v31  ;;  %p3754_p12 = pnand %p3753_p6, %p3747_p0 }
 0x5cf   : > { %3427 = vmatpush1.bf16.msra.mxu0 %v4824_v33  ;;  %3459 = vmatpush1.bf16.msra.mxu1 %v4829_v11 }
 0x5d0   : > { %3429 = vmatprep.subr.bf16.mxu0 %v4836_v35  ;;  %3461 = vmatprep.subr.bf16.mxu1 %v4842_v16 }
 0x5d3   : > { %3431 = vmatpush1.bf16.msra.mxu0 %v4844_v49  ;;  %3463 = vmatpush1.bf16.msra.mxu1 %v4850_v4 }
 0x5d4   : > { %3433 = vmatprep.subr.bf16.mxu0 %v4856_v37  ;;  %3465 = vmatprep.subr.bf16.mxu1 %v4858_v45 }
 0x5d7   : > { %3435 = vmatpush1.bf16.msra.mxu0 %v4864_v39  ;;  %3467 = vmatpush1.bf16.msra.mxu1 %v4871_v7 }
 0x5d8   : > { %3437 = vmatprep.subr.bf16.mxu0 %v4873_v8  ;;  %3469 = vmatprep.subr.bf16.mxu1 %v4879_v60 }
 0x5db   : > { %3439 = vmatpush1.bf16.msra.mxu0 %v4885_v38  ;;  %3471 = vmatpush1.bf16.msra.mxu1 %v4889_v43 }
 0x5dc   : > { %3473 = vmatprep.subr.bf16.mxu0 %v4737_v15  ;;  %3505 = vmatprep.subr.bf16.mxu1 %v4742_v42 }
 0x690   : > { %v2078_v9 = vpop.f32.mrb[26].mxu0  ;;  %v2149_v10 = vpop.f32.mrb[26].mxu1 }
 0x691   : > { %v2154_v26 = vadd.f32 %v2078_v9, %v1944_v48  ;;  %v2080_v13 = vpop.f32.mrb[27].mxu0  ;;  %v2151_v50 = vpop.f32.mrb[27].mxu1  ;;  %v2156_v5 = vadd.f32 %v2149_v10, %v1946_v62  ;;  %v2432_v10 = vld [vmem:[%s2431_s14] sm:$0xff] }
 0x692   : > { %v2155_v15 = vadd.f32 %v2080_v13, %v1945_v51  ;;  %v2157_v40 = vadd.f32 %v2151_v50, %v1947_v36  ;;  %v2433_v50 = vld [vmem:[%s2431_s14 + $0x8] sm:$0xff] }
 0x693   : > { %v2158_v56 = vsub.f32 0.0, %v2154_v26 }
 0x694   : > { %v2163_v42 = vsub.f32 0.0, %v2155_v15  ;;  %v2169_v54 = vsub.f32 0.0, %v2157_v40  ;;  %v2435_v40 = vld [vmem:[%s2431_s14 + $0x18] sm:$0xff] }
 0x695   : > { %v2159_v63 = vmul.f32 1.442695, %v2158_v56 }
 0x696   : > { %v2164_v41 = vmul.f32 1.442695, %v2163_v42  ;;  %v2170_v3 = vmul.f32 1.442695, %v2169_v54 }
 0x697   : > { %3666 = vpow2.f32 %v2159_v63 }
 0x698   : > { %3668 = vpow2.f32 %v2164_v41 }
 0x699   : > { %3670 = vpow2.f32 %v2170_v3 }
 0x69a   : > { %3672 = vtanh.f32 %v2156_v5  ;;  %v2434_v5 = vld [vmem:[%s2431_s14 + $0x10] sm:$0xff] }
 0x6a1   : > { %v3667_v25 = vpop.eup %3666 }
 0x6a2   : > { %v3669_v27 = vpop.eup %3668  ;;  %v2161_v59 = vadd.f32 1.0, %v3667_v25 }
 0x6a3   : > { %v2166_v1 = vadd.f32 1.0, %v3669_v27  ;;  %v3671_v29 = vpop.eup %3670 }
 0x6a4   : > { %3674 = vrcp.f32 %v2161_v59  ;;  %v3673_v0 = vpop.eup %3672  ;;  %v2172_v19 = vadd.f32 1.0, %v3671_v29 }
 0x6a5   : > { %3676 = vrcp.f32 %v2166_v1 }
 0x6a6   : > { %3678 = vrcp.f32 %v2172_v19 }
 0x6ae   : > { %v3675_v44 = vpop.eup %3674 }
 0x6af   : > { %v3677_v6 = vpop.eup %3676  ;;  %v2175_v18 = vmul.f32 %v3675_v44, %v3673_v0 }
 0x6b0   : > { %v2174_v46 = vmul.f32 %v3677_v6, %v4726_v20  ;;  %v3679_v52 = vpop.eup %3678 }
 0x6b2   : > { %v4904_v61 = vadd.f32 %v2175_v18, %v2174_v46 }
 0x6b4   : > { %3680 = vtanh.f32 %v4904_v61 }
 0x6be   : > { %v3681_v53 = vpop.eup %3680 }
 0x6bf   : > { %v2178_v48 = vmul.f32 %v3681_v53, %v3679_v52 }
 0x6c1   : > { %2180 = vst [vmem:[%s2179_s16] sm:$0xff] %v2178_v48  ;;  %2321 = vmatmul.mubr.f32.vlgmr.msra.gmra.mrb[28].mxu0 %v2178_v48  ;;  %2392 = vmatmul.mubr.f32.vlgmr.msra.gmra.mrb[28].mxu1 %v2178_v48  ;;  %s2882_s16 = sshll.u32 %s3869_s22, 7  ;;  %s2671_s22 = scalar_lea.sflag [#allocation5], %s3955_s13 }
 0x6c2   : > { %3475 = vmatpush1.bf16.msra.mxu0 %v4744_v21  ;;  %3507 = vmatpush1.bf16.msra.mxu1 %v4749_v55  ;;  %s4972_s23 = scalar_lea.hbm %s5022_s4, %s2882_s16 }
 0x6c3   : > { %3477 = vmatprep.subr.bf16.mxu0 %v4757_v24  ;;  %3509 = vmatprep.subr.bf16.mxu1 %v4762_v17  ;;  %v2189_v24 = vld [vmem:[%s2187_s8 + $0x8] sm:$0xff] }
 0x6c4   : > { %2564 = vmatprep.mubr.f32.mxu0 %v3813_v2  ;;  %2635 = vmatprep.mubr.f32.mxu1 %v3813_v2  ;;  %v2188_v2 = vld [vmem:[%s2187_s8] sm:$0xff] }
 0x6c6   : > { %3479 = vmatpush1.bf16.msra.mxu0 %v4764_v23  ;;  %3511 = vmatpush1.bf16.msra.mxu1 %v4769_v47 }
 0x6c7   : > { %3481 = vmatprep.subr.bf16.mxu0 %v4777_v34  ;;  %3513 = vmatprep.subr.bf16.mxu1 %v4782_v22 }
 0x6ca   : > { %3483 = vmatpush1.bf16.msra.mxu0 %v4784_v58  ;;  %3515 = vmatpush1.bf16.msra.mxu1 %v4789_v14  ;;  %v2191_v14 = vld [vmem:[%s2187_s8 + $0x18] sm:$0xff] }
 0x6cb   : > { %3485 = vmatprep.subr.bf16.mxu0 %v4797_v32  ;;  %3517 = vmatprep.subr.bf16.mxu1 %v4802_v12 }
 0x6ce   : > { %3487 = vmatpush1.bf16.msra.mxu0 %v4804_v30  ;;  %3519 = vmatpush1.bf16.msra.mxu1 %v4809_v28  ;;  %v2190_v28 = vld [vmem:[%s2187_s8 + $0x10] sm:$0xff]  ;;  %s291_s8 = scalar_lea.vmem %s5023_s5, %s2856_s15 }
 0x6cf   : > { %3489 = vmatprep.subr.bf16.mxu0 %v4817_v57  ;;  %3521 = vmatprep.subr.bf16.mxu1 %v4822_v31 }
 0x6d2   : > { %3491 = vmatpush1.bf16.msra.mxu0 %v4824_v33  ;;  %3523 = vmatpush1.bf16.msra.mxu1 %v4829_v11 }
 0x6d3   : > { %3493 = vmatprep.subr.bf16.mxu0 %v4836_v35  ;;  %3525 = vmatprep.subr.bf16.mxu1 %v4842_v16 }
 0x6d6   : > { %3495 = vmatpush1.bf16.msra.mxu0 %v4844_v49  ;;  %3527 = vmatpush1.bf16.msra.mxu1 %v4850_v4 }
 0x6d7   : > { %3497 = vmatprep.subr.bf16.mxu0 %v4856_v37  ;;  %3529 = vmatprep.subr.bf16.mxu1 %v4858_v45 }
 0x6da   : > { %3499 = vmatpush1.bf16.msra.mxu0 %v4864_v39  ;;  %3531 = vmatpush1.bf16.msra.mxu1 %v4871_v7 }
 0x6db   : > { %3501 = vmatprep.subr.bf16.mxu0 %v4873_v8  ;;  %3533 = vmatprep.subr.bf16.mxu1 %v4879_v60 }
 0x6de   : > { %3503 = vmatpush1.bf16.msra.mxu0 %v4885_v38  ;;  %3535 = vmatpush1.bf16.msra.mxu1 %v4889_v43 }
 0x794   : > { %v2322_v20 = vpop.f32.mrb[28].mxu0  ;;  %v2393_v21 = vpop.f32.mrb[28].mxu1 }
 0x795   : > { %v2398_v55 = vadd.f32 %v2322_v20, %v2188_v2  ;;  %v2324_v17 = vpop.f32.mrb[29].mxu0  ;;  %v2395_v23 = vpop.f32.mrb[29].mxu1  ;;  %v2400_v31 = vadd.f32 %v2393_v21, %v2190_v28 }
 0x796   : > { %v2399_v47 = vadd.f32 %v2324_v17, %v2189_v24  ;;  %v2401_v12 = vadd.f32 %v2395_v23, %v2191_v14 }
 0x797   : > { %v2402_v34 = vsub.f32 0.0, %v2398_v55 }
 0x798   : > { %v2407_v22 = vsub.f32 0.0, %v2399_v47  ;;  %v2413_v30 = vsub.f32 0.0, %v2401_v12 }
 0x799   : > { %v2403_v58 = vmul.f32 1.442695, %v2402_v34 }
 0x79a   : > { %v2408_v32 = vmul.f32 1.442695, %v2407_v22  ;;  %v2414_v57 = vmul.f32 1.442695, %v2413_v30 }
 0x79b   : > { %3682 = vpow2.f32 %v2403_v58 }
 0x79c   : > { %3684 = vpow2.f32 %v2408_v32 }
 0x79d   : > { %3686 = vpow2.f32 %v2414_v57 }
 0x79e   : > { %3688 = vtanh.f32 %v2400_v31 }
 0x7a5   : > { %v3683_v33 = vpop.eup %3682 }
 0x7a6   : > { %v3685_v11 = vpop.eup %3684  ;;  %v2405_v35 = vadd.f32 1.0, %v3683_v33 }
 0x7a7   : > { %v2410_v16 = vadd.f32 1.0, %v3685_v11  ;;  %v3687_v49 = vpop.eup %3686 }
 0x7a8   : > { %3690 = vrcp.f32 %v2405_v35  ;;  %v3689_v4 = vpop.eup %3688  ;;  %v2416_v7 = vadd.f32 1.0, %v3687_v49 }
 0x7a9   : > { %3692 = vrcp.f32 %v2410_v16 }
 0x7aa   : > { %3694 = vrcp.f32 %v2416_v7 }
 0x7b2   : > { %v3691_v37 = vpop.eup %3690 }
 0x7b3   : > { %v3693_v45 = vpop.eup %3692  ;;  %v2419_v39 = vmul.f32 %v3691_v37, %v3689_v4 }
 0x7b4   : > { %v2418_v8 = vmul.f32 %v3693_v45, %v4904_v61  ;;  %v3695_v38 = vpop.eup %3694 }
 0x7b6   : > { %v2420_v60 = vadd.f32 %v2419_v39, %v2418_v8 }
 0x7b8   : > { %3696 = vtanh.f32 %v2420_v60 }
 0x7c2   : > { %v3697_v43 = vpop.eup %3696 }
 0x7c3   : > { %v2422_v9 = vmul.f32 %v3697_v43, %v3695_v38 }
 0x7c5   : > { %2424 = vst [vmem:[%s2423_s7] sm:$0xff] %v2422_v9  ;;  %2565 = vmatmul.mubr.f32.vlgmr.msra.gmra.mrb[30].mxu0 %v2422_v9  ;;  %2636 = vmatmul.mubr.f32.vlgmr.msra.gmra.mrb[30].mxu1 %v2422_v9 }
 0x898   : > { %v2566_v26 = vpop.f32.mrb[30].mxu0  ;;  %v2637_v51 = vpop.f32.mrb[30].mxu1 }
 0x899   : > { %v2642_v13 = vadd.f32 %v2566_v26, %v2432_v10  ;;  %v2568_v15 = vpop.f32.mrb[31].mxu0  ;;  %v2639_v56 = vpop.f32.mrb[31].mxu1  ;;  %v2644_v27 = vadd.f32 %v2637_v51, %v2434_v5 }
 0x89a   : > { %v2643_v42 = vadd.f32 %v2568_v15, %v2433_v50  ;;  %v2645_v62 = vadd.f32 %v2639_v56, %v2435_v40 }
 0x89b   : > { %v2646_v63 = vsub.f32 0.0, %v2642_v13 }
 0x89c   : > { %v2651_v36 = vsub.f32 0.0, %v2643_v42  ;;  %v2657_v3 = vsub.f32 0.0, %v2645_v62 }
 0x89d   : > { %v2647_v41 = vmul.f32 1.442695, %v2646_v63 }
 0x89e   : > { %v2652_v54 = vmul.f32 1.442695, %v2651_v36  ;;  %v2658_v25 = vmul.f32 1.442695, %v2657_v3 }
 0x89f   : > { %3698 = vpow2.f32 %v2647_v41 }
 0x8a0   : > { %3700 = vpow2.f32 %v2652_v54 }
 0x8a1   : > { %3702 = vpow2.f32 %v2658_v25 }
 0x8a2   : > { %3704 = vtanh.f32 %v2644_v27 }
 0x8a9   : > { %v3699_v59 = vpop.eup %3698 }
 0x8aa   : > { %v3701_v1 = vpop.eup %3700  ;;  %v2649_v29 = vadd.f32 1.0, %v3699_v59 }
 0x8ab   : > { %v2654_v0 = vadd.f32 1.0, %v3701_v1  ;;  %v3703_v44 = vpop.eup %3702 }
 0x8ac   : > { %3706 = vrcp.f32 %v2649_v29  ;;  %v3705_v6 = vpop.eup %3704  ;;  %v2660_v61 = vadd.f32 1.0, %v3703_v44 }
 0x8ad   : > { %3708 = vrcp.f32 %v2654_v0 }
 0x8ae   : > { %3710 = vrcp.f32 %v2660_v61 }
 0x8b6   : > { %v3707_v18 = vpop.eup %3706 }
 0x8b7   : > { %v3709_v19 = vpop.eup %3708  ;;  %v2663_v46 = vmul.f32 %v3707_v18, %v3705_v6 }
 0x8b8   : > { %v2662_v52 = vmul.f32 %v3709_v19, %v2420_v60  ;;  %v3711_v48 = vpop.eup %3710 }
 0x8ba   : > { %v2664_v53 = vadd.f32 %v2663_v46, %v2662_v52 }
 0x8bc   : > { %3712 = vtanh.f32 %v2664_v53 }
 0x8c6   : > { %v3713_v2 = vpop.eup %3712 }
 0x8c7   : > { %v2666_v20 = vmul.f32 %v3713_v2, %v3711_v48 }
 0x8c9   : > { %2668 = vst [vmem:[%s2667_s26] sm:$0xff] %v2666_v20  ;;  %2669 = vst [vmem:[%s291_s8] sm:$0xff] %v2666_v20 }
 0x8ca   : > { %3757 = shalt.err (!%p3754_p12)
}
 0x8cb   : > { %s3758_s14 = scalar_lea.hbm %s4972_s23, 1024  ;;  %s3762_s26 = scalar_lea.hbm %s5022_s4, 2048 }
 0x8cc   : > { %p3759_p13 = scmp.ne.s32.totalorder %s4972_s23, %s3758_s14  ;;  %p3763_p2 = scmp.lt.u32.totalorder %s4972_s23, %s5022_s4 }
 0x8cd   : > { %p3764_p7 = scmp.lt.u32.totalorder %s3762_s26, %s3758_s14  ;;  %p3766_p10 = scmp.lt.u32.totalorder %s3758_s14, %s4972_s23 }
 0x8ce   : > { %p3760_p3 = pnand %p3759_p13, %p5041_p4 }
 0x8cf   : > { %p3765_p5 = por %p3764_p7, %p3763_p2 }
 0x8d0   : > { %p3761_p8 = pneg %p3760_p3 }
 0x8d1   : > { %p3767_p9 = por %p3766_p10, %p3765_p5 }
 0x8d3   : > { %p3768_p0 = pnand %p3767_p9, %p3761_p8 }
 0x8d5   : > { %3771 = shalt.err (!%p3768_p0)
}
 0x8d6   : > { %s3815_s8 = smov 128   ;;  %s3816_s7 = smov 256  }
 0x8d7   : > { %s3817_s17 = smov 8  }
 0x8d8   : > { %3538 = dma.vmem_to_hbm [thread:$0]  (%p5041_p4), %s4974_s25, 1024, %s4972_s23, %s2671_s22, %s3815_s8, %s3816_s7, %s3817_s17  }
 0x8d9 PF: > { %s2705_s12 = sand.u32 1, %s3798_s18   ;;  %p5042_p1 = scmp.ne.s32.totalorder %s5029_s6, 0 }
 0x8da   : > { %p5043_p11 = scmp.ge.s32.totalorder %s3810_s21, 2  ;;  %s2706_s9 = scalar_lea.sflag [#allocation5], %s2705_s12 }
 0x8dc   : > { %p3545_p6 = pnand %p5043_p11, %p5042_p1 }
 0x8de   : > { %3793 = dma.done.wait (!%p3545_p6), %s2706_s9, 1024  }
 0x8df   : > { %3795 = vsyncadd (!%p3545_p6), %s2706_s9, 4294966272  ;;  %p19_p12 = scmp.ge.s32.totalorder %s3873_s24, 4   ;;  %s5044_s18 = smov %s3802_s19 }
 0x8e0   : > { %s5045_s19 = smov %s3806_s20  ;;  %s5046_s20 = smov %s3885_s27 }
 0x8e1   : > { %s5047_s21 = smov %s3873_s24  ;;  %21 = sbr.rel (!%p19_p12) target bundleno = 5 (0x5), region = 115 }
 0x8e8   :  { %2718 = vsyncpa [#allocation4], 1 }
 0x8e9   :  { %2720 = vsyncpa [#allocation4 + $0x1], 1 }
 0x8ea   :  { %2721 = vsyncpa [#allocation5], 1 }
 0x8eb   :  { %2723 = vsyncpa [#allocation5 + $0x1], 1 }

</bundles_post_ra>
